<compile_context>
chip_gen: v6e
topology: v6e:2x2x1
jax: 0.10.0
libtpu: 0.0.40
codegen_flags: <defaults>
</compile_context>

<pallas_src>
import functools

import jax
import jax.numpy as jnp
from jax.experimental import pallas as pl
from jax.experimental.pallas import tpu as pltpu

EPS = 1e-5
SLOPE = 0.01

ENC_CH = [(3, 64), (64, 128), (128, 256), (256, 512)]
DEC_CH = [(512, 256), (256, 128), (128, 64), (64, 3)]


def _round_up(x, m):
    return ((x + m - 1) // m) * m


# ----------------------------- Pallas kernels ------------------------------

def _gemm_kernel(a_ref, b_ref, bias_ref, scale_ref, shift_ref, *refs,
                 in_leaky, out_tanh, emit_stats, m_valid, tm, slope):
    if emit_stats:
        o_ref, sum_ref, ssq_ref, acc_ref = refs
    else:
        o_ref, acc_ref = refs
        sum_ref = ssq_ref = None

    # Grid indices: hoisted to kernel top level (never call pl.program_id inside
    # a pl.when body -- the cond branch cannot lower it).
    k = pl.program_id(2)
    k_last = pl.num_programs(2) - 1
    row_start = pl.program_id(0) * tm

    @pl.when(k == 0)
    def _():
        acc_ref[...] = jnp.zeros_like(acc_ref)

    # Folded BatchNorm(+LeakyReLU) of the producing layer, applied to this layer's
    # input tile in f32 before casting to bf16 for the MXU.
    a = a_ref[...].astype(jnp.float32)
    a = a * scale_ref[...] + shift_ref[...]
    if in_leaky:
        a = jnp.where(a > 0, a, slope * a)
    acc_ref[...] += jnp.dot(a.astype(jnp.bfloat16), b_ref[...],
                            preferred_element_type=jnp.float32)

    @pl.when(k == k_last)
    def _():
        y = acc_ref[...] + bias_ref[...]
        if out_tanh:
            y = jnp.tanh(y)
        o_ref[...] = y.astype(o_ref.dtype)
        if emit_stats:
            rows = jax.lax.broadcasted_iota(jnp.int32, y.shape, 0) + row_start
            valid = (rows < m_valid).astype(jnp.float32)   # mask padded M rows
            yv = y * valid
            s = jnp.sum(yv, axis=0, keepdims=True)          # (1, tn)
            q = jnp.sum(yv * yv, axis=0, keepdims=True)
            sum_ref[...] = jnp.broadcast_to(s, sum_ref.shape)
            ssq_ref[...] = jnp.broadcast_to(q, ssq_ref.shape)


def fused_gemm(a, w, bias, col_scale, col_shift, *,
               in_leaky, out_tanh, emit_stats, out_dtype):
    """y = act_prev_BN(a) @ w + bias (optional tanh); optionally emits column stats."""
    M, K = a.shape
    K2, N = w.shape
    assert K == K2
    tm = min(256, _round_up(M, 8))
    tn = min(256, _round_up(N, 128))
    tk = min(512, _round_up(K, 128))
    Mp, Np, Kp = _round_up(M, tm), _round_up(N, tn), _round_up(K, tk)
    nm, nn, nk = Mp // tm, Np // tn, Kp // tk

    a_p = jnp.pad(a.astype(jnp.bfloat16), ((0, Mp - M), (0, Kp - K)))
    w_p = jnp.pad(w.astype(jnp.bfloat16), ((0, Kp - K), (0, Np - N)))
    b_p = jnp.pad(bias.reshape(1, N).astype(jnp.float32), ((0, 0), (0, Np - N)))
    sc_p = jnp.pad(col_scale.reshape(1, K).astype(jnp.float32), ((0, 0), (0, Kp - K)))
    sh_p = jnp.pad(col_shift.reshape(1, K).astype(jnp.float32), ((0, 0), (0, Kp - K)))

    if emit_stats:
        out_shape = (jax.ShapeDtypeStruct((Mp, Np), out_dtype),
                     jax.ShapeDtypeStruct((nm * 8, Np), jnp.float32),
                     jax.ShapeDtypeStruct((nm * 8, Np), jnp.float32))
        out_specs = (pl.BlockSpec((tm, tn), lambda i, j, k: (i, j)),
                     pl.BlockSpec((8, tn), lambda i, j, k: (i, j)),
                     pl.BlockSpec((8, tn), lambda i, j, k: (i, j)))
    else:
        out_shape = jax.ShapeDtypeStruct((Mp, Np), out_dtype)
        out_specs = pl.BlockSpec((tm, tn), lambda i, j, k: (i, j))

    kernel = functools.partial(
        _gemm_kernel, in_leaky=in_leaky, out_tanh=out_tanh,
        emit_stats=emit_stats, m_valid=M, tm=tm, slope=SLOPE)

    res = pl.pallas_call(
        kernel,
        out_shape=out_shape,
        grid=(nm, nn, nk),
        in_specs=[
            pl.BlockSpec((tm, tk), lambda i, j, k: (i, k)),
            pl.BlockSpec((tk, tn), lambda i, j, k: (k, j)),
            pl.BlockSpec((1, tn), lambda i, j, k: (0, j)),
            pl.BlockSpec((1, tk), lambda i, j, k: (0, k)),
            pl.BlockSpec((1, tk), lambda i, j, k: (0, k)),
        ],
        out_specs=out_specs,
        scratch_shapes=[pltpu.VMEM((tm, tn), jnp.float32)],
        compiler_params=pltpu.CompilerParams(
            dimension_semantics=("parallel", "parallel", "arbitrary")),
    )(a_p, w_p, b_p, sc_p, sh_p)

    if emit_stats:
        y_p, s_p, q_p = res
        col_sum = s_p[::8, :N].sum(axis=0)
        col_ssq = q_p[::8, :N].sum(axis=0)
        return y_p[:M, :N], col_sum, col_ssq
    return res[:M, :N], None, None


def _affine_kernel(x_ref, scale_ref, shift_ref, o_ref, *, leaky, slope):
    y = x_ref[...].astype(jnp.float32) * scale_ref[...] + shift_ref[...]
    if leaky:
        y = jnp.where(y > 0, y, slope * y)
    o_ref[...] = y.astype(o_ref.dtype)


def pallas_affine_act(x, scale, shift, *, leaky, out_dtype):
    """Per-column y = x*scale + shift (+LeakyReLU), tiled over columns."""
    M, F = x.shape
    Mp = _round_up(M, 8)
    tf = min(2048, _round_up(F, 128))
    Fp = _round_up(F, tf)
    x_p = jnp.pad(x, ((0, Mp - M), (0, Fp - F)))
    s_p = jnp.pad(scale.reshape(1, F).astype(jnp.float32), ((0, 0), (0, Fp - F)))
    t_p = jnp.pad(shift.reshape(1, F).astype(jnp.float32), ((0, 0), (0, Fp - F)))
    out = pl.pallas_call(
        functools.partial(_affine_kernel, leaky=leaky, slope=SLOPE),
        out_shape=jax.ShapeDtypeStruct((Mp, Fp), out_dtype),
        grid=(Fp // tf,),
        in_specs=[pl.BlockSpec((Mp, tf), lambda j: (0, j)),
                  pl.BlockSpec((1, tf), lambda j: (0, j)),
                  pl.BlockSpec((1, tf), lambda j: (0, j))],
        out_specs=pl.BlockSpec((Mp, tf), lambda j: (0, j)),
        compiler_params=pltpu.CompilerParams(dimension_semantics=("parallel",)),
    )(x_p, s_p, t_p)
    return out[:M, :F]


# ------------------------------- JAX glue ----------------------------------

def bn_fold(col_sum, col_ssq, count, gamma, beta):
    """Training-mode BN (biased var) as per-column scale/shift, all f32."""
    mean = col_sum / count
    var = jnp.maximum(col_ssq / count - mean * mean, 0.0)
    scale = gamma * jax.lax.rsqrt(var + EPS)
    shift = beta - mean * scale
    return scale, shift


def conv_w_to_mat(w):
    # PyTorch Conv2d weight (Cout, Cin, kh, kw) -> (kh*kw*Cin, Cout) matching im2col order.
    cout, cin, kh, kw = w.shape
    return jnp.transpose(w, (2, 3, 1, 0)).reshape(kh * kw * cin, cout)


def im2col(xpad, k, stride):
    # xpad: NHWC, already padded. Columns ordered (kh, kw, cin).
    B, H, W, C = xpad.shape
    Ho = (H - k) // stride + 1
    Wo = (W - k) // stride + 1
    cols = []
    for di in range(k):
        for dj in range(k):
            cols.append(xpad[:, di:di + stride * (Ho - 1) + 1:stride,
                                dj:dj + stride * (Wo - 1) + 1:stride, :])
    p = jnp.stack(cols, axis=3)                       # (B, Ho, Wo, k*k, C)
    return p.reshape(B * Ho * Wo, k * k * C), Ho, Wo


def deconv_parity_slabs(x):
    # Sub-pixel decomposition of ConvTranspose2d(k=4, s=2, p=1): one 2x2 stride-1
    # patch slab per output parity (rh, rw). Columns ordered (dh, dw, cin).
    B, H, W, C = x.shape
    xp = jnp.pad(x, ((0, 0), (1, 1), (1, 1), (0, 0)))
    slabs = []
    for rh in (0, 1):
        for rw in (0, 1):
            win = xp[:, rh:rh + H + 1, rw:rw + W + 1, :]
            cols = []
            for dh in (0, 1):
                for dw in (0, 1):
                    cols.append(win[:, dh:dh + H, dw:dw + W, :])
            p = jnp.stack(cols, axis=3)               # (B, H, W, 4, C)
            slabs.append(p.reshape(B * H * W, 4 * C))
    return slabs                                      # order (0,0),(0,1),(1,0),(1,1)


def deconv_parity_weight(w, rh, rw):
    # PyTorch ConvTranspose2d weight (Cin, Cout, 4, 4) -> (4*Cin, Cout) for parity (rh, rw).
    mats = []
    for dh in (0, 1):
        kh = (3 - 2 * dh) if rh == 0 else (2 - 2 * dh)
        for dw in (0, 1):
            kw = (3 - 2 * dw) if rw == 0 else (2 - 2 * dw)
            mats.append(w[:, :, kh, kw])              # (Cin, Cout)
    return jnp.concatenate(mats, axis=0)


def interleave_parities(ys, B, H, W, C):
    y = jnp.stack([t.reshape(B, H, W, C) for t in ys], axis=0)  # (4, B, H, W, C)
    y = y.reshape(2, 2, B, H, W, C)                             # (rh, rw, B, H, W, C)
    y = jnp.transpose(y, (2, 3, 0, 4, 1, 5))                    # (B, H, rh, W, rw, C)
    return y.reshape(B, 2 * H, 2 * W, C)


# ----------------------------- parameters ----------------------------------

def init_params(key, latent_dim, spatial):
    hf = spatial // 16                     # four stride-2 halvings
    flat_dim = 512 * hf * hf
    keys = iter(jax.random.split(key, 32))

    def nrm(shape, scale):
        return scale * jax.random.normal(next(keys), shape, jnp.float32)

    p = {}
    for i, (cin, cout) in enumerate(ENC_CH):
        p[f"enc_conv{i}_w"] = nrm((cout, cin, 4, 4), 1.0 / jnp.sqrt(cin * 16.0))
        p[f"enc_conv{i}_b"] = nrm((cout,), 0.01)
        p[f"enc_bn{i}_g"] = jnp.ones((cout,), jnp.float32)
        p[f"enc_bn{i}_b"] = jnp.zeros((cout,), jnp.float32)
    # NOTE: FC weight rows/cols are stored in NHWC-flatten (h, w, c) order so the
    # bottleneck avoids activation transposes; a PyTorch state_dict would be permuted here.
    p["enc_fc_w"] = nrm((flat_dim, latent_dim), 1.0 / jnp.sqrt(float(flat_dim)))
    p["enc_fc_b"] = nrm((latent_dim,), 0.01)
    p["enc_bnfc_g"] = jnp.ones((latent_dim,), jnp.float32)
    p["enc_bnfc_b"] = jnp.zeros((latent_dim,), jnp.float32)

    p["dec_fc_w"] = nrm((latent_dim, flat_dim), 1.0 / jnp.sqrt(float(latent_dim)))
    p["dec_fc_b"] = nrm((flat_dim,), 0.01)
    p["dec_bnfc_g"] = jnp.ones((flat_dim,), jnp.float32)
    p["dec_bnfc_b"] = jnp.zeros((flat_dim,), jnp.float32)
    for i, (cin, cout) in enumerate(DEC_CH):
        p[f"dec_deconv{i}_w"] = nrm((cin, cout, 4, 4), 1.0 / jnp.sqrt(cin * 16.0))
        p[f"dec_deconv{i}_b"] = nrm((cout,), 0.01)
        if i < 3:
            p[f"dec_bn{i}_g"] = jnp.ones((cout,), jnp.float32)
            p[f"dec_bn{i}_b"] = jnp.zeros((cout,), jnp.float32)
    return p


# ------------------------------ forward pass --------------------------------

def autoencoder_forward(params, x_nchw):
    B = x_nchw.shape[0]
    x = jnp.transpose(x_nchw, (0, 2, 3, 1)).astype(jnp.bfloat16)      # -> NHWC

    # ---- encoder: 4 x [Conv2d(k4,s2,p1) -> BN2d -> LeakyReLU] (BN folded forward) ----
    prev = None          # (col_sum, col_ssq, count, gamma, beta) of producing layer
    for i in range(4):
        _, H, W, C = x.shape
        xp = jnp.pad(x, ((0, 0), (1, 1), (1, 1), (0, 0)))
        slab, Ho, Wo = im2col(xp, 4, 2)
        if prev is None:
            sc = jnp.ones((16 * C,), jnp.float32)
            sh = jnp.zeros((16 * C,), jnp.float32)
            lk = False
        else:
            s, t = bn_fold(*prev)
            sc, sh, lk = jnp.tile(s, 16), jnp.tile(t, 16), True
        y, cs, cq = fused_gemm(slab, conv_w_to_mat(params[f"enc_conv{i}_w"]),
                               params[f"enc_conv{i}_b"], sc, sh,
                               in_leaky=lk, out_tanh=False, emit_stats=True,
                               out_dtype=jnp.bfloat16)
        prev = (cs, cq, B * Ho * Wo, params[f"enc_bn{i}_g"], params[f"enc_bn{i}_b"])
        x = y.reshape(B, Ho, Wo, -1)

    # ---- bottleneck: Flatten -> Linear -> BN1d(latent) (encoder output) ----
    _, hf, wf, Cf = x.shape
    flat = x.reshape(B, hf * wf * Cf)                 # NHWC flatten; weights match layout
    s, t = bn_fold(*prev)
    z_raw, zs, zq = fused_gemm(flat, params["enc_fc_w"], params["enc_fc_b"],
                               jnp.tile(s, hf * wf), jnp.tile(t, hf * wf),
                               in_leaky=True, out_tanh=False, emit_stats=True,
                               out_dtype=jnp.bfloat16)

    # ---- decoder: Linear (latent BN folded, no LeakyReLU) -> BN1d(flat) -> LeakyReLU ----
    s, t = bn_fold(zs, zq, B, params["enc_bnfc_g"], params["enc_bnfc_b"])
    h_raw, hs, hq = fused_gemm(z_raw, params["dec_fc_w"], params["dec_fc_b"], s, t,
                               in_leaky=False, out_tanh=False, emit_stats=True,
                               out_dtype=jnp.bfloat16)
    s, t = bn_fold(hs, hq, B, params["dec_bnfc_g"], params["dec_bnfc_b"])
    h = pallas_affine_act(h_raw, s, t, leaky=True, out_dtype=jnp.bfloat16)
    x = h.reshape(B, hf, wf, Cf)                      # Unflatten (NHWC layout)

    # ---- decoder: 4 x ConvTranspose2d(k4,s2,p1) via sub-pixel parity GEMMs ----
    prev = None
    for i in range(4):
        _, H, W, C = x.shape
        slabs = deconv_parity_slabs(x)
        if prev is None:
            sc = jnp.ones((4 * C,), jnp.float32)
            sh = jnp.zeros((4 * C,), jnp.float32)
            lk = False
        else:
            s, t = bn_fold(*prev)
            sc, sh, lk = jnp.tile(s, 4), jnp.tile(t, 4), True
        last = (i == 3)
        cout = DEC_CH[i][1]
        ys, tot_s, tot_q = [], 0.0, 0.0
        for p_idx, (rh, rw) in enumerate(((0, 0), (0, 1), (1, 0), (1, 1))):
            wmat = deconv_parity_weight(params[f"dec_deconv{i}_w"], rh, rw)
            y, cs, cq = fused_gemm(slabs[p_idx], wmat, params[f"dec_deconv{i}_b"],
                                   sc, sh, in_leaky=lk, out_tanh=last,
                                   emit_stats=not last,
                                   out_dtype=jnp.float32 if last else jnp.bfloat16)
            ys.append(y)
            if not last:
                tot_s, tot_q = tot_s + cs, tot_q + cq
        x = interleave_parities(ys, B, H, W, cout)
        if not last:
            prev = (tot_s, tot_q, 4 * B * H * W,
                    params[f"dec_bn{i}_g"], params[f"dec_bn{i}_b"])

    return jnp.transpose(x, (0, 3, 1, 2))             # -> NCHW, float32


# --------------------------------- main -------------------------------------

if __name__ == "__main__":
    key = jax.random.PRNGKey(0)
    pkey, xkey = jax.random.split(key)

    latent_dim = 32
    B, H, W = 2, 32, 32                               # small stand-in for (B, 3, 256, 256)
    params = init_params(pkey, latent_dim=latent_dim, spatial=H)
    x = jax.random.normal(xkey, (B, 3, H, W), jnp.float32)

    fwd = jax.jit(autoencoder_forward)
    out = fwd(params, x)
    jax.block_until_ready(out)
    assert out.shape == (B, 3, H, W), out.shape
    assert bool(jnp.all(jnp.isfinite(out)))
    print("KERNEL_OK")
</pallas_src>

<mosaic_0001>
module attributes {stable_mosaic.version = 11 : i64} {
  func.func @_gemm_kernel(%arg0: i32, %arg1: i32, %arg2: i32, %arg3: memref<256x128xbf16, #tpu.memory_space<vmem>>, %arg4: memref<128x128xbf16, #tpu.memory_space<vmem>>, %arg5: memref<1x128xf32, #tpu.memory_space<vmem>>, %arg6: memref<1x128xf32, #tpu.memory_space<vmem>>, %arg7: memref<1x128xf32, #tpu.memory_space<vmem>>, %arg8: memref<256x128xbf16, #tpu.memory_space<vmem>>, %arg9: memref<8x128xf32, #tpu.memory_space<vmem>>, %arg10: memref<8x128xf32, #tpu.memory_space<vmem>>, %arg11: memref<256x128xf32, #tpu.memory_space<vmem>>) attributes {dimension_semantics = [#tpu.dimension_semantics<parallel>, #tpu.dimension_semantics<parallel>, #tpu.dimension_semantics<arbitrary>], iteration_bounds = array<i64: 2, 1, 1>, scalar_prefetch = 0 : i64, scratch_operands = 1 : i64, tpu.core_type = #tpu.core_type<tc>, window_params = [{transform_indices = @transform_0, window_bounds = array<i64: 256, 128>}, {transform_indices = @transform_1, window_bounds = array<i64: 128, 128>}, {transform_indices = @transform_2, window_bounds = array<i64: 1, 128>}, {transform_indices = @transform_3, window_bounds = array<i64: 1, 128>}, {transform_indices = @transform_4, window_bounds = array<i64: 1, 128>}, {transform_indices = @transform_5, window_bounds = array<i64: 256, 128>}, {transform_indices = @transform_6, window_bounds = array<i64: 8, 128>}, {transform_indices = @transform_7, window_bounds = array<i64: 8, 128>}]} {
    %c256_i32 = arith.constant 256 : i32
    %0 = arith.muli %arg0, %c256_i32 : i32
    %c0_i32 = arith.constant 0 : i32
    %1 = arith.cmpi eq, %arg2, %c0_i32 : i32
    %2 = arith.extui %1 : i1 to i32
    %c0_i32_0 = arith.constant 0 : i32
    %3 = arith.cmpi ne, %2, %c0_i32_0 : i32
    scf.if %3 {
      %cst_14 = arith.constant 0.000000e+00 : f32
      %21 = vector.broadcast %cst_14 : f32 to vector<256x128xf32>
      %c0_15 = arith.constant 0 : index
      %c0_16 = arith.constant 0 : index
      %22 = vector.load %arg11[%c0_15, %c0_16] : memref<256x128xf32, #tpu.memory_space<vmem>>, vector<256x128xf32>
      tpu.vector_store %arg11[%c0_15, %c0_16], %21 {strides = array<i32>} : memref<256x128xf32, #tpu.memory_space<vmem>>, vector<256x128xf32>,
    } else {
    }
    %c0 = arith.constant 0 : index
    %c0_1 = arith.constant 0 : index
    %4 = vector.load %arg3[%c0, %c0_1] : memref<256x128xbf16, #tpu.memory_space<vmem>>, vector<256x128xbf16>
    %5 = arith.extf %4 : vector<256x128xbf16> to vector<256x128xf32>
    %c0_2 = arith.constant 0 : index
    %c0_3 = arith.constant 0 : index
    %6 = vector.load %arg6[%c0_2, %c0_3] : memref<1x128xf32, #tpu.memory_space<vmem>>, vector<1x128xf32>
    %7 = vector.broadcast %6 : vector<1x128xf32> to vector<256x128xf32>
    %8 = arith.mulf %5, %7 : vector<256x128xf32>
    %c0_4 = arith.constant 0 : index
    %c0_5 = arith.constant 0 : index
    %9 = vector.load %arg7[%c0_4, %c0_5] : memref<1x128xf32, #tpu.memory_space<vmem>>, vector<1x128xf32>
    %10 = vector.broadcast %9 : vector<1x128xf32> to vector<256x128xf32>
    %11 = arith.addf %8, %10 : vector<256x128xf32>
    %c0_6 = arith.constant 0 : index
    %c0_7 = arith.constant 0 : index
    %12 = vector.load %arg11[%c0_6, %c0_7] : memref<256x128xf32, #tpu.memory_space<vmem>>, vector<256x128xf32>
    %13 = arith.truncf %11 : vector<256x128xf32> to vector<256x128xbf16>
    %c0_8 = arith.constant 0 : index
    %c0_9 = arith.constant 0 : index
    %14 = vector.load %arg4[%c0_8, %c0_9] : memref<128x128xbf16, #tpu.memory_space<vmem>>, vector<128x128xbf16>
    %cst = arith.constant dense<0.000000e+00> : vector<256x128xf32>
    %15 = tpu.matmul %13, %14, %cst {dimension_numbers = #tpu.dot_dimension_numbers<[1], [0], [0], [1], [0, 0, 1, 1], [], []>} : vector<256x128xbf16>, vector<128x128xbf16>, vector<256x128xf32> -> vector<256x128xf32>
    %16 = arith.addf %12, %15 : vector<256x128xf32>
    %c0_10 = arith.constant 0 : index
    %c0_11 = arith.constant 0 : index
    %17 = vector.load %arg11[%c0_10, %c0_11] : memref<256x128xf32, #tpu.memory_space<vmem>>, vector<256x128xf32>
    tpu.vector_store %arg11[%c0_10, %c0_11], %16 {strides = array<i32>} : memref<256x128xf32, #tpu.memory_space<vmem>>, vector<256x128xf32>,
    %c0_i32_12 = arith.constant 0 : i32
    %18 = arith.cmpi eq, %arg2, %c0_i32_12 : i32
    %19 = arith.extui %18 : i1 to i32
    %c0_i32_13 = arith.constant 0 : i32
    %20 = arith.cmpi ne, %19, %c0_i32_13 : i32
    scf.if %20 {
      %c0_14 = arith.constant 0 : index
      %c0_15 = arith.constant 0 : index
      %21 = vector.load %arg11[%c0_14, %c0_15] : memref<256x128xf32, #tpu.memory_space<vmem>>, vector<256x128xf32>
      %c0_16 = arith.constant 0 : index
      %c0_17 = arith.constant 0 : index
      %22 = vector.load %arg5[%c0_16, %c0_17] : memref<1x128xf32, #tpu.memory_space<vmem>>, vector<1x128xf32>
      %23 = vector.broadcast %22 : vector<1x128xf32> to vector<256x128xf32>
      %24 = arith.addf %21, %23 : vector<256x128xf32>
      %25 = arith.truncf %24 : vector<256x128xf32> to vector<256x128xbf16>
      %c0_18 = arith.constant 0 : index
      %c0_19 = arith.constant 0 : index
      %26 = vector.load %arg8[%c0_18, %c0_19] : memref<256x128xbf16, #tpu.memory_space<vmem>>, vector<256x128xbf16>
      tpu.vector_store %arg8[%c0_18, %c0_19], %25 {strides = array<i32>} : memref<256x128xbf16, #tpu.memory_space<vmem>>, vector<256x128xbf16>,
      %27 = tpu.iota {dimensions = array<i32: 0>} : vector<256x128xi32>
      %28 = vector.broadcast %0 : i32 to vector<256x128xi32>
      %29 = arith.addi %27, %28 : vector<256x128xi32>
      %c512_i32 = arith.constant 512 : i32
      %30 = vector.broadcast %c512_i32 : i32 to vector<256x128xi32>
      %31 = arith.cmpi slt, %29, %30 : vector<256x128xi32>
      %32 = arith.extui %31 : vector<256x128xi1> to vector<256x128xi32>
      %33 = arith.sitofp %32 : vector<256x128xi32> to vector<256x128xf32>
      %34 = arith.mulf %24, %33 : vector<256x128xf32>
      %cst_20 = arith.constant dense<0.000000e+00> : vector<128xf32>
      %35 = vector.multi_reduction <add>, %34, %cst_20 [0] : vector<256x128xf32> to vector<128xf32>
      %36 = vector.shape_cast %35 : vector<128xf32> to vector<1x128xf32>
      %37 = arith.mulf %34, %34 : vector<256x128xf32>
      %cst_21 = arith.constant dense<0.000000e+00> : vector<128xf32>
      %38 = vector.multi_reduction <add>, %37, %cst_21 [0] : vector<256x128xf32> to vector<128xf32>
      %39 = vector.shape_cast %38 : vector<128xf32> to vector<1x128xf32>
      %40 = vector.shape_cast %36 : vector<1x128xf32> to vector<1x128xf32>
      %41 = vector.broadcast %40 : vector<1x128xf32> to vector<8x128xf32>
      %c0_22 = arith.constant 0 : index
      %c0_23 = arith.constant 0 : index
      %42 = vector.load %arg9[%c0_22, %c0_23] : memref<8x128xf32, #tpu.memory_space<vmem>>, vector<8x128xf32>
      tpu.vector_store %arg9[%c0_22, %c0_23], %41 {strides = array<i32>} : memref<8x128xf32, #tpu.memory_space<vmem>>, vector<8x128xf32>,
      %43 = vector.shape_cast %39 : vector<1x128xf32> to vector<1x128xf32>
      %44 = vector.broadcast %43 : vector<1x128xf32> to vector<8x128xf32>
      %c0_24 = arith.constant 0 : index
      %c0_25 = arith.constant 0 : index
      %45 = vector.load %arg10[%c0_24, %c0_25] : memref<8x128xf32, #tpu.memory_space<vmem>>, vector<8x128xf32>
      tpu.vector_store %arg10[%c0_24, %c0_25], %44 {strides = array<i32>} : memref<8x128xf32, #tpu.memory_space<vmem>>, vector<8x128xf32>,
    } else {
    }
    return
  }
  func.func @transform_0(%arg0: i32, %arg1: i32, %arg2: i32) -> (i32, i32) {
    %c0_i32 = arith.constant 0 : i32
    return %arg0, %arg2 : i32, i32
  }
  func.func @transform_1(%arg0: i32, %arg1: i32, %arg2: i32) -> (i32, i32) {
    %c0_i32 = arith.constant 0 : i32
    return %arg2, %arg1 : i32, i32
  }
  func.func @transform_2(%arg0: i32, %arg1: i32, %arg2: i32) -> (i32, i32) {
    %c0_i32 = arith.constant 0 : i32
    %c0_i32_0 = arith.constant 0 : i32
    return %c0_i32, %arg1 : i32, i32
  }
  func.func @transform_3(%arg0: i32, %arg1: i32, %arg2: i32) -> (i32, i32) {
    %c0_i32 = arith.constant 0 : i32
    %c0_i32_0 = arith.constant 0 : i32
    return %c0_i32, %arg2 : i32, i32
  }
  func.func @transform_4(%arg0: i32, %arg1: i32, %arg2: i32) -> (i32, i32) {
    %c0_i32 = arith.constant 0 : i32
    %c0_i32_0 = arith.constant 0 : i32
    return %c0_i32, %arg2 : i32, i32
  }
  func.func @transform_5(%arg0: i32, %arg1: i32, %arg2: i32) -> (i32, i32) {
    %c0_i32 = arith.constant 0 : i32
    return %arg0, %arg1 : i32, i32
  }
  func.func @transform_6(%arg0: i32, %arg1: i32, %arg2: i32) -> (i32, i32) {
    %c0_i32 = arith.constant 0 : i32
    return %arg0, %arg1 : i32, i32
  }
  func.func @transform_7(%arg0: i32, %arg1: i32, %arg2: i32) -> (i32, i32) {
    %c0_i32 = arith.constant 0 : i32
    return %arg0, %arg1 : i32, i32
  }
}

module attributes {stable_mosaic.version = 11 : i64} {
  func.func @_gemm_kernel(%arg0: i32, %arg1: i32, %arg2: i32, %arg3: memref<128x512xbf16, #tpu.memory_space<vmem>>, %arg4: memref<512x128xbf16, #tpu.memory_space<vmem>>, %arg5: memref<1x128xf32, #tpu.memory_space<vmem>>, %arg6: memref<1x512xf32, #tpu.memory_space<vmem>>, %arg7: memref<1x512xf32, #tpu.memory_space<vmem>>, %arg8: memref<128x128xbf16, #tpu.memory_space<vmem>>, %arg9: memref<8x128xf32, #tpu.memory_space<vmem>>, %arg10: memref<8x128xf32, #tpu.memory_space<vmem>>, %arg11: memref<128x128xf32, #tpu.memory_space<vmem>>) attributes {dimension_semantics = [#tpu.dimension_semantics<parallel>, #tpu.dimension_semantics<parallel>, #tpu.dimension_semantics<arbitrary>], iteration_bounds = array<i64: 1, 1, 2>, scalar_prefetch = 0 : i64, scratch_operands = 1 : i64, tpu.core_type = #tpu.core_type<tc>, window_params = [{transform_indices = @transform_0, window_bounds = array<i64: 128, 512>}, {transform_indices = @transform_1, window_bounds = array<i64: 512, 128>}, {transform_indices = @transform_2, window_bounds = array<i64: 1, 128>}, {transform_indices = @transform_3, window_bounds = array<i64: 1, 512>}, {transform_indices = @transform_4, window_bounds = array<i64: 1, 512>}, {transform_indices = @transform_5, window_bounds = array<i64: 128, 128>}, {transform_indices = @transform_6, window_bounds = array<i64: 8, 128>}, {transform_indices = @transform_7, window_bounds = array<i64: 8, 128>}]} {
    %c128_i32 = arith.constant 128 : i32
    %0 = arith.muli %arg0, %c128_i32 : i32
    %c0_i32 = arith.constant 0 : i32
    %1 = arith.cmpi eq, %arg2, %c0_i32 : i32
    %2 = arith.extui %1 : i1 to i32
    %c0_i32_0 = arith.constant 0 : i32
    %3 = arith.cmpi ne, %2, %c0_i32_0 : i32
    scf.if %3 {
      %cst_15 = arith.constant 0.000000e+00 : f32
      %26 = vector.broadcast %cst_15 : f32 to vector<128x128xf32>
      %c0_16 = arith.constant 0 : index
      %c0_17 = arith.constant 0 : index
      %27 = vector.load %arg11[%c0_16, %c0_17] : memref<128x128xf32, #tpu.memory_space<vmem>>, vector<128x128xf32>
      tpu.vector_store %arg11[%c0_16, %c0_17], %26 {strides = array<i32>} : memref<128x128xf32, #tpu.memory_space<vmem>>, vector<128x128xf32>,
    } else {
    }
    %c0 = arith.constant 0 : index
    %c0_1 = arith.constant 0 : index
    %4 = vector.load %arg3[%c0, %c0_1] : memref<128x512xbf16, #tpu.memory_space<vmem>>, vector<128x512xbf16>
    %5 = arith.extf %4 : vector<128x512xbf16> to vector<128x512xf32>
    %c0_2 = arith.constant 0 : index
    %c0_3 = arith.constant 0 : index
    %6 = vector.load %arg6[%c0_2, %c0_3] : memref<1x512xf32, #tpu.memory_space<vmem>>, vector<1x512xf32>
    %7 = vector.broadcast %6 : vector<1x512xf32> to vector<128x512xf32>
    %8 = arith.mulf %5, %7 : vector<128x512xf32>
    %c0_4 = arith.constant 0 : index
    %c0_5 = arith.constant 0 : index
    %9 = vector.load %arg7[%c0_4, %c0_5] : memref<1x512xf32, #tpu.memory_space<vmem>>, vector<1x512xf32>
    %10 = vector.broadcast %9 : vector<1x512xf32> to vector<128x512xf32>
    %11 = arith.addf %8, %10 : vector<128x512xf32>
    %cst = arith.constant 0.000000e+00 : f32
    %12 = vector.broadcast %cst : f32 to vector<128x512xf32>
    %13 = arith.cmpf ogt, %11, %12 : vector<128x512xf32>
    %cst_6 = arith.constant 0.00999999977 : f32
    %14 = vector.broadcast %cst_6 : f32 to vector<128x512xf32>
    %15 = arith.mulf %14, %11 : vector<128x512xf32>
    %16 = arith.select %13, %11, %15 : vector<128x512xi1>, vector<128x512xf32>
    %c0_7 = arith.constant 0 : index
    %c0_8 = arith.constant 0 : index
    %17 = vector.load %arg11[%c0_7, %c0_8] : memref<128x128xf32, #tpu.memory_space<vmem>>, vector<128x128xf32>
    %18 = arith.truncf %16 : vector<128x512xf32> to vector<128x512xbf16>
    %c0_9 = arith.constant 0 : index
    %c0_10 = arith.constant 0 : index
    %19 = vector.load %arg4[%c0_9, %c0_10] : memref<512x128xbf16, #tpu.memory_space<vmem>>, vector<512x128xbf16>
    %cst_11 = arith.constant dense<0.000000e+00> : vector<128x128xf32>
    %20 = tpu.matmul %18, %19, %cst_11 {dimension_numbers = #tpu.dot_dimension_numbers<[1], [0], [0], [1], [0, 0, 1, 1], [], []>} : vector<128x512xbf16>, vector<512x128xbf16>, vector<128x128xf32> -> vector<128x128xf32>
    %21 = arith.addf %17, %20 : vector<128x128xf32>
    %c0_12 = arith.constant 0 : index
    %c0_13 = arith.constant 0 : index
    %22 = vector.load %arg11[%c0_12, %c0_13] : memref<128x128xf32, #tpu.memory_space<vmem>>, vector<128x128xf32>
    tpu.vector_store %arg11[%c0_12, %c0_13], %21 {strides = array<i32>} : memref<128x128xf32, #tpu.memory_space<vmem>>, vector<128x128xf32>,
    %c1_i32 = arith.constant 1 : i32
    %23 = arith.cmpi eq, %arg2, %c1_i32 : i32
    %24 = arith.extui %23 : i1 to i32
    %c0_i32_14 = arith.constant 0 : i32
    %25 = arith.cmpi ne, %24, %c0_i32_14 : i32
    scf.if %25 {
      %c0_15 = arith.constant 0 : index
      %c0_16 = arith.constant 0 : index
      %26 = vector.load %arg11[%c0_15, %c0_16] : memref<128x128xf32, #tpu.memory_space<vmem>>, vector<128x128xf32>
      %c0_17 = arith.constant 0 : index
      %c0_18 = arith.constant 0 : index
      %27 = vector.load %arg5[%c0_17, %c0_18] : memref<1x128xf32, #tpu.memory_space<vmem>>, vector<1x128xf32>
      %28 = vector.broadcast %27 : vector<1x128xf32> to vector<128x128xf32>
      %29 = arith.addf %26, %28 : vector<128x128xf32>
      %30 = arith.truncf %29 : vector<128x128xf32> to vector<128x128xbf16>
      %c0_19 = arith.constant 0 : index
      %c0_20 = arith.constant 0 : index
      %31 = vector.load %arg8[%c0_19, %c0_20] : memref<128x128xbf16, #tpu.memory_space<vmem>>, vector<128x128xbf16>
      tpu.vector_store %arg8[%c0_19, %c0_20], %30 {strides = array<i32>} : memref<128x128xbf16, #tpu.memory_space<vmem>>, vector<128x128xbf16>,
      %32 = tpu.iota {dimensions = array<i32: 0>} : vector<128x128xi32>
      %33 = vector.broadcast %0 : i32 to vector<128x128xi32>
      %34 = arith.addi %32, %33 : vector<128x128xi32>
      %c128_i32_21 = arith.constant 128 : i32
      %35 = vector.broadcast %c128_i32_21 : i32 to vector<128x128xi32>
      %36 = arith.cmpi slt, %34, %35 : vector<128x128xi32>
      %37 = arith.extui %36 : vector<128x128xi1> to vector<128x128xi32>
      %38 = arith.sitofp %37 : vector<128x128xi32> to vector<128x128xf32>
      %39 = arith.mulf %29, %38 : vector<128x128xf32>
      %cst_22 = arith.constant dense<0.000000e+00> : vector<128xf32>
      %40 = vector.multi_reduction <add>, %39, %cst_22 [0] : vector<128x128xf32> to vector<128xf32>
      %41 = vector.shape_cast %40 : vector<128xf32> to vector<1x128xf32>
      %42 = arith.mulf %39, %39 : vector<128x128xf32>
      %cst_23 = arith.constant dense<0.000000e+00> : vector<128xf32>
      %43 = vector.multi_reduction <add>, %42, %cst_23 [0] : vector<128x128xf32> to vector<128xf32>
      %44 = vector.shape_cast %43 : vector<128xf32> to vector<1x128xf32>
      %45 = vector.shape_cast %41 : vector<1x128xf32> to vector<1x128xf32>
      %46 = vector.broadcast %45 : vector<1x128xf32> to vector<8x128xf32>
      %c0_24 = arith.constant 0 : index
      %c0_25 = arith.constant 0 : index
      %47 = vector.load %arg9[%c0_24, %c0_25] : memref<8x128xf32, #tpu.memory_space<vmem>>, vector<8x128xf32>
      tpu.vector_store %arg9[%c0_24, %c0_25], %46 {strides = array<i32>} : memref<8x128xf32, #tpu.memory_space<vmem>>, vector<8x128xf32>,
      %48 = vector.shape_cast %44 : vector<1x128xf32> to vector<1x128xf32>
      %49 = vector.broadcast %48 : vector<1x128xf32> to vector<8x128xf32>
      %c0_26 = arith.constant 0 : index
      %c0_27 = arith.constant 0 : index
      %50 = vector.load %arg10[%c0_26, %c0_27] : memref<8x128xf32, #tpu.memory_space<vmem>>, vector<8x128xf32>
      tpu.vector_store %arg10[%c0_26, %c0_27], %49 {strides = array<i32>} : memref<8x128xf32, #tpu.memory_space<vmem>>, vector<8x128xf32>,
    } else {
    }
    return
  }
  func.func @transform_0(%arg0: i32, %arg1: i32, %arg2: i32) -> (i32, i32) {
    %c0_i32 = arith.constant 0 : i32
    return %arg0, %arg2 : i32, i32
  }
  func.func @transform_1(%arg0: i32, %arg1: i32, %arg2: i32) -> (i32, i32) {
    %c0_i32 = arith.constant 0 : i32
    return %arg2, %arg1 : i32, i32
  }
  func.func @transform_2(%arg0: i32, %arg1: i32, %arg2: i32) -> (i32, i32) {
    %c0_i32 = arith.constant 0 : i32
    %c0_i32_0 = arith.constant 0 : i32
    return %c0_i32, %arg1 : i32, i32
  }
  func.func @transform_3(%arg0: i32, %arg1: i32, %arg2: i32) -> (i32, i32) {
    %c0_i32 = arith.constant 0 : i32
    %c0_i32_0 = arith.constant 0 : i32
    return %c0_i32, %arg2 : i32, i32
  }
  func.func @transform_4(%arg0: i32, %arg1: i32, %arg2: i32) -> (i32, i32) {
    %c0_i32 = arith.constant 0 : i32
    %c0_i32_0 = arith.constant 0 : i32
    return %c0_i32, %arg2 : i32, i32
  }
  func.func @transform_5(%arg0: i32, %arg1: i32, %arg2: i32) -> (i32, i32) {
    %c0_i32 = arith.constant 0 : i32
    return %arg0, %arg1 : i32, i32
  }
  func.func @transform_6(%arg0: i32, %arg1: i32, %arg2: i32) -> (i32, i32) {
    %c0_i32 = arith.constant 0 : i32
    return %arg0, %arg1 : i32, i32
  }
  func.func @transform_7(%arg0: i32, %arg1: i32, %arg2: i32) -> (i32, i32) {
    %c0_i32 = arith.constant 0 : i32
    return %arg0, %arg1 : i32, i32
  }
}

module attributes {stable_mosaic.version = 11 : i64} {
  func.func @_gemm_kernel(%arg0: i32, %arg1: i32, %arg2: i32, %arg3: memref<32x512xbf16, #tpu.memory_space<vmem>>, %arg4: memref<512x256xbf16, #tpu.memory_space<vmem>>, %arg5: memref<1x256xf32, #tpu.memory_space<vmem>>, %arg6: memref<1x512xf32, #tpu.memory_space<vmem>>, %arg7: memref<1x512xf32, #tpu.memory_space<vmem>>, %arg8: memref<32x256xbf16, #tpu.memory_space<vmem>>, %arg9: memref<8x256xf32, #tpu.memory_space<vmem>>, %arg10: memref<8x256xf32, #tpu.memory_space<vmem>>, %arg11: memref<32x256xf32, #tpu.memory_space<vmem>>) attributes {dimension_semantics = [#tpu.dimension_semantics<parallel>, #tpu.dimension_semantics<parallel>, #tpu.dimension_semantics<arbitrary>], iteration_bounds = array<i64: 1, 1, 4>, scalar_prefetch = 0 : i64, scratch_operands = 1 : i64, tpu.core_type = #tpu.core_type<tc>, window_params = [{transform_indices = @transform_0, window_bounds = array<i64: 32, 512>}, {transform_indices = @transform_1, window_bounds = array<i64: 512, 256>}, {transform_indices = @transform_2, window_bounds = array<i64: 1, 256>}, {transform_indices = @transform_3, window_bounds = array<i64: 1, 512>}, {transform_indices = @transform_4, window_bounds = array<i64: 1, 512>}, {transform_indices = @transform_5, window_bounds = array<i64: 32, 256>}, {transform_indices = @transform_6, window_bounds = array<i64: 8, 256>}, {transform_indices = @transform_7, window_bounds = array<i64: 8, 256>}]} {
    %c32_i32 = arith.constant 32 : i32
    %0 = arith.muli %arg0, %c32_i32 : i32
    %c0_i32 = arith.constant 0 : i32
    %1 = arith.cmpi eq, %arg2, %c0_i32 : i32
    %2 = arith.extui %1 : i1 to i32
    %c0_i32_0 = arith.constant 0 : i32
    %3 = arith.cmpi ne, %2, %c0_i32_0 : i32
    scf.if %3 {
      %cst_15 = arith.constant 0.000000e+00 : f32
      %26 = vector.broadcast %cst_15 : f32 to vector<32x256xf32>
      %c0_16 = arith.constant 0 : index
      %c0_17 = arith.constant 0 : index
      %27 = vector.load %arg11[%c0_16, %c0_17] : memref<32x256xf32, #tpu.memory_space<vmem>>, vector<32x256xf32>
      tpu.vector_store %arg11[%c0_16, %c0_17], %26 {strides = array<i32>} : memref<32x256xf32, #tpu.memory_space<vmem>>, vector<32x256xf32>,
    } else {
    }
    %c0 = arith.constant 0 : index
    %c0_1 = arith.constant 0 : index
    %4 = vector.load %arg3[%c0, %c0_1] : memref<32x512xbf16, #tpu.memory_space<vmem>>, vector<32x512xbf16>
    %5 = arith.extf %4 : vector<32x512xbf16> to vector<32x512xf32>
    %c0_2 = arith.constant 0 : index
    %c0_3 = arith.constant 0 : index
    %6 = vector.load %arg6[%c0_2, %c0_3] : memref<1x512xf32, #tpu.memory_space<vmem>>, vector<1x512xf32>
    %7 = vector.broadcast %6 : vector<1x512xf32> to vector<32x512xf32>
    %8 = arith.mulf %5, %7 : vector<32x512xf32>
    %c0_4 = arith.constant 0 : index
    %c0_5 = arith.constant 0 : index
    %9 = vector.load %arg7[%c0_4, %c0_5] : memref<1x512xf32, #tpu.memory_space<vmem>>, vector<1x512xf32>
    %10 = vector.broadcast %9 : vector<1x512xf32> to vector<32x512xf32>
    %11 = arith.addf %8, %10 : vector<32x512xf32>
    %cst = arith.constant 0.000000e+00 : f32
    %12 = vector.broadcast %cst : f32 to vector<32x512xf32>
    %13 = arith.cmpf ogt, %11, %12 : vector<32x512xf32>
    %cst_6 = arith.constant 0.00999999977 : f32
    %14 = vector.broadcast %cst_6 : f32 to vector<32x512xf32>
    %15 = arith.mulf %14, %11 : vector<32x512xf32>
    %16 = arith.select %13, %11, %15 : vector<32x512xi1>, vector<32x512xf32>
    %c0_7 = arith.constant 0 : index
    %c0_8 = arith.constant 0 : index
    %17 = vector.load %arg11[%c0_7, %c0_8] : memref<32x256xf32, #tpu.memory_space<vmem>>, vector<32x256xf32>
    %18 = arith.truncf %16 : vector<32x512xf32> to vector<32x512xbf16>
    %c0_9 = arith.constant 0 : index
    %c0_10 = arith.constant 0 : index
    %19 = vector.load %arg4[%c0_9, %c0_10] : memref<512x256xbf16, #tpu.memory_space<vmem>>, vector<512x256xbf16>
    %cst_11 = arith.constant dense<0.000000e+00> : vector<32x256xf32>
    %20 = tpu.matmul %18, %19, %cst_11 {dimension_numbers = #tpu.dot_dimension_numbers<[1], [0], [0], [1], [0, 0, 1, 1], [], []>} : vector<32x512xbf16>, vector<512x256xbf16>, vector<32x256xf32> -> vector<32x256xf32>
    %21 = arith.addf %17, %20 : vector<32x256xf32>
    %c0_12 = arith.constant 0 : index
    %c0_13 = arith.constant 0 : index
    %22 = vector.load %arg11[%c0_12, %c0_13] : memref<32x256xf32, #tpu.memory_space<vmem>>, vector<32x256xf32>
    tpu.vector_store %arg11[%c0_12, %c0_13], %21 {strides = array<i32>} : memref<32x256xf32, #tpu.memory_space<vmem>>, vector<32x256xf32>,
    %c3_i32 = arith.constant 3 : i32
    %23 = arith.cmpi eq, %arg2, %c3_i32 : i32
    %24 = arith.extui %23 : i1 to i32
    %c0_i32_14 = arith.constant 0 : i32
    %25 = arith.cmpi ne, %24, %c0_i32_14 : i32
    scf.if %25 {
      %c0_15 = arith.constant 0 : index
      %c0_16 = arith.constant 0 : index
      %26 = vector.load %arg11[%c0_15, %c0_16] : memref<32x256xf32, #tpu.memory_space<vmem>>, vector<32x256xf32>
      %c0_17 = arith.constant 0 : index
      %c0_18 = arith.constant 0 : index
      %27 = vector.load %arg5[%c0_17, %c0_18] : memref<1x256xf32, #tpu.memory_space<vmem>>, vector<1x256xf32>
      %28 = vector.broadcast %27 : vector<1x256xf32> to vector<32x256xf32>
      %29 = arith.addf %26, %28 : vector<32x256xf32>
      %30 = arith.truncf %29 : vector<32x256xf32> to vector<32x256xbf16>
      %c0_19 = arith.constant 0 : index
      %c0_20 = arith.constant 0 : index
      %31 = vector.load %arg8[%c0_19, %c0_20] : memref<32x256xbf16, #tpu.memory_space<vmem>>, vector<32x256xbf16>
      tpu.vector_store %arg8[%c0_19, %c0_20], %30 {strides = array<i32>} : memref<32x256xbf16, #tpu.memory_space<vmem>>, vector<32x256xbf16>,
      %32 = tpu.iota {dimensions = array<i32: 0>} : vector<32x256xi32>
      %33 = vector.broadcast %0 : i32 to vector<32x256xi32>
      %34 = arith.addi %32, %33 : vector<32x256xi32>
      %c32_i32_21 = arith.constant 32 : i32
      %35 = vector.broadcast %c32_i32_21 : i32 to vector<32x256xi32>
      %36 = arith.cmpi slt, %34, %35 : vector<32x256xi32>
      %37 = arith.extui %36 : vector<32x256xi1> to vector<32x256xi32>
      %38 = arith.sitofp %37 : vector<32x256xi32> to vector<32x256xf32>
      %39 = arith.mulf %29, %38 : vector<32x256xf32>
      %cst_22 = arith.constant dense<0.000000e+00> : vector<256xf32>
      %40 = vector.multi_reduction <add>, %39, %cst_22 [0] : vector<32x256xf32> to vector<256xf32>
      %41 = vector.shape_cast %40 : vector<256xf32> to vector<1x256xf32>
      %42 = arith.mulf %39, %39 : vector<32x256xf32>
      %cst_23 = arith.constant dense<0.000000e+00> : vector<256xf32>
      %43 = vector.multi_reduction <add>, %42, %cst_23 [0] : vector<32x256xf32> to vector<256xf32>
      %44 = vector.shape_cast %43 : vector<256xf32> to vector<1x256xf32>
      %45 = vector.shape_cast %41 : vector<1x256xf32> to vector<1x256xf32>
      %46 = vector.broadcast %45 : vector<1x256xf32> to vector<8x256xf32>
      %c0_24 = arith.constant 0 : index
      %c0_25 = arith.constant 0 : index
      %47 = vector.load %arg9[%c0_24, %c0_25] : memref<8x256xf32, #tpu.memory_space<vmem>>, vector<8x256xf32>
      tpu.vector_store %arg9[%c0_24, %c0_25], %46 {strides = array<i32>} : memref<8x256xf32, #tpu.memory_space<vmem>>, vector<8x256xf32>,
      %48 = vector.shape_cast %44 : vector<1x256xf32> to vector<1x256xf32>
      %49 = vector.broadcast %48 : vector<1x256xf32> to vector<8x256xf32>
      %c0_26 = arith.constant 0 : index
      %c0_27 = arith.constant 0 : index
      %50 = vector.load %arg10[%c0_26, %c0_27] : memref<8x256xf32, #tpu.memory_space<vmem>>, vector<8x256xf32>
      tpu.vector_store %arg10[%c0_26, %c0_27], %49 {strides = array<i32>} : memref<8x256xf32, #tpu.memory_space<vmem>>, vector<8x256xf32>,
    } else {
    }
    return
  }
  func.func @transform_0(%arg0: i32, %arg1: i32, %arg2: i32) -> (i32, i32) {
    %c0_i32 = arith.constant 0 : i32
    return %arg0, %arg2 : i32, i32
  }
  func.func @transform_1(%arg0: i32, %arg1: i32, %arg2: i32) -> (i32, i32) {
    %c0_i32 = arith.constant 0 : i32
    return %arg2, %arg1 : i32, i32
  }
  func.func @transform_2(%arg0: i32, %arg1: i32, %arg2: i32) -> (i32, i32) {
    %c0_i32 = arith.constant 0 : i32
    %c0_i32_0 = arith.constant 0 : i32
    return %c0_i32, %arg1 : i32, i32
  }
  func.func @transform_3(%arg0: i32, %arg1: i32, %arg2: i32) -> (i32, i32) {
    %c0_i32 = arith.constant 0 : i32
    %c0_i32_0 = arith.constant 0 : i32
    return %c0_i32, %arg2 : i32, i32
  }
  func.func @transform_4(%arg0: i32, %arg1: i32, %arg2: i32) -> (i32, i32) {
    %c0_i32 = arith.constant 0 : i32
    %c0_i32_0 = arith.constant 0 : i32
    return %c0_i32, %arg2 : i32, i32
  }
  func.func @transform_5(%arg0: i32, %arg1: i32, %arg2: i32) -> (i32, i32) {
    %c0_i32 = arith.constant 0 : i32
    return %arg0, %arg1 : i32, i32
  }
  func.func @transform_6(%arg0: i32, %arg1: i32, %arg2: i32) -> (i32, i32) {
    %c0_i32 = arith.constant 0 : i32
    return %arg0, %arg1 : i32, i32
  }
  func.func @transform_7(%arg0: i32, %arg1: i32, %arg2: i32) -> (i32, i32) {
    %c0_i32 = arith.constant 0 : i32
    return %arg0, %arg1 : i32, i32
  }
}

module attributes {stable_mosaic.version = 11 : i64} {
  func.func @_gemm_kernel(%arg0: i32, %arg1: i32, %arg2: i32, %arg3: memref<8x512xbf16, #tpu.memory_space<vmem>>, %arg4: memref<512x256xbf16, #tpu.memory_space<vmem>>, %arg5: memref<1x256xf32, #tpu.memory_space<vmem>>, %arg6: memref<1x512xf32, #tpu.memory_space<vmem>>, %arg7: memref<1x512xf32, #tpu.memory_space<vmem>>, %arg8: memref<8x256xbf16, #tpu.memory_space<vmem>>, %arg9: memref<8x256xf32, #tpu.memory_space<vmem>>, %arg10: memref<8x256xf32, #tpu.memory_space<vmem>>, %arg11: memref<8x256xf32, #tpu.memory_space<vmem>>) attributes {dimension_semantics = [#tpu.dimension_semantics<parallel>, #tpu.dimension_semantics<parallel>, #tpu.dimension_semantics<arbitrary>], iteration_bounds = array<i64: 1, 2, 8>, scalar_prefetch = 0 : i64, scratch_operands = 1 : i64, tpu.core_type = #tpu.core_type<tc>, window_params = [{transform_indices = @transform_0, window_bounds = array<i64: 8, 512>}, {transform_indices = @transform_1, window_bounds = array<i64: 512, 256>}, {transform_indices = @transform_2, window_bounds = array<i64: 1, 256>}, {transform_indices = @transform_3, window_bounds = array<i64: 1, 512>}, {transform_indices = @transform_4, window_bounds = array<i64: 1, 512>}, {transform_indices = @transform_5, window_bounds = array<i64: 8, 256>}, {transform_indices = @transform_6, window_bounds = array<i64: 8, 256>}, {transform_indices = @transform_7, window_bounds = array<i64: 8, 256>}]} {
    %c8_i32 = arith.constant 8 : i32
    %0 = arith.muli %arg0, %c8_i32 : i32
    %c0_i32 = arith.constant 0 : i32
    %1 = arith.cmpi eq, %arg2, %c0_i32 : i32
    %2 = arith.extui %1 : i1 to i32
    %c0_i32_0 = arith.constant 0 : i32
    %3 = arith.cmpi ne, %2, %c0_i32_0 : i32
    scf.if %3 {
      %cst_15 = arith.constant 0.000000e+00 : f32
      %26 = vector.broadcast %cst_15 : f32 to vector<8x256xf32>
      %c0_16 = arith.constant 0 : index
      %c0_17 = arith.constant 0 : index
      %27 = vector.load %arg11[%c0_16, %c0_17] : memref<8x256xf32, #tpu.memory_space<vmem>>, vector<8x256xf32>
      tpu.vector_store %arg11[%c0_16, %c0_17], %26 {strides = array<i32>} : memref<8x256xf32, #tpu.memory_space<vmem>>, vector<8x256xf32>,
    } else {
    }
    %c0 = arith.constant 0 : index
    %c0_1 = arith.constant 0 : index
    %4 = vector.load %arg3[%c0, %c0_1] : memref<8x512xbf16, #tpu.memory_space<vmem>>, vector<8x512xbf16>
    %5 = arith.extf %4 : vector<8x512xbf16> to vector<8x512xf32>
    %c0_2 = arith.constant 0 : index
    %c0_3 = arith.constant 0 : index
    %6 = vector.load %arg6[%c0_2, %c0_3] : memref<1x512xf32, #tpu.memory_space<vmem>>, vector<1x512xf32>
    %7 = vector.broadcast %6 : vector<1x512xf32> to vector<8x512xf32>
    %8 = arith.mulf %5, %7 : vector<8x512xf32>
    %c0_4 = arith.constant 0 : index
    %c0_5 = arith.constant 0 : index
    %9 = vector.load %arg7[%c0_4, %c0_5] : memref<1x512xf32, #tpu.memory_space<vmem>>, vector<1x512xf32>
    %10 = vector.broadcast %9 : vector<1x512xf32> to vector<8x512xf32>
    %11 = arith.addf %8, %10 : vector<8x512xf32>
    %cst = arith.constant 0.000000e+00 : f32
    %12 = vector.broadcast %cst : f32 to vector<8x512xf32>
    %13 = arith.cmpf ogt, %11, %12 : vector<8x512xf32>
    %cst_6 = arith.constant 0.00999999977 : f32
    %14 = vector.broadcast %cst_6 : f32 to vector<8x512xf32>
    %15 = arith.mulf %14, %11 : vector<8x512xf32>
    %16 = arith.select %13, %11, %15 : vector<8x512xi1>, vector<8x512xf32>
    %c0_7 = arith.constant 0 : index
    %c0_8 = arith.constant 0 : index
    %17 = vector.load %arg11[%c0_7, %c0_8] : memref<8x256xf32, #tpu.memory_space<vmem>>, vector<8x256xf32>
    %18 = arith.truncf %16 : vector<8x512xf32> to vector<8x512xbf16>
    %c0_9 = arith.constant 0 : index
    %c0_10 = arith.constant 0 : index
    %19 = vector.load %arg4[%c0_9, %c0_10] : memref<512x256xbf16, #tpu.memory_space<vmem>>, vector<512x256xbf16>
    %cst_11 = arith.constant dense<0.000000e+00> : vector<8x256xf32>
    %20 = tpu.matmul %18, %19, %cst_11 {dimension_numbers = #tpu.dot_dimension_numbers<[1], [0], [0], [1], [0, 0, 1, 1], [], []>} : vector<8x512xbf16>, vector<512x256xbf16>, vector<8x256xf32> -> vector<8x256xf32>
    %21 = arith.addf %17, %20 : vector<8x256xf32>
    %c0_12 = arith.constant 0 : index
    %c0_13 = arith.constant 0 : index
    %22 = vector.load %arg11[%c0_12, %c0_13] : memref<8x256xf32, #tpu.memory_space<vmem>>, vector<8x256xf32>
    tpu.vector_store %arg11[%c0_12, %c0_13], %21 {strides = array<i32>} : memref<8x256xf32, #tpu.memory_space<vmem>>, vector<8x256xf32>,
    %c7_i32 = arith.constant 7 : i32
    %23 = arith.cmpi eq, %arg2, %c7_i32 : i32
    %24 = arith.extui %23 : i1 to i32
    %c0_i32_14 = arith.constant 0 : i32
    %25 = arith.cmpi ne, %24, %c0_i32_14 : i32
    scf.if %25 {
      %c0_15 = arith.constant 0 : index
      %c0_16 = arith.constant 0 : index
      %26 = vector.load %arg11[%c0_15, %c0_16] : memref<8x256xf32, #tpu.memory_space<vmem>>, vector<8x256xf32>
      %c0_17 = arith.constant 0 : index
      %c0_18 = arith.constant 0 : index
      %27 = vector.load %arg5[%c0_17, %c0_18] : memref<1x256xf32, #tpu.memory_space<vmem>>, vector<1x256xf32>
      %28 = vector.broadcast %27 : vector<1x256xf32> to vector<8x256xf32>
      %29 = arith.addf %26, %28 : vector<8x256xf32>
      %30 = arith.truncf %29 : vector<8x256xf32> to vector<8x256xbf16>
      %c0_19 = arith.constant 0 : index
      %c0_20 = arith.constant 0 : index
      %31 = vector.load %arg8[%c0_19, %c0_20] : memref<8x256xbf16, #tpu.memory_space<vmem>>, vector<8x256xbf16>
      tpu.vector_store %arg8[%c0_19, %c0_20], %30 {strides = array<i32>} : memref<8x256xbf16, #tpu.memory_space<vmem>>, vector<8x256xbf16>,
      %32 = tpu.iota {dimensions = array<i32: 0>} : vector<8x256xi32>
      %33 = vector.broadcast %0 : i32 to vector<8x256xi32>
      %34 = arith.addi %32, %33 : vector<8x256xi32>
      %c8_i32_21 = arith.constant 8 : i32
      %35 = vector.broadcast %c8_i32_21 : i32 to vector<8x256xi32>
      %36 = arith.cmpi slt, %34, %35 : vector<8x256xi32>
      %37 = arith.extui %36 : vector<8x256xi1> to vector<8x256xi32>
      %38 = arith.sitofp %37 : vector<8x256xi32> to vector<8x256xf32>
      %39 = arith.mulf %29, %38 : vector<8x256xf32>
      %cst_22 = arith.constant dense<0.000000e+00> : vector<256xf32>
      %40 = vector.multi_reduction <add>, %39, %cst_22 [0] : vector<8x256xf32> to vector<256xf32>
      %41 = vector.shape_cast %40 : vector<256xf32> to vector<1x256xf32>
      %42 = arith.mulf %39, %39 : vector<8x256xf32>
      %cst_23 = arith.constant dense<0.000000e+00> : vector<256xf32>
      %43 = vector.multi_reduction <add>, %42, %cst_23 [0] : vector<8x256xf32> to vector<256xf32>
      %44 = vector.shape_cast %43 : vector<256xf32> to vector<1x256xf32>
      %45 = vector.shape_cast %41 : vector<1x256xf32> to vector<1x256xf32>
      %46 = vector.broadcast %45 : vector<1x256xf32> to vector<8x256xf32>
      %c0_24 = arith.constant 0 : index
      %c0_25 = arith.constant 0 : index
      %47 = vector.load %arg9[%c0_24, %c0_25] : memref<8x256xf32, #tpu.memory_space<vmem>>, vector<8x256xf32>
      tpu.vector_store %arg9[%c0_24, %c0_25], %46 {strides = array<i32>} : memref<8x256xf32, #tpu.memory_space<vmem>>, vector<8x256xf32>,
      %48 = vector.shape_cast %44 : vector<1x256xf32> to vector<1x256xf32>
      %49 = vector.broadcast %48 : vector<1x256xf32> to vector<8x256xf32>
      %c0_26 = arith.constant 0 : index
      %c0_27 = arith.constant 0 : index
      %50 = vector.load %arg10[%c0_26, %c0_27] : memref<8x256xf32, #tpu.memory_space<vmem>>, vector<8x256xf32>
      tpu.vector_store %arg10[%c0_26, %c0_27], %49 {strides = array<i32>} : memref<8x256xf32, #tpu.memory_space<vmem>>, vector<8x256xf32>,
    } else {
    }
    return
  }
  func.func @transform_0(%arg0: i32, %arg1: i32, %arg2: i32) -> (i32, i32) {
    %c0_i32 = arith.constant 0 : i32
    return %arg0, %arg2 : i32, i32
  }
  func.func @transform_1(%arg0: i32, %arg1: i32, %arg2: i32) -> (i32, i32) {
    %c0_i32 = arith.constant 0 : i32
    return %arg2, %arg1 : i32, i32
  }
  func.func @transform_2(%arg0: i32, %arg1: i32, %arg2: i32) -> (i32, i32) {
    %c0_i32 = arith.constant 0 : i32
    %c0_i32_0 = arith.constant 0 : i32
    return %c0_i32, %arg1 : i32, i32
  }
  func.func @transform_3(%arg0: i32, %arg1: i32, %arg2: i32) -> (i32, i32) {
    %c0_i32 = arith.constant 0 : i32
    %c0_i32_0 = arith.constant 0 : i32
    return %c0_i32, %arg2 : i32, i32
  }
  func.func @transform_4(%arg0: i32, %arg1: i32, %arg2: i32) -> (i32, i32) {
    %c0_i32 = arith.constant 0 : i32
    %c0_i32_0 = arith.constant 0 : i32
    return %c0_i32, %arg2 : i32, i32
  }
  func.func @transform_5(%arg0: i32, %arg1: i32, %arg2: i32) -> (i32, i32) {
    %c0_i32 = arith.constant 0 : i32
    return %arg0, %arg1 : i32, i32
  }
  func.func @transform_6(%arg0: i32, %arg1: i32, %arg2: i32) -> (i32, i32) {
    %c0_i32 = arith.constant 0 : i32
    return %arg0, %arg1 : i32, i32
  }
  func.func @transform_7(%arg0: i32, %arg1: i32, %arg2: i32) -> (i32, i32) {
    %c0_i32 = arith.constant 0 : i32
    return %arg0, %arg1 : i32, i32
  }
}

module attributes {stable_mosaic.version = 11 : i64} {
  func.func @_gemm_kernel(%arg0: i32, %arg1: i32, %arg2: i32, %arg3: memref<8x512xbf16, #tpu.memory_space<vmem>>, %arg4: memref<512x128xbf16, #tpu.memory_space<vmem>>, %arg5: memref<1x128xf32, #tpu.memory_space<vmem>>, %arg6: memref<1x512xf32, #tpu.memory_space<vmem>>, %arg7: memref<1x512xf32, #tpu.memory_space<vmem>>, %arg8: memref<8x128xbf16, #tpu.memory_space<vmem>>, %arg9: memref<8x128xf32, #tpu.memory_space<vmem>>, %arg10: memref<8x128xf32, #tpu.memory_space<vmem>>, %arg11: memref<8x128xf32, #tpu.memory_space<vmem>>) attributes {dimension_semantics = [#tpu.dimension_semantics<parallel>, #tpu.dimension_semantics<parallel>, #tpu.dimension_semantics<arbitrary>], iteration_bounds = array<i64: 1, 1, 4>, scalar_prefetch = 0 : i64, scratch_operands = 1 : i64, tpu.core_type = #tpu.core_type<tc>, window_params = [{transform_indices = @transform_0, window_bounds = array<i64: 8, 512>}, {transform_indices = @transform_1, window_bounds = array<i64: 512, 128>}, {transform_indices = @transform_2, window_bounds = array<i64: 1, 128>}, {transform_indices = @transform_3, window_bounds = array<i64: 1, 512>}, {transform_indices = @transform_4, window_bounds = array<i64: 1, 512>}, {transform_indices = @transform_5, window_bounds = array<i64: 8, 128>}, {transform_indices = @transform_6, window_bounds = array<i64: 8, 128>}, {transform_indices = @transform_7, window_bounds = array<i64: 8, 128>}]} {
    %c8_i32 = arith.constant 8 : i32
    %0 = arith.muli %arg0, %c8_i32 : i32
    %c0_i32 = arith.constant 0 : i32
    %1 = arith.cmpi eq, %arg2, %c0_i32 : i32
    %2 = arith.extui %1 : i1 to i32
    %c0_i32_0 = arith.constant 0 : i32
    %3 = arith.cmpi ne, %2, %c0_i32_0 : i32
    scf.if %3 {
      %cst_15 = arith.constant 0.000000e+00 : f32
      %26 = vector.broadcast %cst_15 : f32 to vector<8x128xf32>
      %c0_16 = arith.constant 0 : index
      %c0_17 = arith.constant 0 : index
      %27 = vector.load %arg11[%c0_16, %c0_17] : memref<8x128xf32, #tpu.memory_space<vmem>>, vector<8x128xf32>
      tpu.vector_store %arg11[%c0_16, %c0_17], %26 {strides = array<i32>} : memref<8x128xf32, #tpu.memory_space<vmem>>, vector<8x128xf32>,
    } else {
    }
    %c0 = arith.constant 0 : index
    %c0_1 = arith.constant 0 : index
    %4 = vector.load %arg3[%c0, %c0_1] : memref<8x512xbf16, #tpu.memory_space<vmem>>, vector<8x512xbf16>
    %5 = arith.extf %4 : vector<8x512xbf16> to vector<8x512xf32>
    %c0_2 = arith.constant 0 : index
    %c0_3 = arith.constant 0 : index
    %6 = vector.load %arg6[%c0_2, %c0_3] : memref<1x512xf32, #tpu.memory_space<vmem>>, vector<1x512xf32>
    %7 = vector.broadcast %6 : vector<1x512xf32> to vector<8x512xf32>
    %8 = arith.mulf %5, %7 : vector<8x512xf32>
    %c0_4 = arith.constant 0 : index
    %c0_5 = arith.constant 0 : index
    %9 = vector.load %arg7[%c0_4, %c0_5] : memref<1x512xf32, #tpu.memory_space<vmem>>, vector<1x512xf32>
    %10 = vector.broadcast %9 : vector<1x512xf32> to vector<8x512xf32>
    %11 = arith.addf %8, %10 : vector<8x512xf32>
    %cst = arith.constant 0.000000e+00 : f32
    %12 = vector.broadcast %cst : f32 to vector<8x512xf32>
    %13 = arith.cmpf ogt, %11, %12 : vector<8x512xf32>
    %cst_6 = arith.constant 0.00999999977 : f32
    %14 = vector.broadcast %cst_6 : f32 to vector<8x512xf32>
    %15 = arith.mulf %14, %11 : vector<8x512xf32>
    %16 = arith.select %13, %11, %15 : vector<8x512xi1>, vector<8x512xf32>
    %c0_7 = arith.constant 0 : index
    %c0_8 = arith.constant 0 : index
    %17 = vector.load %arg11[%c0_7, %c0_8] : memref<8x128xf32, #tpu.memory_space<vmem>>, vector<8x128xf32>
    %18 = arith.truncf %16 : vector<8x512xf32> to vector<8x512xbf16>
    %c0_9 = arith.constant 0 : index
    %c0_10 = arith.constant 0 : index
    %19 = vector.load %arg4[%c0_9, %c0_10] : memref<512x128xbf16, #tpu.memory_space<vmem>>, vector<512x128xbf16>
    %cst_11 = arith.constant dense<0.000000e+00> : vector<8x128xf32>
    %20 = tpu.matmul %18, %19, %cst_11 {dimension_numbers = #tpu.dot_dimension_numbers<[1], [0], [0], [1], [0, 0, 1, 1], [], []>} : vector<8x512xbf16>, vector<512x128xbf16>, vector<8x128xf32> -> vector<8x128xf32>
    %21 = arith.addf %17, %20 : vector<8x128xf32>
    %c0_12 = arith.constant 0 : index
    %c0_13 = arith.constant 0 : index
    %22 = vector.load %arg11[%c0_12, %c0_13] : memref<8x128xf32, #tpu.memory_space<vmem>>, vector<8x128xf32>
    tpu.vector_store %arg11[%c0_12, %c0_13], %21 {strides = array<i32>} : memref<8x128xf32, #tpu.memory_space<vmem>>, vector<8x128xf32>,
    %c3_i32 = arith.constant 3 : i32
    %23 = arith.cmpi eq, %arg2, %c3_i32 : i32
    %24 = arith.extui %23 : i1 to i32
    %c0_i32_14 = arith.constant 0 : i32
    %25 = arith.cmpi ne, %24, %c0_i32_14 : i32
    scf.if %25 {
      %c0_15 = arith.constant 0 : index
      %c0_16 = arith.constant 0 : index
      %26 = vector.load %arg11[%c0_15, %c0_16] : memref<8x128xf32, #tpu.memory_space<vmem>>, vector<8x128xf32>
      %c0_17 = arith.constant 0 : index
      %c0_18 = arith.constant 0 : index
      %27 = vector.load %arg5[%c0_17, %c0_18] : memref<1x128xf32, #tpu.memory_space<vmem>>, vector<1x128xf32>
      %28 = vector.broadcast %27 : vector<1x128xf32> to vector<8x128xf32>
      %29 = arith.addf %26, %28 : vector<8x128xf32>
      %30 = arith.truncf %29 : vector<8x128xf32> to vector<8x128xbf16>
      %c0_19 = arith.constant 0 : index
      %c0_20 = arith.constant 0 : index
      %31 = vector.load %arg8[%c0_19, %c0_20] : memref<8x128xbf16, #tpu.memory_space<vmem>>, vector<8x128xbf16>
      tpu.vector_store %arg8[%c0_19, %c0_20], %30 {strides = array<i32>} : memref<8x128xbf16, #tpu.memory_space<vmem>>, vector<8x128xbf16>,
      %32 = tpu.iota {dimensions = array<i32: 0>} : vector<8x128xi32>
      %33 = vector.broadcast %0 : i32 to vector<8x128xi32>
      %34 = arith.addi %32, %33 : vector<8x128xi32>
      %c2_i32 = arith.constant 2 : i32
      %35 = vector.broadcast %c2_i32 : i32 to vector<8x128xi32>
      %36 = arith.cmpi slt, %34, %35 : vector<8x128xi32>
      %37 = arith.extui %36 : vector<8x128xi1> to vector<8x128xi32>
      %38 = arith.sitofp %37 : vector<8x128xi32> to vector<8x128xf32>
      %39 = arith.mulf %29, %38 : vector<8x128xf32>
      %cst_21 = arith.constant dense<0.000000e+00> : vector<128xf32>
      %40 = vector.multi_reduction <add>, %39, %cst_21 [0] : vector<8x128xf32> to vector<128xf32>
      %41 = vector.shape_cast %40 : vector<128xf32> to vector<1x128xf32>
      %42 = arith.mulf %39, %39 : vector<8x128xf32>
      %cst_22 = arith.constant dense<0.000000e+00> : vector<128xf32>
      %43 = vector.multi_reduction <add>, %42, %cst_22 [0] : vector<8x128xf32> to vector<128xf32>
      %44 = vector.shape_cast %43 : vector<128xf32> to vector<1x128xf32>
      %45 = vector.shape_cast %41 : vector<1x128xf32> to vector<1x128xf32>
      %46 = vector.broadcast %45 : vector<1x128xf32> to vector<8x128xf32>
      %c0_23 = arith.constant 0 : index
      %c0_24 = arith.constant 0 : index
      %47 = vector.load %arg9[%c0_23, %c0_24] : memref<8x128xf32, #tpu.memory_space<vmem>>, vector<8x128xf32>
      tpu.vector_store %arg9[%c0_23, %c0_24], %46 {strides = array<i32>} : memref<8x128xf32, #tpu.memory_space<vmem>>, vector<8x128xf32>,
      %48 = vector.shape_cast %44 : vector<1x128xf32> to vector<1x128xf32>
      %49 = vector.broadcast %48 : vector<1x128xf32> to vector<8x128xf32>
      %c0_25 = arith.constant 0 : index
      %c0_26 = arith.constant 0 : index
      %50 = vector.load %arg10[%c0_25, %c0_26] : memref<8x128xf32, #tpu.memory_space<vmem>>, vector<8x128xf32>
      tpu.vector_store %arg10[%c0_25, %c0_26], %49 {strides = array<i32>} : memref<8x128xf32, #tpu.memory_space<vmem>>, vector<8x128xf32>,
    } else {
    }
    return
  }
  func.func @transform_0(%arg0: i32, %arg1: i32, %arg2: i32) -> (i32, i32) {
    %c0_i32 = arith.constant 0 : i32
    return %arg0, %arg2 : i32, i32
  }
  func.func @transform_1(%arg0: i32, %arg1: i32, %arg2: i32) -> (i32, i32) {
    %c0_i32 = arith.constant 0 : i32
    return %arg2, %arg1 : i32, i32
  }
  func.func @transform_2(%arg0: i32, %arg1: i32, %arg2: i32) -> (i32, i32) {
    %c0_i32 = arith.constant 0 : i32
    %c0_i32_0 = arith.constant 0 : i32
    return %c0_i32, %arg1 : i32, i32
  }
  func.func @transform_3(%arg0: i32, %arg1: i32, %arg2: i32) -> (i32, i32) {
    %c0_i32 = arith.constant 0 : i32
    %c0_i32_0 = arith.constant 0 : i32
    return %c0_i32, %arg2 : i32, i32
  }
  func.func @transform_4(%arg0: i32, %arg1: i32, %arg2: i32) -> (i32, i32) {
    %c0_i32 = arith.constant 0 : i32
    %c0_i32_0 = arith.constant 0 : i32
    return %c0_i32, %arg2 : i32, i32
  }
  func.func @transform_5(%arg0: i32, %arg1: i32, %arg2: i32) -> (i32, i32) {
    %c0_i32 = arith.constant 0 : i32
    return %arg0, %arg1 : i32, i32
  }
  func.func @transform_6(%arg0: i32, %arg1: i32, %arg2: i32) -> (i32, i32) {
    %c0_i32 = arith.constant 0 : i32
    return %arg0, %arg1 : i32, i32
  }
  func.func @transform_7(%arg0: i32, %arg1: i32, %arg2: i32) -> (i32, i32) {
    %c0_i32 = arith.constant 0 : i32
    return %arg0, %arg1 : i32, i32
  }
}

module attributes {stable_mosaic.version = 11 : i64} {
  func.func @_gemm_kernel(%arg0: i32, %arg1: i32, %arg2: i32, %arg3: memref<8x128xbf16, #tpu.memory_space<vmem>>, %arg4: memref<128x256xbf16, #tpu.memory_space<vmem>>, %arg5: memref<1x256xf32, #tpu.memory_space<vmem>>, %arg6: memref<1x128xf32, #tpu.memory_space<vmem>>, %arg7: memref<1x128xf32, #tpu.memory_space<vmem>>, %arg8: memref<8x256xbf16, #tpu.memory_space<vmem>>, %arg9: memref<8x256xf32, #tpu.memory_space<vmem>>, %arg10: memref<8x256xf32, #tpu.memory_space<vmem>>, %arg11: memref<8x256xf32, #tpu.memory_space<vmem>>) attributes {dimension_semantics = [#tpu.dimension_semantics<parallel>, #tpu.dimension_semantics<parallel>, #tpu.dimension_semantics<arbitrary>], iteration_bounds = array<i64: 1, 8, 1>, scalar_prefetch = 0 : i64, scratch_operands = 1 : i64, tpu.core_type = #tpu.core_type<tc>, window_params = [{transform_indices = @transform_0, window_bounds = array<i64: 8, 128>}, {transform_indices = @transform_1, window_bounds = array<i64: 128, 256>}, {transform_indices = @transform_2, window_bounds = array<i64: 1, 256>}, {transform_indices = @transform_3, window_bounds = array<i64: 1, 128>}, {transform_indices = @transform_4, window_bounds = array<i64: 1, 128>}, {transform_indices = @transform_5, window_bounds = array<i64: 8, 256>}, {transform_indices = @transform_6, window_bounds = array<i64: 8, 256>}, {transform_indices = @transform_7, window_bounds = array<i64: 8, 256>}]} {
    %c8_i32 = arith.constant 8 : i32
    %0 = arith.muli %arg0, %c8_i32 : i32
    %c0_i32 = arith.constant 0 : i32
    %1 = arith.cmpi eq, %arg2, %c0_i32 : i32
    %2 = arith.extui %1 : i1 to i32
    %c0_i32_0 = arith.constant 0 : i32
    %3 = arith.cmpi ne, %2, %c0_i32_0 : i32
    scf.if %3 {
      %cst_14 = arith.constant 0.000000e+00 : f32
      %21 = vector.broadcast %cst_14 : f32 to vector<8x256xf32>
      %c0_15 = arith.constant 0 : index
      %c0_16 = arith.constant 0 : index
      %22 = vector.load %arg11[%c0_15, %c0_16] : memref<8x256xf32, #tpu.memory_space<vmem>>, vector<8x256xf32>
      tpu.vector_store %arg11[%c0_15, %c0_16], %21 {strides = array<i32>} : memref<8x256xf32, #tpu.memory_space<vmem>>, vector<8x256xf32>,
    } else {
    }
    %c0 = arith.constant 0 : index
    %c0_1 = arith.constant 0 : index
    %4 = vector.load %arg3[%c0, %c0_1] : memref<8x128xbf16, #tpu.memory_space<vmem>>, vector<8x128xbf16>
    %5 = arith.extf %4 : vector<8x128xbf16> to vector<8x128xf32>
    %c0_2 = arith.constant 0 : index
    %c0_3 = arith.constant 0 : index
    %6 = vector.load %arg6[%c0_2, %c0_3] : memref<1x128xf32, #tpu.memory_space<vmem>>, vector<1x128xf32>
    %7 = vector.broadcast %6 : vector<1x128xf32> to vector<8x128xf32>
    %8 = arith.mulf %5, %7 : vector<8x128xf32>
    %c0_4 = arith.constant 0 : index
    %c0_5 = arith.constant 0 : index
    %9 = vector.load %arg7[%c0_4, %c0_5] : memref<1x128xf32, #tpu.memory_space<vmem>>, vector<1x128xf32>
    %10 = vector.broadcast %9 : vector<1x128xf32> to vector<8x128xf32>
    %11 = arith.addf %8, %10 : vector<8x128xf32>
    %c0_6 = arith.constant 0 : index
    %c0_7 = arith.constant 0 : index
    %12 = vector.load %arg11[%c0_6, %c0_7] : memref<8x256xf32, #tpu.memory_space<vmem>>, vector<8x256xf32>
    %13 = arith.truncf %11 : vector<8x128xf32> to vector<8x128xbf16>
    %c0_8 = arith.constant 0 : index
    %c0_9 = arith.constant 0 : index
    %14 = vector.load %arg4[%c0_8, %c0_9] : memref<128x256xbf16, #tpu.memory_space<vmem>>, vector<128x256xbf16>
    %cst = arith.constant dense<0.000000e+00> : vector<8x256xf32>
    %15 = tpu.matmul %13, %14, %cst {dimension_numbers = #tpu.dot_dimension_numbers<[1], [0], [0], [1], [0, 0, 1, 1], [], []>} : vector<8x128xbf16>, vector<128x256xbf16>, vector<8x256xf32> -> vector<8x256xf32>
    %16 = arith.addf %12, %15 : vector<8x256xf32>
    %c0_10 = arith.constant 0 : index
    %c0_11 = arith.constant 0 : index
    %17 = vector.load %arg11[%c0_10, %c0_11] : memref<8x256xf32, #tpu.memory_space<vmem>>, vector<8x256xf32>
    tpu.vector_store %arg11[%c0_10, %c0_11], %16 {strides = array<i32>} : memref<8x256xf32, #tpu.memory_space<vmem>>, vector<8x256xf32>,
    %c0_i32_12 = arith.constant 0 : i32
    %18 = arith.cmpi eq, %arg2, %c0_i32_12 : i32
    %19 = arith.extui %18 : i1 to i32
    %c0_i32_13 = arith.constant 0 : i32
    %20 = arith.cmpi ne, %19, %c0_i32_13 : i32
    scf.if %20 {
      %c0_14 = arith.constant 0 : index
      %c0_15 = arith.constant 0 : index
      %21 = vector.load %arg11[%c0_14, %c0_15] : memref<8x256xf32, #tpu.memory_space<vmem>>, vector<8x256xf32>
      %c0_16 = arith.constant 0 : index
      %c0_17 = arith.constant 0 : index
      %22 = vector.load %arg5[%c0_16, %c0_17] : memref<1x256xf32, #tpu.memory_space<vmem>>, vector<1x256xf32>
      %23 = vector.broadcast %22 : vector<1x256xf32> to vector<8x256xf32>
      %24 = arith.addf %21, %23 : vector<8x256xf32>
      %25 = arith.truncf %24 : vector<8x256xf32> to vector<8x256xbf16>
      %c0_18 = arith.constant 0 : index
      %c0_19 = arith.constant 0 : index
      %26 = vector.load %arg8[%c0_18, %c0_19] : memref<8x256xbf16, #tpu.memory_space<vmem>>, vector<8x256xbf16>
      tpu.vector_store %arg8[%c0_18, %c0_19], %25 {strides = array<i32>} : memref<8x256xbf16, #tpu.memory_space<vmem>>, vector<8x256xbf16>,
      %27 = tpu.iota {dimensions = array<i32: 0>} : vector<8x256xi32>
      %28 = vector.broadcast %0 : i32 to vector<8x256xi32>
      %29 = arith.addi %27, %28 : vector<8x256xi32>
      %c2_i32 = arith.constant 2 : i32
      %30 = vector.broadcast %c2_i32 : i32 to vector<8x256xi32>
      %31 = arith.cmpi slt, %29, %30 : vector<8x256xi32>
      %32 = arith.extui %31 : vector<8x256xi1> to vector<8x256xi32>
      %33 = arith.sitofp %32 : vector<8x256xi32> to vector<8x256xf32>
      %34 = arith.mulf %24, %33 : vector<8x256xf32>
      %cst_20 = arith.constant dense<0.000000e+00> : vector<256xf32>
      %35 = vector.multi_reduction <add>, %34, %cst_20 [0] : vector<8x256xf32> to vector<256xf32>
      %36 = vector.shape_cast %35 : vector<256xf32> to vector<1x256xf32>
      %37 = arith.mulf %34, %34 : vector<8x256xf32>
      %cst_21 = arith.constant dense<0.000000e+00> : vector<256xf32>
      %38 = vector.multi_reduction <add>, %37, %cst_21 [0] : vector<8x256xf32> to vector<256xf32>
      %39 = vector.shape_cast %38 : vector<256xf32> to vector<1x256xf32>
      %40 = vector.shape_cast %36 : vector<1x256xf32> to vector<1x256xf32>
      %41 = vector.broadcast %40 : vector<1x256xf32> to vector<8x256xf32>
      %c0_22 = arith.constant 0 : index
      %c0_23 = arith.constant 0 : index
      %42 = vector.load %arg9[%c0_22, %c0_23] : memref<8x256xf32, #tpu.memory_space<vmem>>, vector<8x256xf32>
      tpu.vector_store %arg9[%c0_22, %c0_23], %41 {strides = array<i32>} : memref<8x256xf32, #tpu.memory_space<vmem>>, vector<8x256xf32>,
      %43 = vector.shape_cast %39 : vector<1x256xf32> to vector<1x256xf32>
      %44 = vector.broadcast %43 : vector<1x256xf32> to vector<8x256xf32>
      %c0_24 = arith.constant 0 : index
      %c0_25 = arith.constant 0 : index
      %45 = vector.load %arg10[%c0_24, %c0_25] : memref<8x256xf32, #tpu.memory_space<vmem>>, vector<8x256xf32>
      tpu.vector_store %arg10[%c0_24, %c0_25], %44 {strides = array<i32>} : memref<8x256xf32, #tpu.memory_space<vmem>>, vector<8x256xf32>,
    } else {
    }
    return
  }
  func.func @transform_0(%arg0: i32, %arg1: i32, %arg2: i32) -> (i32, i32) {
    %c0_i32 = arith.constant 0 : i32
    return %arg0, %arg2 : i32, i32
  }
  func.func @transform_1(%arg0: i32, %arg1: i32, %arg2: i32) -> (i32, i32) {
    %c0_i32 = arith.constant 0 : i32
    return %arg2, %arg1 : i32, i32
  }
  func.func @transform_2(%arg0: i32, %arg1: i32, %arg2: i32) -> (i32, i32) {
    %c0_i32 = arith.constant 0 : i32
    %c0_i32_0 = arith.constant 0 : i32
    return %c0_i32, %arg1 : i32, i32
  }
  func.func @transform_3(%arg0: i32, %arg1: i32, %arg2: i32) -> (i32, i32) {
    %c0_i32 = arith.constant 0 : i32
    %c0_i32_0 = arith.constant 0 : i32
    return %c0_i32, %arg2 : i32, i32
  }
  func.func @transform_4(%arg0: i32, %arg1: i32, %arg2: i32) -> (i32, i32) {
    %c0_i32 = arith.constant 0 : i32
    %c0_i32_0 = arith.constant 0 : i32
    return %c0_i32, %arg2 : i32, i32
  }
  func.func @transform_5(%arg0: i32, %arg1: i32, %arg2: i32) -> (i32, i32) {
    %c0_i32 = arith.constant 0 : i32
    return %arg0, %arg1 : i32, i32
  }
  func.func @transform_6(%arg0: i32, %arg1: i32, %arg2: i32) -> (i32, i32) {
    %c0_i32 = arith.constant 0 : i32
    return %arg0, %arg1 : i32, i32
  }
  func.func @transform_7(%arg0: i32, %arg1: i32, %arg2: i32) -> (i32, i32) {
    %c0_i32 = arith.constant 0 : i32
    return %arg0, %arg1 : i32, i32
  }
}

module attributes {stable_mosaic.version = 11 : i64} {
  func.func @_affine_kernel(%arg0: i32, %arg1: memref<8x2048xbf16, #tpu.memory_space<vmem>>, %arg2: memref<1x2048xf32, #tpu.memory_space<vmem>>, %arg3: memref<1x2048xf32, #tpu.memory_space<vmem>>, %arg4: memref<8x2048xbf16, #tpu.memory_space<vmem>>) attributes {dimension_semantics = [#tpu.dimension_semantics<parallel>], iteration_bounds = array<i64: 1>, scalar_prefetch = 0 : i64, scratch_operands = 0 : i64, tpu.core_type = #tpu.core_type<tc>, window_params = [{transform_indices = @transform_0, window_bounds = array<i64: 8, 2048>}, {transform_indices = @transform_1, window_bounds = array<i64: 1, 2048>}, {transform_indices = @transform_2, window_bounds = array<i64: 1, 2048>}, {transform_indices = @transform_3, window_bounds = array<i64: 8, 2048>}]} {
    %c0 = arith.constant 0 : index
    %c0_0 = arith.constant 0 : index
    %0 = vector.load %arg1[%c0, %c0_0] : memref<8x2048xbf16, #tpu.memory_space<vmem>>, vector<8x2048xbf16>
    %1 = arith.extf %0 : vector<8x2048xbf16> to vector<8x2048xf32>
    %c0_1 = arith.constant 0 : index
    %c0_2 = arith.constant 0 : index
    %2 = vector.load %arg2[%c0_1, %c0_2] : memref<1x2048xf32, #tpu.memory_space<vmem>>, vector<1x2048xf32>
    %3 = vector.broadcast %2 : vector<1x2048xf32> to vector<8x2048xf32>
    %4 = arith.mulf %1, %3 : vector<8x2048xf32>
    %c0_3 = arith.constant 0 : index
    %c0_4 = arith.constant 0 : index
    %5 = vector.load %arg3[%c0_3, %c0_4] : memref<1x2048xf32, #tpu.memory_space<vmem>>, vector<1x2048xf32>
    %6 = vector.broadcast %5 : vector<1x2048xf32> to vector<8x2048xf32>
    %7 = arith.addf %4, %6 : vector<8x2048xf32>
    %cst = arith.constant 0.000000e+00 : f32
    %8 = vector.broadcast %cst : f32 to vector<8x2048xf32>
    %9 = arith.cmpf ogt, %7, %8 : vector<8x2048xf32>
    %cst_5 = arith.constant 0.00999999977 : f32
    %10 = vector.broadcast %cst_5 : f32 to vector<8x2048xf32>
    %11 = arith.mulf %10, %7 : vector<8x2048xf32>
    %12 = arith.select %9, %7, %11 : vector<8x2048xi1>, vector<8x2048xf32>
    %13 = arith.truncf %12 : vector<8x2048xf32> to vector<8x2048xbf16>
    %c0_6 = arith.constant 0 : index
    %c0_7 = arith.constant 0 : index
    %14 = vector.load %arg4[%c0_6, %c0_7] : memref<8x2048xbf16, #tpu.memory_space<vmem>>, vector<8x2048xbf16>
    tpu.vector_store %arg4[%c0_6, %c0_7], %13 {strides = array<i32>} : memref<8x2048xbf16, #tpu.memory_space<vmem>>, vector<8x2048xbf16>,
    return
  }
  func.func @transform_0(%arg0: i32) -> (i32, i32) {
    %c0_i32 = arith.constant 0 : i32
    %c0_i32_0 = arith.constant 0 : i32
    return %c0_i32, %arg0 : i32, i32
  }
  func.func @transform_1(%arg0: i32) -> (i32, i32) {
    %c0_i32 = arith.constant 0 : i32
    %c0_i32_0 = arith.constant 0 : i32
    return %c0_i32, %arg0 : i32, i32
  }
  func.func @transform_2(%arg0: i32) -> (i32, i32) {
    %c0_i32 = arith.constant 0 : i32
    %c0_i32_0 = arith.constant 0 : i32
    return %c0_i32, %arg0 : i32, i32
  }
  func.func @transform_3(%arg0: i32) -> (i32, i32) {
    %c0_i32 = arith.constant 0 : i32
    %c0_i32_0 = arith.constant 0 : i32
    return %c0_i32, %arg0 : i32, i32
  }
}

module attributes {stable_mosaic.version = 11 : i64} {
  func.func @_gemm_kernel(%arg0: i32, %arg1: i32, %arg2: i32, %arg3: memref<8x512xbf16, #tpu.memory_space<vmem>>, %arg4: memref<512x256xbf16, #tpu.memory_space<vmem>>, %arg5: memref<1x256xf32, #tpu.memory_space<vmem>>, %arg6: memref<1x512xf32, #tpu.memory_space<vmem>>, %arg7: memref<1x512xf32, #tpu.memory_space<vmem>>, %arg8: memref<8x256xbf16, #tpu.memory_space<vmem>>, %arg9: memref<8x256xf32, #tpu.memory_space<vmem>>, %arg10: memref<8x256xf32, #tpu.memory_space<vmem>>, %arg11: memref<8x256xf32, #tpu.memory_space<vmem>>) attributes {dimension_semantics = [#tpu.dimension_semantics<parallel>, #tpu.dimension_semantics<parallel>, #tpu.dimension_semantics<arbitrary>], iteration_bounds = array<i64: 1, 1, 4>, scalar_prefetch = 0 : i64, scratch_operands = 1 : i64, tpu.core_type = #tpu.core_type<tc>, window_params = [{transform_indices = @transform_0, window_bounds = array<i64: 8, 512>}, {transform_indices = @transform_1, window_bounds = array<i64: 512, 256>}, {transform_indices = @transform_2, window_bounds = array<i64: 1, 256>}, {transform_indices = @transform_3, window_bounds = array<i64: 1, 512>}, {transform_indices = @transform_4, window_bounds = array<i64: 1, 512>}, {transform_indices = @transform_5, window_bounds = array<i64: 8, 256>}, {transform_indices = @transform_6, window_bounds = array<i64: 8, 256>}, {transform_indices = @transform_7, window_bounds = array<i64: 8, 256>}]} {
    %c8_i32 = arith.constant 8 : i32
    %0 = arith.muli %arg0, %c8_i32 : i32
    %c0_i32 = arith.constant 0 : i32
    %1 = arith.cmpi eq, %arg2, %c0_i32 : i32
    %2 = arith.extui %1 : i1 to i32
    %c0_i32_0 = arith.constant 0 : i32
    %3 = arith.cmpi ne, %2, %c0_i32_0 : i32
    scf.if %3 {
      %cst_13 = arith.constant 0.000000e+00 : f32
      %21 = vector.broadcast %cst_13 : f32 to vector<8x256xf32>
      %c0_14 = arith.constant 0 : index
      %c0_15 = arith.constant 0 : index
      %22 = vector.load %arg11[%c0_14, %c0_15] : memref<8x256xf32, #tpu.memory_space<vmem>>, vector<8x256xf32>
      tpu.vector_store %arg11[%c0_14, %c0_15], %21 {strides = array<i32>} : memref<8x256xf32, #tpu.memory_space<vmem>>, vector<8x256xf32>,
    } else {
    }
    %c0 = arith.constant 0 : index
    %c0_1 = arith.constant 0 : index
    %4 = vector.load %arg3[%c0, %c0_1] : memref<8x512xbf16, #tpu.memory_space<vmem>>, vector<8x512xbf16>
    %5 = arith.extf %4 : vector<8x512xbf16> to vector<8x512xf32>
    %c0_2 = arith.constant 0 : index
    %c0_3 = arith.constant 0 : index
    %6 = vector.load %arg6[%c0_2, %c0_3] : memref<1x512xf32, #tpu.memory_space<vmem>>, vector<1x512xf32>
    %7 = vector.broadcast %6 : vector<1x512xf32> to vector<8x512xf32>
    %8 = arith.mulf %5, %7 : vector<8x512xf32>
    %c0_4 = arith.constant 0 : index
    %c0_5 = arith.constant 0 : index
    %9 = vector.load %arg7[%c0_4, %c0_5] : memref<1x512xf32, #tpu.memory_space<vmem>>, vector<1x512xf32>
    %10 = vector.broadcast %9 : vector<1x512xf32> to vector<8x512xf32>
    %11 = arith.addf %8, %10 : vector<8x512xf32>
    %c0_6 = arith.constant 0 : index
    %c0_7 = arith.constant 0 : index
    %12 = vector.load %arg11[%c0_6, %c0_7] : memref<8x256xf32, #tpu.memory_space<vmem>>, vector<8x256xf32>
    %13 = arith.truncf %11 : vector<8x512xf32> to vector<8x512xbf16>
    %c0_8 = arith.constant 0 : index
    %c0_9 = arith.constant 0 : index
    %14 = vector.load %arg4[%c0_8, %c0_9] : memref<512x256xbf16, #tpu.memory_space<vmem>>, vector<512x256xbf16>
    %cst = arith.constant dense<0.000000e+00> : vector<8x256xf32>
    %15 = tpu.matmul %13, %14, %cst {dimension_numbers = #tpu.dot_dimension_numbers<[1], [0], [0], [1], [0, 0, 1, 1], [], []>} : vector<8x512xbf16>, vector<512x256xbf16>, vector<8x256xf32> -> vector<8x256xf32>
    %16 = arith.addf %12, %15 : vector<8x256xf32>
    %c0_10 = arith.constant 0 : index
    %c0_11 = arith.constant 0 : index
    %17 = vector.load %arg11[%c0_10, %c0_11] : memref<8x256xf32, #tpu.memory_space<vmem>>, vector<8x256xf32>
    tpu.vector_store %arg11[%c0_10, %c0_11], %16 {strides = array<i32>} : memref<8x256xf32, #tpu.memory_space<vmem>>, vector<8x256xf32>,
    %c3_i32 = arith.constant 3 : i32
    %18 = arith.cmpi eq, %arg2, %c3_i32 : i32
    %19 = arith.extui %18 : i1 to i32
    %c0_i32_12 = arith.constant 0 : i32
    %20 = arith.cmpi ne, %19, %c0_i32_12 : i32
    scf.if %20 {
      %c0_13 = arith.constant 0 : index
      %c0_14 = arith.constant 0 : index
      %21 = vector.load %arg11[%c0_13, %c0_14] : memref<8x256xf32, #tpu.memory_space<vmem>>, vector<8x256xf32>
      %c0_15 = arith.constant 0 : index
      %c0_16 = arith.constant 0 : index
      %22 = vector.load %arg5[%c0_15, %c0_16] : memref<1x256xf32, #tpu.memory_space<vmem>>, vector<1x256xf32>
      %23 = vector.broadcast %22 : vector<1x256xf32> to vector<8x256xf32>
      %24 = arith.addf %21, %23 : vector<8x256xf32>
      %25 = arith.truncf %24 : vector<8x256xf32> to vector<8x256xbf16>
      %c0_17 = arith.constant 0 : index
      %c0_18 = arith.constant 0 : index
      %26 = vector.load %arg8[%c0_17, %c0_18] : memref<8x256xbf16, #tpu.memory_space<vmem>>, vector<8x256xbf16>
      tpu.vector_store %arg8[%c0_17, %c0_18], %25 {strides = array<i32>} : memref<8x256xbf16, #tpu.memory_space<vmem>>, vector<8x256xbf16>,
      %27 = tpu.iota {dimensions = array<i32: 0>} : vector<8x256xi32>
      %28 = vector.broadcast %0 : i32 to vector<8x256xi32>
      %29 = arith.addi %27, %28 : vector<8x256xi32>
      %c8_i32_19 = arith.constant 8 : i32
      %30 = vector.broadcast %c8_i32_19 : i32 to vector<8x256xi32>
      %31 = arith.cmpi slt, %29, %30 : vector<8x256xi32>
      %32 = arith.extui %31 : vector<8x256xi1> to vector<8x256xi32>
      %33 = arith.sitofp %32 : vector<8x256xi32> to vector<8x256xf32>
      %34 = arith.mulf %24, %33 : vector<8x256xf32>
      %cst_20 = arith.constant dense<0.000000e+00> : vector<256xf32>
      %35 = vector.multi_reduction <add>, %34, %cst_20 [0] : vector<8x256xf32> to vector<256xf32>
      %36 = vector.shape_cast %35 : vector<256xf32> to vector<1x256xf32>
      %37 = arith.mulf %34, %34 : vector<8x256xf32>
      %cst_21 = arith.constant dense<0.000000e+00> : vector<256xf32>
      %38 = vector.multi_reduction <add>, %37, %cst_21 [0] : vector<8x256xf32> to vector<256xf32>
      %39 = vector.shape_cast %38 : vector<256xf32> to vector<1x256xf32>
      %40 = vector.shape_cast %36 : vector<1x256xf32> to vector<1x256xf32>
      %41 = vector.broadcast %40 : vector<1x256xf32> to vector<8x256xf32>
      %c0_22 = arith.constant 0 : index
      %c0_23 = arith.constant 0 : index
      %42 = vector.load %arg9[%c0_22, %c0_23] : memref<8x256xf32, #tpu.memory_space<vmem>>, vector<8x256xf32>
      tpu.vector_store %arg9[%c0_22, %c0_23], %41 {strides = array<i32>} : memref<8x256xf32, #tpu.memory_space<vmem>>, vector<8x256xf32>,
      %43 = vector.shape_cast %39 : vector<1x256xf32> to vector<1x256xf32>
      %44 = vector.broadcast %43 : vector<1x256xf32> to vector<8x256xf32>
      %c0_24 = arith.constant 0 : index
      %c0_25 = arith.constant 0 : index
      %45 = vector.load %arg10[%c0_24, %c0_25] : memref<8x256xf32, #tpu.memory_space<vmem>>, vector<8x256xf32>
      tpu.vector_store %arg10[%c0_24, %c0_25], %44 {strides = array<i32>} : memref<8x256xf32, #tpu.memory_space<vmem>>, vector<8x256xf32>,
    } else {
    }
    return
  }
  func.func @transform_0(%arg0: i32, %arg1: i32, %arg2: i32) -> (i32, i32) {
    %c0_i32 = arith.constant 0 : i32
    return %arg0, %arg2 : i32, i32
  }
  func.func @transform_1(%arg0: i32, %arg1: i32, %arg2: i32) -> (i32, i32) {
    %c0_i32 = arith.constant 0 : i32
    return %arg2, %arg1 : i32, i32
  }
  func.func @transform_2(%arg0: i32, %arg1: i32, %arg2: i32) -> (i32, i32) {
    %c0_i32 = arith.constant 0 : i32
    %c0_i32_0 = arith.constant 0 : i32
    return %c0_i32, %arg1 : i32, i32
  }
  func.func @transform_3(%arg0: i32, %arg1: i32, %arg2: i32) -> (i32, i32) {
    %c0_i32 = arith.constant 0 : i32
    %c0_i32_0 = arith.constant 0 : i32
    return %c0_i32, %arg2 : i32, i32
  }
  func.func @transform_4(%arg0: i32, %arg1: i32, %arg2: i32) -> (i32, i32) {
    %c0_i32 = arith.constant 0 : i32
    %c0_i32_0 = arith.constant 0 : i32
    return %c0_i32, %arg2 : i32, i32
  }
  func.func @transform_5(%arg0: i32, %arg1: i32, %arg2: i32) -> (i32, i32) {
    %c0_i32 = arith.constant 0 : i32
    return %arg0, %arg1 : i32, i32
  }
  func.func @transform_6(%arg0: i32, %arg1: i32, %arg2: i32) -> (i32, i32) {
    %c0_i32 = arith.constant 0 : i32
    return %arg0, %arg1 : i32, i32
  }
  func.func @transform_7(%arg0: i32, %arg1: i32, %arg2: i32) -> (i32, i32) {
    %c0_i32 = arith.constant 0 : i32
    return %arg0, %arg1 : i32, i32
  }
}

module attributes {stable_mosaic.version = 11 : i64} {
  func.func @_gemm_kernel(%arg0: i32, %arg1: i32, %arg2: i32, %arg3: memref<32x512xbf16, #tpu.memory_space<vmem>>, %arg4: memref<512x128xbf16, #tpu.memory_space<vmem>>, %arg5: memref<1x128xf32, #tpu.memory_space<vmem>>, %arg6: memref<1x512xf32, #tpu.memory_space<vmem>>, %arg7: memref<1x512xf32, #tpu.memory_space<vmem>>, %arg8: memref<32x128xbf16, #tpu.memory_space<vmem>>, %arg9: memref<8x128xf32, #tpu.memory_space<vmem>>, %arg10: memref<8x128xf32, #tpu.memory_space<vmem>>, %arg11: memref<32x128xf32, #tpu.memory_space<vmem>>) attributes {dimension_semantics = [#tpu.dimension_semantics<parallel>, #tpu.dimension_semantics<parallel>, #tpu.dimension_semantics<arbitrary>], iteration_bounds = array<i64: 1, 1, 2>, scalar_prefetch = 0 : i64, scratch_operands = 1 : i64, tpu.core_type = #tpu.core_type<tc>, window_params = [{transform_indices = @transform_0, window_bounds = array<i64: 32, 512>}, {transform_indices = @transform_1, window_bounds = array<i64: 512, 128>}, {transform_indices = @transform_2, window_bounds = array<i64: 1, 128>}, {transform_indices = @transform_3, window_bounds = array<i64: 1, 512>}, {transform_indices = @transform_4, window_bounds = array<i64: 1, 512>}, {transform_indices = @transform_5, window_bounds = array<i64: 32, 128>}, {transform_indices = @transform_6, window_bounds = array<i64: 8, 128>}, {transform_indices = @transform_7, window_bounds = array<i64: 8, 128>}]} {
    %c32_i32 = arith.constant 32 : i32
    %0 = arith.muli %arg0, %c32_i32 : i32
    %c0_i32 = arith.constant 0 : i32
    %1 = arith.cmpi eq, %arg2, %c0_i32 : i32
    %2 = arith.extui %1 : i1 to i32
    %c0_i32_0 = arith.constant 0 : i32
    %3 = arith.cmpi ne, %2, %c0_i32_0 : i32
    scf.if %3 {
      %cst_15 = arith.constant 0.000000e+00 : f32
      %26 = vector.broadcast %cst_15 : f32 to vector<32x128xf32>
      %c0_16 = arith.constant 0 : index
      %c0_17 = arith.constant 0 : index
      %27 = vector.load %arg11[%c0_16, %c0_17] : memref<32x128xf32, #tpu.memory_space<vmem>>, vector<32x128xf32>
      tpu.vector_store %arg11[%c0_16, %c0_17], %26 {strides = array<i32>} : memref<32x128xf32, #tpu.memory_space<vmem>>, vector<32x128xf32>,
    } else {
    }
    %c0 = arith.constant 0 : index
    %c0_1 = arith.constant 0 : index
    %4 = vector.load %arg3[%c0, %c0_1] : memref<32x512xbf16, #tpu.memory_space<vmem>>, vector<32x512xbf16>
    %5 = arith.extf %4 : vector<32x512xbf16> to vector<32x512xf32>
    %c0_2 = arith.constant 0 : index
    %c0_3 = arith.constant 0 : index
    %6 = vector.load %arg6[%c0_2, %c0_3] : memref<1x512xf32, #tpu.memory_space<vmem>>, vector<1x512xf32>
    %7 = vector.broadcast %6 : vector<1x512xf32> to vector<32x512xf32>
    %8 = arith.mulf %5, %7 : vector<32x512xf32>
    %c0_4 = arith.constant 0 : index
    %c0_5 = arith.constant 0 : index
    %9 = vector.load %arg7[%c0_4, %c0_5] : memref<1x512xf32, #tpu.memory_space<vmem>>, vector<1x512xf32>
    %10 = vector.broadcast %9 : vector<1x512xf32> to vector<32x512xf32>
    %11 = arith.addf %8, %10 : vector<32x512xf32>
    %cst = arith.constant 0.000000e+00 : f32
    %12 = vector.broadcast %cst : f32 to vector<32x512xf32>
    %13 = arith.cmpf ogt, %11, %12 : vector<32x512xf32>
    %cst_6 = arith.constant 0.00999999977 : f32
    %14 = vector.broadcast %cst_6 : f32 to vector<32x512xf32>
    %15 = arith.mulf %14, %11 : vector<32x512xf32>
    %16 = arith.select %13, %11, %15 : vector<32x512xi1>, vector<32x512xf32>
    %c0_7 = arith.constant 0 : index
    %c0_8 = arith.constant 0 : index
    %17 = vector.load %arg11[%c0_7, %c0_8] : memref<32x128xf32, #tpu.memory_space<vmem>>, vector<32x128xf32>
    %18 = arith.truncf %16 : vector<32x512xf32> to vector<32x512xbf16>
    %c0_9 = arith.constant 0 : index
    %c0_10 = arith.constant 0 : index
    %19 = vector.load %arg4[%c0_9, %c0_10] : memref<512x128xbf16, #tpu.memory_space<vmem>>, vector<512x128xbf16>
    %cst_11 = arith.constant dense<0.000000e+00> : vector<32x128xf32>
    %20 = tpu.matmul %18, %19, %cst_11 {dimension_numbers = #tpu.dot_dimension_numbers<[1], [0], [0], [1], [0, 0, 1, 1], [], []>} : vector<32x512xbf16>, vector<512x128xbf16>, vector<32x128xf32> -> vector<32x128xf32>
    %21 = arith.addf %17, %20 : vector<32x128xf32>
    %c0_12 = arith.constant 0 : index
    %c0_13 = arith.constant 0 : index
    %22 = vector.load %arg11[%c0_12, %c0_13] : memref<32x128xf32, #tpu.memory_space<vmem>>, vector<32x128xf32>
    tpu.vector_store %arg11[%c0_12, %c0_13], %21 {strides = array<i32>} : memref<32x128xf32, #tpu.memory_space<vmem>>, vector<32x128xf32>,
    %c1_i32 = arith.constant 1 : i32
    %23 = arith.cmpi eq, %arg2, %c1_i32 : i32
    %24 = arith.extui %23 : i1 to i32
    %c0_i32_14 = arith.constant 0 : i32
    %25 = arith.cmpi ne, %24, %c0_i32_14 : i32
    scf.if %25 {
      %c0_15 = arith.constant 0 : index
      %c0_16 = arith.constant 0 : index
      %26 = vector.load %arg11[%c0_15, %c0_16] : memref<32x128xf32, #tpu.memory_space<vmem>>, vector<32x128xf32>
      %c0_17 = arith.constant 0 : index
      %c0_18 = arith.constant 0 : index
      %27 = vector.load %arg5[%c0_17, %c0_18] : memref<1x128xf32, #tpu.memory_space<vmem>>, vector<1x128xf32>
      %28 = vector.broadcast %27 : vector<1x128xf32> to vector<32x128xf32>
      %29 = arith.addf %26, %28 : vector<32x128xf32>
      %30 = arith.truncf %29 : vector<32x128xf32> to vector<32x128xbf16>
      %c0_19 = arith.constant 0 : index
      %c0_20 = arith.constant 0 : index
      %31 = vector.load %arg8[%c0_19, %c0_20] : memref<32x128xbf16, #tpu.memory_space<vmem>>, vector<32x128xbf16>
      tpu.vector_store %arg8[%c0_19, %c0_20], %30 {strides = array<i32>} : memref<32x128xbf16, #tpu.memory_space<vmem>>, vector<32x128xbf16>,
      %32 = tpu.iota {dimensions = array<i32: 0>} : vector<32x128xi32>
      %33 = vector.broadcast %0 : i32 to vector<32x128xi32>
      %34 = arith.addi %32, %33 : vector<32x128xi32>
      %c32_i32_21 = arith.constant 32 : i32
      %35 = vector.broadcast %c32_i32_21 : i32 to vector<32x128xi32>
      %36 = arith.cmpi slt, %34, %35 : vector<32x128xi32>
      %37 = arith.extui %36 : vector<32x128xi1> to vector<32x128xi32>
      %38 = arith.sitofp %37 : vector<32x128xi32> to vector<32x128xf32>
      %39 = arith.mulf %29, %38 : vector<32x128xf32>
      %cst_22 = arith.constant dense<0.000000e+00> : vector<128xf32>
      %40 = vector.multi_reduction <add>, %39, %cst_22 [0] : vector<32x128xf32> to vector<128xf32>
      %41 = vector.shape_cast %40 : vector<128xf32> to vector<1x128xf32>
      %42 = arith.mulf %39, %39 : vector<32x128xf32>
      %cst_23 = arith.constant dense<0.000000e+00> : vector<128xf32>
      %43 = vector.multi_reduction <add>, %42, %cst_23 [0] : vector<32x128xf32> to vector<128xf32>
      %44 = vector.shape_cast %43 : vector<128xf32> to vector<1x128xf32>
      %45 = vector.shape_cast %41 : vector<1x128xf32> to vector<1x128xf32>
      %46 = vector.broadcast %45 : vector<1x128xf32> to vector<8x128xf32>
      %c0_24 = arith.constant 0 : index
      %c0_25 = arith.constant 0 : index
      %47 = vector.load %arg9[%c0_24, %c0_25] : memref<8x128xf32, #tpu.memory_space<vmem>>, vector<8x128xf32>
      tpu.vector_store %arg9[%c0_24, %c0_25], %46 {strides = array<i32>} : memref<8x128xf32, #tpu.memory_space<vmem>>, vector<8x128xf32>,
      %48 = vector.shape_cast %44 : vector<1x128xf32> to vector<1x128xf32>
      %49 = vector.broadcast %48 : vector<1x128xf32> to vector<8x128xf32>
      %c0_26 = arith.constant 0 : index
      %c0_27 = arith.constant 0 : index
      %50 = vector.load %arg10[%c0_26, %c0_27] : memref<8x128xf32, #tpu.memory_space<vmem>>, vector<8x128xf32>
      tpu.vector_store %arg10[%c0_26, %c0_27], %49 {strides = array<i32>} : memref<8x128xf32, #tpu.memory_space<vmem>>, vector<8x128xf32>,
    } else {
    }
    return
  }
  func.func @transform_0(%arg0: i32, %arg1: i32, %arg2: i32) -> (i32, i32) {
    %c0_i32 = arith.constant 0 : i32
    return %arg0, %arg2 : i32, i32
  }
  func.func @transform_1(%arg0: i32, %arg1: i32, %arg2: i32) -> (i32, i32) {
    %c0_i32 = arith.constant 0 : i32
    return %arg2, %arg1 : i32, i32
  }
  func.func @transform_2(%arg0: i32, %arg1: i32, %arg2: i32) -> (i32, i32) {
    %c0_i32 = arith.constant 0 : i32
    %c0_i32_0 = arith.constant 0 : i32
    return %c0_i32, %arg1 : i32, i32
  }
  func.func @transform_3(%arg0: i32, %arg1: i32, %arg2: i32) -> (i32, i32) {
    %c0_i32 = arith.constant 0 : i32
    %c0_i32_0 = arith.constant 0 : i32
    return %c0_i32, %arg2 : i32, i32
  }
  func.func @transform_4(%arg0: i32, %arg1: i32, %arg2: i32) -> (i32, i32) {
    %c0_i32 = arith.constant 0 : i32
    %c0_i32_0 = arith.constant 0 : i32
    return %c0_i32, %arg2 : i32, i32
  }
  func.func @transform_5(%arg0: i32, %arg1: i32, %arg2: i32) -> (i32, i32) {
    %c0_i32 = arith.constant 0 : i32
    return %arg0, %arg1 : i32, i32
  }
  func.func @transform_6(%arg0: i32, %arg1: i32, %arg2: i32) -> (i32, i32) {
    %c0_i32 = arith.constant 0 : i32
    return %arg0, %arg1 : i32, i32
  }
  func.func @transform_7(%arg0: i32, %arg1: i32, %arg2: i32) -> (i32, i32) {
    %c0_i32 = arith.constant 0 : i32
    return %arg0, %arg1 : i32, i32
  }
}

module attributes {stable_mosaic.version = 11 : i64} {
  func.func @_gemm_kernel(%arg0: i32, %arg1: i32, %arg2: i32, %arg3: memref<128x512xbf16, #tpu.memory_space<vmem>>, %arg4: memref<512x128xbf16, #tpu.memory_space<vmem>>, %arg5: memref<1x128xf32, #tpu.memory_space<vmem>>, %arg6: memref<1x512xf32, #tpu.memory_space<vmem>>, %arg7: memref<1x512xf32, #tpu.memory_space<vmem>>, %arg8: memref<128x128xbf16, #tpu.memory_space<vmem>>, %arg9: memref<8x128xf32, #tpu.memory_space<vmem>>, %arg10: memref<8x128xf32, #tpu.memory_space<vmem>>, %arg11: memref<128x128xf32, #tpu.memory_space<vmem>>) attributes {dimension_semantics = [#tpu.dimension_semantics<parallel>, #tpu.dimension_semantics<parallel>, #tpu.dimension_semantics<arbitrary>], iteration_bounds = array<i64: 1, 1, 1>, scalar_prefetch = 0 : i64, scratch_operands = 1 : i64, tpu.core_type = #tpu.core_type<tc>, window_params = [{transform_indices = @transform_0, window_bounds = array<i64: 128, 512>}, {transform_indices = @transform_1, window_bounds = array<i64: 512, 128>}, {transform_indices = @transform_2, window_bounds = array<i64: 1, 128>}, {transform_indices = @transform_3, window_bounds = array<i64: 1, 512>}, {transform_indices = @transform_4, window_bounds = array<i64: 1, 512>}, {transform_indices = @transform_5, window_bounds = array<i64: 128, 128>}, {transform_indices = @transform_6, window_bounds = array<i64: 8, 128>}, {transform_indices = @transform_7, window_bounds = array<i64: 8, 128>}]} {
    %c128_i32 = arith.constant 128 : i32
    %0 = arith.muli %arg0, %c128_i32 : i32
    %c0_i32 = arith.constant 0 : i32
    %1 = arith.cmpi eq, %arg2, %c0_i32 : i32
    %2 = arith.extui %1 : i1 to i32
    %c0_i32_0 = arith.constant 0 : i32
    %3 = arith.cmpi ne, %2, %c0_i32_0 : i32
    scf.if %3 {
      %cst_16 = arith.constant 0.000000e+00 : f32
      %26 = vector.broadcast %cst_16 : f32 to vector<128x128xf32>
      %c0_17 = arith.constant 0 : index
      %c0_18 = arith.constant 0 : index
      %27 = vector.load %arg11[%c0_17, %c0_18] : memref<128x128xf32, #tpu.memory_space<vmem>>, vector<128x128xf32>
      tpu.vector_store %arg11[%c0_17, %c0_18], %26 {strides = array<i32>} : memref<128x128xf32, #tpu.memory_space<vmem>>, vector<128x128xf32>,
    } else {
    }
    %c0 = arith.constant 0 : index
    %c0_1 = arith.constant 0 : index
    %4 = vector.load %arg3[%c0, %c0_1] : memref<128x512xbf16, #tpu.memory_space<vmem>>, vector<128x512xbf16>
    %5 = arith.extf %4 : vector<128x512xbf16> to vector<128x512xf32>
    %c0_2 = arith.constant 0 : index
    %c0_3 = arith.constant 0 : index
    %6 = vector.load %arg6[%c0_2, %c0_3] : memref<1x512xf32, #tpu.memory_space<vmem>>, vector<1x512xf32>
    %7 = vector.broadcast %6 : vector<1x512xf32> to vector<128x512xf32>
    %8 = arith.mulf %5, %7 : vector<128x512xf32>
    %c0_4 = arith.constant 0 : index
    %c0_5 = arith.constant 0 : index
    %9 = vector.load %arg7[%c0_4, %c0_5] : memref<1x512xf32, #tpu.memory_space<vmem>>, vector<1x512xf32>
    %10 = vector.broadcast %9 : vector<1x512xf32> to vector<128x512xf32>
    %11 = arith.addf %8, %10 : vector<128x512xf32>
    %cst = arith.constant 0.000000e+00 : f32
    %12 = vector.broadcast %cst : f32 to vector<128x512xf32>
    %13 = arith.cmpf ogt, %11, %12 : vector<128x512xf32>
    %cst_6 = arith.constant 0.00999999977 : f32
    %14 = vector.broadcast %cst_6 : f32 to vector<128x512xf32>
    %15 = arith.mulf %14, %11 : vector<128x512xf32>
    %16 = arith.select %13, %11, %15 : vector<128x512xi1>, vector<128x512xf32>
    %c0_7 = arith.constant 0 : index
    %c0_8 = arith.constant 0 : index
    %17 = vector.load %arg11[%c0_7, %c0_8] : memref<128x128xf32, #tpu.memory_space<vmem>>, vector<128x128xf32>
    %18 = arith.truncf %16 : vector<128x512xf32> to vector<128x512xbf16>
    %c0_9 = arith.constant 0 : index
    %c0_10 = arith.constant 0 : index
    %19 = vector.load %arg4[%c0_9, %c0_10] : memref<512x128xbf16, #tpu.memory_space<vmem>>, vector<512x128xbf16>
    %cst_11 = arith.constant dense<0.000000e+00> : vector<128x128xf32>
    %20 = tpu.matmul %18, %19, %cst_11 {dimension_numbers = #tpu.dot_dimension_numbers<[1], [0], [0], [1], [0, 0, 1, 1], [], []>} : vector<128x512xbf16>, vector<512x128xbf16>, vector<128x128xf32> -> vector<128x128xf32>
    %21 = arith.addf %17, %20 : vector<128x128xf32>
    %c0_12 = arith.constant 0 : index
    %c0_13 = arith.constant 0 : index
    %22 = vector.load %arg11[%c0_12, %c0_13] : memref<128x128xf32, #tpu.memory_space<vmem>>, vector<128x128xf32>
    tpu.vector_store %arg11[%c0_12, %c0_13], %21 {strides = array<i32>} : memref<128x128xf32, #tpu.memory_space<vmem>>, vector<128x128xf32>,
    %c0_i32_14 = arith.constant 0 : i32
    %23 = arith.cmpi eq, %arg2, %c0_i32_14 : i32
    %24 = arith.extui %23 : i1 to i32
    %c0_i32_15 = arith.constant 0 : i32
    %25 = arith.cmpi ne, %24, %c0_i32_15 : i32
    scf.if %25 {
      %c0_16 = arith.constant 0 : index
      %c0_17 = arith.constant 0 : index
      %26 = vector.load %arg11[%c0_16, %c0_17] : memref<128x128xf32, #tpu.memory_space<vmem>>, vector<128x128xf32>
      %c0_18 = arith.constant 0 : index
      %c0_19 = arith.constant 0 : index
      %27 = vector.load %arg5[%c0_18, %c0_19] : memref<1x128xf32, #tpu.memory_space<vmem>>, vector<1x128xf32>
      %28 = vector.broadcast %27 : vector<1x128xf32> to vector<128x128xf32>
      %29 = arith.addf %26, %28 : vector<128x128xf32>
      %30 = arith.truncf %29 : vector<128x128xf32> to vector<128x128xbf16>
      %c0_20 = arith.constant 0 : index
      %c0_21 = arith.constant 0 : index
      %31 = vector.load %arg8[%c0_20, %c0_21] : memref<128x128xbf16, #tpu.memory_space<vmem>>, vector<128x128xbf16>
      tpu.vector_store %arg8[%c0_20, %c0_21], %30 {strides = array<i32>} : memref<128x128xbf16, #tpu.memory_space<vmem>>, vector<128x128xbf16>,
      %32 = tpu.iota {dimensions = array<i32: 0>} : vector<128x128xi32>
      %33 = vector.broadcast %0 : i32 to vector<128x128xi32>
      %34 = arith.addi %32, %33 : vector<128x128xi32>
      %c128_i32_22 = arith.constant 128 : i32
      %35 = vector.broadcast %c128_i32_22 : i32 to vector<128x128xi32>
      %36 = arith.cmpi slt, %34, %35 : vector<128x128xi32>
      %37 = arith.extui %36 : vector<128x128xi1> to vector<128x128xi32>
      %38 = arith.sitofp %37 : vector<128x128xi32> to vector<128x128xf32>
      %39 = arith.mulf %29, %38 : vector<128x128xf32>
      %cst_23 = arith.constant dense<0.000000e+00> : vector<128xf32>
      %40 = vector.multi_reduction <add>, %39, %cst_23 [0] : vector<128x128xf32> to vector<128xf32>
      %41 = vector.shape_cast %40 : vector<128xf32> to vector<1x128xf32>
      %42 = arith.mulf %39, %39 : vector<128x128xf32>
      %cst_24 = arith.constant dense<0.000000e+00> : vector<128xf32>
      %43 = vector.multi_reduction <add>, %42, %cst_24 [0] : vector<128x128xf32> to vector<128xf32>
      %44 = vector.shape_cast %43 : vector<128xf32> to vector<1x128xf32>
      %45 = vector.shape_cast %41 : vector<1x128xf32> to vector<1x128xf32>
      %46 = vector.broadcast %45 : vector<1x128xf32> to vector<8x128xf32>
      %c0_25 = arith.constant 0 : index
      %c0_26 = arith.constant 0 : index
      %47 = vector.load %arg9[%c0_25, %c0_26] : memref<8x128xf32, #tpu.memory_space<vmem>>, vector<8x128xf32>
      tpu.vector_store %arg9[%c0_25, %c0_26], %46 {strides = array<i32>} : memref<8x128xf32, #tpu.memory_space<vmem>>, vector<8x128xf32>,
      %48 = vector.shape_cast %44 : vector<1x128xf32> to vector<1x128xf32>
      %49 = vector.broadcast %48 : vector<1x128xf32> to vector<8x128xf32>
      %c0_27 = arith.constant 0 : index
      %c0_28 = arith.constant 0 : index
      %50 = vector.load %arg10[%c0_27, %c0_28] : memref<8x128xf32, #tpu.memory_space<vmem>>, vector<8x128xf32>
      tpu.vector_store %arg10[%c0_27, %c0_28], %49 {strides = array<i32>} : memref<8x128xf32, #tpu.memory_space<vmem>>, vector<8x128xf32>,
    } else {
    }
    return
  }
  func.func @transform_0(%arg0: i32, %arg1: i32, %arg2: i32) -> (i32, i32) {
    %c0_i32 = arith.constant 0 : i32
    return %arg0, %arg2 : i32, i32
  }
  func.func @transform_1(%arg0: i32, %arg1: i32, %arg2: i32) -> (i32, i32) {
    %c0_i32 = arith.constant 0 : i32
    return %arg2, %arg1 : i32, i32
  }
  func.func @transform_2(%arg0: i32, %arg1: i32, %arg2: i32) -> (i32, i32) {
    %c0_i32 = arith.constant 0 : i32
    %c0_i32_0 = arith.constant 0 : i32
    return %c0_i32, %arg1 : i32, i32
  }
  func.func @transform_3(%arg0: i32, %arg1: i32, %arg2: i32) -> (i32, i32) {
    %c0_i32 = arith.constant 0 : i32
    %c0_i32_0 = arith.constant 0 : i32
    return %c0_i32, %arg2 : i32, i32
  }
  func.func @transform_4(%arg0: i32, %arg1: i32, %arg2: i32) -> (i32, i32) {
    %c0_i32 = arith.constant 0 : i32
    %c0_i32_0 = arith.constant 0 : i32
    return %c0_i32, %arg2 : i32, i32
  }
  func.func @transform_5(%arg0: i32, %arg1: i32, %arg2: i32) -> (i32, i32) {
    %c0_i32 = arith.constant 0 : i32
    return %arg0, %arg1 : i32, i32
  }
  func.func @transform_6(%arg0: i32, %arg1: i32, %arg2: i32) -> (i32, i32) {
    %c0_i32 = arith.constant 0 : i32
    return %arg0, %arg1 : i32, i32
  }
  func.func @transform_7(%arg0: i32, %arg1: i32, %arg2: i32) -> (i32, i32) {
    %c0_i32 = arith.constant 0 : i32
    return %arg0, %arg1 : i32, i32
  }
}

module attributes {stable_mosaic.version = 11 : i64} {
  func.func @_gemm_kernel(%arg0: i32, %arg1: i32, %arg2: i32, %arg3: memref<256x256xbf16, #tpu.memory_space<vmem>>, %arg4: memref<256x128xbf16, #tpu.memory_space<vmem>>, %arg5: memref<1x128xf32, #tpu.memory_space<vmem>>, %arg6: memref<1x256xf32, #tpu.memory_space<vmem>>, %arg7: memref<1x256xf32, #tpu.memory_space<vmem>>, %arg8: memref<256x128xf32, #tpu.memory_space<vmem>>, %arg9: memref<256x128xf32, #tpu.memory_space<vmem>>) attributes {dimension_semantics = [#tpu.dimension_semantics<parallel>, #tpu.dimension_semantics<parallel>, #tpu.dimension_semantics<arbitrary>], iteration_bounds = array<i64: 2, 1, 1>, scalar_prefetch = 0 : i64, scratch_operands = 1 : i64, tpu.core_type = #tpu.core_type<tc>, window_params = [{transform_indices = @transform_0, window_bounds = array<i64: 256, 256>}, {transform_indices = @transform_1, window_bounds = array<i64: 256, 128>}, {transform_indices = @transform_2, window_bounds = array<i64: 1, 128>}, {transform_indices = @transform_3, window_bounds = array<i64: 1, 256>}, {transform_indices = @transform_4, window_bounds = array<i64: 1, 256>}, {transform_indices = @transform_5, window_bounds = array<i64: 256, 128>}]} {
    %c0_i32 = arith.constant 0 : i32
    %0 = arith.cmpi eq, %arg2, %c0_i32 : i32
    %1 = arith.extui %0 : i1 to i32
    %c0_i32_0 = arith.constant 0 : i32
    %2 = arith.cmpi ne, %1, %c0_i32_0 : i32
    scf.if %2 {
      %cst_16 = arith.constant 0.000000e+00 : f32
      %25 = vector.broadcast %cst_16 : f32 to vector<256x128xf32>
      %c0_17 = arith.constant 0 : index
      %c0_18 = arith.constant 0 : index
      %26 = vector.load %arg9[%c0_17, %c0_18] : memref<256x128xf32, #tpu.memory_space<vmem>>, vector<256x128xf32>
      tpu.vector_store %arg9[%c0_17, %c0_18], %25 {strides = array<i32>} : memref<256x128xf32, #tpu.memory_space<vmem>>, vector<256x128xf32>,
    } else {
    }
    %c0 = arith.constant 0 : index
    %c0_1 = arith.constant 0 : index
    %3 = vector.load %arg3[%c0, %c0_1] : memref<256x256xbf16, #tpu.memory_space<vmem>>, vector<256x256xbf16>
    %4 = arith.extf %3 : vector<256x256xbf16> to vector<256x256xf32>
    %c0_2 = arith.constant 0 : index
    %c0_3 = arith.constant 0 : index
    %5 = vector.load %arg6[%c0_2, %c0_3] : memref<1x256xf32, #tpu.memory_space<vmem>>, vector<1x256xf32>
    %6 = vector.broadcast %5 : vector<1x256xf32> to vector<256x256xf32>
    %7 = arith.mulf %4, %6 : vector<256x256xf32>
    %c0_4 = arith.constant 0 : index
    %c0_5 = arith.constant 0 : index
    %8 = vector.load %arg7[%c0_4, %c0_5] : memref<1x256xf32, #tpu.memory_space<vmem>>, vector<1x256xf32>
    %9 = vector.broadcast %8 : vector<1x256xf32> to vector<256x256xf32>
    %10 = arith.addf %7, %9 : vector<256x256xf32>
    %cst = arith.constant 0.000000e+00 : f32
    %11 = vector.broadcast %cst : f32 to vector<256x256xf32>
    %12 = arith.cmpf ogt, %10, %11 : vector<256x256xf32>
    %cst_6 = arith.constant 0.00999999977 : f32
    %13 = vector.broadcast %cst_6 : f32 to vector<256x256xf32>
    %14 = arith.mulf %13, %10 : vector<256x256xf32>
    %15 = arith.select %12, %10, %14 : vector<256x256xi1>, vector<256x256xf32>
    %c0_7 = arith.constant 0 : index
    %c0_8 = arith.constant 0 : index
    %16 = vector.load %arg9[%c0_7, %c0_8] : memref<256x128xf32, #tpu.memory_space<vmem>>, vector<256x128xf32>
    %17 = arith.truncf %15 : vector<256x256xf32> to vector<256x256xbf16>
    %c0_9 = arith.constant 0 : index
    %c0_10 = arith.constant 0 : index
    %18 = vector.load %arg4[%c0_9, %c0_10] : memref<256x128xbf16, #tpu.memory_space<vmem>>, vector<256x128xbf16>
    %cst_11 = arith.constant dense<0.000000e+00> : vector<256x128xf32>
    %19 = tpu.matmul %17, %18, %cst_11 {dimension_numbers = #tpu.dot_dimension_numbers<[1], [0], [0], [1], [0, 0, 1, 1], [], []>} : vector<256x256xbf16>, vector<256x128xbf16>, vector<256x128xf32> -> vector<256x128xf32>
    %20 = arith.addf %16, %19 : vector<256x128xf32>
    %c0_12 = arith.constant 0 : index
    %c0_13 = arith.constant 0 : index
    %21 = vector.load %arg9[%c0_12, %c0_13] : memref<256x128xf32, #tpu.memory_space<vmem>>, vector<256x128xf32>
    tpu.vector_store %arg9[%c0_12, %c0_13], %20 {strides = array<i32>} : memref<256x128xf32, #tpu.memory_space<vmem>>, vector<256x128xf32>,
    %c0_i32_14 = arith.constant 0 : i32
    %22 = arith.cmpi eq, %arg2, %c0_i32_14 : i32
    %23 = arith.extui %22 : i1 to i32
    %c0_i32_15 = arith.constant 0 : i32
    %24 = arith.cmpi ne, %23, %c0_i32_15 : i32
    scf.if %24 {
      %c0_16 = arith.constant 0 : index
      %c0_17 = arith.constant 0 : index
      %25 = vector.load %arg9[%c0_16, %c0_17] : memref<256x128xf32, #tpu.memory_space<vmem>>, vector<256x128xf32>
      %c0_18 = arith.constant 0 : index
      %c0_19 = arith.constant 0 : index
      %26 = vector.load %arg5[%c0_18, %c0_19] : memref<1x128xf32, #tpu.memory_space<vmem>>, vector<1x128xf32>
      %27 = vector.broadcast %26 : vector<1x128xf32> to vector<256x128xf32>
      %28 = arith.addf %25, %27 : vector<256x128xf32>
      %29 = math.tanh %28 : vector<256x128xf32>
      %c0_20 = arith.constant 0 : index
      %c0_21 = arith.constant 0 : index
      %30 = vector.load %arg8[%c0_20, %c0_21] : memref<256x128xf32, #tpu.memory_space<vmem>>, vector<256x128xf32>
      tpu.vector_store %arg8[%c0_20, %c0_21], %29 {strides = array<i32>} : memref<256x128xf32, #tpu.memory_space<vmem>>, vector<256x128xf32>,
    } else {
    }
    return
  }
  func.func @transform_0(%arg0: i32, %arg1: i32, %arg2: i32) -> (i32, i32) {
    %c0_i32 = arith.constant 0 : i32
    return %arg0, %arg2 : i32, i32
  }
  func.func @transform_1(%arg0: i32, %arg1: i32, %arg2: i32) -> (i32, i32) {
    %c0_i32 = arith.constant 0 : i32
    return %arg2, %arg1 : i32, i32
  }
  func.func @transform_2(%arg0: i32, %arg1: i32, %arg2: i32) -> (i32, i32) {
    %c0_i32 = arith.constant 0 : i32
    %c0_i32_0 = arith.constant 0 : i32
    return %c0_i32, %arg1 : i32, i32
  }
  func.func @transform_3(%arg0: i32, %arg1: i32, %arg2: i32) -> (i32, i32) {
    %c0_i32 = arith.constant 0 : i32
    %c0_i32_0 = arith.constant 0 : i32
    return %c0_i32, %arg2 : i32, i32
  }
  func.func @transform_4(%arg0: i32, %arg1: i32, %arg2: i32) -> (i32, i32) {
    %c0_i32 = arith.constant 0 : i32
    %c0_i32_0 = arith.constant 0 : i32
    return %c0_i32, %arg2 : i32, i32
  }
  func.func @transform_5(%arg0: i32, %arg1: i32, %arg2: i32) -> (i32, i32) {
    %c0_i32 = arith.constant 0 : i32
    return %arg0, %arg1 : i32, i32
  }
}

</mosaic_0001>

<bundles_post_ra>
// kernel: autoencoder_forward.23
= control target key start
LH: loop header
LB: loop body
LE: loop exit
PB: predicated region body
PF: predicated region fallthrough
CT: control target
= control target key end

     0   :  { %s2187_s24 = smov 0   ;;  %s2189_s25 = smov 0   ;;  %s2658_s0 = inlined_call_operand.vmem [shape: bf16[512,128], index: 0, kind: input, shape index: {}]   ;;  %s2659_s1 = inlined_call_operand.vmem [shape: bf16[128,128], index: 1, kind: input, shape index: {}]   ;;  %s2660_s2 = inlined_call_operand.vmem [shape: f32[1,128], index: 2, kind: input, shape index: {}]   ;;  %s2661_s3 = inlined_call_operand.vmem [shape: f32[1,128], index: 3, kind: input, shape index: {}]   ;;  %s2662_s4 = inlined_call_operand.vmem [shape: f32[1,128], index: 4, kind: input, shape index: {}]   ;;  %s2663_s5 = inlined_call_operand.vmem [shape: bf16[512,128], index: 5, kind: output, shape index: {0}]   ;;  %s2664_s6 = inlined_call_operand.vmem [shape: f32[16,128], index: 6, kind: output, shape index: {1}]   ;;  %s2665_s7 = inlined_call_operand.vmem [shape: f32[16,128], index: 7, kind: output, shape index: {2}]  }
   0x1   :  { %s2191_s26 = smov 0  }
   0x2 LB: > { %s37_s27 = sadd.s32 1, %s2140_s25  ;;  %p1710_p0 = scmp.ge.s32.totalorder %s2144_s26, 1  ;;  %s2144_s26 = sphi %s2191_s26, %s18_s26   ;;  %s2140_s25 = sphi %s2189_s25, %s2667_s25   ;;  %s2136_s24 = sphi %s2187_s24, %s2666_s24  }
   0x3   : > { %p39_p1 = scmp.ge.s32.totalorder %s37_s27, 2  ;;  %p313_p2 = scmp.lt.s32.totalorder %s2144_s26, 3 }
   0x5   : > { %s2669_s27 = smov (%p39_p1, %s37_s27), 0  ;;  %p314_p3 = pnand %p1710_p0, %p313_p2 }
   0x6   : > { %s1711_s30 = sshll.u32 (!%p314_p3), %s2136_s24, 5  ;;  %s1717_s13 = sshll.u32 (!%p314_p3), %s2136_s24, 8 }
   0x7   : > { %317 = sbr.rel (%p314_p3) target bundleno = 325 (0x145), region = 40  ;;  %p383_p4 = scmp.lt.s32.totalorder (!%p314_p3), %s1711_s30, 63 }
   0x8   : > { %p418_p5 = scmp.lt.s32.totalorder (!%p314_p3), %s2136_s24, 1 }
   0xc   : > { %v2114_v0 = vld [vmem:[%s2659_s1 + $0x38] sm:$0xff]   ;;  %v2115_v1 = vld [vmem:[%s2659_s1 + $0x30] sm:$0xff]   ;;  %s2671_s30 = smov (!%p383_p4, %s1711_s30), 63  ;;  %v2116_v2 = vld [vmem:[%s2659_s1 + $0x28] sm:$0xff]   ;;  %s2673_s24 = smov (!%p418_p5, %s2136_s24), 1 }
   0xd   : > { %2025 = vmatprep.subr.bf16.mxu0 %v2114_v0  ;;  %2073 = vmatprep.subr.bf16.mxu1 %v2114_v0  ;;  %s1712_s12 = sshll.u32 %s2671_s30, 2  ;;  %v2117_v3 = vld [vmem:[%s2659_s1 + $0x20] sm:$0xff]   ;;  %v2118_v12 = vld [vmem:[%s2659_s1 + $0x18] sm:$0xff]   ;;  %v2119_v21 = vld [vmem:[%s2659_s1 + $0x10] sm:$0xff]   ;;  %s1715_s30 = sshll.u32 %s2673_s24, 3 }
   0xe   : > { %2026 = vmatpush3.bf16.msra.mxu0 %v2114_v0  ;;  %2081 = vmatpush3.bf16.msra.mxu1 %v2114_v0  ;;  %s2225_s15 = scalar_lea.vmem %s2658_s0, %s1712_s12  ;;  %v2234_v5 = vld [vmem:[%s2661_s3] ss:$0 sm:$0xff]  ;;  %v2120_v29 = vld [vmem:[%s2659_s1 + $0x8] sm:$0xff]   ;;  %s2422_s18 = scalar_lea.vmem %s2663_s5, %s1712_s12 }
   0xf   : > { %2027 = vmatprep.subr.bf16.mxu0 %v2115_v1  ;;  %2074 = vmatprep.subr.bf16.mxu1 %v2115_v1  ;;  %v1828_v4 = vld [vmem:[%s2225_s15] sm:$0xff]   ;;  %v1971_v11 = vld [vmem:[%s2225_s15 + $0x8] sm:$0xff]   ;;  %v1972_v13 = vld [vmem:[%s2225_s15 + $0x10] sm:$0xff]   ;;  %s424_s20 = scalar_lea.vmem %s2664_s6, %s1715_s30  ;;  %s431_s23 = scalar_lea.vmem %s2665_s7, %s1715_s30 }
  0x10   : > { %v1829_v6 = vunpack.c.l.bf16 %v1828_v4  ;;  %v1830_v7 = vunpack.c.h.bf16 %v1828_v4  ;;  %v2239_v8 = vld [vmem:[%s2662_s4] ss:$0 sm:$0xff]  ;;  %v1833_v16 = vunpack.c.l.bf16 %v1971_v11  ;;  %v1834_v18 = vunpack.c.h.bf16 %v1971_v11  ;;  %v1973_v20 = vld [vmem:[%s2225_s15 + $0x18] sm:$0xff]   ;;  %v1979_v32 = vld [vmem:[%s2225_s15 + $0x48] sm:$0xff]  }
  0x11   : > { %v1837_v19 = vunpack.c.l.bf16 %v1972_v13  ;;  %v1838_v22 = vunpack.c.h.bf16 %v1972_v13  ;;  %v1978_v23 = vld [vmem:[%s2225_s15 + $0x40] sm:$0xff]   ;;  %v1841_v25 = vunpack.c.l.bf16 %v1973_v20  ;;  %v1842_v30 = vunpack.c.h.bf16 %v1973_v20  ;;  %v1980_v35 = vld [vmem:[%s2225_s15 + $0x50] sm:$0xff]   ;;  %v1981_v44 = vld [vmem:[%s2225_s15 + $0x58] sm:$0xff]  }
  0x12   : > { %2028 = vmatpush3.bf16.msra.mxu0 %v2115_v1  ;;  %2082 = vmatpush3.bf16.msra.mxu1 %v2115_v1  ;;  %v541_v9 = vmul.f32 %v1829_v6, %v2234_v5  ;;  %v542_v10 = vmul.f32 %v1830_v7, %v2234_v5  ;;  %v543_v24 = vmul.f32 %v1833_v16, %v2234_v5  ;;  %v1974_v26 = vld [vmem:[%s2225_s15 + $0x20] sm:$0xff]   ;;  %v1861_v31 = vunpack.c.l.bf16 %v1978_v23  ;;  %v1975_v6 = vld [vmem:[%s2225_s15 + $0x28] sm:$0xff]   ;;  %v1976_v11 = vld [vmem:[%s2225_s15 + $0x30] sm:$0xff]  }
  0x13   : > { %2029 = vmatprep.subr.bf16.mxu0 %v2116_v2  ;;  %2075 = vmatprep.subr.bf16.mxu1 %v2116_v2  ;;  %v544_v27 = vmul.f32 %v1834_v18, %v2234_v5  ;;  %v545_v28 = vmul.f32 %v1837_v19, %v2234_v5  ;;  %v546_v33 = vmul.f32 %v1838_v22, %v2234_v5  ;;  %v1845_v34 = vunpack.c.l.bf16 %v1974_v26  ;;  %v2121_v45 = vld [vmem:[%s2659_s1] sm:$0xff]   ;;  %v1983_v18 = vld [vmem:[%s2225_s15 + $0x68] sm:$0xff]  }
  0x14   : > { %v580_v14 = vadd.f32 %v2239_v8, %v541_v9  ;;  %v581_v15 = vadd.f32 %v2239_v8, %v542_v10  ;;  %v2266_v36 = vadd.f32 %v2239_v8, %v543_v24  ;;  %v547_v37 = vmul.f32 %v1841_v25, %v2234_v5  ;;  %v1982_v54 = vld [vmem:[%s2225_s15 + $0x60] sm:$0xff]  }
  0x15   : > { %v1862_v38 = vunpack.c.h.bf16 %v1978_v23  ;;  %v557_v39 = vmul.f32 %v1861_v31, %v2234_v5  ;;  %v583_v40 = vadd.f32 %v2239_v8, %v544_v27  ;;  %v2272_v41 = vadd.f32 %v2239_v8, %v545_v28  ;;  %v1984_v23 = vld [vmem:[%s2225_s15 + $0x70] sm:$0xff]  }
  0x16   : > { %2030 = vmatpush3.bf16.msra.mxu0 %v2116_v2  ;;  %2083 = vmatpush3.bf16.msra.mxu1 %v2116_v2  ;;  %v644_v17 = vpack.c.bf16 %v581_v15, %v580_v14  ;;  %v1865_v42 = vunpack.c.l.bf16 %v1979_v32  ;;  %v1866_v43 = vunpack.c.h.bf16 %v1979_v32  ;;  %v548_v46 = vmul.f32 %v1842_v30, %v2234_v5 }
  0x17   : > { %2031 = vmatprep.subr.bf16.mxu0 %v2117_v3  ;;  %2076 = vmatprep.subr.bf16.mxu1 %v2117_v3  ;;  %v1846_v47 = vunpack.c.h.bf16 %v1974_v26  ;;  %v558_v48 = vmul.f32 %v1862_v38, %v2234_v5  ;;  %v1869_v49 = vunpack.c.l.bf16 %v1980_v35  ;;  %v596_v50 = vadd.f32 %v2239_v8, %v557_v39 }
  0x18   : > { %2041 = vmatprep.mubr.bf16.mxu0 %v644_v17  ;;  %v559_v51 = vmul.f32 %v1865_v42, %v2234_v5  ;;  %v560_v52 = vmul.f32 %v1866_v43, %v2234_v5  ;;  %v1870_v53 = vunpack.c.h.bf16 %v1980_v35  ;;  %v585_v55 = vadd.f32 %v2239_v8, %v546_v33 }
  0x19   : > { %v597_v56 = vadd.f32 %v2239_v8, %v558_v48  ;;  %v561_v57 = vmul.f32 %v1869_v49, %v2234_v5  ;;  %v1873_v58 = vunpack.c.l.bf16 %v1981_v44  ;;  %v1874_v62 = vunpack.c.h.bf16 %v1981_v44  ;;  %v1985_v49 = vld [vmem:[%s2225_s15 + $0x78] sm:$0xff]  }
  0x1a   : > { %2032 = vmatpush3.bf16.msra.mxu0 %v2117_v3  ;;  %2084 = vmatpush3.bf16.msra.mxu1 %v2117_v3  ;;  %v598_v59 = vadd.f32 %v2239_v8, %v559_v51  ;;  %v599_v60 = vadd.f32 %v2239_v8, %v560_v52  ;;  %v562_v61 = vmul.f32 %v1870_v53, %v2234_v5  ;;  %v1877_v2 = vunpack.c.l.bf16 %v1982_v54 }
  0x1b   : > { %2033 = vmatprep.subr.bf16.mxu0 %v2118_v12  ;;  %2077 = vmatprep.subr.bf16.mxu1 %v2118_v12  ;;  %v645_v63 = vpack.c.bf16 %v583_v40, %v2266_v36  ;;  %v652_v0 = vpack.c.bf16 %v597_v56, %v596_v50  ;;  %v600_v1 = vadd.f32 %v2239_v8, %v561_v57  ;;  %v1878_v9 = vunpack.c.h.bf16 %v1982_v54  ;;  %v1977_v40 = vld [vmem:[%s2225_s15 + $0x38] sm:$0xff]  }
  0x1c   : > { %v549_v3 = vmul.f32 %v1845_v34, %v2234_v5  ;;  %v550_v4 = vmul.f32 %v1846_v47, %v2234_v5  ;;  %v601_v7 = vadd.f32 %v2239_v8, %v562_v61  ;;  %v646_v10 = vpack.c.bf16 %v585_v55, %v2272_v41 }
  0x1d   : > { %2057 = vmatprep.mubr.bf16.mxu1 %v652_v0  ;;  %v563_v13 = vmul.f32 %v1873_v58, %v2234_v5  ;;  %v564_v14 = vmul.f32 %v1874_v62, %v2234_v5  ;;  %v565_v16 = vmul.f32 %v1877_v2, %v2234_v5  ;;  %v566_v17 = vmul.f32 %v1878_v9, %v2234_v5 }
  0x1e   : > { %2034 = vmatpush3.bf16.msra.mxu0 %v2118_v12  ;;  %2085 = vmatpush3.bf16.msra.mxu1 %v2118_v12  ;;  %v653_v12 = vpack.c.bf16 %v599_v60, %v598_v59  ;;  %v654_v15 = vpack.c.bf16 %v601_v7, %v600_v1  ;;  %v586_v19 = vadd.f32 %v2239_v8, %v547_v37  ;;  %v1850_v22 = vunpack.c.h.bf16 %v1975_v6 }
  0x1f   : > { %2035 = vmatprep.subr.bf16.mxu0 %v2119_v21  ;;  %2078 = vmatprep.subr.bf16.mxu1 %v2119_v21  ;;  %v587_v20 = vadd.f32 %v2239_v8, %v548_v46  ;;  %v588_v24 = vadd.f32 %v2239_v8, %v549_v3  ;;  %v589_v25 = vadd.f32 %v2239_v8, %v550_v4  ;;  %v1853_v26 = vunpack.c.l.bf16 %v1976_v11 }
  0x20   : > { %v1854_v27 = vunpack.c.h.bf16 %v1976_v11  ;;  %v602_v28 = vadd.f32 %v2239_v8, %v563_v13  ;;  %v1881_v30 = vunpack.c.l.bf16 %v1983_v18  ;;  %v1882_v31 = vunpack.c.h.bf16 %v1983_v18 }
  0x21   : > { %v604_v32 = vadd.f32 %v2239_v8, %v565_v16  ;;  %v605_v33 = vadd.f32 %v2239_v8, %v566_v17  ;;  %v1885_v34 = vunpack.c.l.bf16 %v1984_v23  ;;  %v1886_v35 = vunpack.c.h.bf16 %v1984_v23 }
  0x22   : > { %2036 = vmatpush3.bf16.msra.mxu0 %v2119_v21  ;;  %2086 = vmatpush3.bf16.msra.mxu1 %v2119_v21  ;;  %v1849_v21 = vunpack.c.l.bf16 %v1975_v6  ;;  %v647_v36 = vpack.c.bf16 %v587_v20, %v586_v19  ;;  %v552_v38 = vmul.f32 %v1850_v22, %v2234_v5  ;;  %v553_v39 = vmul.f32 %v1853_v26, %v2234_v5 }
  0x23   : > { %2037 = vmatprep.subr.bf16.mxu0 %v2120_v29  ;;  %2079 = vmatprep.subr.bf16.mxu1 %v2120_v29  ;;  %v554_v41 = vmul.f32 %v1854_v27, %v2234_v5  ;;  %v567_v43 = vmul.f32 %v1881_v30, %v2234_v5  ;;  %v568_v44 = vmul.f32 %v1882_v31, %v2234_v5  ;;  %v1857_v50 = vunpack.c.l.bf16 %v1977_v40 }
  0x24   : > { %v551_v37 = vmul.f32 %v1849_v21, %v2234_v5  ;;  %v656_v46 = vpack.c.bf16 %v605_v33, %v604_v32  ;;  %v569_v47 = vmul.f32 %v1885_v34, %v2234_v5  ;;  %v570_v48 = vmul.f32 %v1886_v35, %v2234_v5 }
  0x25   : > { %v591_v52 = vadd.f32 %v2239_v8, %v552_v38  ;;  %v592_v53 = vadd.f32 %v2239_v8, %v553_v39  ;;  %v1858_v54 = vunpack.c.h.bf16 %v1977_v40  ;;  %v606_v55 = vadd.f32 %v2239_v8, %v567_v43 }
  0x26   : > { %2038 = vmatpush3.bf16.msra.mxu0 %v2120_v29  ;;  %2087 = vmatpush3.bf16.msra.mxu1 %v2120_v29  ;;  %v603_v29 = vadd.f32 %v2239_v8, %v564_v14  ;;  %v590_v51 = vadd.f32 %v2239_v8, %v551_v37  ;;  %v607_v56 = vadd.f32 %v2239_v8, %v568_v44  ;;  %v1889_v57 = vunpack.c.l.bf16 %v1985_v49 }
  0x27   : > { %2039 = vmatprep.subr.bf16.mxu0 %v2121_v45  ;;  %2080 = vmatprep.subr.bf16.mxu1 %v2121_v45  ;;  %v1890_v58 = vunpack.c.h.bf16 %v1985_v49  ;;  %v593_v59 = vadd.f32 %v2239_v8, %v554_v41  ;;  %v608_v60 = vadd.f32 %v2239_v8, %v569_v47  ;;  %v609_v61 = vadd.f32 %v2239_v8, %v570_v48  ;;  %v2384_v49 = vld [vmem:[%s2660_s2] ss:$0 sm:$0xff] }
  0x28   : > { %v655_v42 = vpack.c.bf16 %v603_v29, %v602_v28  ;;  %v555_v62 = vmul.f32 %v1857_v50, %v2234_v5  ;;  %v649_v0 = vpack.c.bf16 %v591_v52, %v590_v51  ;;  %v657_v1 = vpack.c.bf16 %v607_v56, %v606_v55 }
  0x29   : > { %v571_v2 = vmul.f32 %v1889_v57, %v2234_v5  ;;  %v572_v3 = vmul.f32 %v1890_v58, %v2234_v5  ;;  %v650_v4 = vpack.c.bf16 %v593_v59, %v592_v53  ;;  %v658_v6 = vpack.c.bf16 %v609_v61, %v608_v60 }
  0x2a   : > { %2040 = vmatpush3.bf16.msra.mxu0 %v2121_v45  ;;  %2088 = vmatpush3.bf16.msra.mxu1 %v2121_v45  ;;  %v648_v45 = vpack.c.bf16 %v589_v25, %v588_v24  ;;  %v594_v7 = vadd.f32 %v2239_v8, %v555_v62  ;;  %v2342_v16 = vstv %s1717_s13  ;;  %v2146_v39 = vmov 0.0  }
  0x2b   : > { %v611_v11 = vadd.f32 %v2239_v8, %v572_v3 }
  0x2d   : > { %2042 = vmatmul.mubr.bf16.vlgmr.msra.gmra.mxu0 %v645_v63  ;;  %2058 = vmatmul.mubr.bf16.vlgmr.msra.gmra.mxu1 %v653_v12  ;;  %v556_v63 = vmul.f32 %v1858_v54, %v2234_v5  ;;  %v1183_v5 = vlaneseq }
  0x2e   : > { %2045 = vmatprep.mubr.bf16.mxu0 %v646_v10  ;;  %2061 = vmatprep.mubr.bf16.mxu1 %v654_v15  ;;  %v610_v10 = vadd.f32 %v2239_v8, %v571_v2 }
  0x2f   : > { %v595_v9 = vadd.f32 %v2239_v8, %v556_v63  ;;  %v2338_v14 = vshrl.u32 %v1183_v5, 7 }
  0x30   : > { %v659_v13 = vpack.c.bf16 %v611_v11, %v610_v10 }
  0x31   : > { %v651_v12 = vpack.c.bf16 %v595_v9, %v594_v7  ;;  %v1186_v15 = vadd.s32 16, %v2338_v14  ;;  %v1187_v17 = vadd.s32 24, %v2338_v14  ;;  %v1185_v18 = vadd.s32 8, %v2338_v14 }
  0x32   : > { %v1190_v8 = vadd.s32 48, %v2338_v14  ;;  %v1188_v20 = vadd.s32 32, %v2338_v14  ;;  %v1191_v21 = vadd.s32 56, %v2338_v14  ;;  %v1189_v22 = vadd.s32 40, %v2338_v14 }
  0x33   : > { %v1219_v19 = vadd.s32 %v2342_v16, %v1186_v15  ;;  %v1194_v23 = vadd.s32 80, %v2338_v14  ;;  %v1217_v24 = vadd.s32 %v2342_v16, %v2338_v14  ;;  %v1220_v25 = vadd.s32 %v2342_v16, %v1187_v17 }
  0x34   : > { %v1218_v26 = vadd.s32 %v2342_v16, %v1185_v18  ;;  %v1223_v27 = vadd.s32 %v2342_v16, %v1190_v8  ;;  %v1192_v28 = vadd.s32 64, %v2338_v14  ;;  %v1195_v29 = vadd.s32 88, %v2338_v14 }
  0x35   : > { %2046 = vmatmul.mubr.bf16.gmra.mxu0 %v647_v36  ;;  %2062 = vmatmul.mubr.bf16.gmra.mxu1 %v655_v42  ;;  %vm1251_vm0 = vcmp.lt.s32.totalorder %v1219_v19, 512  ;;  %v1221_v30 = vadd.s32 %v2342_v16, %v1188_v20  ;;  %v1224_v31 = vadd.s32 %v2342_v16, %v1191_v21  ;;  %v1222_v32 = vadd.s32 %v2342_v16, %v1189_v22 }
  0x36   : > { %2049 = vmatprep.mubr.bf16.mxu0 %v648_v45  ;;  %2065 = vmatprep.mubr.bf16.mxu1 %v656_v46  ;;  %v1227_v33 = vadd.s32 %v2342_v16, %v1194_v23  ;;  %v1193_v34 = vadd.s32 72, %v2338_v14  ;;  %v1198_v35 = vadd.s32 112, %v2338_v14  ;;  %vm1249_vm1 = vcmp.lt.s32.totalorder %v1217_v24, 512 }
  0x37   : > { %vm1252_vm2 = vcmp.lt.s32.totalorder %v1220_v25, 512  ;;  %vm1250_vm3 = vcmp.lt.s32.totalorder %v1218_v26, 512  ;;  %vm1255_vm4 = vcmp.lt.s32.totalorder %v1223_v27, 512  ;;  %v1225_v36 = vadd.s32 %v2342_v16, %v1192_v28 }
  0x38   : > { %v1228_v37 = vadd.s32 %v2342_v16, %v1195_v29  ;;  %v1196_v38 = vadd.s32 96, %v2338_v14  ;;  %v1763_v40 = vsel %vm1251_vm0, 1.0, %v2146_v39  ;;  %vm1253_vm5 = vcmp.lt.s32.totalorder %v1221_v30, 512 }
  0x39   : > { %vm1256_vm6 = vcmp.lt.s32.totalorder %v1224_v31, 512  ;;  %vm1254_vm7 = vcmp.lt.s32.totalorder %v1222_v32, 512  ;;  %vm1259_vm8 = vcmp.lt.s32.totalorder %v1227_v33, 512  ;;  %v1226_v42 = vadd.s32 %v2342_v16, %v1193_v34 }
  0x3a   : > { %v1231_v43 = vadd.s32 %v2342_v16, %v1198_v35  ;;  %v1761_v45 = vsel %vm1249_vm1, 1.0, %v2146_v39  ;;  %v1764_v46 = vsel %vm1252_vm2, 1.0, %v2146_v39  ;;  %v1762_v47 = vsel %vm1250_vm3, 1.0, %v2146_v39 }
  0x3b   : > { %v2379_v48 = vsel %vm1255_vm4, 1.0, %v2146_v39  ;;  %v2387_v51 = vsel %vm1253_vm5, 1.0, %v2146_v39  ;;  %vm1257_vm9 = vcmp.lt.s32.totalorder %v1225_v36, 512  ;;  %vm1260_vm10 = vcmp.lt.s32.totalorder %v1228_v37, 512 }
  0x3c   : > { %v1229_v52 = vadd.s32 %v2342_v16, %v1196_v38  ;;  %v2393_v55 = vsel %vm1256_vm6, 1.0, %v2146_v39  ;;  %v2397_v56 = vsel %vm1254_vm7, 1.0, %v2146_v39  ;;  %v2401_v57 = vsel %vm1259_vm8, 1.0, %v2146_v39 }
  0x3d   : > { %2050 = vmatmul.mubr.bf16.gmra.mxu0 %v649_v0  ;;  %2066 = vmatmul.mubr.bf16.gmra.mxu1 %v657_v1  ;;  %vm1258_vm11 = vcmp.lt.s32.totalorder %v1226_v42, 512  ;;  %vm1263_vm12 = vcmp.lt.s32.totalorder %v1231_v43, 512  ;;  %v1199_v60 = vadd.s32 120, %v2338_v14  ;;  %v2411_v0 = vsel %vm1257_vm9, 1.0, %v2146_v39 }
  0x3e   : > { %2053 = vmatprep.mubr.bf16.mxu0 %v650_v4  ;;  %2069 = vmatprep.mubr.bf16.mxu1 %v658_v6  ;;  %v2415_v1 = vsel %vm1260_vm10, 1.0, %v2146_v39  ;;  %vm1261_vm13 = vcmp.lt.s32.totalorder %v1229_v52, 512  ;;  %v2433_v11 = vsel %vm1258_vm11, 1.0, %v2146_v39  ;;  %v1197_v15 = vadd.s32 104, %v2338_v14 }
  0x3f   : > { %v2440_v5 = vadd.s32 %v2342_v16, %v1199_v60  ;;  %v2451_v22 = vsel %vm1261_vm13, 1.0, %v2146_v39  ;;  %v2454_v26 = vadd.s32 144, %v2338_v14  ;;  %v1200_v34 = vadd.s32 128, %v2338_v14 }
  0x40   : > { %v2465_v35 = vadd.s32 %v2342_v16, %v1197_v15 }
  0x41   : > { %vm1264_vm14 = vcmp.lt.s32.totalorder %v2440_v5, 512  ;;  %v1233_v15 = vadd.s32 %v2342_v16, %v1200_v34  ;;  %v2503_v34 = vadd.s32 %v2342_v16, %v2454_v26 }
  0x42   : > { %vm1262_vm15 = vcmp.lt.s32.totalorder %v2465_v35, 512 }
  0x43   : > { %vm1265_vm0 = vcmp.lt.s32.totalorder %v1233_v15, 512  ;;  %v1774_v5 = vsel %vm1262_vm15, 1.0, %v2146_v39  ;;  %vm1267_vm2 = vcmp.lt.s32.totalorder %v2503_v34, 512  ;;  %v1209_v34 = vadd.s32 200, %v2338_v14 }
  0x45   : > { %2054 = vmatmul.mubr.bf16.gmra.mxu0 %v651_v12  ;;  %2070 = vmatmul.mubr.bf16.gmra.mxu1 %v659_v13  ;;  %v2437_v12 = vsel %vm1263_vm12, 1.0, %v2146_v39 }
  0xed   : > { %v2043_v41 = vpop.f32.mrf.mxu0  ;;  %v2059_v44 = vpop.f32.mrf.mxu1 }
  0xee   : > { %v2404_v59 = vadd.f32 %v2059_v44, %v2384_v49  ;;  %v993_v62 = vadd.f32 %v2043_v41, %v2384_v49 }
  0xef   : > { %v758_v50 = vpop.f32.mrf.mxu0  ;;  %v822_v53 = vpop.f32.mrf.mxu1 }
  0xf0   : > { %v991_v54 = vadd.f32 %v2384_v49, %v758_v50  ;;  %v2425_v4 = vadd.f32 %v2384_v49, %v822_v53  ;;  %v1347_v19 = vmul.f32 %v1763_v40, %v993_v62 }
  0xf1   : > { %v2044_v58 = vpop.f32.mrf.mxu0  ;;  %v2060_v61 = vpop.f32.mrf.mxu1 }
  0xf2   : > { %v994_v63 = vadd.f32 %v2044_v58, %v2384_v49  ;;  %v1345_v2 = vmul.f32 %v1761_v45, %v991_v54  ;;  %v2428_v6 = vadd.f32 %v2060_v61, %v2384_v49  ;;  %v1416_v38 = vmul.f32 %v1347_v19, %v1347_v19 }
  0xf3   : > { %v761_v3 = vpop.f32.mrf.mxu0  ;;  %v825_v7 = vpop.f32.mrf.mxu1 }
  0xf4   : > { %v1899_v9 = vpack.c.bf16 %v994_v63, %v993_v62  ;;  %v992_v10 = vadd.f32 %v2384_v49, %v761_v3  ;;  %v1939_v17 = vpack.c.bf16 %v2428_v6, %v2404_v59  ;;  %v2446_v18 = vadd.f32 %v2384_v49, %v825_v7 }
  0xf5   : > { %v2047_v13 = vpop.f32.mrf.mxu0  ;;  %v2063_v8 = vpop.f32.mrf.mxu1  ;;  %v1414_v23 = vmul.f32 %v1345_v2, %v1345_v2  ;;  %v1348_v24 = vmul.f32 %v1764_v46, %v994_v63  ;;  %v1203_v46 = vadd.s32 152, %v2338_v14 }
  0xf6   : > { %1986 = vst [vmem:[%s2422_s18 + $0x8] sm:$0xff] %v1899_v9   ;;  %v1894_v20 = vpack.c.bf16 %v992_v10, %v991_v54  ;;  %v1346_v21 = vmul.f32 %v1762_v47, %v992_v10  ;;  %1994 = vst [vmem:[%s2422_s18 + $0x48] sm:$0xff] %v1939_v17   ;;  %v1934_v27 = vpack.c.bf16 %v2446_v18, %v2425_v4  ;;  %v1201_v17 = vadd.s32 136, %v2338_v14 }
  0xf7   : > { %v774_v25 = vpop.f32.mrf.mxu0  ;;  %v838_v28 = vpop.f32.mrf.mxu1  ;;  %v997_v31 = vadd.f32 %v2047_v13, %v2384_v49  ;;  %v2469_v36 = vadd.f32 %v2063_v8, %v2384_v49  ;;  %v1417_v43 = vmul.f32 %v1348_v24, %v1348_v24 }
  0xf8   : > { %1895 = vst [vmem:[%s2422_s18] sm:$0xff] %v1894_v20   ;;  %v1377_v29 = vadd.f32 %v1346_v21, %v1345_v2  ;;  %v1415_v30 = vmul.f32 %v1346_v21, %v1346_v21  ;;  %v995_v32 = vadd.f32 %v2384_v49, %v774_v25  ;;  %1993 = vst [vmem:[%s2422_s18 + $0x40] sm:$0xff] %v1934_v27  }
  0xf9   : > { %v2048_v33 = vpop.f32.mrf.mxu0  ;;  %v2064_v37 = vpop.f32.mrf.mxu1  ;;  %v1351_v53 = vmul.f32 %v2379_v48, %v997_v31  ;;  %v2480_v62 = vadd.f32 %v2384_v49, %v838_v28 }
  0xfa   : > { %v1378_v40 = vadd.f32 %v1377_v29, %v1347_v19  ;;  %v1446_v41 = vadd.f32 %v1415_v30, %v1414_v23  ;;  %v1349_v42 = vmul.f32 %v2387_v51, %v995_v32  ;;  %v998_v44 = vadd.f32 %v2048_v33, %v2384_v49 }
  0xfb   : > { %v777_v45 = vpop.f32.mrf.mxu0  ;;  %v2475_v47 = vadd.f32 %v2064_v37, %v2384_v49  ;;  %v841_v50 = vpop.f32.mrf.mxu1  ;;  %v2508_v37 = vsel %vm1264_vm14, 1.0, %v2146_v39 }
  0xfc   : > { %v1447_v52 = vadd.f32 %v1446_v41, %v1416_v38  ;;  %v1379_v54 = vadd.f32 %v1378_v40, %v1348_v24  ;;  %v996_v58 = vadd.f32 %v2384_v49, %v777_v45  ;;  %v1418_v60 = vmul.f32 %v1349_v42, %v1349_v42 }
  0xfd   : > { %v1909_v51 = vpack.c.bf16 %v998_v44, %v997_v31  ;;  %v2051_v61 = vpop.f32.mrf.mxu0  ;;  %v1949_v63 = vpack.c.bf16 %v2475_v47, %v2469_v36  ;;  %v2067_v2 = vpop.f32.mrf.mxu1  ;;  %v1352_v10 = vmul.f32 %v2393_v55, %v998_v44  ;;  %v2491_v8 = vadd.f32 %v2384_v49, %v841_v50 }
  0xfe   : > { %v1380_v3 = vadd.f32 %v1379_v54, %v1349_v42  ;;  %v1448_v7 = vadd.f32 %v1447_v52, %v1417_v43  ;;  %v1904_v9 = vpack.c.bf16 %v996_v58, %v995_v32  ;;  %v1350_v48 = vmul.f32 %v2397_v56, %v996_v58 }
  0xff   : > { %1988 = vst [vmem:[%s2422_s18 + $0x18] sm:$0xff] %v1909_v51   ;;  %v790_v13 = vpop.f32.mrf.mxu0  ;;  %1996 = vst [vmem:[%s2422_s18 + $0x58] sm:$0xff] %v1949_v63   ;;  %v854_v19 = vpop.f32.mrf.mxu1  ;;  %v1420_v56 = vmul.f32 %v1351_v53, %v1351_v53  ;;  %v1001_v55 = vadd.f32 %v2051_v61, %v2384_v49  ;;  %v1944_v27 = vpack.c.bf16 %v2491_v8, %v2480_v62 }
 0x100   : > { %v1449_v20 = vadd.f32 %v1448_v7, %v1418_v60  ;;  %1987 = vst [vmem:[%s2422_s18 + $0x10] sm:$0xff] %v1904_v9   ;;  %v1381_v21 = vadd.f32 %v1380_v3, %v1350_v48  ;;  %v1419_v23 = vmul.f32 %v1350_v48, %v1350_v48  ;;  %v999_v24 = vadd.f32 %v2384_v49, %v790_v13 }
 0x101   : > { %v2052_v25 = vpop.f32.mrf.mxu0  ;;  %v2068_v28 = vpop.f32.mrf.mxu1  ;;  %v2511_v38 = vadd.s32 %v2342_v16, %v1201_v17  ;;  %1995 = vst [vmem:[%s2422_s18 + $0x50] sm:$0xff] %v1944_v27   ;;  %v2519_v45 = vadd.s32 %v2342_v16, %v1203_v46  ;;  %v2522_v50 = vadd.f32 %v2067_v2, %v2384_v49  ;;  %v1355_v51 = vmul.f32 %v2401_v57, %v1001_v55 }
 0x102   : > { %v1382_v29 = vadd.f32 %v1381_v21, %v1351_v53  ;;  %v1450_v30 = vadd.f32 %v1449_v20, %v1419_v23  ;;  %v1353_v31 = vmul.f32 %v2411_v0, %v999_v24  ;;  %v1002_v32 = vadd.f32 %v2052_v25, %v2384_v49 }
 0x103   : > { %v793_v33 = vpop.f32.mrf.mxu0  ;;  %v857_v40 = vpop.f32.mrf.mxu1  ;;  %v1421_v0 = vmul.f32 %v1352_v10, %v1352_v10  ;;  %v2526_v60 = vadd.f32 %v2068_v28, %v2384_v49  ;;  %v1777_v46 = vsel %vm1265_vm0, 1.0, %v2146_v39  ;;  %vm1266_vm1 = vcmp.lt.s32.totalorder %v2511_v38, 512 }
 0x104   : > { %v1451_v41 = vadd.f32 %v1450_v30, %v1420_v56  ;;  %v1383_v42 = vadd.f32 %v1382_v29, %v1352_v10  ;;  %v1919_v43 = vpack.c.bf16 %v1002_v32, %v1001_v55  ;;  %v1000_v44 = vadd.f32 %v2384_v49, %v793_v33 }
 0x105   : > { %v2055_v26 = vpop.f32.mrf.mxu0  ;;  %v2071_v52 = vpop.f32.mrf.mxu1  ;;  %v1422_v54 = vmul.f32 %v1353_v31, %v1353_v31  ;;  %v2535_v9 = vadd.f32 %v2384_v49, %v854_v19  ;;  %v1356_v48 = vmul.f32 %v2415_v1, %v1002_v32  ;;  %v1959_v13 = vpack.c.bf16 %v2526_v60, %v2522_v50 }
 0x106   : > { %v1384_v53 = vadd.f32 %v1383_v42, %v1353_v31  ;;  %v1452_v58 = vadd.f32 %v1451_v41, %v1421_v0  ;;  %1990 = vst [vmem:[%s2422_s18 + $0x28] sm:$0xff] %v1919_v43   ;;  %v1914_v61 = vpack.c.bf16 %v1000_v44, %v999_v24  ;;  %v1354_v35 = vmul.f32 %v2433_v11, %v1000_v44 }
 0x107   : > { %v806_v63 = vpop.f32.mrf.mxu0  ;;  %v870_v2 = vpop.f32.mrf.mxu1  ;;  %v1005_v17 = vadd.f32 %v2055_v26, %v2384_v49  ;;  %v1206_v19 = vadd.s32 176, %v2338_v14  ;;  %v2546_v21 = vadd.f32 %v2384_v49, %v857_v40  ;;  %v1424_v1 = vmul.f32 %v1355_v51, %v1355_v51  ;;  %1998 = vst [vmem:[%s2422_s18 + $0x68] sm:$0xff] %v1959_v13  }
 0x108   : > { %v1453_v3 = vadd.f32 %v1452_v58, %v1422_v54  ;;  %v1003_v7 = vadd.f32 %v2384_v49, %v806_v63  ;;  %1989 = vst [vmem:[%s2422_s18 + $0x20] sm:$0xff] %v1914_v61   ;;  %v1385_v57 = vadd.f32 %v1384_v53, %v1354_v35  ;;  %v1423_v10 = vmul.f32 %v1354_v35, %v1354_v35 }
 0x109   : > { %v2056_v11 = vpop.f32.mrf.mxu0  ;;  %v2072_v15 = vpop.f32.mrf.mxu1  ;;  %vm1268_vm3 = vcmp.lt.s32.totalorder %v2519_v45, 512  ;;  %v1204_v28 = vadd.s32 160, %v2338_v14  ;;  %v1205_v29 = vadd.s32 168, %v2338_v14  ;;  %v1425_v30 = vmul.f32 %v1356_v48, %v1356_v48 }
 0x10a   : > { %v1006_v20 = vadd.f32 %v2056_v11, %v2384_v49  ;;  %v1386_v23 = vadd.f32 %v1385_v57, %v1355_v51  ;;  %v1454_v24 = vadd.f32 %v1453_v3, %v1423_v10  ;;  %v1357_v56 = vmul.f32 %v2451_v22, %v1003_v7 }
 0x10b   : > { %v809_v55 = vpop.f32.mrf.mxu0  ;;  %v1954_v33 = vpack.c.bf16 %v2546_v21, %v2535_v9  ;;  %v873_v22 = vpop.f32.mrf.mxu1  ;;  %v1359_v40 = vmul.f32 %v2437_v12, %v1005_v17  ;;  %v2559_v42 = vadd.f32 %v2071_v52, %v2384_v49  ;;  %v2563_v53 = vadd.f32 %v2384_v49, %v870_v2 }
 0x10c   : > { %v1929_v25 = vpack.c.bf16 %v1006_v20, %v1005_v17  ;;  %v1004_v27 = vadd.f32 %v2384_v49, %v809_v55  ;;  %v1455_v31 = vadd.f32 %v1454_v24, %v1424_v1  ;;  %v1387_v32 = vadd.f32 %v1386_v23, %v1356_v48 }
 0x10d   : > { %v1426_v44 = vmul.f32 %v1357_v56, %v1357_v56  ;;  %1997 = vst [vmem:[%s2422_s18 + $0x60] sm:$0xff] %v1954_v33   ;;  %v1237_v58 = vadd.s32 %v2342_v16, %v1204_v28  ;;  %v2568_v51 = vadd.f32 %v2072_v15, %v2384_v49  ;;  %v2571_v12 = vadd.f32 %v2384_v49, %v873_v22 }
 0x10e   : > { %1992 = vst [vmem:[%s2422_s18 + $0x38] sm:$0xff] %v1929_v25   ;;  %v1924_v0 = vpack.c.bf16 %v1004_v27, %v1003_v7  ;;  %v1358_v41 = vmul.f32 %v1774_v5, %v1004_v27  ;;  %v1388_v43 = vadd.f32 %v1387_v32, %v1357_v56  ;;  %v1456_v26 = vadd.f32 %v1455_v31, %v1425_v30 }
 0x10f   : > { %v1360_v52 = vmul.f32 %v2508_v37, %v1006_v20  ;;  %v1778_v35 = vsel %vm1266_vm1, 1.0, %v2146_v39  ;;  %v1207_v63 = vadd.s32 184, %v2338_v14  ;;  %v1238_v2 = vadd.s32 %v2342_v16, %v1205_v29 }
 0x110   : > { %1991 = vst [vmem:[%s2422_s18 + $0x30] sm:$0xff] %v1924_v0   ;;  %v1427_v54 = vmul.f32 %v1358_v41, %v1358_v41  ;;  %v1457_v5 = vadd.f32 %v1456_v26, %v1426_v44  ;;  %v1389_v61 = vadd.f32 %v1388_v43, %v1358_v41  ;;  %v1969_v3 = vpack.c.bf16 %v2568_v51, %v2559_v42 }
 0x111   : > { %v1964_v49 = vpack.c.bf16 %v2571_v12, %v2563_v53  ;;  %v1428_v7 = vmul.f32 %v1359_v40, %v1359_v40  ;;  %v1361_v48 = vmul.f32 %v1777_v46, %v2425_v4  ;;  %v1779_v38 = vsel %vm1267_vm2, 1.0, %v2146_v39 }
 0x112   : > { %v1390_v37 = vadd.f32 %v1389_v61, %v1359_v40  ;;  %v1458_v57 = vadd.f32 %v1457_v5, %v1427_v54  ;;  %v1239_v10 = vadd.s32 %v2342_v16, %v1206_v19  ;;  %vm1269_vm4 = vcmp.lt.s32.totalorder %v1237_v58, 512  ;;  %2000 = vst [vmem:[%s2422_s18 + $0x78] sm:$0xff] %v1969_v3  }
 0x113   : > { %v1208_v11 = vadd.s32 192, %v2338_v14  ;;  %1999 = vst [vmem:[%s2422_s18 + $0x70] sm:$0xff] %v1964_v49   ;;  %v1429_v13 = vmul.f32 %v1360_v52, %v1360_v52  ;;  %v1362_v17 = vmul.f32 %v1778_v35, %v2446_v18  ;;  %v1780_v4 = vsel %vm1268_vm3, 1.0, %v2146_v39 }
 0x114   : > { %v1459_v15 = vadd.f32 %v1458_v57, %v1428_v7  ;;  %v1391_v20 = vadd.f32 %v1390_v37, %v1360_v52  ;;  %v1240_v46 = vadd.s32 %v2342_v16, %v1207_v63  ;;  %vm1270_vm5 = vcmp.lt.s32.totalorder %v1238_v2, 512 }
 0x115   : > { %v1363_v19 = vmul.f32 %v1779_v38, %v2404_v59  ;;  %v1430_v1 = vmul.f32 %v1361_v48, %v1361_v48  ;;  %vm1271_vm6 = vcmp.lt.s32.totalorder %v1239_v10, 512  ;;  %v1781_v56 = vsel %vm1269_vm4, 1.0, %v2146_v39 }
 0x116   : > { %v1392_v23 = vadd.f32 %v1391_v20, %v1361_v48  ;;  %v1460_v24 = vadd.f32 %v1459_v15, %v1429_v13  ;;  %v1210_v18 = vadd.s32 208, %v2338_v14  ;;  %v1241_v55 = vadd.s32 %v2342_v16, %v1208_v11 }
 0x117   : > { %v1364_v45 = vmul.f32 %v1780_v4, %v2428_v6  ;;  %v1431_v27 = vmul.f32 %v1362_v17, %v1362_v17  ;;  %vm1272_vm7 = vcmp.lt.s32.totalorder %v1240_v46, 512  ;;  %v1782_v29 = vsel %vm1270_vm5, 1.0, %v2146_v39 }
 0x118   : > { %v1393_v25 = vadd.f32 %v1392_v23, %v1362_v17  ;;  %v1461_v28 = vadd.f32 %v1460_v24, %v1430_v1  ;;  %v1211_v59 = vadd.s32 216, %v2338_v14  ;;  %v1242_v30 = vadd.s32 %v2342_v16, %v1209_v34 }
 0x119   : > { %v1432_v31 = vmul.f32 %v1363_v19, %v1363_v19  ;;  %v1365_v22 = vmul.f32 %v1781_v56, %v2480_v62  ;;  %v1783_v40 = vsel %vm1271_vm6, 1.0, %v2146_v39  ;;  %v1243_v6 = vadd.s32 %v2342_v16, %v1210_v18 }
 0x11a   : > { %v1394_v32 = vadd.f32 %v1393_v25, %v1363_v19  ;;  %v1462_v33 = vadd.f32 %v1461_v28, %v1431_v27  ;;  %vm1273_vm8 = vcmp.lt.s32.totalorder %v1241_v55, 512  ;;  %v1212_v0 = vadd.s32 224, %v2338_v14 }
 0x11b   : > { %v1433_v41 = vmul.f32 %v1364_v45, %v1364_v45  ;;  %v1366_v26 = vmul.f32 %v1782_v29, %v2491_v8  ;;  %v1784_v54 = vsel %vm1272_vm7, 1.0, %v2146_v39  ;;  %v1244_v58 = vadd.s32 %v2342_v16, %v1211_v59 }
 0x11c   : > { %v1463_v43 = vadd.f32 %v1462_v33, %v1432_v31  ;;  %v1395_v44 = vadd.f32 %v1394_v32, %v1364_v45  ;;  %vm1274_vm9 = vcmp.lt.s32.totalorder %v1242_v30, 512  ;;  %v1213_v62 = vadd.s32 232, %v2338_v14 }
 0x11d   : > { %v1367_v5 = vmul.f32 %v1783_v40, %v2469_v36  ;;  %v1434_v61 = vmul.f32 %v1365_v22, %v1365_v22  ;;  %vm1275_vm10 = vcmp.lt.s32.totalorder %v1243_v6, 512  ;;  %v1785_v63 = vsel %vm1273_vm8, 1.0, %v2146_v39 }
 0x11e   : > { %v1396_v52 = vadd.f32 %v1395_v44, %v1365_v22  ;;  %v1464_v35 = vadd.f32 %v1463_v43, %v1433_v41  ;;  %v1214_v2 = vadd.s32 240, %v2338_v14  ;;  %v1245_v8 = vadd.s32 %v2342_v16, %v1212_v0 }
 0x11f   : > { %v1368_v49 = vmul.f32 %v1784_v54, %v2475_v47  ;;  %v1435_v48 = vmul.f32 %v1366_v26, %v1366_v26  ;;  %vm1276_vm11 = vcmp.lt.s32.totalorder %v1244_v58, 512  ;;  %v1786_v37 = vsel %vm1274_vm9, 1.0, %v2146_v39 }
 0x120   : > { %v1465_v3 = vadd.f32 %v1464_v35, %v1434_v61  ;;  %v1397_v7 = vadd.f32 %v1396_v52, %v1366_v26  ;;  %v1215_v36 = vadd.s32 248, %v2338_v14  ;;  %v1246_v57 = vadd.s32 %v2342_v16, %v1213_v62 }
 0x121   : > { %v1436_v38 = vmul.f32 %v1367_v5, %v1367_v5  ;;  %v1369_v13 = vmul.f32 %v1785_v63, %v2535_v9  ;;  %v1787_v15 = vsel %vm1275_vm10, 1.0, %v2146_v39  ;;  %v1247_v17 = vadd.s32 %v2342_v16, %v1214_v2 }
 0x122   : > { %v1398_v10 = vadd.f32 %v1397_v7, %v1367_v5  ;;  %v1466_v11 = vadd.f32 %v1465_v3, %v1435_v48  ;;  %vm1277_vm12 = vcmp.lt.s32.totalorder %v1245_v8, 512  ;;  %v1437_v47 = vmul.f32 %v1368_v49, %v1368_v49 }
 0x123   : > { %v1370_v46 = vmul.f32 %v1786_v37, %v2546_v21  ;;  %v1788_v14 = vsel %vm1276_vm11, 1.0, %v2146_v39  ;;  %v1248_v34 = vadd.s32 %v2342_v16, %v1215_v36  ;;  %vm1278_vm13 = vcmp.lt.s32.totalorder %v1246_v57, 512 }
 0x124   : > { %v1467_v20 = vadd.f32 %v1466_v11, %v1436_v38  ;;  %v1399_v4 = vadd.f32 %v1398_v10, %v1368_v49  ;;  %v1371_v19 = vmul.f32 %v1787_v15, %v2522_v50  ;;  %v1438_v9 = vmul.f32 %v1369_v13, %v1369_v13 }
 0x125   : > { %vm1279_vm14 = vcmp.lt.s32.totalorder %v1247_v17, 512  ;;  %v1789_v24 = vsel %vm1277_vm12, 1.0, %v2146_v39  ;;  %v1372_v18 = vmul.f32 %v1788_v14, %v2526_v60  ;;  %v1439_v45 = vmul.f32 %v1370_v46, %v1370_v46 }
 0x126   : > { %v1400_v1 = vadd.f32 %v1399_v4, %v1369_v13  ;;  %v1468_v23 = vadd.f32 %v1467_v20, %v1437_v47  ;;  %vm1280_vm15 = vcmp.lt.s32.totalorder %v1248_v34, 512  ;;  %v1790_v21 = vsel %vm1278_vm13, 1.0, %v2146_v39 }
 0x127   : > { %v1440_v25 = vmul.f32 %v1371_v19, %v1371_v19  ;;  %v1373_v28 = vmul.f32 %v1789_v24, %v2563_v53  ;;  %v1791_v50 = vsel %vm1279_vm14, 1.0, %v2146_v39  ;;  %v1441_v29 = vmul.f32 %v1372_v18, %v1372_v18 }
 0x128   : > { %v1469_v56 = vadd.f32 %v1468_v23, %v1438_v9  ;;  %v1401_v55 = vadd.f32 %v1400_v1, %v1370_v46  ;;  %v1374_v31 = vmul.f32 %v1790_v21, %v2571_v12  ;;  %v1792_v60 = vsel %vm1280_vm15, 1.0, %v2146_v39 }
 0x129   : > { %v1375_v32 = vmul.f32 %v1791_v50, %v2559_v42  ;;  %v1442_v22 = vmul.f32 %v1373_v28, %v1373_v28  ;;  %v1376_v0 = vmul.f32 %v1792_v60, %v2568_v51 }
 0x12a   : > { %v1402_v27 = vadd.f32 %v1401_v55, %v1371_v19  ;;  %v1470_v16 = vadd.f32 %v1469_v56, %v1439_v45  ;;  %v1443_v41 = vmul.f32 %v1374_v31, %v1374_v31 }
 0x12b   : > { %v1444_v43 = vmul.f32 %v1375_v32, %v1375_v32  ;;  %v1445_v54 = vmul.f32 %v1376_v0, %v1376_v0 }
 0x12c   : > { %v1471_v59 = vadd.f32 %v1470_v16, %v1440_v25  ;;  %v1403_v30 = vadd.f32 %v1402_v27, %v1372_v18 }
 0x12e   : > { %v1404_v33 = vadd.f32 %v1403_v30, %v1373_v28  ;;  %v1472_v40 = vadd.f32 %v1471_v59, %v1441_v29 }
 0x130   : > { %v1473_v6 = vadd.f32 %v1472_v40, %v1442_v22  ;;  %v1405_v53 = vadd.f32 %v1404_v33, %v1374_v31 }
 0x132   : > { %v1406_v44 = vadd.f32 %v1405_v53, %v1375_v32  ;;  %v1474_v26 = vadd.f32 %v1473_v6, %v1443_v41 }
 0x134   : > { %v1407_v58 = vadd.f32 %v1406_v44, %v1376_v0  ;;  %v1475_v12 = vadd.f32 %v1474_v26, %v1444_v43 }
 0x136   : > { %v1408_v62 = vrot.slane %v1407_v58, 4  ;;  %v1476_v39 = vadd.f32 %v1475_v12, %v1445_v54 }
 0x138   : > { %v1409_v42 = vadd.f32 %v1408_v62, %v1407_v58  ;;  %v1477_v5 = vrot.slane %v1476_v39, 4 }
 0x13a   : > { %v1410_v52 = vrot.slane %v1409_v42, 2  ;;  %v1478_v61 = vadd.f32 %v1477_v5, %v1476_v39 }
 0x13c   : > { %v1411_v35 = vadd.f32 %v1410_v52, %v1409_v42  ;;  %v1479_v63 = vrot.slane %v1478_v61, 2 }
 0x13e   : > { %v1412_v51 = vrot.slane %v1411_v35, 1  ;;  %v1480_v2 = vadd.f32 %v1479_v63, %v1478_v61 }
 0x140   : > { %v1413_v8 = vadd.f32 %v1412_v51, %v1411_v35  ;;  %v1481_v3 = vrot.slane %v1480_v2, 1 }
 0x142   : > { %v1482_v49 = vadd.f32 %v1481_v3, %v1480_v2  ;;  %1483 = vst [vmem:[%s424_s20] sm:$0xff] %v1413_v8 }
 0x144   : > { %1484 = vst [vmem:[%s431_s23] sm:$0xff] %v1482_v49 }
 0x145 PF: > { %s18_s26 = sadd.s32 1, %s2144_s26   ;;  %s2666_s24 = smov %s2140_s25 }
 0x146   : > { %p15_p6 = scmp.ge.s32.totalorder %s18_s26, 4   ;;  %s2667_s25 = smov %s2669_s27 }
 0x148   :  { %17 = sbr.rel (!%p15_p6) target bundleno = 2 (0x2), region = 114 }

// kernel: tile.91
= control target key start
LH: loop header
LB: loop body
LE: loop exit
PB: predicated region body
PF: predicated region fallthrough
CT: control target
= control target key end

     0   :  { %s28_s0 = inlined_call_operand.vmem [shape: f32[64], index: 0, kind: input, shape index: {}]   ;;  %s29_s1 = inlined_call_operand.vmem [shape: f32[16,64], index: 1, kind: output, shape index: {}]  }
   0x1   :  { %v4_v0 = vld [vmem:[%s28_s0] ss:$0 sm:$0xff] }
   0x2   :  { %5 = vst [vmem:[%s29_s1] sm:$0xff] %v4_v0  ;;  %8 = vst [vmem:[%s29_s1 + $0x8] sm:$0xff] %v4_v0 }

// kernel: tile.96
= control target key start
LH: loop header
LB: loop body
LE: loop exit
PB: predicated region body
PF: predicated region fallthrough
CT: control target
= control target key end

     0   :  { %vm3_vm0 = vcmask 523264   ;;  %vm10_vm1 = vcmask 1048064   ;;  %s125_s0 = inlined_call_operand.vmem [shape: f32[16,64], index: 0, kind: input, shape index: {}]   ;;  %s126_s1 = inlined_call_operand.vmem [shape: f32[1,1024], index: 1, kind: output, shape index: {}]  }
   0x1   :  { %v75_v0 = vld [vmem:[%s125_s0 + $0x1] ss:$2 sm:$0xff]   ;;  %v2_v1 = vld [vmem:[%s125_s0] ss:$2 sm:$0xff]   ;;  %s84_s0 = smov 64  }
   0x2   :  { %8 = vrot.lane.b32.xlu0 %v75_v0, %s84_s0  ;;  %4 = vst.msk [vmem:[#allocation0] ss:$8 sm:$0xf] %vm3_vm0, %v2_v1   ;;  %5 = vst.msk [vmem:[#allocation0] ss:$8 sm:$0xf0] %vm3_vm0, %v2_v1  }
  0x74   :  { %v9_v2 = vpop.permute.xlu0 %8  }
  0x75   :  { %11 = vst.msk [vmem:[#allocation0] ss:$8 sm:$0xf] %vm10_vm1, %v9_v2   ;;  %12 = vst.msk [vmem:[#allocation0] ss:$8 sm:$0xf0] %vm10_vm1, %v9_v2  }
  0x7c   :  { %v17_v3 = vld [vmem:[#allocation0] sm:$0x1]  ;;  %v22_v4 = vld [vmem:[#allocation0 + $0x8] sm:$0x1]  ;;  %v28_v5 = vld [vmem:[#allocation0 + $0x10] sm:$0x1] }
  0x7d   :  { %20 = vst [vmem:[%s126_s1] sm:$0x1] %v17_v3  ;;  %76 = vst [vmem:[%s126_s1 + $0x1] sm:$0x1] %v22_v4  ;;  %v35_v6 = vld [vmem:[#allocation0 + $0x18] sm:$0x1] }
  0x7e   :  { %77 = vst [vmem:[%s126_s1 + $0x2] sm:$0x1] %v28_v5  ;;  %v42_v7 = vld [vmem:[#allocation0 + $0x20] sm:$0x1]  ;;  %v49_v8 = vld [vmem:[#allocation0 + $0x28] sm:$0x1] }
  0x7f   :  { %78 = vst [vmem:[%s126_s1 + $0x3] sm:$0x1] %v35_v6  ;;  %79 = vst [vmem:[%s126_s1 + $0x4] sm:$0x1] %v42_v7  ;;  %v56_v9 = vld [vmem:[#allocation0 + $0x30] sm:$0x1] }
  0x80   :  { %80 = vst [vmem:[%s126_s1 + $0x5] sm:$0x1] %v49_v8  ;;  %v63_v10 = vld [vmem:[#allocation0 + $0x38] sm:$0x1]  ;;  %81 = vst [vmem:[%s126_s1 + $0x6] sm:$0x1] %v56_v9 }
  0x81   :  { %82 = vst [vmem:[%s126_s1 + $0x7] sm:$0x1] %v63_v10 }

// kernel: tile.101
= control target key start
LH: loop header
LB: loop body
LE: loop exit
PB: predicated region body
PF: predicated region fallthrough
CT: control target
= control target key end

     0   :  { %s28_s0 = inlined_call_operand.vmem [shape: f32[128], index: 0, kind: input, shape index: {}]   ;;  %s29_s1 = inlined_call_operand.vmem [shape: f32[16,128], index: 1, kind: output, shape index: {}]  }
   0x1   :  { %v4_v0 = vld [vmem:[%s28_s0] ss:$0 sm:$0xff] }
   0x2   :  { %5 = vst [vmem:[%s29_s1] sm:$0xff] %v4_v0  ;;  %8 = vst [vmem:[%s29_s1 + $0x8] sm:$0xff] %v4_v0 }

// kernel: autoencoder_forward.24
= control target key start
LH: loop header
LB: loop body
LE: loop exit
PB: predicated region body
PF: predicated region fallthrough
CT: control target
= control target key end

     0   :  { %s2432_s24 = smov 0   ;;  %s2434_s25 = smov 0   ;;  %s2845_s0 = inlined_call_operand.vmem [shape: bf16[128,1024], index: 0, kind: input, shape index: {}]   ;;  %s2846_s1 = inlined_call_operand.vmem [shape: bf16[1024,128], index: 1, kind: input, shape index: {}]   ;;  %s2847_s2 = inlined_call_operand.vmem [shape: f32[1,128], index: 2, kind: input, shape index: {}]   ;;  %s2848_s3 = inlined_call_operand.vmem [shape: f32[1,1024], index: 3, kind: input, shape index: {}]   ;;  %s2849_s4 = inlined_call_operand.vmem [shape: f32[1,1024], index: 4, kind: input, shape index: {}]   ;;  %s2850_s5 = inlined_call_operand.vmem [shape: bf16[128,128], index: 5, kind: output, shape index: {0}]   ;;  %s2851_s6 = inlined_call_operand.vmem [shape: f32[8,128], index: 6, kind: output, shape index: {1}]   ;;  %s2852_s7 = inlined_call_operand.vmem [shape: f32[8,128], index: 7, kind: output, shape index: {2}]  }
   0x1   :  { %s2436_s26 = smov 0   ;;  %s2438_s27 = smov 0  }
   0x2   :  { %s2440_s28 = smov 0  }
   0x3 LB: > { %s30_s29 = sadd.s32 1, %s2385_s27  ;;  %p53_p1 = scmp.ne.s32.totalorder %s2377_s25, %s2373_s24  ;;  %s2389_s28 = sphi %s2440_s28, %s18_s28   ;;  %s2385_s27 = sphi %s2438_s27, %s2856_s27   ;;  %s2381_s26 = sphi %s2436_s26, %s2855_s26   ;;  %s2377_s25 = sphi %s2434_s25, %s2854_s25   ;;  %s2373_s24 = sphi %s2432_s24, %s2853_s24  }
   0x4   : > { %p31_p0 = scmp.ge.s32.totalorder %s30_s29, 2  ;;  %p54_p2 = scmp.eq.s32.totalorder %s2389_s28, 0 }
   0x5   : > { %s46_s8 = sadd.s32 1, %s2377_s25  ;;  %p2019_p5 = scmp.ge.s32.totalorder %s2389_s28, 2 }
   0x6   : > { %s2858_s29 = smov (%p31_p0, %s30_s29), 0  ;;  %p55_p3 = por %p54_p2, %p53_p1 }
   0x7   : > { %s42_s30 = ssub.s32 %s2385_s27, %s2858_s29  ;;  %275 = sbr.rel (%p2019_p5) target bundleno = 32 (0x20), region = 20 }
   0x8   : > { %p44_p4 = scmp.eq.s32.totalorder %s42_s30, 0 }
   0xa   : > { %s2467_s9 = scalar_select %p44_p4, %s2377_s25, %s46_s8  }
   0xc   : > { %278 = sbr.rel (!%p55_p3) target bundleno = 32 (0x20), region = 24  ;;  %s280_s10 = sand.u32 (%p55_p3), 1, %s2377_s25  }
   0xd   : > { %s2086_s11 = sshll.u32 (%p55_p3), %s2385_s27, 4  ;;  %s2020_s12 = sshll.u32 (%p55_p3), %s280_s10, 8 }
   0xe   : > { %s2475_s15 = scalar_lea.vmem (%p55_p3), %s2845_s0, %s2086_s11  ;;  %s2480_s16 = scalar_lea.vmem (%p55_p3), [#allocation3], %s2020_s12 }
   0xf   : > { %v301_v0 = vld [vmem:[%s2475_s15] sm:$0xff] (%p55_p3)  ;;  %v303_v1 = vld [vmem:[%s2475_s15 + $0x8] sm:$0xff] (%p55_p3) }
  0x10   : > { %v305_v2 = vld [vmem:[%s2475_s15 + $0x20] sm:$0xff] (%p55_p3)  ;;  %302 = vst [vmem:[%s2480_s16] sm:$0xff] (%p55_p3), %v301_v0  ;;  %304 = vst [vmem:[%s2480_s16 + $0x8] sm:$0xff] (%p55_p3), %v303_v1  ;;  %v307_v3 = vld [vmem:[%s2475_s15 + $0x28] sm:$0xff] (%p55_p3) }
  0x11   : > { %306 = vst [vmem:[%s2480_s16 + $0x10] sm:$0xff] %v305_v2  ;;  %v309_v4 = vld [vmem:[%s2475_s15 + $0x40] sm:$0xff]  ;;  %v311_v5 = vld [vmem:[%s2475_s15 + $0x48] sm:$0xff]  ;;  %308 = vst [vmem:[%s2480_s16 + $0x18] sm:$0xff] %v307_v3 }
  0x12   : > { %310 = vst [vmem:[%s2480_s16 + $0x20] sm:$0xff] %v309_v4  ;;  %312 = vst [vmem:[%s2480_s16 + $0x28] sm:$0xff] %v311_v5  ;;  %v313_v6 = vld [vmem:[%s2475_s15 + $0x60] sm:$0xff]  ;;  %v315_v7 = vld [vmem:[%s2475_s15 + $0x68] sm:$0xff] }
  0x13   : > { %v317_v8 = vld [vmem:[%s2475_s15 + $0x80] sm:$0xff]  ;;  %314 = vst [vmem:[%s2480_s16 + $0x30] sm:$0xff] %v313_v6  ;;  %316 = vst [vmem:[%s2480_s16 + $0x38] sm:$0xff] %v315_v7  ;;  %v319_v9 = vld [vmem:[%s2475_s15 + $0x88] sm:$0xff] }
  0x14   : > { %318 = vst [vmem:[%s2480_s16 + $0x40] sm:$0xff] %v317_v8  ;;  %v321_v10 = vld [vmem:[%s2475_s15 + $0xa0] sm:$0xff]  ;;  %v323_v11 = vld [vmem:[%s2475_s15 + $0xa8] sm:$0xff]  ;;  %320 = vst [vmem:[%s2480_s16 + $0x48] sm:$0xff] %v319_v9 }
  0x15   : > { %322 = vst [vmem:[%s2480_s16 + $0x50] sm:$0xff] %v321_v10  ;;  %324 = vst [vmem:[%s2480_s16 + $0x58] sm:$0xff] %v323_v11  ;;  %v325_v12 = vld [vmem:[%s2475_s15 + $0xc0] sm:$0xff]  ;;  %v327_v13 = vld [vmem:[%s2475_s15 + $0xc8] sm:$0xff] }
  0x16   : > { %v329_v14 = vld [vmem:[%s2475_s15 + $0xe0] sm:$0xff]  ;;  %326 = vst [vmem:[%s2480_s16 + $0x60] sm:$0xff] %v325_v12  ;;  %328 = vst [vmem:[%s2480_s16 + $0x68] sm:$0xff] %v327_v13  ;;  %v331_v15 = vld [vmem:[%s2475_s15 + $0xe8] sm:$0xff] }
  0x17   : > { %330 = vst [vmem:[%s2480_s16 + $0x70] sm:$0xff] %v329_v14  ;;  %v333_v16 = vld [vmem:[%s2475_s15 + $0x100] sm:$0xff]  ;;  %v335_v17 = vld [vmem:[%s2475_s15 + $0x108] sm:$0xff]  ;;  %332 = vst [vmem:[%s2480_s16 + $0x78] sm:$0xff] %v331_v15 }
  0x18   : > { %334 = vst [vmem:[%s2480_s16 + $0x80] sm:$0xff] %v333_v16  ;;  %336 = vst [vmem:[%s2480_s16 + $0x88] sm:$0xff] %v335_v17  ;;  %v337_v18 = vld [vmem:[%s2475_s15 + $0x120] sm:$0xff]  ;;  %v339_v19 = vld [vmem:[%s2475_s15 + $0x128] sm:$0xff] }
  0x19   : > { %v341_v20 = vld [vmem:[%s2475_s15 + $0x140] sm:$0xff]  ;;  %338 = vst [vmem:[%s2480_s16 + $0x90] sm:$0xff] %v337_v18  ;;  %340 = vst [vmem:[%s2480_s16 + $0x98] sm:$0xff] %v339_v19  ;;  %v343_v21 = vld [vmem:[%s2475_s15 + $0x148] sm:$0xff] }
  0x1a   : > { %342 = vst [vmem:[%s2480_s16 + $0xa0] sm:$0xff] %v341_v20  ;;  %v345_v22 = vld [vmem:[%s2475_s15 + $0x160] sm:$0xff]  ;;  %v347_v23 = vld [vmem:[%s2475_s15 + $0x168] sm:$0xff]  ;;  %344 = vst [vmem:[%s2480_s16 + $0xa8] sm:$0xff] %v343_v21 }
  0x1b   : > { %346 = vst [vmem:[%s2480_s16 + $0xb0] sm:$0xff] %v345_v22  ;;  %348 = vst [vmem:[%s2480_s16 + $0xb8] sm:$0xff] %v347_v23  ;;  %v349_v24 = vld [vmem:[%s2475_s15 + $0x180] sm:$0xff]  ;;  %v351_v25 = vld [vmem:[%s2475_s15 + $0x188] sm:$0xff] }
  0x1c   : > { %v353_v26 = vld [vmem:[%s2475_s15 + $0x1a0] sm:$0xff]  ;;  %350 = vst [vmem:[%s2480_s16 + $0xc0] sm:$0xff] %v349_v24  ;;  %352 = vst [vmem:[%s2480_s16 + $0xc8] sm:$0xff] %v351_v25  ;;  %v355_v27 = vld [vmem:[%s2475_s15 + $0x1a8] sm:$0xff] }
  0x1d   : > { %354 = vst [vmem:[%s2480_s16 + $0xd0] sm:$0xff] %v353_v26  ;;  %v357_v28 = vld [vmem:[%s2475_s15 + $0x1c0] sm:$0xff]  ;;  %v359_v29 = vld [vmem:[%s2475_s15 + $0x1c8] sm:$0xff]  ;;  %356 = vst [vmem:[%s2480_s16 + $0xd8] sm:$0xff] %v355_v27 }
  0x1e   : > { %358 = vst [vmem:[%s2480_s16 + $0xe0] sm:$0xff] %v357_v28  ;;  %360 = vst [vmem:[%s2480_s16 + $0xe8] sm:$0xff] %v359_v29  ;;  %v361_v30 = vld [vmem:[%s2475_s15 + $0x1e0] sm:$0xff]  ;;  %v363_v31 = vld [vmem:[%s2475_s15 + $0x1e8] sm:$0xff] }
  0x1f   : > { %362 = vst [vmem:[%s2480_s16 + $0xf0] sm:$0xff] %v361_v30  ;;  %364 = vst [vmem:[%s2480_s16 + $0xf8] sm:$0xff] %v363_v31 }
  0x20 PF: > { %p2023_p6 = scmp.ge.s32.totalorder %s2389_s28, 1  ;;  %p397_p7 = scmp.lt.s32.totalorder %s2389_s28, 3 }
  0x22   : > { %p398_p8 = pnand %p2023_p6, %p397_p7 }
  0x23   : > { %s404_s17 = sand.u32 (!%p398_p8), 1, %s2373_s24   ;;  %s2025_s18 = sshll.u32 (!%p398_p8), %s2381_s26, 6 }
  0x24   : > { %401 = sbr.rel (%p398_p8) target bundleno = 436 (0x1b4), region = 59  ;;  %s2024_s19 = sshll.u32 (!%p398_p8), %s404_s17, 8 }
  0x25   : > { %p474_p9 = scmp.lt.s32.totalorder (!%p398_p8), %s2025_s18, 127  ;;  %s2027_s20 = sshll.u32 (!%p398_p8), %s2381_s26, 2 }
  0x26   : > { %p486_p10 = scmp.lt.s32.totalorder (!%p398_p8), %s2027_s20, 7  ;;  %s2563_s14 = scalar_lea.vmem (!%p398_p8), [#allocation3], %s2024_s19 }
  0x27   : > { %p2029_p11 = scmp.ne.s32.totalorder (!%p398_p8), %s2381_s26, 0 }
  0x29   : > { %s2860_s18 = smov (!%p474_p9, %s2025_s18), 127  ;;  %s2862_s20 = smov (!%p486_p10, %s2027_s20), 7 }
  0x2a   : > { %s2026_s21 = sshll.u32 %s2860_s18, 2  ;;  %s488_s24 = scalar_lea.vmem %s2848_s3, %s2862_s20 }
  0x2b   : > { %s2551_s30 = scalar_lea.vmem %s2846_s1, %s2026_s21  ;;  %s493_s13 = scalar_lea.vmem %s2849_s4, %s2862_s20 }
  0x2c   : > { %523 = sbr.rel (%p2029_p11) target bundleno = 58 (0x3a), region = 67 }
  0x31   : > { %v2391_v32 = vmov 0.0  }
  0x32   : > { %524 = vst [vmem:[#allocation2 + $0x30] sm:$0xff] %v2391_v32  ;;  %525 = vst [vmem:[#allocation2] sm:$0xff] %v2391_v32 }
  0x33   : > { %526 = vst [vmem:[#allocation2 + $0x58] sm:$0xff] %v2391_v32  ;;  %527 = vst [vmem:[#allocation2 + $0x18] sm:$0xff] %v2391_v32 }
  0x34   : > { %528 = vst [vmem:[#allocation2 + $0x50] sm:$0xff] %v2391_v32  ;;  %529 = vst [vmem:[#allocation2 + $0x68] sm:$0xff] %v2391_v32 }
  0x35   : > { %530 = vst [vmem:[#allocation2 + $0x8] sm:$0xff] %v2391_v32  ;;  %531 = vst [vmem:[#allocation2 + $0x48] sm:$0xff] %v2391_v32 }
  0x36   : > { %532 = vst [vmem:[#allocation2 + $0x40] sm:$0xff] %v2391_v32  ;;  %533 = vst [vmem:[#allocation2 + $0x20] sm:$0xff] %v2391_v32 }
  0x37   : > { %534 = vst [vmem:[#allocation2 + $0x10] sm:$0xff] %v2391_v32  ;;  %535 = vst [vmem:[#allocation2 + $0x38] sm:$0xff] %v2391_v32 }
  0x38   : > { %536 = vst [vmem:[#allocation2 + $0x60] sm:$0xff] %v2391_v32  ;;  %537 = vst [vmem:[#allocation2 + $0x70] sm:$0xff] %v2391_v32 }
  0x39   : > { %538 = vst [vmem:[#allocation2 + $0x78] sm:$0xff] %v2391_v32  ;;  %539 = vst [vmem:[#allocation2 + $0x28] sm:$0xff] %v2391_v32 }
  0x3a PF: > { %v2319_v33 = vld [vmem:[%s2551_s30 + $0x78] sm:$0xff]   ;;  %v2323_v37 = vld [vmem:[%s2551_s30 + $0x70] sm:$0xff]   ;;  %v2327_v41 = vld [vmem:[%s2551_s30 + $0x68] sm:$0xff]   ;;  %v638_v56 = vlaneseq  ;;  %p2062_p12 = scmp.ne.s32.totalorder %s2381_s26, 1 }
  0x3b   : > { %v2320_v34 = vld [vmem:[%s2551_s30 + $0xf8] sm:$0xff]   ;;  %2150 = vmatprep.subr.bf16.mxu0 %v2319_v33  ;;  %v2324_v38 = vld [vmem:[%s2551_s30 + $0xf0] sm:$0xff]   ;;  %v2328_v42 = vld [vmem:[%s2551_s30 + $0xe8] sm:$0xff]  }
  0x3c   : > { %v2321_v35 = vld [vmem:[%s2551_s30 + $0x38] sm:$0xff]   ;;  %2214 = vmatprep.subr.bf16.mxu1 %v2320_v34  ;;  %v2325_v39 = vld [vmem:[%s2551_s30 + $0x30] sm:$0xff]   ;;  %v2329_v43 = vld [vmem:[%s2551_s30 + $0x28] sm:$0xff]   ;;  %v639_v61 = vshrl.u32 %v638_v56, 7 }
  0x3d   : > { %v2322_v36 = vld [vmem:[%s2551_s30 + $0xb8] sm:$0xff]   ;;  %2151 = vmatpush3.bf16.msra.mxu0 %v2321_v35  ;;  %v2326_v40 = vld [vmem:[%s2551_s30 + $0xb0] sm:$0xff]   ;;  %v2330_v44 = vld [vmem:[%s2551_s30 + $0xa8] sm:$0xff]  }
  0x3e   : > { %2215 = vmatpush3.bf16.msra.mxu1 %v2322_v36  ;;  %2152 = vmatprep.subr.bf16.mxu0 %v2323_v37  ;;  %v2331_v45 = vld [vmem:[%s2551_s30 + $0x60] sm:$0xff]   ;;  %v2335_v49 = vld [vmem:[%s2551_s30 + $0x58] sm:$0xff]   ;;  %v2339_v53 = vld [vmem:[%s2551_s30 + $0x50] sm:$0xff]   ;;  %v644_v2 = vsub.s32 1, %v639_v61  ;;  %v652_v4 = vsub.s32 3, %v639_v61  ;;  %v640_v8 = vsub.s32 0, %v639_v61 }
  0x3f   : > { %2216 = vmatprep.subr.bf16.mxu1 %v2324_v38  ;;  %v2332_v46 = vld [vmem:[%s2551_s30 + $0xe0] sm:$0xff]   ;;  %v2336_v50 = vld [vmem:[%s2551_s30 + $0xd8] sm:$0xff]   ;;  %v2340_v54 = vld [vmem:[%s2551_s30 + $0xd0] sm:$0xff]   ;;  %v648_v9 = vsub.s32 2, %v639_v61 }
  0x40   : > { %v2333_v47 = vld [vmem:[%s2551_s30 + $0x20] sm:$0xff]   ;;  %v2337_v51 = vld [vmem:[%s2551_s30 + $0x18] sm:$0xff]   ;;  %v2341_v55 = vld [vmem:[%s2551_s30 + $0x10] sm:$0xff]  }
  0x41   : > { %2153 = vmatpush3.bf16.msra.mxu0 %v2325_v39  ;;  %v2334_v48 = vld [vmem:[%s2551_s30 + $0xa0] sm:$0xff]   ;;  %v2338_v52 = vld [vmem:[%s2551_s30 + $0x98] sm:$0xff]   ;;  %v2342_v57 = vld [vmem:[%s2551_s30 + $0x90] sm:$0xff]  }
  0x42   : > { %2217 = vmatpush3.bf16.msra.mxu1 %v2326_v40  ;;  %2154 = vmatprep.subr.bf16.mxu0 %v2327_v41  ;;  %v2343_v58 = vld [vmem:[%s2551_s30 + $0x48] sm:$0xff]   ;;  %v2347_v63 = vld [vmem:[%s2551_s30 + $0x40] sm:$0xff]   ;;  %v542_v6 = vld [vmem:[%s2563_s14 + $0x10] sm:$0xff] }
  0x43   : > { %2218 = vmatprep.subr.bf16.mxu1 %v2328_v42  ;;  %v2344_v59 = vld [vmem:[%s2551_s30 + $0xc8] sm:$0xff]   ;;  %v2348_v0 = vld [vmem:[%s2551_s30 + $0xc0] sm:$0xff]   ;;  %v576_v12 = vunpack.c.l.bf16 %v542_v6  ;;  %v577_v13 = vunpack.c.h.bf16 %v542_v6  ;;  %v543_v16 = vld [vmem:[%s2563_s14 + $0x18] sm:$0xff] }
  0x44   : > { %v2345_v60 = vld [vmem:[%s2551_s30 + $0x8] sm:$0xff]   ;;  %v2349_v1 = vld [vmem:[%s2551_s30] sm:$0xff]   ;;  %v578_v21 = vunpack.c.l.bf16 %v543_v16  ;;  %v579_v22 = vunpack.c.h.bf16 %v543_v16  ;;  %v547_v61 = vld [vmem:[%s2563_s14 + $0x38] sm:$0xff] }
  0x45   : > { %2155 = vmatpush3.bf16.msra.mxu0 %v2329_v43  ;;  %v2346_v62 = vld [vmem:[%s2551_s30 + $0x88] sm:$0xff]   ;;  %v2350_v3 = vld [vmem:[%s2551_s30 + $0x80] sm:$0xff]  }
  0x46   : > { %2219 = vmatpush3.bf16.msra.mxu1 %v2330_v44  ;;  %2156 = vmatprep.subr.bf16.mxu0 %v2331_v45  ;;  %v540_v5 = vld [vmem:[%s2563_s14] sm:$0xff]  ;;  %v541_v15 = vld [vmem:[%s2563_s14 + $0x8] sm:$0xff] }
  0x47   : > { %2220 = vmatprep.subr.bf16.mxu1 %v2332_v46  ;;  %v636_v7 = vld [vmem:[%s488_s24] sm:$0xf]  ;;  %v572_v10 = vunpack.c.l.bf16 %v540_v5  ;;  %v573_v11 = vunpack.c.h.bf16 %v540_v5  ;;  %v574_v19 = vunpack.c.l.bf16 %v541_v15  ;;  %v575_v20 = vunpack.c.h.bf16 %v541_v15 }
  0x48   : > { %v722_v14 = vld [vmem:[%s493_s13] sm:$0xf]  ;;  %v2612_v17 = vrot.slane %v636_v7, %v644_v2  ;;  %v2616_v23 = vrot.slane %v636_v7, %v652_v4  ;;  %v2622_v27 = vrot.slane %v636_v7, %v640_v8  ;;  %v2628_v31 = vrot.slane %v636_v7, %v648_v9 }
  0x49   : > { %2157 = vmatpush3.bf16.msra.mxu0 %v2333_v47  ;;  %v2614_v18 = vrot.slane %v722_v14, %v644_v2  ;;  %v2618_v24 = vrot.slane %v722_v14, %v652_v4  ;;  %v2624_v28 = vrot.slane %v722_v14, %v640_v8  ;;  %v2630_v32 = vrot.slane %v722_v14, %v648_v9 }
  0x4a   : > { %2221 = vmatpush3.bf16.msra.mxu1 %v2334_v48  ;;  %2158 = vmatprep.subr.bf16.mxu0 %v2335_v49  ;;  %v659_v25 = vmul.f32 %v2612_v17, %v573_v11  ;;  %v663_v26 = vmul.f32 %v2612_v17, %v577_v13  ;;  %v661_v29 = vmul.f32 %v2616_v23, %v575_v20  ;;  %v587_v8 = vunpack.c.h.bf16 %v547_v61 }
  0x4b   : > { %2222 = vmatprep.subr.bf16.mxu1 %v2336_v50  ;;  %v665_v30 = vmul.f32 %v2616_v23, %v579_v22  ;;  %v658_v35 = vmul.f32 %v2622_v27, %v572_v10  ;;  %v662_v36 = vmul.f32 %v2622_v27, %v576_v12  ;;  %v660_v39 = vmul.f32 %v2628_v31, %v574_v19 }
  0x4c   : > { %v745_v33 = vadd.f32 %v2614_v18, %v659_v25  ;;  %v749_v34 = vadd.f32 %v2614_v18, %v663_v26  ;;  %v747_v37 = vadd.f32 %v2618_v24, %v661_v29  ;;  %v664_v40 = vmul.f32 %v2628_v31, %v578_v21 }
  0x4d   : > { %2159 = vmatpush3.bf16.msra.mxu0 %v2337_v51  ;;  %v751_v38 = vadd.f32 %v2618_v24, %v665_v30  ;;  %v744_v47 = vadd.f32 %v2624_v28, %v658_v35  ;;  %v748_v48 = vadd.f32 %v2624_v28, %v662_v36  ;;  %v673_v16 = vmul.f32 %v2616_v23, %v587_v8 }
  0x4e   : > { %2223 = vmatpush3.bf16.msra.mxu1 %v2338_v52  ;;  %2160 = vmatprep.subr.bf16.mxu0 %v2339_v53  ;;  %vm809_vm0 = vcmp.gt.f32.partialorder %v745_v33, 0.0  ;;  %vm813_vm1 = vcmp.gt.f32.partialorder %v749_v34, 0.0  ;;  %v873_v41 = vmul.f32 0.01, %v745_v33  ;;  %v877_v42 = vmul.f32 0.01, %v749_v34 }
  0x4f   : > { %2224 = vmatprep.subr.bf16.mxu1 %v2340_v54  ;;  %vm811_vm2 = vcmp.gt.f32.partialorder %v747_v37, 0.0  ;;  %vm815_vm3 = vcmp.gt.f32.partialorder %v751_v38, 0.0  ;;  %v875_v43 = vmul.f32 0.01, %v747_v37  ;;  %v879_v44 = vmul.f32 0.01, %v751_v38 }
  0x50   : > { %v937_v45 = vsel %vm809_vm0, %v745_v33, %v873_v41  ;;  %v941_v46 = vsel %vm813_vm1, %v749_v34, %v877_v42  ;;  %v746_v52 = vadd.f32 %v2630_v32, %v660_v39  ;;  %v544_v53 = vld [vmem:[%s2563_s14 + $0x20] sm:$0xff]  ;;  %v546_v54 = vld [vmem:[%s2563_s14 + $0x30] sm:$0xff]  ;;  %vm808_vm4 = vcmp.gt.f32.partialorder %v744_v47, 0.0 }
  0x51   : > { %2161 = vmatpush3.bf16.msra.mxu0 %v2341_v55  ;;  %v1017_v49 = vpack.c.bf16 %v941_v46, %v937_v45  ;;  %v939_v50 = vsel %vm811_vm2, %v747_v37, %v875_v43  ;;  %v943_v51 = vsel %vm815_vm3, %v751_v38, %v879_v44  ;;  %v2646_v55 = vld [vmem:[%s2563_s14 + $0x28] sm:$0xff]  ;;  %vm812_vm5 = vcmp.gt.f32.partialorder %v748_v48, 0.0  ;;  %v548_v38 = vld [vmem:[%s2563_s14 + $0x40] sm:$0xff]  ;;  %v550_v42 = vld [vmem:[%s2563_s14 + $0x50] sm:$0xff] }
  0x52   : > { %2225 = vmatpush3.bf16.msra.mxu1 %v2342_v57  ;;  %2162 = vmatprep.subr.bf16.mxu0 %v2343_v58  ;;  %v1019_v56 = vpack.c.bf16 %v943_v51, %v939_v50  ;;  %v872_v57 = vmul.f32 0.01, %v744_v47  ;;  %v876_v58 = vmul.f32 0.01, %v748_v48  ;;  %vm810_vm6 = vcmp.gt.f32.partialorder %v746_v52, 0.0  ;;  %v551_v50 = vld [vmem:[%s2563_s14 + $0x58] sm:$0xff] }
  0x53   : > { %2226 = vmatprep.subr.bf16.mxu1 %v2344_v59  ;;  %1336 = vmatprep.mubr.bf16.mxu0 %v1017_v49  ;;  %v750_v59 = vadd.f32 %v2630_v32, %v664_v40  ;;  %v580_v11 = vunpack.c.l.bf16 %v544_v53  ;;  %v584_v12 = vunpack.c.l.bf16 %v546_v54  ;;  %v582_v22 = vunpack.c.l.bf16 %v2646_v55  ;;  %v549_v49 = vld [vmem:[%s2563_s14 + $0x48] sm:$0xff] }
  0x54   : > { %1433 = vmatprep.mubr.bf16.mxu1 %v1019_v56  ;;  %v940_v2 = vsel %vm812_vm5, %v748_v48, %v876_v58  ;;  %v759_v29 = vadd.f32 %v2618_v24, %v673_v16  ;;  %v586_v37 = vunpack.c.l.bf16 %v547_v61  ;;  %v589_v48 = vunpack.c.h.bf16 %v548_v38 }
  0x55   : > { %2163 = vmatpush3.bf16.msra.mxu0 %v2345_v60  ;;  %v874_v60 = vmul.f32 0.01, %v746_v52  ;;  %vm814_vm7 = vcmp.gt.f32.partialorder %v750_v59, 0.0  ;;  %v666_v20 = vmul.f32 %v2622_v27, %v580_v11  ;;  %v670_v21 = vmul.f32 %v2622_v27, %v584_v12 }
  0x56   : > { %2227 = vmatpush3.bf16.msra.mxu1 %v2346_v62  ;;  %2164 = vmatprep.subr.bf16.mxu0 %v2347_v63  ;;  %v936_v62 = vsel %vm808_vm4, %v744_v47, %v872_v57  ;;  %v581_v63 = vunpack.c.h.bf16 %v544_v53  ;;  %vm823_vm11 = vcmp.gt.f32.partialorder %v759_v29, 0.0  ;;  %v887_v40 = vmul.f32 0.01, %v759_v29 }
  0x57   : > { %2228 = vmatprep.subr.bf16.mxu1 %v2348_v0  ;;  %v585_v0 = vunpack.c.h.bf16 %v546_v54  ;;  %v938_v4 = vsel %vm810_vm6, %v746_v52, %v874_v60  ;;  %v1016_v5 = vpack.c.bf16 %v940_v2, %v936_v62  ;;  %v752_v33 = vadd.f32 %v2624_v28, %v666_v20 }
  0x58   : > { %v667_v6 = vmul.f32 %v2612_v17, %v581_v63  ;;  %v756_v36 = vadd.f32 %v2624_v28, %v670_v21  ;;  %v951_v45 = vsel %vm823_vm11, %v759_v29, %v887_v40  ;;  %v668_v46 = vmul.f32 %v2628_v31, %v582_v22 }
  0x59   : > { %2165 = vmatpush3.bf16.msra.mxu0 %v2349_v1  ;;  %v583_v1 = vunpack.c.h.bf16 %v2646_v55  ;;  %v671_v7 = vmul.f32 %v2612_v17, %v585_v0  ;;  %vm816_vm12 = vcmp.gt.f32.partialorder %v752_v33, 0.0  ;;  %v880_v43 = vmul.f32 0.01, %v752_v33 }
  0x5a   : > { %2229 = vmatpush3.bf16.msra.mxu1 %v2350_v3  ;;  %v878_v3 = vmul.f32 0.01, %v750_v59  ;;  %v753_v14 = vadd.f32 %v2614_v18, %v667_v6  ;;  %vm820_vm13 = vcmp.gt.f32.partialorder %v756_v36, 0.0  ;;  %v884_v44 = vmul.f32 0.01, %v756_v36 }
  0x5b   : > { %v669_v10 = vmul.f32 %v2616_v23, %v583_v1  ;;  %v757_v15 = vadd.f32 %v2614_v18, %v671_v7  ;;  %v672_v47 = vmul.f32 %v2628_v31, %v586_v37  ;;  %v944_v52 = vsel %vm816_vm12, %v752_v33, %v880_v43  ;;  %v554_v37 = vld [vmem:[%s2563_s14 + $0x70] sm:$0xff] }
  0x5c   : > { %v942_v9 = vsel %vm814_vm7, %v750_v59, %v878_v3  ;;  %1337 = vmatmul.mubr.bf16.vlgmr.msra.gmra.mxu0 %v1016_v5  ;;  %vm817_vm8 = vcmp.gt.f32.partialorder %v753_v14, 0.0  ;;  %v881_v25 = vmul.f32 0.01, %v753_v14  ;;  %v948_v53 = vsel %vm820_vm13, %v756_v36, %v884_v44 }
  0x5d   : > { %v1018_v13 = vpack.c.bf16 %v942_v9, %v938_v4  ;;  %v755_v19 = vadd.f32 %v2618_v24, %v669_v10  ;;  %vm821_vm9 = vcmp.gt.f32.partialorder %v757_v15, 0.0  ;;  %v885_v26 = vmul.f32 0.01, %v757_v15 }
  0x5e   : > { %v945_v34 = vsel %vm817_vm8, %v753_v14, %v881_v25  ;;  %v593_v54 = vunpack.c.h.bf16 %v550_v42  ;;  %v1020_v55 = vpack.c.bf16 %v948_v53, %v944_v52  ;;  %v754_v56 = vadd.f32 %v2630_v32, %v668_v46  ;;  %v552_v25 = vld [vmem:[%s2563_s14 + $0x60] sm:$0xff]  ;;  %v555_v46 = vld [vmem:[%s2563_s14 + $0x78] sm:$0xff] }
  0x5f   : > { %1434 = vmatmul.mubr.bf16.vlgmr.msra.gmra.mxu1 %v1018_v13  ;;  %vm819_vm10 = vcmp.gt.f32.partialorder %v755_v19, 0.0  ;;  %v883_v30 = vmul.f32 0.01, %v755_v19  ;;  %v949_v35 = vsel %vm821_vm9, %v757_v15, %v885_v26  ;;  %v758_v57 = vadd.f32 %v2630_v32, %v672_v47 }
  0x60   : > { %v1021_v39 = vpack.c.bf16 %v949_v35, %v945_v34  ;;  %v675_v58 = vmul.f32 %v2612_v17, %v589_v48  ;;  %v679_v59 = vmul.f32 %v2612_v17, %v593_v54  ;;  %v591_v60 = vunpack.c.h.bf16 %v549_v49 }
  0x61   : > { %v947_v41 = vsel %vm819_vm10, %v755_v19, %v883_v30  ;;  %v595_v61 = vunpack.c.h.bf16 %v551_v50  ;;  %v588_v62 = vunpack.c.l.bf16 %v548_v38  ;;  %vm818_vm14 = vcmp.gt.f32.partialorder %v754_v56, 0.0  ;;  %v2689_v38 = vld [vmem:[%s2563_s14 + $0x68] sm:$0xff] }
  0x62   : > { %1344 = vmatprep.mubr.bf16.mxu0 %v1021_v39  ;;  %v1023_v51 = vpack.c.bf16 %v951_v45, %v947_v41  ;;  %vm822_vm15 = vcmp.gt.f32.partialorder %v758_v57, 0.0  ;;  %v882_v63 = vmul.f32 0.01, %v754_v56  ;;  %v886_v0 = vmul.f32 0.01, %v758_v57 }
  0x63   : > { %v761_v1 = vadd.f32 %v2614_v18, %v675_v58  ;;  %v765_v2 = vadd.f32 %v2614_v18, %v679_v59  ;;  %v677_v3 = vmul.f32 %v2616_v23, %v591_v60  ;;  %v681_v4 = vmul.f32 %v2616_v23, %v595_v61 }
  0x64   : > { %1441 = vmatprep.mubr.bf16.mxu1 %v1023_v51  ;;  %1345 = vmatmul.mubr.bf16.gmra.mxu0 %v1020_v55  ;;  %v946_v5 = vsel %vm818_vm14, %v754_v56, %v882_v63  ;;  %v950_v6 = vsel %vm822_vm15, %v758_v57, %v886_v0  ;;  %v592_v7 = vunpack.c.l.bf16 %v550_v42  ;;  %v674_v8 = vmul.f32 %v2622_v27, %v588_v62 }
  0x65   : > { %v1022_v9 = vpack.c.bf16 %v950_v6, %v946_v5  ;;  %vm825_vm0 = vcmp.gt.f32.partialorder %v761_v1, 0.0  ;;  %vm829_vm1 = vcmp.gt.f32.partialorder %v765_v2, 0.0  ;;  %v889_v10 = vmul.f32 0.01, %v761_v1 }
  0x66   : > { %v893_v11 = vmul.f32 0.01, %v765_v2  ;;  %v763_v12 = vadd.f32 %v2618_v24, %v677_v3  ;;  %v767_v13 = vadd.f32 %v2618_v24, %v681_v4  ;;  %v678_v14 = vmul.f32 %v2622_v27, %v592_v7 }
  0x67   : > { %1442 = vmatmul.mubr.bf16.gmra.mxu1 %v1022_v9  ;;  %v953_v15 = vsel %vm825_vm0, %v761_v1, %v889_v10  ;;  %v760_v16 = vadd.f32 %v2624_v28, %v674_v8  ;;  %v590_v19 = vunpack.c.l.bf16 %v549_v49  ;;  %v594_v20 = vunpack.c.l.bf16 %v551_v50 }
  0x68   : > { %v957_v21 = vsel %vm829_vm1, %v765_v2, %v893_v11  ;;  %vm827_vm2 = vcmp.gt.f32.partialorder %v763_v12, 0.0  ;;  %vm831_vm3 = vcmp.gt.f32.partialorder %v767_v13, 0.0  ;;  %v891_v22 = vmul.f32 0.01, %v763_v12 }
  0x69   : > { %v1025_v26 = vpack.c.bf16 %v957_v21, %v953_v15  ;;  %v895_v29 = vmul.f32 0.01, %v767_v13  ;;  %v764_v30 = vadd.f32 %v2624_v28, %v678_v14  ;;  %vm824_vm4 = vcmp.gt.f32.partialorder %v760_v16, 0.0  ;;  %v556_v14 = vld [vmem:[%s2563_s14 + $0x80] sm:$0xff] }
  0x6a   : > { %v955_v33 = vsel %vm827_vm2, %v763_v12, %v891_v22  ;;  %v888_v34 = vmul.f32 0.01, %v760_v16  ;;  %v676_v35 = vmul.f32 %v2628_v31, %v590_v19  ;;  %v680_v36 = vmul.f32 %v2628_v31, %v594_v20  ;;  %v558_v20 = vld [vmem:[%s2563_s14 + $0x90] sm:$0xff] }
  0x6b   : > { %1352 = vmatprep.mubr.bf16.mxu0 %v1025_v26  ;;  %v959_v39 = vsel %vm831_vm3, %v767_v13, %v895_v29  ;;  %vm828_vm5 = vcmp.gt.f32.partialorder %v764_v30, 0.0  ;;  %v892_v40 = vmul.f32 0.01, %v764_v30  ;;  %v597_v41 = vunpack.c.h.bf16 %v552_v25 }
  0x6c   : > { %v1027_v42 = vpack.c.bf16 %v959_v39, %v955_v33  ;;  %v952_v43 = vsel %vm824_vm4, %v760_v16, %v888_v34  ;;  %v762_v44 = vadd.f32 %v2630_v32, %v676_v35  ;;  %v766_v45 = vadd.f32 %v2630_v32, %v680_v36  ;;  %v557_v33 = vld [vmem:[%s2563_s14 + $0x88] sm:$0xff]  ;;  %v559_v34 = vld [vmem:[%s2563_s14 + $0x98] sm:$0xff] }
  0x6d   : > { %v956_v47 = vsel %vm828_vm5, %v764_v30, %v892_v40  ;;  %v601_v48 = vunpack.c.h.bf16 %v554_v37  ;;  %v683_v49 = vmul.f32 %v2612_v17, %v597_v41  ;;  %v599_v50 = vunpack.c.h.bf16 %v2689_v38 }
  0x6e   : > { %1449 = vmatprep.mubr.bf16.mxu1 %v1027_v42  ;;  %v1024_v51 = vpack.c.bf16 %v956_v47, %v952_v43  ;;  %vm826_vm6 = vcmp.gt.f32.partialorder %v762_v44, 0.0  ;;  %vm830_vm7 = vcmp.gt.f32.partialorder %v766_v45, 0.0  ;;  %v890_v52 = vmul.f32 0.01, %v762_v44 }
  0x6f   : > { %v894_v53 = vmul.f32 0.01, %v766_v45  ;;  %v687_v54 = vmul.f32 %v2612_v17, %v601_v48  ;;  %v769_v55 = vadd.f32 %v2614_v18, %v683_v49  ;;  %v603_v56 = vunpack.c.h.bf16 %v555_v46 }
  0x70   : > { %1353 = vmatmul.mubr.bf16.gmra.mxu0 %v1024_v51  ;;  %v954_v57 = vsel %vm826_vm6, %v762_v44, %v890_v52  ;;  %v685_v58 = vmul.f32 %v2616_v23, %v599_v50  ;;  %v596_v59 = vunpack.c.l.bf16 %v552_v25  ;;  %v600_v60 = vunpack.c.l.bf16 %v554_v37 }
  0x71   : > { %v958_v61 = vsel %vm830_vm7, %v766_v45, %v894_v53  ;;  %v773_v62 = vadd.f32 %v2614_v18, %v687_v54  ;;  %vm833_vm8 = vcmp.gt.f32.partialorder %v769_v55, 0.0  ;;  %v897_v63 = vmul.f32 0.01, %v769_v55 }
  0x72   : > { %v1026_v0 = vpack.c.bf16 %v958_v61, %v954_v57  ;;  %v689_v1 = vmul.f32 %v2616_v23, %v603_v56  ;;  %v771_v2 = vadd.f32 %v2618_v24, %v685_v58  ;;  %v682_v3 = vmul.f32 %v2622_v27, %v596_v59 }
  0x73   : > { %vm837_vm9 = vcmp.gt.f32.partialorder %v773_v62, 0.0  ;;  %v901_v4 = vmul.f32 0.01, %v773_v62  ;;  %v961_v5 = vsel %vm833_vm8, %v769_v55, %v897_v63  ;;  %v686_v6 = vmul.f32 %v2622_v27, %v600_v60 }
  0x74   : > { %1450 = vmatmul.mubr.bf16.gmra.mxu1 %v1026_v0  ;;  %v775_v7 = vadd.f32 %v2618_v24, %v689_v1  ;;  %vm835_vm10 = vcmp.gt.f32.partialorder %v771_v2, 0.0  ;;  %v899_v8 = vmul.f32 0.01, %v771_v2  ;;  %v768_v9 = vadd.f32 %v2624_v28, %v682_v3 }
  0x75   : > { %v965_v10 = vsel %vm837_vm9, %v773_v62, %v901_v4  ;;  %v772_v11 = vadd.f32 %v2624_v28, %v686_v6  ;;  %v598_v12 = vunpack.c.l.bf16 %v2689_v38  ;;  %v602_v13 = vunpack.c.l.bf16 %v555_v46 }
  0x76   : > { %v1029_v15 = vpack.c.bf16 %v965_v10, %v961_v5  ;;  %vm839_vm11 = vcmp.gt.f32.partialorder %v775_v7, 0.0  ;;  %v903_v16 = vmul.f32 0.01, %v775_v7  ;;  %v963_v19 = vsel %vm835_vm10, %v771_v2, %v899_v8  ;;  %v560_v5 = vld [vmem:[%s2563_s14 + $0xa0] sm:$0xff] }
  0x77   : > { %vm832_vm12 = vcmp.gt.f32.partialorder %v768_v9, 0.0  ;;  %vm836_vm13 = vcmp.gt.f32.partialorder %v772_v11, 0.0  ;;  %v896_v21 = vmul.f32 0.01, %v768_v9  ;;  %v900_v22 = vmul.f32 0.01, %v772_v11 }
  0x78   : > { %1360 = vmatprep.mubr.bf16.mxu0 %v1029_v15  ;;  %v967_v25 = vsel %vm839_vm11, %v775_v7, %v903_v16  ;;  %v684_v26 = vmul.f32 %v2628_v31, %v598_v12  ;;  %v688_v29 = vmul.f32 %v2628_v31, %v602_v13  ;;  %v605_v30 = vunpack.c.h.bf16 %v556_v14  ;;  %v562_v13 = vld [vmem:[%s2563_s14 + $0xb0] sm:$0xff] }
  0x79   : > { %v1031_v35 = vpack.c.bf16 %v967_v25, %v963_v19  ;;  %v960_v36 = vsel %vm832_vm12, %v768_v9, %v896_v21  ;;  %v964_v37 = vsel %vm836_vm13, %v772_v11, %v900_v22  ;;  %v609_v38 = vunpack.c.h.bf16 %v558_v20 }
  0x7a   : > { %v1028_v39 = vpack.c.bf16 %v964_v37, %v960_v36  ;;  %v770_v40 = vadd.f32 %v2630_v32, %v684_v26  ;;  %v774_v41 = vadd.f32 %v2630_v32, %v688_v29  ;;  %v691_v42 = vmul.f32 %v2612_v17, %v605_v30  ;;  %v563_v26 = vld [vmem:[%s2563_s14 + $0xb8] sm:$0xff] }
  0x7b   : > { %1457 = vmatprep.mubr.bf16.mxu1 %v1031_v35  ;;  %v695_v43 = vmul.f32 %v2612_v17, %v609_v38  ;;  %v607_v44 = vunpack.c.h.bf16 %v557_v33  ;;  %v611_v45 = vunpack.c.h.bf16 %v559_v34  ;;  %v604_v46 = vunpack.c.l.bf16 %v556_v14  ;;  %v2733_v14 = vld [vmem:[%s2563_s14 + $0xa8] sm:$0xff] }
  0x7c   : > { %1361 = vmatmul.mubr.bf16.gmra.mxu0 %v1028_v39  ;;  %vm834_vm14 = vcmp.gt.f32.partialorder %v770_v40, 0.0  ;;  %vm838_vm15 = vcmp.gt.f32.partialorder %v774_v41, 0.0  ;;  %v898_v47 = vmul.f32 0.01, %v770_v40  ;;  %v902_v48 = vmul.f32 0.01, %v774_v41 }
  0x7d   : > { %v777_v49 = vadd.f32 %v2614_v18, %v691_v42  ;;  %v781_v50 = vadd.f32 %v2614_v18, %v695_v43  ;;  %v693_v51 = vmul.f32 %v2616_v23, %v607_v44  ;;  %v697_v52 = vmul.f32 %v2616_v23, %v611_v45 }
  0x7e   : > { %v962_v53 = vsel %vm834_vm14, %v770_v40, %v898_v47  ;;  %v966_v54 = vsel %vm838_vm15, %v774_v41, %v902_v48  ;;  %v608_v55 = vunpack.c.l.bf16 %v558_v20  ;;  %v690_v56 = vmul.f32 %v2622_v27, %v604_v46 }
  0x7f   : > { %v1030_v57 = vpack.c.bf16 %v966_v54, %v962_v53  ;;  %vm841_vm0 = vcmp.gt.f32.partialorder %v777_v49, 0.0  ;;  %vm845_vm1 = vcmp.gt.f32.partialorder %v781_v50, 0.0  ;;  %v905_v58 = vmul.f32 0.01, %v777_v49 }
  0x80   : > { %v909_v59 = vmul.f32 0.01, %v781_v50  ;;  %v779_v60 = vadd.f32 %v2618_v24, %v693_v51  ;;  %v783_v61 = vadd.f32 %v2618_v24, %v697_v52  ;;  %v694_v62 = vmul.f32 %v2622_v27, %v608_v55 }
  0x81   : > { %1458 = vmatmul.mubr.bf16.gmra.mxu1 %v1030_v57  ;;  %v969_v63 = vsel %vm841_vm0, %v777_v49, %v905_v58  ;;  %v776_v0 = vadd.f32 %v2624_v28, %v690_v56  ;;  %v606_v1 = vunpack.c.l.bf16 %v557_v33  ;;  %v610_v2 = vunpack.c.l.bf16 %v559_v34 }
  0x82   : > { %v973_v3 = vsel %vm845_vm1, %v781_v50, %v909_v59  ;;  %vm843_vm2 = vcmp.gt.f32.partialorder %v779_v60, 0.0  ;;  %vm847_vm3 = vcmp.gt.f32.partialorder %v783_v61, 0.0  ;;  %v907_v4 = vmul.f32 0.01, %v779_v60 }
  0x83   : > { %v1033_v6 = vpack.c.bf16 %v973_v3, %v969_v63  ;;  %v911_v7 = vmul.f32 0.01, %v783_v61  ;;  %v780_v8 = vadd.f32 %v2624_v28, %v694_v62  ;;  %vm840_vm4 = vcmp.gt.f32.partialorder %v776_v0, 0.0  ;;  %v564_v62 = vld [vmem:[%s2563_s14 + $0xc0] sm:$0xff] }
  0x84   : > { %v971_v9 = vsel %vm843_vm2, %v779_v60, %v907_v4  ;;  %v904_v10 = vmul.f32 0.01, %v776_v0  ;;  %v692_v11 = vmul.f32 %v2628_v31, %v606_v1  ;;  %v696_v12 = vmul.f32 %v2628_v31, %v610_v2  ;;  %v566_v2 = vld [vmem:[%s2563_s14 + $0xd0] sm:$0xff] }
  0x85   : > { %1368 = vmatprep.mubr.bf16.mxu0 %v1033_v6  ;;  %v975_v15 = vsel %vm847_vm3, %v783_v61, %v911_v7  ;;  %vm844_vm5 = vcmp.gt.f32.partialorder %v780_v8, 0.0  ;;  %v908_v16 = vmul.f32 0.01, %v780_v8  ;;  %v613_v19 = vunpack.c.h.bf16 %v560_v5 }
  0x86   : > { %v1035_v20 = vpack.c.bf16 %v975_v15, %v971_v9  ;;  %v968_v21 = vsel %vm840_vm4, %v776_v0, %v904_v10  ;;  %v778_v22 = vadd.f32 %v2630_v32, %v692_v11  ;;  %v782_v25 = vadd.f32 %v2630_v32, %v696_v12  ;;  %v565_v9 = vld [vmem:[%s2563_s14 + $0xc8] sm:$0xff]  ;;  %v567_v10 = vld [vmem:[%s2563_s14 + $0xd8] sm:$0xff] }
  0x87   : > { %v972_v29 = vsel %vm844_vm5, %v780_v8, %v908_v16  ;;  %v617_v30 = vunpack.c.h.bf16 %v562_v13  ;;  %v699_v33 = vmul.f32 %v2612_v17, %v613_v19  ;;  %v615_v34 = vunpack.c.h.bf16 %v2733_v14 }
  0x88   : > { %1465 = vmatprep.mubr.bf16.mxu1 %v1035_v20  ;;  %v1032_v35 = vpack.c.bf16 %v972_v29, %v968_v21  ;;  %vm842_vm6 = vcmp.gt.f32.partialorder %v778_v22, 0.0  ;;  %vm846_vm7 = vcmp.gt.f32.partialorder %v782_v25, 0.0  ;;  %v906_v36 = vmul.f32 0.01, %v778_v22 }
  0x89   : > { %v910_v37 = vmul.f32 0.01, %v782_v25  ;;  %v703_v38 = vmul.f32 %v2612_v17, %v617_v30  ;;  %v785_v39 = vadd.f32 %v2614_v18, %v699_v33  ;;  %v619_v40 = vunpack.c.h.bf16 %v563_v26 }
  0x8a   : > { %1369 = vmatmul.mubr.bf16.gmra.mxu0 %v1032_v35  ;;  %v970_v41 = vsel %vm842_vm6, %v778_v22, %v906_v36  ;;  %v701_v42 = vmul.f32 %v2616_v23, %v615_v34  ;;  %v612_v43 = vunpack.c.l.bf16 %v560_v5  ;;  %v616_v44 = vunpack.c.l.bf16 %v562_v13 }
  0x8b   : > { %v974_v45 = vsel %vm846_vm7, %v782_v25, %v910_v37  ;;  %v789_v46 = vadd.f32 %v2614_v18, %v703_v38  ;;  %vm849_vm8 = vcmp.gt.f32.partialorder %v785_v39, 0.0  ;;  %v913_v47 = vmul.f32 0.01, %v785_v39 }
  0x8c   : > { %v1034_v48 = vpack.c.bf16 %v974_v45, %v970_v41  ;;  %v705_v49 = vmul.f32 %v2616_v23, %v619_v40  ;;  %v787_v50 = vadd.f32 %v2618_v24, %v701_v42  ;;  %v698_v51 = vmul.f32 %v2622_v27, %v612_v43 }
  0x8d   : > { %vm853_vm9 = vcmp.gt.f32.partialorder %v789_v46, 0.0  ;;  %v917_v52 = vmul.f32 0.01, %v789_v46  ;;  %v977_v53 = vsel %vm849_vm8, %v785_v39, %v913_v47  ;;  %v702_v54 = vmul.f32 %v2622_v27, %v616_v44 }
  0x8e   : > { %1466 = vmatmul.mubr.bf16.gmra.mxu1 %v1034_v48  ;;  %v791_v55 = vadd.f32 %v2618_v24, %v705_v49  ;;  %vm851_vm10 = vcmp.gt.f32.partialorder %v787_v50, 0.0  ;;  %v915_v56 = vmul.f32 0.01, %v787_v50  ;;  %v784_v57 = vadd.f32 %v2624_v28, %v698_v51 }
  0x8f   : > { %v981_v58 = vsel %vm853_vm9, %v789_v46, %v917_v52  ;;  %v788_v59 = vadd.f32 %v2624_v28, %v702_v54  ;;  %v614_v60 = vunpack.c.l.bf16 %v2733_v14  ;;  %v618_v61 = vunpack.c.l.bf16 %v563_v26 }
  0x90   : > { %v1037_v63 = vpack.c.bf16 %v981_v58, %v977_v53  ;;  %vm855_vm11 = vcmp.gt.f32.partialorder %v791_v55, 0.0  ;;  %v919_v0 = vmul.f32 0.01, %v791_v55  ;;  %v979_v1 = vsel %vm851_vm10, %v787_v50, %v915_v56  ;;  %v568_v53 = vld [vmem:[%s2563_s14 + $0xe0] sm:$0xff] }
  0x91   : > { %vm848_vm12 = vcmp.gt.f32.partialorder %v784_v57, 0.0  ;;  %vm852_vm13 = vcmp.gt.f32.partialorder %v788_v59, 0.0  ;;  %v912_v3 = vmul.f32 0.01, %v784_v57  ;;  %v916_v4 = vmul.f32 0.01, %v788_v59 }
  0x92   : > { %1376 = vmatprep.mubr.bf16.mxu0 %v1037_v63  ;;  %v983_v5 = vsel %vm855_vm11, %v791_v55, %v919_v0  ;;  %v700_v6 = vmul.f32 %v2628_v31, %v614_v60  ;;  %v704_v7 = vmul.f32 %v2628_v31, %v618_v61  ;;  %v621_v8 = vunpack.c.h.bf16 %v564_v62  ;;  %v570_v61 = vld [vmem:[%s2563_s14 + $0xf0] sm:$0xff] }
  0x93   : > { %v1039_v11 = vpack.c.bf16 %v983_v5, %v979_v1  ;;  %v976_v12 = vsel %vm848_vm12, %v784_v57, %v912_v3  ;;  %v980_v13 = vsel %vm852_vm13, %v788_v59, %v916_v4  ;;  %v625_v14 = vunpack.c.h.bf16 %v566_v2 }
  0x94   : > { %v1036_v15 = vpack.c.bf16 %v980_v13, %v976_v12  ;;  %v786_v16 = vadd.f32 %v2630_v32, %v700_v6  ;;  %v790_v19 = vadd.f32 %v2630_v32, %v704_v7  ;;  %v707_v20 = vmul.f32 %v2612_v17, %v621_v8  ;;  %v571_v6 = vld [vmem:[%s2563_s14 + $0xf8] sm:$0xff] }
  0x95   : > { %1473 = vmatprep.mubr.bf16.mxu1 %v1039_v11  ;;  %v711_v21 = vmul.f32 %v2612_v17, %v625_v14  ;;  %v623_v22 = vunpack.c.h.bf16 %v565_v9  ;;  %v627_v25 = vunpack.c.h.bf16 %v567_v10  ;;  %v620_v26 = vunpack.c.l.bf16 %v564_v62  ;;  %v569_v62 = vld [vmem:[%s2563_s14 + $0xe8] sm:$0xff] }
  0x96   : > { %1377 = vmatmul.mubr.bf16.gmra.mxu0 %v1036_v15  ;;  %vm850_vm14 = vcmp.gt.f32.partialorder %v786_v16, 0.0  ;;  %vm854_vm15 = vcmp.gt.f32.partialorder %v790_v19, 0.0  ;;  %v914_v29 = vmul.f32 0.01, %v786_v16  ;;  %v918_v30 = vmul.f32 0.01, %v790_v19 }
  0x97   : > { %v793_v33 = vadd.f32 %v2614_v18, %v707_v20  ;;  %v797_v34 = vadd.f32 %v2614_v18, %v711_v21  ;;  %v709_v35 = vmul.f32 %v2616_v23, %v623_v22  ;;  %v713_v36 = vmul.f32 %v2616_v23, %v627_v25 }
  0x98   : > { %v978_v37 = vsel %vm850_vm14, %v786_v16, %v914_v29  ;;  %v982_v38 = vsel %vm854_vm15, %v790_v19, %v918_v30  ;;  %v624_v39 = vunpack.c.l.bf16 %v566_v2  ;;  %v706_v40 = vmul.f32 %v2622_v27, %v620_v26 }
  0x99   : > { %v1038_v41 = vpack.c.bf16 %v982_v38, %v978_v37  ;;  %vm857_vm0 = vcmp.gt.f32.partialorder %v793_v33, 0.0  ;;  %vm861_vm1 = vcmp.gt.f32.partialorder %v797_v34, 0.0  ;;  %v921_v42 = vmul.f32 0.01, %v793_v33 }
  0x9a   : > { %v925_v43 = vmul.f32 0.01, %v797_v34  ;;  %v795_v44 = vadd.f32 %v2618_v24, %v709_v35  ;;  %v799_v45 = vadd.f32 %v2618_v24, %v713_v36  ;;  %v710_v46 = vmul.f32 %v2622_v27, %v624_v39 }
  0x9b   : > { %1474 = vmatmul.mubr.bf16.gmra.mxu1 %v1038_v41  ;;  %v985_v47 = vsel %vm857_vm0, %v793_v33, %v921_v42  ;;  %v792_v48 = vadd.f32 %v2624_v28, %v706_v40  ;;  %v622_v49 = vunpack.c.l.bf16 %v565_v9  ;;  %v626_v50 = vunpack.c.l.bf16 %v567_v10 }
  0x9c   : > { %v989_v51 = vsel %vm861_vm1, %v797_v34, %v925_v43  ;;  %vm859_vm2 = vcmp.gt.f32.partialorder %v795_v44, 0.0  ;;  %vm863_vm3 = vcmp.gt.f32.partialorder %v799_v45, 0.0  ;;  %v923_v52 = vmul.f32 0.01, %v795_v44 }
  0x9d   : > { %v1041_v54 = vpack.c.bf16 %v989_v51, %v985_v47  ;;  %v927_v55 = vmul.f32 0.01, %v799_v45  ;;  %v796_v56 = vadd.f32 %v2624_v28, %v710_v46  ;;  %vm856_vm4 = vcmp.gt.f32.partialorder %v792_v48, 0.0 }
  0x9e   : > { %v987_v57 = vsel %vm859_vm2, %v795_v44, %v923_v52  ;;  %v920_v58 = vmul.f32 0.01, %v792_v48  ;;  %v708_v59 = vmul.f32 %v2628_v31, %v622_v49  ;;  %v712_v60 = vmul.f32 %v2628_v31, %v626_v50 }
  0x9f   : > { %1384 = vmatprep.mubr.bf16.mxu0 %v1041_v54  ;;  %v991_v63 = vsel %vm863_vm3, %v799_v45, %v927_v55  ;;  %vm860_vm5 = vcmp.gt.f32.partialorder %v796_v56, 0.0  ;;  %v924_v0 = vmul.f32 0.01, %v796_v56  ;;  %v629_v1 = vunpack.c.h.bf16 %v568_v53 }
  0xa0   : > { %v1043_v2 = vpack.c.bf16 %v991_v63, %v987_v57  ;;  %v984_v3 = vsel %vm856_vm4, %v792_v48, %v920_v58  ;;  %v794_v4 = vadd.f32 %v2630_v32, %v708_v59  ;;  %v798_v5 = vadd.f32 %v2630_v32, %v712_v60 }
  0xa1   : > { %v988_v7 = vsel %vm860_vm5, %v796_v56, %v924_v0  ;;  %v633_v8 = vunpack.c.h.bf16 %v570_v61  ;;  %v715_v9 = vmul.f32 %v2612_v17, %v629_v1  ;;  %v631_v10 = vunpack.c.h.bf16 %v569_v62  ;;  %v1000_v1 = vld [vmem:[#allocation2 + $0x30] sm:$0xff] }
  0xa2   : > { %1481 = vmatprep.mubr.bf16.mxu1 %v1043_v2  ;;  %v1040_v11 = vpack.c.bf16 %v988_v7, %v984_v3  ;;  %vm858_vm6 = vcmp.gt.f32.partialorder %v794_v4, 0.0  ;;  %vm862_vm7 = vcmp.gt.f32.partialorder %v798_v5, 0.0  ;;  %v922_v12 = vmul.f32 0.01, %v794_v4 }
  0xa3   : > { %v926_v13 = vmul.f32 0.01, %v798_v5  ;;  %v719_v14 = vmul.f32 %v2612_v17, %v633_v8  ;;  %v801_v15 = vadd.f32 %v2614_v18, %v715_v9  ;;  %v635_v16 = vunpack.c.h.bf16 %v571_v6  ;;  %v1001_v8 = vld [vmem:[#allocation2] sm:$0xff] }
  0xa4   : > { %1385 = vmatmul.mubr.bf16.gmra.mxu0 %v1040_v11  ;;  %v986_v19 = vsel %vm858_vm6, %v794_v4, %v922_v12  ;;  %v717_v20 = vmul.f32 %v2616_v23, %v631_v10  ;;  %v628_v21 = vunpack.c.l.bf16 %v568_v53  ;;  %v632_v22 = vunpack.c.l.bf16 %v570_v61 }
  0xa5   : > { %v990_v25 = vsel %vm862_vm7, %v798_v5, %v926_v13  ;;  %v805_v26 = vadd.f32 %v2614_v18, %v719_v14  ;;  %vm865_vm8 = vcmp.gt.f32.partialorder %v801_v15, 0.0  ;;  %v929_v29 = vmul.f32 0.01, %v801_v15 }
  0xa6   : > { %v1042_v30 = vpack.c.bf16 %v990_v25, %v986_v19  ;;  %v721_v33 = vmul.f32 %v2616_v23, %v635_v16  ;;  %v803_v34 = vadd.f32 %v2618_v24, %v717_v20  ;;  %v714_v17 = vmul.f32 %v2622_v27, %v628_v21  ;;  %v1002_v21 = vld [vmem:[#allocation2 + $0x58] sm:$0xff] }
  0xa7   : > { %vm869_vm9 = vcmp.gt.f32.partialorder %v805_v26, 0.0  ;;  %v933_v35 = vmul.f32 0.01, %v805_v26  ;;  %v993_v36 = vsel %vm865_vm8, %v801_v15, %v929_v29  ;;  %v718_v37 = vmul.f32 %v2622_v27, %v632_v22 }
  0xa8   : > { %1482 = vmatmul.mubr.bf16.gmra.mxu1 %v1042_v30  ;;  %v807_v38 = vadd.f32 %v2618_v24, %v721_v33  ;;  %vm867_vm10 = vcmp.gt.f32.partialorder %v803_v34, 0.0  ;;  %v931_v39 = vmul.f32 0.01, %v803_v34  ;;  %v800_v18 = vadd.f32 %v2624_v28, %v714_v17 }
  0xa9   : > { %v997_v40 = vsel %vm869_vm9, %v805_v26, %v933_v35  ;;  %v804_v41 = vadd.f32 %v2624_v28, %v718_v37  ;;  %v630_v23 = vunpack.c.l.bf16 %v569_v62  ;;  %v634_v42 = vunpack.c.l.bf16 %v571_v6 }
  0xaa   : > { %v1045_v43 = vpack.c.bf16 %v997_v40, %v993_v36  ;;  %vm871_vm11 = vcmp.gt.f32.partialorder %v807_v38, 0.0  ;;  %v935_v44 = vmul.f32 0.01, %v807_v38  ;;  %v995_v45 = vsel %vm867_vm10, %v803_v34, %v931_v39  ;;  %v1003_v34 = vld [vmem:[#allocation2 + $0x18] sm:$0xff] }
  0xab   : > { %vm864_vm12 = vcmp.gt.f32.partialorder %v800_v18, 0.0  ;;  %vm868_vm13 = vcmp.gt.f32.partialorder %v804_v41, 0.0  ;;  %v928_v46 = vmul.f32 0.01, %v800_v18  ;;  %v932_v27 = vmul.f32 0.01, %v804_v41 }
  0xac   : > { %1392 = vmatprep.mubr.bf16.mxu0 %v1045_v43  ;;  %v999_v47 = vsel %vm871_vm11, %v807_v38, %v935_v44  ;;  %v716_v24 = vmul.f32 %v2628_v31, %v630_v23  ;;  %v720_v48 = vmul.f32 %v2628_v31, %v634_v42  ;;  %v1004_v42 = vld [vmem:[#allocation2 + $0x50] sm:$0xff] }
  0xad   : > { %v1047_v49 = vpack.c.bf16 %v999_v47, %v995_v45  ;;  %v992_v50 = vsel %vm864_vm12, %v800_v18, %v928_v46  ;;  %v996_v51 = vsel %vm868_vm13, %v804_v41, %v932_v27 }
  0xae   : > { %v1044_v28 = vpack.c.bf16 %v996_v51, %v992_v50  ;;  %v802_v52 = vadd.f32 %v2630_v32, %v716_v24  ;;  %v806_v53 = vadd.f32 %v2630_v32, %v720_v48  ;;  %v1005_v24 = vld [vmem:[#allocation2 + $0x68] sm:$0xff] }
  0xaf   : > { %1489 = vmatprep.mubr.bf16.mxu1 %v1047_v49 }
  0xb0   : > { %1393 = vmatmul.mubr.bf16.gmra.mxu0 %v1044_v28  ;;  %vm866_vm14 = vcmp.gt.f32.partialorder %v802_v52, 0.0  ;;  %vm870_vm15 = vcmp.gt.f32.partialorder %v806_v53, 0.0  ;;  %v930_v54 = vmul.f32 0.01, %v802_v52  ;;  %v934_v55 = vmul.f32 0.01, %v806_v53 }
  0xb2   : > { %v994_v56 = vsel %vm866_vm14, %v802_v52, %v930_v54  ;;  %v998_v57 = vsel %vm870_vm15, %v806_v53, %v934_v55 }
  0xb3   : > { %v1046_v58 = vpack.c.bf16 %v998_v57, %v994_v56  ;;  %v1006_v57 = vld [vmem:[#allocation2 + $0x8] sm:$0xff] }
  0xb5   : > { %1490 = vmatmul.mubr.bf16.gmra.mxu1 %v1046_v58 }
 0x11c   : > { %v2166_v59 = vpop.f32.mrf.mxu0 }
 0x11e   : > { %v2167_v60 = vpop.f32.mrf.mxu0 }
 0x11f   : > { %v2230_v31 = vpop.f32.mrf.mxu1  ;;  %v2168_v61 = vadd.f32 %v2167_v60, %v2166_v59 }
 0x120   : > { %v2169_v63 = vpop.f32.mrf.mxu0 }
 0x121   : > { %v2231_v62 = vpop.f32.mrf.mxu1 }
 0x122   : > { %v2232_v0 = vadd.f32 %v2231_v62, %v2230_v31  ;;  %v2170_v32 = vpop.f32.mrf.mxu0 }
 0x123   : > { %v2233_v2 = vpop.f32.mrf.mxu1  ;;  %v2171_v4 = vadd.f32 %v2170_v32, %v2169_v63  ;;  %v1007_v63 = vld [vmem:[#allocation2 + $0x48] sm:$0xff] }
 0x124   : > { %v1436_v3 = vadd.f32 %v2232_v0, %v2168_v61  ;;  %v2172_v10 = vpop.f32.mrf.mxu0 }
 0x125   : > { %v2234_v5 = vpop.f32.mrf.mxu1 }
 0x126   : > { %v1498_v6 = vadd.f32 %v1436_v3, %v1000_v1  ;;  %v2235_v7 = vadd.f32 %v2234_v5, %v2233_v2  ;;  %v2173_v12 = vpop.f32.mrf.mxu0 }
 0x127   : > { %v2236_v14 = vpop.f32.mrf.mxu1  ;;  %v2174_v15 = vadd.f32 %v2173_v12, %v2172_v10 }
 0x128   : > { %1514 = vst [vmem:[#allocation2 + $0x30] sm:$0xff] %v1498_v6  ;;  %v1439_v9 = vadd.f32 %v2235_v7, %v2171_v4  ;;  %v2175_v13 = vpop.f32.mrf.mxu0 }
 0x129   : > { %v2237_v16 = vpop.f32.mrf.mxu1 }
 0x12a   : > { %v1499_v11 = vadd.f32 %v1439_v9, %v1001_v8  ;;  %v2176_v19 = vpop.f32.mrf.mxu0  ;;  %v2238_v20 = vadd.f32 %v2237_v16, %v2236_v14  ;;  %v1008_v9 = vld [vmem:[#allocation2 + $0x40] sm:$0xff] }
 0x12b   : > { %v2239_v22 = vpop.f32.mrf.mxu1  ;;  %v2177_v26 = vadd.f32 %v2176_v19, %v2175_v13  ;;  %v1009_v16 = vld [vmem:[#allocation2 + $0x20] sm:$0xff] }
 0x12c   : > { %1515 = vst [vmem:[#allocation2] sm:$0xff] %v1499_v11  ;;  %v1444_v25 = vadd.f32 %v2238_v20, %v2174_v15 }
 0x12d   : > { %v2240_v29 = vpop.f32.mrf.mxu1 }
 0x12e   : > { %v1500_v30 = vadd.f32 %v1444_v25, %v1002_v21  ;;  %v2241_v33 = vadd.f32 %v2240_v29, %v2239_v22 }
 0x130   : > { %1516 = vst [vmem:[#allocation2 + $0x58] sm:$0xff] %v1500_v30  ;;  %v1447_v17 = vadd.f32 %v2241_v33, %v2177_v26  ;;  %v2178_v35 = vpop.f32.mrf.mxu0 }
 0x132   : > { %v1501_v36 = vadd.f32 %v1447_v17, %v1003_v34  ;;  %v2179_v37 = vpop.f32.mrf.mxu0  ;;  %v1010_v17 = vld [vmem:[#allocation2 + $0x10] sm:$0xff] }
 0x133   : > { %v2180_v18 = vadd.f32 %v2179_v37, %v2178_v35 }
 0x134   : > { %1517 = vst [vmem:[#allocation2 + $0x18] sm:$0xff] %v1501_v36  ;;  %v2242_v38 = vpop.f32.mrf.mxu1  ;;  %v2181_v39 = vpop.f32.mrf.mxu0 }
 0x136   : > { %v2243_v40 = vpop.f32.mrf.mxu1  ;;  %v2182_v41 = vpop.f32.mrf.mxu0 }
 0x137   : > { %v2244_v23 = vadd.f32 %v2243_v40, %v2242_v38  ;;  %v2183_v45 = vadd.f32 %v2182_v41, %v2181_v39  ;;  %v1011_v40 = vld [vmem:[#allocation2 + $0x38] sm:$0xff] }
 0x138   : > { %v2245_v43 = vpop.f32.mrf.mxu1 }
 0x139   : > { %v1452_v44 = vadd.f32 %v2244_v23, %v2180_v18 }
 0x13a   : > { %v2246_v46 = vpop.f32.mrf.mxu1 }
 0x13b   : > { %v1502_v27 = vadd.f32 %v1452_v44, %v1004_v42  ;;  %v2247_v47 = vadd.f32 %v2246_v46, %v2245_v43 }
 0x13c   : > { %v2184_v48 = vpop.f32.mrf.mxu0 }
 0x13d   : > { %1518 = vst [vmem:[#allocation2 + $0x50] sm:$0xff] %v1502_v27  ;;  %v1455_v49 = vadd.f32 %v2247_v47, %v2183_v45 }
 0x13e   : > { %v2185_v50 = vpop.f32.mrf.mxu0 }
 0x13f   : > { %v1503_v51 = vadd.f32 %v1455_v49, %v1005_v24  ;;  %v2186_v53 = vadd.f32 %v2185_v50, %v2184_v48  ;;  %v1012_v48 = vld [vmem:[#allocation2 + $0x60] sm:$0xff] }
 0x140   : > { %v2187_v28 = vpop.f32.mrf.mxu0 }
 0x141   : > { %1519 = vst [vmem:[#allocation2 + $0x68] sm:$0xff] %v1503_v51  ;;  %v2248_v52 = vpop.f32.mrf.mxu1 }
 0x142   : > { %v2188_v55 = vpop.f32.mrf.mxu0 }
 0x143   : > { %v2249_v54 = vpop.f32.mrf.mxu1  ;;  %v2189_v31 = vadd.f32 %v2188_v55, %v2187_v28 }
 0x144   : > { %v2250_v56 = vadd.f32 %v2249_v54, %v2248_v52  ;;  %v1013_v54 = vld [vmem:[#allocation2 + $0x70] sm:$0xff] }
 0x145   : > { %v2251_v58 = vpop.f32.mrf.mxu1 }
 0x146   : > { %v1460_v59 = vadd.f32 %v2250_v56, %v2186_v53 }
 0x147   : > { %v2252_v60 = vpop.f32.mrf.mxu1 }
 0x148   : > { %v1504_v61 = vadd.f32 %v1460_v59, %v1006_v57  ;;  %v2253_v62 = vadd.f32 %v2252_v60, %v2251_v58 }
 0x14a   : > { %1520 = vst [vmem:[#allocation2 + $0x8] sm:$0xff] %v1504_v61  ;;  %v1463_v0 = vadd.f32 %v2253_v62, %v2189_v31  ;;  %v2190_v1 = vpop.f32.mrf.mxu0 }
 0x14c   : > { %v1505_v2 = vadd.f32 %v1463_v0, %v1007_v63  ;;  %v2191_v32 = vpop.f32.mrf.mxu0  ;;  %v1014_v0 = vld [vmem:[#allocation2 + $0x78] sm:$0xff] }
 0x14d   : > { %v2192_v5 = vadd.f32 %v2191_v32, %v2190_v1 }
 0x14e   : > { %1521 = vst [vmem:[#allocation2 + $0x48] sm:$0xff] %v1505_v2  ;;  %v2254_v3 = vpop.f32.mrf.mxu1  ;;  %v2193_v4 = vpop.f32.mrf.mxu0 }
 0x150   : > { %v2255_v6 = vpop.f32.mrf.mxu1  ;;  %v2194_v7 = vpop.f32.mrf.mxu0 }
 0x151   : > { %v2256_v8 = vadd.f32 %v2255_v6, %v2254_v3  ;;  %v2195_v12 = vadd.f32 %v2194_v7, %v2193_v4  ;;  %v1015_v6 = vld [vmem:[#allocation2 + $0x28] sm:$0xff] }
 0x152   : > { %v2257_v10 = vpop.f32.mrf.mxu1 }
 0x153   : > { %v1468_v11 = vadd.f32 %v2256_v8, %v2192_v5 }
 0x154   : > { %v2258_v13 = vpop.f32.mrf.mxu1 }
 0x155   : > { %v1506_v14 = vadd.f32 %v1468_v11, %v1008_v9  ;;  %v2259_v15 = vadd.f32 %v2258_v13, %v2257_v10 }
 0x156   : > { %v2196_v19 = vpop.f32.mrf.mxu0 }
 0x157   : > { %1522 = vst [vmem:[#allocation2 + $0x40] sm:$0xff] %v1506_v14  ;;  %v1471_v20 = vadd.f32 %v2259_v15, %v2195_v12 }
 0x158   : > { %v2197_v21 = vpop.f32.mrf.mxu0 }
 0x159   : > { %v1507_v22 = vadd.f32 %v1471_v20, %v1009_v16  ;;  %v2198_v29 = vadd.f32 %v2197_v21, %v2196_v19 }
 0x15a   : > { %v2199_v25 = vpop.f32.mrf.mxu0 }
 0x15b   : > { %1523 = vst [vmem:[#allocation2 + $0x20] sm:$0xff] %v1507_v22  ;;  %v2260_v26 = vpop.f32.mrf.mxu1 }
 0x15c   : > { %v2200_v33 = vpop.f32.mrf.mxu0 }
 0x15d   : > { %v2261_v30 = vpop.f32.mrf.mxu1  ;;  %v2201_v37 = vadd.f32 %v2200_v33, %v2199_v25 }
 0x15e   : > { %v2262_v34 = vadd.f32 %v2261_v30, %v2260_v26 }
 0x15f   : > { %v2263_v35 = vpop.f32.mrf.mxu1 }
 0x160   : > { %v1476_v36 = vadd.f32 %v2262_v34, %v2198_v29 }
 0x161   : > { %v2264_v38 = vpop.f32.mrf.mxu1 }
 0x162   : > { %v1508_v39 = vadd.f32 %v1476_v36, %v1010_v17  ;;  %v2265_v18 = vadd.f32 %v2264_v38, %v2263_v35 }
 0x164   : > { %1524 = vst [vmem:[#allocation2 + $0x10] sm:$0xff] %v1508_v39  ;;  %v1479_v41 = vadd.f32 %v2265_v18, %v2201_v37  ;;  %v2202_v23 = vpop.f32.mrf.mxu0 }
 0x166   : > { %v1509_v42 = vadd.f32 %v1479_v41, %v1011_v40  ;;  %v2203_v43 = vpop.f32.mrf.mxu0 }
 0x167   : > { %v2204_v46 = vadd.f32 %v2203_v43, %v2202_v23 }
 0x168   : > { %1525 = vst [vmem:[#allocation2 + $0x38] sm:$0xff] %v1509_v42  ;;  %v2266_v44 = vpop.f32.mrf.mxu1  ;;  %v2205_v45 = vpop.f32.mrf.mxu0 }
 0x16a   : > { %v2267_v27 = vpop.f32.mrf.mxu1  ;;  %v2206_v47 = vpop.f32.mrf.mxu0 }
 0x16b   : > { %v2268_v24 = vadd.f32 %v2267_v27, %v2266_v44  ;;  %v2207_v51 = vadd.f32 %v2206_v47, %v2205_v45 }
 0x16c   : > { %v2269_v49 = vpop.f32.mrf.mxu1 }
 0x16d   : > { %v1484_v50 = vadd.f32 %v2268_v24, %v2204_v46 }
 0x16e   : > { %v2270_v28 = vpop.f32.mrf.mxu1 }
 0x16f   : > { %v1510_v52 = vadd.f32 %v1484_v50, %v1012_v48  ;;  %v2271_v53 = vadd.f32 %v2270_v28, %v2269_v49 }
 0x170   : > { %v2208_v55 = vpop.f32.mrf.mxu0 }
 0x171   : > { %1526 = vst [vmem:[#allocation2 + $0x60] sm:$0xff] %v1510_v52  ;;  %v1487_v56 = vadd.f32 %v2271_v53, %v2207_v51 }
 0x172   : > { %v2209_v57 = vpop.f32.mrf.mxu0 }
 0x173   : > { %v1511_v58 = vadd.f32 %v1487_v56, %v1013_v54  ;;  %v2210_v60 = vadd.f32 %v2209_v57, %v2208_v55 }
 0x174   : > { %v2211_v59 = vpop.f32.mrf.mxu0 }
 0x175   : > { %1527 = vst [vmem:[#allocation2 + $0x70] sm:$0xff] %v1511_v58  ;;  %v2272_v31 = vpop.f32.mrf.mxu1 }
 0x176   : > { %v2212_v62 = vpop.f32.mrf.mxu0 }
 0x177   : > { %v2273_v61 = vpop.f32.mrf.mxu1  ;;  %v2213_v32 = vadd.f32 %v2212_v62, %v2211_v59 }
 0x178   : > { %v2274_v63 = vadd.f32 %v2273_v61, %v2272_v31 }
 0x179   : > { %v2275_v1 = vpop.f32.mrf.mxu1 }
 0x17a   : > { %v1492_v2 = vadd.f32 %v2274_v63, %v2210_v60 }
 0x17b   : > { %v2276_v3 = vpop.f32.mrf.mxu1 }
 0x17c   : > { %v1512_v4 = vadd.f32 %v1492_v2, %v1014_v0  ;;  %v2277_v5 = vadd.f32 %v2276_v3, %v2275_v1 }
 0x17e   : > { %1528 = vst [vmem:[#allocation2 + $0x78] sm:$0xff] %v1512_v4  ;;  %v1495_v7 = vadd.f32 %v2277_v5, %v2213_v32  ;;  %1533 = sbr.rel (%p2062_p12) target bundleno = 436 (0x1b4), region = 71 }
 0x180   : > { %v1513_v8 = vadd.f32 %v1495_v7, %v1015_v6 }
 0x182   : > { %1529 = vst [vmem:[#allocation2 + $0x28] sm:$0xff] %v1513_v8 }
 0x183   : > { %v1534_v9 = vld [vmem:[#allocation2 + $0x30] sm:$0xff]  ;;  %v1535_v10 = vld [vmem:[#allocation2] sm:$0xff]  ;;  %v1536_v14 = vld [vmem:[#allocation2 + $0x58] sm:$0xff] }
 0x184   : > { %v2063_v11 = vld [vmem:[%s2847_s2] ss:$0 sm:$0xff]  ;;  %v1537_v15 = vld [vmem:[#allocation2 + $0x18] sm:$0xff]  ;;  %v1538_v16 = vld [vmem:[#allocation2 + $0x50] sm:$0xff] }
 0x185   : > { %v1557_v12 = vadd.f32 %v2063_v11, %v1534_v9  ;;  %v1558_v13 = vadd.f32 %v2063_v11, %v1535_v10  ;;  %v1559_v19 = vadd.f32 %v2063_v11, %v1536_v14  ;;  %v1560_v20 = vadd.f32 %v2063_v11, %v1537_v15  ;;  %v1539_v21 = vld [vmem:[#allocation2 + $0x68] sm:$0xff]  ;;  %v1542_v37 = vld [vmem:[#allocation2 + $0x40] sm:$0xff]  ;;  %v1544_v44 = vld [vmem:[#allocation2 + $0x10] sm:$0xff] }
 0x186   : > { %v1561_v22 = vadd.f32 %v2063_v11, %v1538_v16  ;;  %v1540_v25 = vld [vmem:[#allocation2 + $0x8] sm:$0xff]  ;;  %v1562_v36 = vadd.f32 %v2063_v11, %v1539_v21  ;;  %v1543_v38 = vld [vmem:[#allocation2 + $0x20] sm:$0xff]  ;;  %v1565_v27 = vadd.f32 %v2063_v11, %v1542_v37  ;;  %v1545_v24 = vld [vmem:[#allocation2 + $0x38] sm:$0xff]  ;;  %v1567_v57 = vadd.f32 %v2063_v11, %v1544_v44 }
 0x187   : > { %v2106_v26 = vpack.c.bf16 %v1558_v13, %v1557_v12  ;;  %v1751_v29 = vadd.f32 %v1558_v13, %v1557_v12  ;;  %v1772_v30 = vmul.f32 %v1557_v12, %v1557_v12  ;;  %v1773_v33 = vmul.f32 %v1558_v13, %v1558_v13  ;;  %v1541_v34 = vld [vmem:[#allocation2 + $0x48] sm:$0xff]  ;;  %v1546_v48 = vld [vmem:[#allocation2 + $0x60] sm:$0xff]  ;;  %v1547_v49 = vld [vmem:[#allocation2 + $0x70] sm:$0xff] }
 0x188   : > { %v2111_v17 = vpack.c.bf16 %v1560_v20, %v1559_v19  ;;  %v1774_v35 = vmul.f32 %v1559_v19, %v1559_v19  ;;  %v1775_v40 = vmul.f32 %v1560_v20, %v1560_v20  ;;  %v1563_v41 = vadd.f32 %v2063_v11, %v1540_v25  ;;  %v1548_v28 = vld [vmem:[#allocation2 + $0x78] sm:$0xff] }
 0x189   : > { %2107 = vst [vmem:[%s2850_s5] sm:$0xff] %v2106_v26   ;;  %v1788_v39 = vadd.f32 %v1773_v33, %v1772_v30  ;;  %v1752_v18 = vadd.f32 %v1751_v29, %v1559_v19  ;;  %v2116_v23 = vpack.c.bf16 %v1562_v36, %v1561_v22  ;;  %v1776_v42 = vmul.f32 %v1561_v22, %v1561_v22  ;;  %v1549_v52 = vld [vmem:[#allocation2 + $0x28] sm:$0xff] }
 0x18a   : > { %2143 = vst [vmem:[%s2850_s5 + $0x8] sm:$0xff] %v2111_v17   ;;  %v1564_v43 = vadd.f32 %v2063_v11, %v1541_v34  ;;  %v1566_v47 = vadd.f32 %v2063_v11, %v1543_v38  ;;  %v1777_v50 = vmul.f32 %v1562_v36, %v1562_v36  ;;  %v1778_v55 = vmul.f32 %v1563_v41, %v1563_v41 }
 0x18b   : > { %v1753_v45 = vadd.f32 %v1752_v18, %v1560_v20  ;;  %v1789_v46 = vadd.f32 %v1788_v39, %v1774_v35  ;;  %2144 = vst [vmem:[%s2850_s5 + $0x10] sm:$0xff] %v2116_v23   ;;  %v1568_v58 = vadd.f32 %v2063_v11, %v1545_v24  ;;  %v1569_v59 = vadd.f32 %v2063_v11, %v1546_v48 }
 0x18c   : > { %v2121_v51 = vpack.c.bf16 %v1564_v43, %v1563_v41  ;;  %v2126_v56 = vpack.c.bf16 %v1566_v47, %v1565_v27  ;;  %v1570_v31 = vadd.f32 %v2063_v11, %v1547_v49  ;;  %v1571_v62 = vadd.f32 %v2063_v11, %v1548_v28 }
 0x18d   : > { %v1790_v53 = vadd.f32 %v1789_v46, %v1775_v40  ;;  %v1754_v54 = vadd.f32 %v1753_v45, %v1561_v22  ;;  %v1572_v63 = vadd.f32 %v2063_v11, %v1549_v52  ;;  %v2131_v0 = vpack.c.bf16 %v1568_v58, %v1567_v57 }
 0x18e   : > { %2145 = vst [vmem:[%s2850_s5 + $0x18] sm:$0xff] %v2121_v51   ;;  %2146 = vst [vmem:[%s2850_s5 + $0x20] sm:$0xff] %v2126_v56   ;;  %v2136_v1 = vpack.c.bf16 %v1570_v31, %v1569_v59  ;;  %v1779_v3 = vmul.f32 %v1564_v43, %v1564_v43  ;;  %v1780_v7 = vmul.f32 %v1565_v27, %v1565_v27 }
 0x18f   : > { %v1755_v60 = vadd.f32 %v1754_v54, %v1562_v36  ;;  %v1791_v61 = vadd.f32 %v1790_v53, %v1776_v42  ;;  %v2141_v4 = vpack.c.bf16 %v1572_v63, %v1571_v62  ;;  %2147 = vst [vmem:[%s2850_s5 + $0x28] sm:$0xff] %v2131_v0   ;;  %v1781_v10 = vmul.f32 %v1566_v47, %v1566_v47 }
 0x190   : > { %2148 = vst [vmem:[%s2850_s5 + $0x30] sm:$0xff] %v2136_v1   ;;  %v1782_v13 = vmul.f32 %v1567_v57, %v1567_v57  ;;  %v1783_v16 = vmul.f32 %v1568_v58, %v1568_v58  ;;  %v1784_v21 = vmul.f32 %v1569_v59, %v1569_v59  ;;  %v1785_v26 = vmul.f32 %v1570_v31, %v1570_v31 }
 0x191   : > { %v1792_v2 = vadd.f32 %v1791_v61, %v1777_v50  ;;  %v1756_v32 = vadd.f32 %v1755_v60, %v1563_v41  ;;  %2149 = vst [vmem:[%s2850_s5 + $0x38] sm:$0xff] %v2141_v4   ;;  %v1786_v33 = vmul.f32 %v1571_v62, %v1571_v62  ;;  %v1787_v17 = vmul.f32 %v1572_v63, %v1572_v63 }
 0x193   : > { %v1757_v5 = vadd.f32 %v1756_v32, %v1564_v43  ;;  %v1793_v6 = vadd.f32 %v1792_v2, %v1778_v55 }
 0x195   : > { %v1794_v8 = vadd.f32 %v1793_v6, %v1779_v3  ;;  %v1758_v9 = vadd.f32 %v1757_v5, %v1565_v27 }
 0x197   : > { %v1759_v11 = vadd.f32 %v1758_v9, %v1566_v47  ;;  %v1795_v12 = vadd.f32 %v1794_v8, %v1780_v7 }
 0x199   : > { %v1796_v14 = vadd.f32 %v1795_v12, %v1781_v10  ;;  %v1760_v15 = vadd.f32 %v1759_v11, %v1567_v57 }
 0x19b   : > { %v1761_v19 = vadd.f32 %v1760_v15, %v1568_v58  ;;  %v1797_v20 = vadd.f32 %v1796_v14, %v1782_v13 }
 0x19d   : > { %v1798_v22 = vadd.f32 %v1797_v20, %v1783_v16  ;;  %v1762_v25 = vadd.f32 %v1761_v19, %v1569_v59 }
 0x19f   : > { %v1763_v29 = vadd.f32 %v1762_v25, %v1570_v31  ;;  %v1799_v30 = vadd.f32 %v1798_v22, %v1784_v21 }
 0x1a1   : > { %v1764_v34 = vadd.f32 %v1763_v29, %v1571_v62  ;;  %v1800_v35 = vadd.f32 %v1799_v30, %v1785_v26 }
 0x1a3   : > { %v1765_v36 = vadd.f32 %v1764_v34, %v1572_v63  ;;  %v1801_v37 = vadd.f32 %v1800_v35, %v1786_v33 }
 0x1a5   : > { %v1766_v38 = vrot.slane %v1765_v36, 4  ;;  %v1802_v39 = vadd.f32 %v1801_v37, %v1787_v17 }
 0x1a7   : > { %v1767_v18 = vadd.f32 %v1766_v38, %v1765_v36  ;;  %v1803_v40 = vrot.slane %v1802_v39, 4 }
 0x1a9   : > { %v1768_v41 = vrot.slane %v1767_v18, 2  ;;  %v1804_v23 = vadd.f32 %v1803_v40, %v1802_v39 }
 0x1ab   : > { %v1769_v42 = vadd.f32 %v1768_v41, %v1767_v18  ;;  %v1805_v43 = vrot.slane %v1804_v23, 2 }
 0x1ad   : > { %v1770_v44 = vrot.slane %v1769_v42, 1  ;;  %v1806_v45 = vadd.f32 %v1805_v43, %v1804_v23 }
 0x1af   : > { %v1771_v46 = vadd.f32 %v1770_v44, %v1769_v42  ;;  %v1807_v27 = vrot.slane %v1806_v45, 1 }
 0x1b1   : > { %1809 = vst [vmem:[%s2851_s6] sm:$0xff] %v1771_v46  ;;  %v1808_v47 = vadd.f32 %v1807_v27, %v1806_v45 }
 0x1b3   : > { %1810 = vst [vmem:[%s2852_s7] sm:$0xff] %v1808_v47 }
 0x1b4 PF: > { %s18_s28 = sadd.s32 1, %s2389_s28   ;;  %s2853_s24 = smov %s2377_s25 }
 0x1b5   : > { %p15_p13 = scmp.ge.s32.totalorder %s18_s28, 4   ;;  %s2854_s25 = smov %s2467_s9 }
 0x1b6   : > { %s2855_s26 = smov %s2385_s27  ;;  %s2856_s27 = smov %s2858_s29 }
 0x1b7   :  { %17 = sbr.rel (!%p15_p13) target bundleno = 3 (0x3), region = 142 }

// kernel: autoencoder_forward.25
= control target key start
LH: loop header
LB: loop body
LE: loop exit
PB: predicated region body
PF: predicated region fallthrough
CT: control target
= control target key end

     0   :  { %s1870_s24 = smov 0   ;;  %s1872_s25 = smov 0   ;;  %s2141_s0 = inlined_call_operand.vmem [shape: bf16[32,2048], index: 0, kind: input, shape index: {}]   ;;  %s2142_s1 = inlined_call_operand.vmem [shape: bf16[2048,256], index: 1, kind: input, shape index: {}]   ;;  %s2143_s2 = inlined_call_operand.vmem [shape: f32[1,256], index: 2, kind: input, shape index: {}]   ;;  %s2144_s3 = inlined_call_operand.vmem [shape: f32[1,2048], index: 3, kind: input, shape index: {}]   ;;  %s2145_s4 = inlined_call_operand.vmem [shape: f32[1,2048], index: 4, kind: input, shape index: {}]   ;;  %s2146_s5 = inlined_call_operand.vmem [shape: bf16[32,256], index: 5, kind: output, shape index: {0}]   ;;  %s2147_s6 = inlined_call_operand.vmem [shape: f32[8,256], index: 6, kind: output, shape index: {1}]   ;;  %s2148_s7 = inlined_call_operand.vmem [shape: f32[8,256], index: 7, kind: output, shape index: {2}]  }
   0x1   :  { %s1874_s26 = smov 0   ;;  %s1876_s27 = smov 0  }
   0x2   :  { %s1878_s28 = smov 0  }
   0x3 LB: > { %s30_s29 = sadd.s32 1, %s1823_s27  ;;  %p53_p1 = scmp.ne.s32.totalorder %s1815_s25, %s1811_s24  ;;  %s1827_s28 = sphi %s1878_s28, %s18_s28   ;;  %s1823_s27 = sphi %s1876_s27, %s2152_s27   ;;  %s1819_s26 = sphi %s1874_s26, %s2151_s26   ;;  %s1815_s25 = sphi %s1872_s25, %s2150_s25   ;;  %s1811_s24 = sphi %s1870_s24, %s2149_s24  }
   0x4   : > { %p31_p0 = scmp.ge.s32.totalorder %s30_s29, 4  ;;  %p54_p2 = scmp.eq.s32.totalorder %s1827_s28, 0 }
   0x5   : > { %s46_s8 = sadd.s32 1, %s1815_s25  ;;  %p1557_p5 = scmp.ge.s32.totalorder %s1827_s28, 4 }
   0x6   : > { %s2154_s29 = smov (%p31_p0, %s30_s29), 0  ;;  %p55_p3 = por %p54_p2, %p53_p1 }
   0x7   : > { %s42_s30 = ssub.s32 %s1823_s27, %s2154_s29  ;;  %277 = sbr.rel (%p1557_p5) target bundleno = 20 (0x14), region = 20 }
   0x8   : > { %p44_p4 = scmp.eq.s32.totalorder %s42_s30, 0 }
   0xa   : > { %s1905_s9 = scalar_select %p44_p4, %s1815_s25, %s46_s8  }
   0xc   : > { %280 = sbr.rel (!%p55_p3) target bundleno = 20 (0x14), region = 24  ;;  %s282_s10 = sand.u32 (%p55_p3), 1, %s1815_s25  }
   0xd   : > { %s1646_s11 = sshll.u32 (%p55_p3), %s1823_s27, 4  ;;  %s1558_s12 = sshll.u32 (%p55_p3), %s282_s10, 6 }
   0xe   : > { %s290_s15 = scalar_lea.vmem (%p55_p3), %s2141_s0, %s1646_s11  ;;  %s284_s16 = scalar_lea.vmem (%p55_p3), [#allocation3], %s1558_s12 }
   0xf   : > { %v303_v0 = vld [vmem:[%s290_s15] sm:$0xff] (%p55_p3)  ;;  %v305_v1 = vld [vmem:[%s290_s15 + $0x8] sm:$0xff] (%p55_p3) }
  0x10   : > { %v307_v2 = vld [vmem:[%s290_s15 + $0x40] sm:$0xff] (%p55_p3)  ;;  %304 = vst [vmem:[%s284_s16] sm:$0xff] (%p55_p3), %v303_v0  ;;  %306 = vst [vmem:[%s284_s16 + $0x8] sm:$0xff] (%p55_p3), %v305_v1  ;;  %v309_v3 = vld [vmem:[%s290_s15 + $0x48] sm:$0xff] (%p55_p3) }
  0x11   : > { %308 = vst [vmem:[%s284_s16 + $0x10] sm:$0xff] %v307_v2  ;;  %v311_v4 = vld [vmem:[%s290_s15 + $0x80] sm:$0xff]  ;;  %v313_v5 = vld [vmem:[%s290_s15 + $0x88] sm:$0xff]  ;;  %310 = vst [vmem:[%s284_s16 + $0x18] sm:$0xff] %v309_v3 }
  0x12   : > { %312 = vst [vmem:[%s284_s16 + $0x20] sm:$0xff] %v311_v4  ;;  %314 = vst [vmem:[%s284_s16 + $0x28] sm:$0xff] %v313_v5  ;;  %v315_v6 = vld [vmem:[%s290_s15 + $0xc0] sm:$0xff]  ;;  %v317_v7 = vld [vmem:[%s290_s15 + $0xc8] sm:$0xff] }
  0x13   : > { %316 = vst [vmem:[%s284_s16 + $0x30] sm:$0xff] %v315_v6  ;;  %318 = vst [vmem:[%s284_s16 + $0x38] sm:$0xff] %v317_v7 }
  0x14 PF: > { %p1561_p6 = scmp.ge.s32.totalorder %s1827_s28, 1  ;;  %p354_p7 = scmp.lt.s32.totalorder %s1827_s28, 5 }
  0x16   : > { %p355_p8 = pnand %p1561_p6, %p354_p7 }
  0x17   : > { %s361_s17 = sand.u32 (!%p355_p8), 1, %s1811_s24   ;;  %s1563_s18 = sshll.u32 (!%p355_p8), %s1819_s26, 6 }
  0x18   : > { %358 = sbr.rel (%p355_p8) target bundleno = 349 (0x15d), region = 59  ;;  %s1562_s19 = sshll.u32 (!%p355_p8), %s361_s17, 6 }
  0x19   : > { %p441_p9 = scmp.lt.s32.totalorder (!%p355_p8), %s1563_s18, 255  ;;  %s1566_s20 = sshll.u32 (!%p355_p8), %s1819_s26, 2 }
  0x1a   : > { %p457_p10 = scmp.lt.s32.totalorder (!%p355_p8), %s1566_s20, 15  ;;  %s1933_s14 = scalar_lea.vmem (!%p355_p8), [#allocation3], %s1562_s19 }
  0x1b   : > { %p1568_p11 = scmp.ne.s32.totalorder (!%p355_p8), %s1819_s26, 0 }
  0x1d   : > { %s2156_s18 = smov (!%p441_p9, %s1563_s18), 255  ;;  %s2158_s20 = smov (!%p457_p10, %s1566_s20), 15 }
  0x1e   : > { %s1647_s21 = sshll.u32 %s2156_s18, 3  ;;  %s459_s24 = scalar_lea.vmem %s2144_s3, %s2158_s20 }
  0x1f   : > { %s1921_s30 = scalar_lea.vmem %s2142_s1, %s1647_s21  ;;  %s464_s13 = scalar_lea.vmem %s2145_s4, %s2158_s20 }
  0x20   : > { %502 = sbr.rel (%p1568_p11) target bundleno = 42 (0x2a), region = 67 }
  0x25   : > { %v1829_v8 = vmov 0.0  }
  0x26   : > { %503 = vst [vmem:[#allocation2 + $0x30] sm:$0xff] %v1829_v8  ;;  %504 = vst [vmem:[#allocation2] sm:$0xff] %v1829_v8 }
  0x27   : > { %505 = vst [vmem:[#allocation2 + $0x18] sm:$0xff] %v1829_v8  ;;  %506 = vst [vmem:[#allocation2 + $0x10] sm:$0xff] %v1829_v8 }
  0x28   : > { %507 = vst [vmem:[#allocation2 + $0x8] sm:$0xff] %v1829_v8  ;;  %508 = vst [vmem:[#allocation2 + $0x20] sm:$0xff] %v1829_v8 }
  0x29   : > { %509 = vst [vmem:[#allocation2 + $0x28] sm:$0xff] %v1829_v8  ;;  %510 = vst [vmem:[#allocation2 + $0x38] sm:$0xff] %v1829_v8 }
  0x2a PF: > { %v1693_v9 = vld [vmem:[%s1921_s30 + $0x74] ss:$8 sps:$4 sm:$0xff]   ;;  %v1697_v11 = vld [vmem:[%s1921_s30 + $0x70] ss:$8 sps:$4 sm:$0xff]   ;;  %v1699_v13 = vld [vmem:[%s1921_s30 + $0x64] ss:$8 sps:$4 sm:$0xff]   ;;  %v537_v46 = vlaneseq }
  0x2b   : > { %v1695_v10 = vld [vmem:[%s1921_s30 + $0x174] ss:$8 sps:$4 sm:$0xff]   ;;  %1059 = vmatprep.subr.bf16.mxu0 %v1693_v9  ;;  %v1698_v12 = vld [vmem:[%s1921_s30 + $0x170] ss:$8 sps:$4 sm:$0xff]   ;;  %v1701_v14 = vld [vmem:[%s1921_s30 + $0x164] ss:$8 sps:$4 sm:$0xff]  }
  0x2c   : > { %1112 = vmatprep.subr.bf16.mxu1 %v1695_v10  ;;  %1060 = vmatpush1.bf16.msra.mxu0 %v1697_v11  ;;  %v1703_v15 = vld [vmem:[%s1921_s30 + $0x60] ss:$8 sps:$4 sm:$0xff]   ;;  %v1705_v17 = vld [vmem:[%s1921_s30 + $0x54] ss:$8 sps:$4 sm:$0xff]   ;;  %v1709_v19 = vld [vmem:[%s1921_s30 + $0x50] ss:$8 sps:$4 sm:$0xff]  }
  0x2d   : > { %1113 = vmatpush1.bf16.msra.mxu1 %v1698_v12  ;;  %1061 = vmatprep.subr.bf16.mxu0 %v1699_v13  ;;  %v1704_v16 = vld [vmem:[%s1921_s30 + $0x160] ss:$8 sps:$4 sm:$0xff]   ;;  %v1707_v18 = vld [vmem:[%s1921_s30 + $0x154] ss:$8 sps:$4 sm:$0xff]   ;;  %v1710_v20 = vld [vmem:[%s1921_s30 + $0x150] ss:$8 sps:$4 sm:$0xff]  }
  0x2e   : > { %1114 = vmatprep.subr.bf16.mxu1 %v1701_v14  ;;  %v1711_v21 = vld [vmem:[%s1921_s30 + $0x44] ss:$8 sps:$4 sm:$0xff]   ;;  %v1715_v23 = vld [vmem:[%s1921_s30 + $0x40] ss:$8 sps:$4 sm:$0xff]   ;;  %v1717_v25 = vld [vmem:[%s1921_s30 + $0x34] ss:$8 sps:$4 sm:$0xff]  }
  0x2f   : > { %v1713_v22 = vld [vmem:[%s1921_s30 + $0x144] ss:$8 sps:$4 sm:$0xff]   ;;  %v1716_v24 = vld [vmem:[%s1921_s30 + $0x140] ss:$8 sps:$4 sm:$0xff]   ;;  %v1719_v26 = vld [vmem:[%s1921_s30 + $0x134] ss:$8 sps:$4 sm:$0xff]  }
  0x30   : > { %1062 = vmatpush1.bf16.msra.mxu0 %v1703_v15  ;;  %v1721_v27 = vld [vmem:[%s1921_s30 + $0x30] ss:$8 sps:$4 sm:$0xff]   ;;  %v1723_v29 = vld [vmem:[%s1921_s30 + $0x24] ss:$8 sps:$4 sm:$0xff]   ;;  %v1727_v31 = vld [vmem:[%s1921_s30 + $0x20] ss:$8 sps:$4 sm:$0xff]  }
  0x31   : > { %1115 = vmatpush1.bf16.msra.mxu1 %v1704_v16  ;;  %1063 = vmatprep.subr.bf16.mxu0 %v1705_v17  ;;  %v1722_v28 = vld [vmem:[%s1921_s30 + $0x130] ss:$8 sps:$4 sm:$0xff]   ;;  %v1725_v30 = vld [vmem:[%s1921_s30 + $0x124] ss:$8 sps:$4 sm:$0xff]   ;;  %v1728_v32 = vld [vmem:[%s1921_s30 + $0x120] ss:$8 sps:$4 sm:$0xff]  }
  0x32   : > { %1116 = vmatprep.subr.bf16.mxu1 %v1707_v18  ;;  %v1729_v33 = vld [vmem:[%s1921_s30 + $0x14] ss:$8 sps:$4 sm:$0xff]   ;;  %v1733_v35 = vld [vmem:[%s1921_s30 + $0x10] ss:$8 sps:$4 sm:$0xff]   ;;  %v1735_v37 = vld [vmem:[%s1921_s30 + $0x4] ss:$8 sps:$4 sm:$0xff]  }
  0x33   : > { %v1731_v34 = vld [vmem:[%s1921_s30 + $0x114] ss:$8 sps:$4 sm:$0xff]   ;;  %v1734_v36 = vld [vmem:[%s1921_s30 + $0x110] ss:$8 sps:$4 sm:$0xff]   ;;  %v1737_v38 = vld [vmem:[%s1921_s30 + $0x104] ss:$8 sps:$4 sm:$0xff]  }
  0x34   : > { %1064 = vmatpush1.bf16.msra.mxu0 %v1709_v19  ;;  %v1739_v39 = vld [vmem:[%s1921_s30] ss:$8 sps:$4 sm:$0xff]   ;;  %v1741_v41 = vld [vmem:[%s1921_s30 + $0xf4] ss:$8 sps:$4 sm:$0xff]   ;;  %v1745_v43 = vld [vmem:[%s1921_s30 + $0xf0] ss:$8 sps:$4 sm:$0xff]  }
  0x35   : > { %1117 = vmatpush1.bf16.msra.mxu1 %v1710_v20  ;;  %1065 = vmatprep.subr.bf16.mxu0 %v1711_v21  ;;  %v1740_v40 = vld [vmem:[%s1921_s30 + $0x100] ss:$8 sps:$4 sm:$0xff]   ;;  %v1743_v42 = vld [vmem:[%s1921_s30 + $0x1f4] ss:$8 sps:$4 sm:$0xff]   ;;  %v1746_v44 = vld [vmem:[%s1921_s30 + $0x1f0] ss:$8 sps:$4 sm:$0xff]  }
  0x36   : > { %1118 = vmatprep.subr.bf16.mxu1 %v1713_v22  ;;  %v1747_v45 = vld [vmem:[%s1921_s30 + $0xe4] ss:$8 sps:$4 sm:$0xff]   ;;  %v1751_v48 = vld [vmem:[%s1921_s30 + $0xe0] ss:$8 sps:$4 sm:$0xff]   ;;  %v1753_v50 = vld [vmem:[%s1921_s30 + $0xd4] ss:$8 sps:$4 sm:$0xff]  }
  0x37   : > { %v1749_v47 = vld [vmem:[%s1921_s30 + $0x1e4] ss:$8 sps:$4 sm:$0xff]   ;;  %v1752_v49 = vld [vmem:[%s1921_s30 + $0x1e0] ss:$8 sps:$4 sm:$0xff]   ;;  %v538_v51 = vshrl.u32 %v537_v46, 7  ;;  %v513_v62 = vld [vmem:[%s1933_s14 + $0x10] sm:$0xff] }
  0x38   : > { %1066 = vmatpush1.bf16.msra.mxu0 %v1715_v23  ;;  %v1755_v52 = vld [vmem:[%s1921_s30 + $0x1d4] ss:$8 sps:$4 sm:$0xff]   ;;  %v1757_v53 = vld [vmem:[%s1921_s30 + $0xd0] ss:$8 sps:$4 sm:$0xff]   ;;  %v1759_v55 = vld [vmem:[%s1921_s30 + $0xc4] ss:$8 sps:$4 sm:$0xff]   ;;  %v523_v5 = vunpack.c.l.bf16 %v513_v62  ;;  %v524_v6 = vunpack.c.h.bf16 %v513_v62 }
  0x39   : > { %1119 = vmatpush1.bf16.msra.mxu1 %v1716_v24  ;;  %1067 = vmatprep.subr.bf16.mxu0 %v1717_v25  ;;  %v1758_v54 = vld [vmem:[%s1921_s30 + $0x1d0] ss:$8 sps:$4 sm:$0xff]   ;;  %v1981_v56 = vsub.s32 1, %v538_v51  ;;  %v1761_v57 = vld [vmem:[%s1921_s30 + $0x1c4] ss:$8 sps:$4 sm:$0xff]   ;;  %v551_v60 = vsub.s32 3, %v538_v51 }
  0x3a   : > { %1120 = vmatprep.subr.bf16.mxu1 %v1719_v26  ;;  %v1763_v58 = vld [vmem:[%s1921_s30 + $0xc0] ss:$8 sps:$4 sm:$0xff]   ;;  %v1986_v61 = vsub.s32 0, %v538_v51  ;;  %v547_v3 = vsub.s32 2, %v538_v51  ;;  %v2008_v10 = vld [vmem:[%s1933_s14 + $0x18] sm:$0xff]  ;;  %v2024_v22 = vld [vmem:[%s1933_s14 + $0x30] sm:$0xff] }
  0x3b   : > { %v511_v59 = vld [vmem:[%s1933_s14] sm:$0xff]  ;;  %v512_v9 = vld [vmem:[%s1933_s14 + $0x8] sm:$0xff]  ;;  %v1765_v11 = vld [vmem:[%s1921_s30 + $0xb4] ss:$8 sps:$4 sm:$0xff]   ;;  %v525_v15 = vunpack.c.l.bf16 %v2008_v10  ;;  %v526_v16 = vunpack.c.h.bf16 %v2008_v10  ;;  %p1633_p12 = scmp.ne.s32.totalorder %s1819_s26, 3 }
  0x3c   : > { %1068 = vmatpush1.bf16.msra.mxu0 %v1721_v27  ;;  %v519_v63 = vunpack.c.l.bf16 %v511_v59  ;;  %v520_v0 = vunpack.c.h.bf16 %v511_v59  ;;  %v535_v1 = vld [vmem:[%s459_s24] sm:$0xf]  ;;  %v1767_v12 = vld [vmem:[%s1921_s30 + $0x1b4] ss:$8 sps:$4 sm:$0xff]   ;;  %v521_v13 = vunpack.c.l.bf16 %v512_v9  ;;  %v522_v14 = vunpack.c.h.bf16 %v512_v9  ;;  %v1769_v27 = vld [vmem:[%s1921_s30 + $0xb0] ss:$8 sps:$4 sm:$0xff]  }
  0x3d   : > { %1121 = vmatpush1.bf16.msra.mxu1 %v1722_v28  ;;  %1069 = vmatprep.subr.bf16.mxu0 %v1723_v29  ;;  %v573_v2 = vld [vmem:[%s464_s13] sm:$0xf]  ;;  %v2001_v7 = vrot.slane %v535_v1, %v1981_v56  ;;  %v2019_v20 = vrot.slane %v535_v1, %v551_v60  ;;  %v2027_v23 = vrot.slane %v535_v1, %v1986_v61  ;;  %v1770_v28 = vld [vmem:[%s1921_s30 + $0x1b0] ss:$8 sps:$4 sm:$0xff]   ;;  %v1783_v9 = vld [vmem:[%s1921_s30 + $0x84] ss:$8 sps:$4 sm:$0xff]  }
  0x3e   : > { %1122 = vmatprep.subr.bf16.mxu1 %v1725_v30  ;;  %v1764_v4 = vld [vmem:[%s1921_s30 + $0x1c0] ss:$8 sps:$4 sm:$0xff]   ;;  %v2004_v8 = vrot.slane %v573_v2, %v1981_v56  ;;  %v2021_v21 = vrot.slane %v573_v2, %v551_v60  ;;  %v2030_v24 = vrot.slane %v573_v2, %v1986_v61  ;;  %v2032_v25 = vrot.slane %v535_v1, %v547_v3  ;;  %v1781_v1 = vld [vmem:[%s1921_s30 + $0x90] ss:$8 sps:$4 sm:$0xff]   ;;  %v1785_v10 = vld [vmem:[%s1921_s30 + $0x184] ss:$8 sps:$4 sm:$0xff]  }
  0x3f   : > { %v2015_v17 = vld [vmem:[%s1933_s14 + $0x20] sm:$0xff]  ;;  %v558_v18 = vmul.f32 %v2001_v7, %v520_v0  ;;  %v562_v19 = vmul.f32 %v2001_v7, %v524_v6  ;;  %v2034_v26 = vrot.slane %v573_v2, %v547_v3  ;;  %v1782_v2 = vld [vmem:[%s1921_s30 + $0x190] ss:$8 sps:$4 sm:$0xff]  }
  0x40   : > { %1070 = vmatpush1.bf16.msra.mxu0 %v1727_v31  ;;  %v560_v31 = vmul.f32 %v2019_v20, %v522_v14 }
  0x41   : > { %1123 = vmatpush1.bf16.msra.mxu1 %v1728_v32  ;;  %1071 = vmatprep.subr.bf16.mxu0 %v1729_v33  ;;  %v596_v29 = vadd.f32 %v2004_v8, %v558_v18  ;;  %v600_v30 = vadd.f32 %v2004_v8, %v562_v19  ;;  %v528_v32 = vunpack.c.h.bf16 %v2015_v17  ;;  %v1771_v33 = vld [vmem:[%s1921_s30 + $0xa4] ss:$8 sps:$4 sm:$0xff]   ;;  %v1787_v19 = vld [vmem:[%s1921_s30 + $0x80] ss:$8 sps:$4 sm:$0xff]  }
  0x42   : > { %1124 = vmatprep.subr.bf16.mxu1 %v1731_v34  ;;  %v1773_v34 = vld [vmem:[%s1921_s30 + $0x1a4] ss:$8 sps:$4 sm:$0xff]  }
  0x43   : > { %vm612_vm0 = vcmp.gt.f32.partialorder %v596_v29, 0.0  ;;  %vm616_vm1 = vcmp.gt.f32.partialorder %v600_v30, 0.0 }
  0x44   : > { %1072 = vmatpush1.bf16.msra.mxu0 %v1733_v35  ;;  %v564_v35 = vmul.f32 %v2019_v20, %v526_v16 }
  0x45   : > { %1125 = vmatpush1.bf16.msra.mxu1 %v1734_v36  ;;  %1073 = vmatprep.subr.bf16.mxu0 %v1735_v37  ;;  %v557_v36 = vmul.f32 %v2027_v23, %v519_v63  ;;  %v561_v37 = vmul.f32 %v2027_v23, %v523_v5  ;;  %v563_v63 = vmul.f32 %v2032_v25, %v525_v15 }
  0x46   : > { %1126 = vmatprep.subr.bf16.mxu1 %v1737_v38  ;;  %v532_v38 = vunpack.c.h.bf16 %v2024_v22  ;;  %v566_v5 = vmul.f32 %v2001_v7, %v528_v32 }
  0x47   : > { %v599_v46 = vadd.f32 %v2030_v24, %v561_v37 }
  0x48   : > { %1074 = vmatpush1.bf16.msra.mxu0 %v1739_v39  ;;  %v2049_v39 = vld [vmem:[%s1933_s14 + $0x28] sm:$0xff]  ;;  %v570_v16 = vmul.f32 %v2001_v7, %v532_v38  ;;  %v604_v18 = vadd.f32 %v2004_v8, %v566_v5 }
  0x49   : > { %1127 = vmatpush1.bf16.msra.mxu1 %v1740_v40  ;;  %1075 = vmatprep.subr.bf16.mxu0 %v1741_v41  ;;  %v628_v40 = vmul.f32 0.01, %v596_v29  ;;  %v632_v41 = vmul.f32 0.01, %v600_v30  ;;  %vm615_vm5 = vcmp.gt.f32.partialorder %v599_v46, 0.0 }
  0x4a   : > { %1128 = vmatprep.subr.bf16.mxu1 %v1743_v42  ;;  %v1775_v42 = vld [vmem:[%s1921_s30 + $0xa0] ss:$8 sps:$4 sm:$0xff]   ;;  %v631_v62 = vmul.f32 0.01, %v599_v46  ;;  %v608_v32 = vadd.f32 %v2004_v8, %v570_v16  ;;  %vm620_vm8 = vcmp.gt.f32.partialorder %v604_v18, 0.0 }
  0x4b   : > { %v648_v51 = vsel %vm616_vm1, %v600_v30, %v632_v41  ;;  %v1788_v30 = vld [vmem:[%s1921_s30 + $0x180] ss:$8 sps:$4 sm:$0xff]  }
  0x4c   : > { %1076 = vmatpush2.bf16.msra.mxu0 %v1745_v43  ;;  %v598_v43 = vadd.f32 %v2021_v21, %v560_v31  ;;  %vm624_vm9 = vcmp.gt.f32.partialorder %v608_v32, 0.0 }
  0x4d   : > { %1129 = vmatpush2.bf16.msra.mxu1 %v1746_v44  ;;  %1077 = vmatprep.subr.bf16.mxu0 %v1747_v45  ;;  %v602_v44 = vadd.f32 %v2021_v21, %v564_v35  ;;  %v595_v45 = vadd.f32 %v2030_v24, %v557_v36  ;;  %v527_v36 = vunpack.c.l.bf16 %v2015_v17 }
  0x4e   : > { %1130 = vmatprep.subr.bf16.mxu1 %v1749_v47  ;;  %v1776_v47 = vld [vmem:[%s1921_s30 + $0x1a0] ss:$8 sps:$4 sm:$0xff]   ;;  %vm614_vm2 = vcmp.gt.f32.partialorder %v598_v43, 0.0 }
  0x4f   : > { %vm618_vm3 = vcmp.gt.f32.partialorder %v602_v44, 0.0  ;;  %vm611_vm4 = vcmp.gt.f32.partialorder %v595_v45, 0.0  ;;  %v627_v59 = vmul.f32 0.01, %v595_v45 }
  0x50   : > { %1078 = vmatpush2.bf16.msra.mxu0 %v1751_v48  ;;  %v1777_v48 = vld [vmem:[%s1921_s30 + $0x94] ss:$8 sps:$4 sm:$0xff]  }
  0x51   : > { %1131 = vmatpush2.bf16.msra.mxu1 %v1752_v49  ;;  %1079 = vmatprep.subr.bf16.mxu0 %v1753_v50  ;;  %v1779_v49 = vld [vmem:[%s1921_s30 + $0x194] ss:$8 sps:$4 sm:$0xff]   ;;  %v644_v50 = vsel %vm612_vm0, %v596_v29, %v628_v40 }
  0x52   : > { %1132 = vmatprep.subr.bf16.mxu1 %v1755_v52  ;;  %v559_v52 = vmul.f32 %v2032_v25, %v521_v13  ;;  %v601_v13 = vadd.f32 %v2034_v26, %v563_v63  ;;  %v659_v63 = vld [vmem:[#allocation2 + $0x30] sm:$0xff] }
  0x54   : > { %1080 = vmatpush2.bf16.msra.mxu0 %v1757_v53  ;;  %v530_v53 = vunpack.c.h.bf16 %v2049_v39  ;;  %v597_v0 = vadd.f32 %v2034_v26, %v559_v52  ;;  %vm617_vm7 = vcmp.gt.f32.partialorder %v601_v13, 0.0 }
  0x55   : > { %1133 = vmatpush2.bf16.msra.mxu1 %v1758_v54  ;;  %1081 = vmatprep.subr.bf16.mxu0 %v1759_v55  ;;  %v668_v54 = vpack.c.bf16 %v648_v51, %v644_v50  ;;  %v630_v55 = vmul.f32 0.01, %v598_v43 }
  0x56   : > { %1134 = vmatprep.subr.bf16.mxu1 %v1761_v57  ;;  %v2062_v57 = vld [vmem:[%s1933_s14 + $0x38] sm:$0xff]  ;;  %vm613_vm6 = vcmp.gt.f32.partialorder %v597_v0, 0.0  ;;  %v629_v15 = vmul.f32 0.01, %v597_v0 }
  0x57   : > { %1091 = vmatprep.mubr.bf16.mxu0 %v668_v54  ;;  %v646_v60 = vsel %vm614_vm2, %v598_v43, %v630_v55  ;;  %v534_v6 = vunpack.c.h.bf16 %v2062_v57  ;;  %v565_v43 = vmul.f32 %v2027_v23, %v527_v36  ;;  %v665_v36 = vld [vmem:[#allocation2 + $0x28] sm:$0xff] }
  0x58   : > { %1082 = vmatpush2.bf16.msra.mxu0 %v1763_v58  ;;  %v634_v58 = vmul.f32 0.01, %v602_v44  ;;  %v645_v31 = vsel %vm613_vm6, %v597_v0, %v629_v15 }
  0x59   : > { %1135 = vmatpush2.bf16.msra.mxu1 %v1764_v4  ;;  %1083 = vmatprep.subr.bf16.mxu0 %v1765_v11  ;;  %v643_v4 = vsel %vm611_vm4, %v595_v45, %v627_v59  ;;  %v572_v29 = vmul.f32 %v2019_v20, %v534_v6 }
  0x5a   : > { %1136 = vmatprep.subr.bf16.mxu1 %v1767_v12  ;;  %v650_v3 = vsel %vm618_vm3, %v602_v44, %v634_v58  ;;  %v647_v12 = vsel %vm615_vm5, %v599_v46, %v631_v62  ;;  %v529_v44 = vunpack.c.l.bf16 %v2049_v39  ;;  %v533_v46 = vunpack.c.l.bf16 %v2062_v57 }
  0x5b   : > { %v670_v11 = vpack.c.bf16 %v650_v3, %v646_v60  ;;  %v667_v14 = vpack.c.bf16 %v647_v12, %v643_v4  ;;  %v610_v35 = vadd.f32 %v2021_v21, %v572_v29 }
  0x5c   : > { %1084 = vmatpush2.bf16.msra.mxu0 %v1769_v27  ;;  %v633_v27 = vmul.f32 0.01, %v601_v13  ;;  %v567_v50 = vmul.f32 %v2032_v25, %v529_v44 }
  0x5d   : > { %1137 = vmatpush2.bf16.msra.mxu1 %v1770_v28  ;;  %1085 = vmatprep.subr.bf16.mxu0 %v1771_v33  ;;  %v568_v28 = vmul.f32 %v2019_v20, %v530_v53  ;;  %v636_v33 = vmul.f32 0.01, %v604_v18  ;;  %v640_v20 = vmul.f32 0.01, %v608_v32  ;;  %vm626_vm11 = vcmp.gt.f32.partialorder %v610_v35, 0.0 }
  0x5e   : > { %1138 = vmatprep.subr.bf16.mxu1 %v1773_v34  ;;  %1144 = vmatprep.mubr.bf16.mxu1 %v670_v11  ;;  %v649_v7 = vsel %vm617_vm7, %v601_v13, %v633_v27  ;;  %v642_v41 = vmul.f32 0.01, %v610_v35  ;;  %v605_v52 = vadd.f32 %v2034_v26, %v567_v50 }
  0x5f   : > { %v606_v34 = vadd.f32 %v2021_v21, %v568_v28  ;;  %v669_v37 = vpack.c.bf16 %v649_v7, %v645_v31  ;;  %v652_v38 = vsel %vm620_vm8, %v604_v18, %v636_v33  ;;  %v656_v8 = vsel %vm624_vm9, %v608_v32, %v640_v20  ;;  %v663_v28 = vld [vmem:[#allocation2 + $0x8] sm:$0xff]  ;;  %v664_v32 = vld [vmem:[#allocation2 + $0x20] sm:$0xff] }
  0x60   : > { %1086 = vmatpush2.bf16.msra.mxu0 %v1775_v42  ;;  %v531_v42 = vunpack.c.l.bf16 %v2024_v22  ;;  %v672_v21 = vpack.c.bf16 %v656_v8, %v652_v38  ;;  %v658_v17 = vsel %vm626_vm11, %v610_v35, %v642_v41  ;;  %v571_v22 = vmul.f32 %v2032_v25, %v533_v46  ;;  %v666_v41 = vld [vmem:[#allocation2 + $0x38] sm:$0xff] }
  0x61   : > { %1139 = vmatpush2.bf16.msra.mxu1 %v1776_v47  ;;  %1087 = vmatprep.subr.bf16.mxu0 %v1777_v48  ;;  %vm622_vm10 = vcmp.gt.f32.partialorder %v606_v34, 0.0  ;;  %v638_v40 = vmul.f32 0.01, %v606_v34  ;;  %vm621_vm14 = vcmp.gt.f32.partialorder %v605_v52, 0.0  ;;  %v637_v55 = vmul.f32 0.01, %v605_v52 }
  0x62   : > { %1140 = vmatprep.subr.bf16.mxu1 %v1779_v49  ;;  %v569_v48 = vmul.f32 %v2027_v23, %v531_v42  ;;  %v603_v49 = vadd.f32 %v2030_v24, %v565_v43  ;;  %v609_v53 = vadd.f32 %v2034_v26, %v571_v22  ;;  %v660_v26 = vld [vmem:[#allocation2] sm:$0xff] }
  0x63   : > { %v654_v45 = vsel %vm622_vm10, %v606_v34, %v638_v40  ;;  %v653_v25 = vsel %vm621_vm14, %v605_v52, %v637_v55 }
  0x64   : > { %1088 = vmatpush2.bf16.msra.mxu0 %v1781_v1  ;;  %v674_v47 = vpack.c.bf16 %v658_v17, %v654_v45  ;;  %v607_v39 = vadd.f32 %v2030_v24, %v569_v48  ;;  %vm619_vm12 = vcmp.gt.f32.partialorder %v603_v49, 0.0  ;;  %v635_v51 = vmul.f32 0.01, %v603_v49 }
  0x65   : > { %1141 = vmatpush2.bf16.msra.mxu1 %v1782_v2  ;;  %1089 = vmatprep.subr.bf16.mxu0 %v1783_v9  ;;  %vm625_vm15 = vcmp.gt.f32.partialorder %v609_v53, 0.0  ;;  %v641_v57 = vmul.f32 0.01, %v609_v53  ;;  %v661_v9 = vld [vmem:[#allocation2 + $0x18] sm:$0xff] }
  0x66   : > { %1142 = vmatprep.subr.bf16.mxu1 %v1785_v10  ;;  %vm623_vm13 = vcmp.gt.f32.partialorder %v607_v39, 0.0  ;;  %v639_v23 = vmul.f32 0.01, %v607_v39  ;;  %v651_v54 = vsel %vm619_vm12, %v603_v49, %v635_v51 }
  0x67   : > { %v657_v60 = vsel %vm625_vm15, %v609_v53, %v641_v57 }
  0x68   : > { %1090 = vmatpush2.bf16.msra.mxu0 %v1787_v19  ;;  %v655_v58 = vsel %vm623_vm13, %v607_v39, %v639_v23  ;;  %v673_v62 = vpack.c.bf16 %v657_v60, %v653_v25 }
  0x69   : > { %1143 = vmatpush2.bf16.msra.mxu1 %v1788_v30  ;;  %v671_v59 = vpack.c.bf16 %v655_v58, %v651_v54 }
  0x6b   : > { %1092 = vmatmul.mubr.bf16.vlgmr.msra.gmra.mxu0 %v667_v14  ;;  %v662_v14 = vld [vmem:[#allocation2 + $0x10] sm:$0xff] }
  0x6c   : > { %1145 = vmatmul.mubr.bf16.vlgmr.msra.gmra.mxu1 %v669_v37  ;;  %1101 = vmatprep.mubr.bf16.mxu0 %v672_v21 }
  0x6d   : > { %1154 = vmatprep.mubr.bf16.mxu1 %v674_v47 }
  0x73   : > { %1102 = vmatmul.mubr.bf16.gmra.mxu0 %v671_v59 }
  0x74   : > { %1155 = vmatmul.mubr.bf16.gmra.mxu1 %v673_v62 }
 0x12b   : > { %v1093_v24 = vpop.f32.mrf.mxu0 }
 0x12c   : > { %v1146_v0 = vpop.f32.mrf.mxu1 }
 0x12d   : > { %v1147_v1 = vadd.f32 %v1146_v0, %v1093_v24  ;;  %v1095_v2 = vpop.f32.mrf.mxu0 }
 0x12e   : > { %v1148_v3 = vpop.f32.mrf.mxu1 }
 0x12f   : > { %v1165_v4 = vadd.f32 %v1147_v1, %v659_v63  ;;  %v1149_v5 = vadd.f32 %v1148_v3, %v1095_v2  ;;  %v1097_v6 = vpop.f32.mrf.mxu0 }
 0x130   : > { %v1150_v10 = vpop.f32.mrf.mxu1 }
 0x131   : > { %1173 = vst [vmem:[#allocation2 + $0x30] sm:$0xff] %v1165_v4  ;;  %v1166_v11 = vadd.f32 %v1149_v5, %v660_v26  ;;  %v1151_v12 = vadd.f32 %v1150_v10, %v1097_v6  ;;  %v1099_v13 = vpop.f32.mrf.mxu0 }
 0x132   : > { %v1152_v15 = vpop.f32.mrf.mxu1 }
 0x133   : > { %1174 = vst [vmem:[#allocation2] sm:$0xff] %v1166_v11  ;;  %v1167_v16 = vadd.f32 %v1151_v12, %v661_v9  ;;  %v1153_v18 = vadd.f32 %v1152_v15, %v1099_v13  ;;  %v1103_v19 = vpop.f32.mrf.mxu0 }
 0x134   : > { %v1156_v29 = vpop.f32.mrf.mxu1 }
 0x135   : > { %1175 = vst [vmem:[#allocation2 + $0x18] sm:$0xff] %v1167_v16  ;;  %v1168_v27 = vadd.f32 %v1153_v18, %v662_v14  ;;  %v1157_v30 = vadd.f32 %v1156_v29, %v1103_v19  ;;  %v1105_v31 = vpop.f32.mrf.mxu0 }
 0x136   : > { %v1158_v33 = vpop.f32.mrf.mxu1 }
 0x137   : > { %1176 = vst [vmem:[#allocation2 + $0x10] sm:$0xff] %v1168_v27  ;;  %v1169_v7 = vadd.f32 %v1157_v30, %v663_v28  ;;  %v1159_v34 = vadd.f32 %v1158_v33, %v1105_v31  ;;  %v1107_v35 = vpop.f32.mrf.mxu0 }
 0x138   : > { %v1160_v37 = vpop.f32.mrf.mxu1 }
 0x139   : > { %1177 = vst [vmem:[#allocation2 + $0x8] sm:$0xff] %v1169_v7  ;;  %v1170_v20 = vadd.f32 %v1159_v34, %v664_v32  ;;  %v1161_v38 = vadd.f32 %v1160_v37, %v1107_v35  ;;  %v1109_v40 = vpop.f32.mrf.mxu0 }
 0x13a   : > { %v1162_v8 = vpop.f32.mrf.mxu1 }
 0x13b   : > { %1178 = vst [vmem:[#allocation2 + $0x20] sm:$0xff] %v1170_v20  ;;  %v1171_v42 = vadd.f32 %v1161_v38, %v665_v36  ;;  %v1163_v43 = vadd.f32 %v1162_v8, %v1109_v40  ;;  %1184 = sbr.rel (%p1633_p12) target bundleno = 349 (0x15d), region = 71 }
 0x13d   : > { %1179 = vst [vmem:[#allocation2 + $0x28] sm:$0xff] %v1171_v42  ;;  %v1172_v44 = vadd.f32 %v1163_v43, %v666_v41 }
 0x13f   : > { %1180 = vst [vmem:[#allocation2 + $0x38] sm:$0xff] %v1172_v44 }
 0x140   : > { %v1185_v21 = vld [vmem:[#allocation2 + $0x30] sm:$0xff]  ;;  %v1186_v45 = vld [vmem:[#allocation2] sm:$0xff]  ;;  %v1187_v48 = vld [vmem:[#allocation2 + $0x18] sm:$0xff] }
 0x141   : > { %v1193_v17 = vld [vmem:[%s2143_s2] sm:$0x3]  ;;  %v1188_v49 = vld [vmem:[#allocation2 + $0x10] sm:$0xff]  ;;  %v1189_v50 = vld [vmem:[#allocation2 + $0x8] sm:$0xff] }
 0x142   : > { %v1198_v46 = vrot.slane %v1193_v17, %v1986_v61  ;;  %v1202_v47 = vrot.slane %v1193_v17, %v1981_v56  ;;  %v1190_v22 = vld [vmem:[#allocation2 + $0x20] sm:$0xff] }
 0x144   : > { %v1191_v39 = vld [vmem:[#allocation2 + $0x28] sm:$0xff]  ;;  %v1205_v52 = vadd.f32 %v1198_v46, %v1185_v21  ;;  %v1206_v53 = vadd.f32 %v1202_v47, %v1186_v45  ;;  %v1207_v23 = vadd.f32 %v1198_v46, %v1187_v48  ;;  %v1208_v54 = vadd.f32 %v1202_v47, %v1188_v49 }
 0x145   : > { %v1209_v55 = vadd.f32 %v1198_v46, %v1189_v50  ;;  %v1210_v57 = vadd.f32 %v1202_v47, %v1190_v22  ;;  %v1211_v58 = vadd.f32 %v1198_v46, %v1191_v39 }
 0x146   : > { %v1192_v51 = vld [vmem:[#allocation2 + $0x38] sm:$0xff]  ;;  %v1648_v25 = vpack.c.bf16 %v1206_v53, %v1205_v52  ;;  %v1289_v60 = vmul.f32 %v1205_v52, %v1205_v52  ;;  %v1290_v62 = vmul.f32 %v1206_v53, %v1206_v53  ;;  %v1649_v61 = vpack.c.bf16 %v1208_v54, %v1207_v23 }
 0x147   : > { %v1212_v59 = vadd.f32 %v1202_v47, %v1192_v51  ;;  %v1271_v24 = vadd.f32 %v1207_v23, %v1205_v52  ;;  %v1280_v56 = vadd.f32 %v1208_v54, %v1206_v53  ;;  %v1291_v63 = vmul.f32 %v1207_v23, %v1207_v23 }
 0x148   : > { %v1292_v0 = vmul.f32 %v1208_v54, %v1208_v54  ;;  %1237 = vst [vmem:[%s2146_s5] sm:$0xff] %v1648_v25  ;;  %1238 = vst [vmem:[%s2146_s5 + $0x8] sm:$0xff] %v1649_v61  ;;  %v1650_v1 = vpack.c.bf16 %v1210_v57, %v1209_v55  ;;  %v1293_v2 = vmul.f32 %v1209_v55, %v1209_v55 }
 0x149   : > { %v1294_v26 = vmul.f32 %v1210_v57, %v1210_v57  ;;  %v1651_v3 = vpack.c.bf16 %v1212_v59, %v1211_v58  ;;  %v1272_v4 = vadd.f32 %v1271_v24, %v1209_v55  ;;  %v1281_v5 = vadd.f32 %v1280_v56, %v1210_v57 }
 0x14a   : > { %v1295_v6 = vmul.f32 %v1211_v58, %v1211_v58  ;;  %v1297_v9 = vadd.f32 %v1291_v63, %v1289_v60  ;;  %1239 = vst [vmem:[%s2146_s5 + $0x10] sm:$0xff] %v1650_v1  ;;  %v1296_v10 = vmul.f32 %v1212_v59, %v1212_v59  ;;  %v1306_v11 = vadd.f32 %v1292_v0, %v1290_v62 }
 0x14b   : > { %1240 = vst [vmem:[%s2146_s5 + $0x18] sm:$0xff] %v1651_v3  ;;  %v1273_v12 = vadd.f32 %v1272_v4, %v1211_v58  ;;  %v1282_v13 = vadd.f32 %v1281_v5, %v1212_v59 }
 0x14c   : > { %v1298_v14 = vadd.f32 %v1297_v9, %v1293_v2  ;;  %v1307_v15 = vadd.f32 %v1306_v11, %v1294_v26 }
 0x14d   : > { %v1274_v16 = vrot.slane %v1273_v12, 4  ;;  %v1283_v18 = vrot.slane %v1282_v13, 4 }
 0x14e   : > { %v1299_v19 = vadd.f32 %v1298_v14, %v1295_v6  ;;  %v1308_v27 = vadd.f32 %v1307_v15, %v1296_v10 }
 0x14f   : > { %v1275_v28 = vadd.f32 %v1274_v16, %v1273_v12  ;;  %v1284_v29 = vadd.f32 %v1283_v18, %v1282_v13 }
 0x150   : > { %v1300_v30 = vrot.slane %v1299_v19, 4  ;;  %v1309_v31 = vrot.slane %v1308_v27, 4 }
 0x151   : > { %v1276_v32 = vrot.slane %v1275_v28, 2  ;;  %v1285_v33 = vrot.slane %v1284_v29, 2 }
 0x152   : > { %v1301_v7 = vadd.f32 %v1300_v30, %v1299_v19  ;;  %v1310_v34 = vadd.f32 %v1309_v31, %v1308_v27 }
 0x153   : > { %v1277_v35 = vadd.f32 %v1276_v32, %v1275_v28  ;;  %v1286_v36 = vadd.f32 %v1285_v33, %v1284_v29 }
 0x154   : > { %v1302_v37 = vrot.slane %v1301_v7, 2  ;;  %v1311_v20 = vrot.slane %v1310_v34, 2 }
 0x155   : > { %v1278_v38 = vrot.slane %v1277_v35, 1  ;;  %v1287_v40 = vrot.slane %v1286_v36, 1 }
 0x156   : > { %v1303_v41 = vadd.f32 %v1302_v37, %v1301_v7  ;;  %v1312_v8 = vadd.f32 %v1311_v20, %v1310_v34 }
 0x157   : > { %v1279_v42 = vadd.f32 %v1278_v38, %v1277_v35  ;;  %v1288_v43 = vadd.f32 %v1287_v40, %v1286_v36 }
 0x158   : > { %v1304_v44 = vrot.slane %v1303_v41, 1  ;;  %v1313_v21 = vrot.slane %v1312_v8, 1 }
 0x159   : > { %1315 = vst [vmem:[%s2147_s6] sm:$0xff] %v1279_v42  ;;  %1316 = vst [vmem:[%s2147_s6 + $0x8] sm:$0xff] %v1288_v43 }
 0x15a   : > { %v1305_v45 = vadd.f32 %v1304_v44, %v1303_v41  ;;  %v1314_v17 = vadd.f32 %v1313_v21, %v1312_v8 }
 0x15c   : > { %1317 = vst [vmem:[%s2148_s7] sm:$0xff] %v1305_v45  ;;  %1318 = vst [vmem:[%s2148_s7 + $0x8] sm:$0xff] %v1314_v17 }
 0x15d PF: > { %s18_s28 = sadd.s32 1, %s1827_s28   ;;  %s2149_s24 = smov %s1815_s25 }
 0x15e   : > { %p15_p13 = scmp.ge.s32.totalorder %s18_s28, 6   ;;  %s2150_s25 = smov %s1905_s9 }
 0x15f   : > { %s2151_s26 = smov %s1823_s27  ;;  %s2152_s27 = smov %s2154_s29 }
 0x160   :  { %17 = sbr.rel (!%p15_p13) target bundleno = 3 (0x3), region = 142 }

// kernel: autoencoder_forward.26
= control target key start
LH: loop header
LB: loop body
LE: loop exit
PB: predicated region body
PF: predicated region fallthrough
CT: control target
= control target key end

     0   :  { %s2306_s0 = inlined_call_operand.vmem [shape: bf16[8,4096], index: 0, kind: input, shape index: {}]   ;;  %s2307_s1 = inlined_call_operand.vmem [shape: bf16[4096,512], index: 1, kind: input, shape index: {}]   ;;  %s2308_s2 = inlined_call_operand.vmem [shape: f32[1,512], index: 2, kind: input, shape index: {}]   ;;  %s2309_s3 = inlined_call_operand.vmem [shape: f32[1,4096], index: 3, kind: input, shape index: {}]   ;;  %s2310_s4 = inlined_call_operand.vmem [shape: f32[1,4096], index: 4, kind: input, shape index: {}]   ;;  %s2311_s5 = inlined_call_operand.vmem [shape: bf16[8,512], index: 5, kind: output, shape index: {0}]   ;;  %s2312_s6 = inlined_call_operand.vmem [shape: f32[8,512], index: 6, kind: output, shape index: {1}]   ;;  %s2313_s7 = inlined_call_operand.vmem [shape: f32[8,512], index: 7, kind: output, shape index: {2}]  }
   0x1   :  { %2315 = sst [smem:[#allocation5_spill]] %s2306_s0 }
   0x2   :  { %2316 = sst [smem:[#allocation6_spill]] %s2307_s1 }
   0x3   :  { %s1949_s24 = smov 0   ;;  %s1951_s25 = smov 0  }
   0x4   :  { %s1953_s26 = smov 0   ;;  %s1955_s27 = smov 0  }
   0x5   :  { %s1957_s28 = smov 0   ;;  %s1959_s29 = smov 0  }
   0x6   :  { %s1961_s30 = smov 0  }
   0x7 LB: > { %s30_s8 = sadd.s32 1, %s1898_s28  ;;  %s33_s9 = sadd.s32 1, %s1902_s29  ;;  %s1906_s30 = sphi %s1961_s30, %s18_s30   ;;  %s1902_s29 = sphi %s1959_s29, %s2328_s29   ;;  %s1898_s28 = sphi %s1957_s28, %s2327_s28   ;;  %s1894_s27 = sphi %s1955_s27, %s2326_s27   ;;  %s1890_s26 = sphi %s1953_s26, %s2325_s26   ;;  %s1886_s25 = sphi %s1951_s25, %s2324_s25   ;;  %s1882_s24 = sphi %s1949_s24, %s2323_s24  }
   0x8   : > { %p31_p0 = scmp.ge.s32.totalorder %s30_s8, 8  ;;  %p81_p1 = scmp.ne.s32.totalorder %s1886_s25, %s1882_s24 }
   0x9   : > { %p82_p2 = scmp.eq.s32.totalorder %s1906_s30, 0  ;;  %s74_s13 = sadd.s32 1, %s1886_s25 }
   0xa   : > { %s2330_s8 = smov (%p31_p0, %s30_s8), 0  ;;  %s2332_s9 = smov (!%p31_p0, %s33_s9), %s1902_s29 }
   0xb   : > { %p83_p3 = por %p82_p2, %p81_p1  ;;  %p35_p4 = scmp.ge.s32.totalorder %s2332_s9, 2 }
   0xc   : > { %s69_s10 = ssub.s32 %s1898_s28, %s2330_s8  ;;  %p1609_p6 = scmp.ge.s32.totalorder %s1906_s30, 16 }
   0xd   : > { %s2334_s9 = smov (%p35_p4, %s2332_s9), 0 }
   0xe   : > { %2317 = sst [smem:[#allocation4_spill]] %s2334_s9  ;;  %s70_s11 = ssub.s32 %s1902_s29, %s2334_s9 }
   0xf   : > { %s71_s12 = sor.u32 %s70_s11, %s69_s10  ;;  %269 = sbr.rel (%p1609_p6) target bundleno = 62 (0x3e), region = 16 }
  0x10   : > { %p72_p5 = scmp.eq.s32.totalorder %s71_s12, 0 }
  0x12   : > { %s2000_s14 = scalar_select %p72_p5, %s1886_s25, %s74_s13  }
  0x14   : > { %285 = sbr.rel (!%p83_p3) target bundleno = 62 (0x3e), region = 24  ;;  %s287_s15 = sand.u32 (%p83_p3), 1, %s1886_s25  }
  0x15   : > { %s1612_s16 = sshll.u32 (%p83_p3), %s1902_s29, 1  ;;  %s1610_s17 = sshll.u32 (%p83_p3), %s287_s15, 9 }
  0x16   : > { %s1697_s18 = sshll.u32 (%p83_p3), %s1898_s28, 8  ;;  %s2318_s1 = sld [smem:[#allocation6_spill]] (%p83_p3) }
  0x17   : > { %s293_s19 = sadd.s32 (%p83_p3), %s1697_s18, %s1612_s16  ;;  %s2014_s10 = scalar_lea.vmem (%p83_p3), [#allocation3], %s1610_s17 }
  0x18   : > { %s1614_s20 = sshll.u32 (%p83_p3), %s293_s19, 2 }
  0x1c   : > { %s2009_s23 = scalar_lea.vmem %s2318_s1, %s1614_s20 }
  0x1d   : > { %v450_v0 = vld [vmem:[%s2009_s23] sm:$0xff]  ;;  %v452_v1 = vld [vmem:[%s2009_s23 + $0x10] sm:$0xff] }
  0x1e   : > { %v454_v2 = vld [vmem:[%s2009_s23 + $0x20] sm:$0xff]  ;;  %451 = vst [vmem:[%s2014_s10] sm:$0xff] %v450_v0  ;;  %453 = vst [vmem:[%s2014_s10 + $0x8] sm:$0xff] %v452_v1  ;;  %v456_v3 = vld [vmem:[%s2009_s23 + $0x30] sm:$0xff] }
  0x1f   : > { %455 = vst [vmem:[%s2014_s10 + $0x10] sm:$0xff] %v454_v2  ;;  %v458_v4 = vld [vmem:[%s2009_s23 + $0x40] sm:$0xff]  ;;  %v460_v5 = vld [vmem:[%s2009_s23 + $0x50] sm:$0xff]  ;;  %457 = vst [vmem:[%s2014_s10 + $0x18] sm:$0xff] %v456_v3 }
  0x20   : > { %459 = vst [vmem:[%s2014_s10 + $0x20] sm:$0xff] %v458_v4  ;;  %461 = vst [vmem:[%s2014_s10 + $0x28] sm:$0xff] %v460_v5  ;;  %v462_v6 = vld [vmem:[%s2009_s23 + $0x60] sm:$0xff]  ;;  %v464_v7 = vld [vmem:[%s2009_s23 + $0x70] sm:$0xff] }
  0x21   : > { %v466_v8 = vld [vmem:[%s2009_s23 + $0x80] sm:$0xff]  ;;  %463 = vst [vmem:[%s2014_s10 + $0x30] sm:$0xff] %v462_v6  ;;  %465 = vst [vmem:[%s2014_s10 + $0x38] sm:$0xff] %v464_v7  ;;  %v468_v9 = vld [vmem:[%s2009_s23 + $0x90] sm:$0xff] }
  0x22   : > { %467 = vst [vmem:[%s2014_s10 + $0x40] sm:$0xff] %v466_v8  ;;  %v470_v10 = vld [vmem:[%s2009_s23 + $0xa0] sm:$0xff]  ;;  %v472_v11 = vld [vmem:[%s2009_s23 + $0xb0] sm:$0xff]  ;;  %469 = vst [vmem:[%s2014_s10 + $0x48] sm:$0xff] %v468_v9 }
  0x23   : > { %471 = vst [vmem:[%s2014_s10 + $0x50] sm:$0xff] %v470_v10  ;;  %473 = vst [vmem:[%s2014_s10 + $0x58] sm:$0xff] %v472_v11  ;;  %v474_v12 = vld [vmem:[%s2009_s23 + $0xc0] sm:$0xff]  ;;  %v476_v13 = vld [vmem:[%s2009_s23 + $0xd0] sm:$0xff] }
  0x24   : > { %v478_v14 = vld [vmem:[%s2009_s23 + $0xe0] sm:$0xff]  ;;  %475 = vst [vmem:[%s2014_s10 + $0x60] sm:$0xff] %v474_v12  ;;  %477 = vst [vmem:[%s2014_s10 + $0x68] sm:$0xff] %v476_v13  ;;  %v480_v15 = vld [vmem:[%s2009_s23 + $0xf0] sm:$0xff] }
  0x25   : > { %479 = vst [vmem:[%s2014_s10 + $0x70] sm:$0xff] %v478_v14  ;;  %v482_v16 = vld [vmem:[%s2009_s23 + $0x100] sm:$0xff]  ;;  %v484_v17 = vld [vmem:[%s2009_s23 + $0x110] sm:$0xff]  ;;  %481 = vst [vmem:[%s2014_s10 + $0x78] sm:$0xff] %v480_v15 }
  0x26   : > { %483 = vst [vmem:[%s2014_s10 + $0x80] sm:$0xff] %v482_v16  ;;  %485 = vst [vmem:[%s2014_s10 + $0x88] sm:$0xff] %v484_v17  ;;  %v486_v18 = vld [vmem:[%s2009_s23 + $0x120] sm:$0xff]  ;;  %v488_v19 = vld [vmem:[%s2009_s23 + $0x130] sm:$0xff] }
  0x27   : > { %v490_v20 = vld [vmem:[%s2009_s23 + $0x140] sm:$0xff]  ;;  %487 = vst [vmem:[%s2014_s10 + $0x90] sm:$0xff] %v486_v18  ;;  %489 = vst [vmem:[%s2014_s10 + $0x98] sm:$0xff] %v488_v19  ;;  %v492_v21 = vld [vmem:[%s2009_s23 + $0x150] sm:$0xff] }
  0x28   : > { %491 = vst [vmem:[%s2014_s10 + $0xa0] sm:$0xff] %v490_v20  ;;  %v494_v22 = vld [vmem:[%s2009_s23 + $0x160] sm:$0xff]  ;;  %v496_v23 = vld [vmem:[%s2009_s23 + $0x170] sm:$0xff]  ;;  %493 = vst [vmem:[%s2014_s10 + $0xa8] sm:$0xff] %v492_v21 }
  0x29   : > { %495 = vst [vmem:[%s2014_s10 + $0xb0] sm:$0xff] %v494_v22  ;;  %497 = vst [vmem:[%s2014_s10 + $0xb8] sm:$0xff] %v496_v23  ;;  %v498_v24 = vld [vmem:[%s2009_s23 + $0x180] sm:$0xff]  ;;  %v500_v25 = vld [vmem:[%s2009_s23 + $0x190] sm:$0xff] }
  0x2a   : > { %v502_v26 = vld [vmem:[%s2009_s23 + $0x1a0] sm:$0xff]  ;;  %499 = vst [vmem:[%s2014_s10 + $0xc0] sm:$0xff] %v498_v24  ;;  %501 = vst [vmem:[%s2014_s10 + $0xc8] sm:$0xff] %v500_v25  ;;  %v504_v27 = vld [vmem:[%s2009_s23 + $0x1b0] sm:$0xff] }
  0x2b   : > { %503 = vst [vmem:[%s2014_s10 + $0xd0] sm:$0xff] %v502_v26  ;;  %v506_v28 = vld [vmem:[%s2009_s23 + $0x1c0] sm:$0xff]  ;;  %v508_v29 = vld [vmem:[%s2009_s23 + $0x1d0] sm:$0xff]  ;;  %505 = vst [vmem:[%s2014_s10 + $0xd8] sm:$0xff] %v504_v27 }
  0x2c   : > { %507 = vst [vmem:[%s2014_s10 + $0xe0] sm:$0xff] %v506_v28  ;;  %509 = vst [vmem:[%s2014_s10 + $0xe8] sm:$0xff] %v508_v29  ;;  %v510_v30 = vld [vmem:[%s2009_s23 + $0x1e0] sm:$0xff]  ;;  %v512_v31 = vld [vmem:[%s2009_s23 + $0x1f0] sm:$0xff] }
  0x2d   : > { %v514_v32 = vld [vmem:[%s2009_s23 + $0x200] sm:$0xff]  ;;  %511 = vst [vmem:[%s2014_s10 + $0xf0] sm:$0xff] %v510_v30  ;;  %513 = vst [vmem:[%s2014_s10 + $0xf8] sm:$0xff] %v512_v31  ;;  %v516_v33 = vld [vmem:[%s2009_s23 + $0x210] sm:$0xff] }
  0x2e   : > { %515 = vst [vmem:[%s2014_s10 + $0x100] sm:$0xff] %v514_v32  ;;  %v518_v34 = vld [vmem:[%s2009_s23 + $0x220] sm:$0xff]  ;;  %v520_v35 = vld [vmem:[%s2009_s23 + $0x230] sm:$0xff]  ;;  %517 = vst [vmem:[%s2014_s10 + $0x108] sm:$0xff] %v516_v33 }
  0x2f   : > { %519 = vst [vmem:[%s2014_s10 + $0x110] sm:$0xff] %v518_v34  ;;  %521 = vst [vmem:[%s2014_s10 + $0x118] sm:$0xff] %v520_v35  ;;  %v522_v36 = vld [vmem:[%s2009_s23 + $0x240] sm:$0xff]  ;;  %v524_v37 = vld [vmem:[%s2009_s23 + $0x250] sm:$0xff] }
  0x30   : > { %v526_v38 = vld [vmem:[%s2009_s23 + $0x260] sm:$0xff]  ;;  %523 = vst [vmem:[%s2014_s10 + $0x120] sm:$0xff] %v522_v36  ;;  %525 = vst [vmem:[%s2014_s10 + $0x128] sm:$0xff] %v524_v37  ;;  %v528_v39 = vld [vmem:[%s2009_s23 + $0x270] sm:$0xff] }
  0x31   : > { %527 = vst [vmem:[%s2014_s10 + $0x130] sm:$0xff] %v526_v38  ;;  %v530_v40 = vld [vmem:[%s2009_s23 + $0x280] sm:$0xff]  ;;  %v532_v41 = vld [vmem:[%s2009_s23 + $0x290] sm:$0xff]  ;;  %529 = vst [vmem:[%s2014_s10 + $0x138] sm:$0xff] %v528_v39 }
  0x32   : > { %531 = vst [vmem:[%s2014_s10 + $0x140] sm:$0xff] %v530_v40  ;;  %533 = vst [vmem:[%s2014_s10 + $0x148] sm:$0xff] %v532_v41  ;;  %v534_v42 = vld [vmem:[%s2009_s23 + $0x2a0] sm:$0xff]  ;;  %v536_v43 = vld [vmem:[%s2009_s23 + $0x2b0] sm:$0xff] }
  0x33   : > { %v538_v44 = vld [vmem:[%s2009_s23 + $0x2c0] sm:$0xff]  ;;  %535 = vst [vmem:[%s2014_s10 + $0x150] sm:$0xff] %v534_v42  ;;  %537 = vst [vmem:[%s2014_s10 + $0x158] sm:$0xff] %v536_v43  ;;  %v540_v45 = vld [vmem:[%s2009_s23 + $0x2d0] sm:$0xff] }
  0x34   : > { %539 = vst [vmem:[%s2014_s10 + $0x160] sm:$0xff] %v538_v44  ;;  %v542_v46 = vld [vmem:[%s2009_s23 + $0x2e0] sm:$0xff]  ;;  %v544_v47 = vld [vmem:[%s2009_s23 + $0x2f0] sm:$0xff]  ;;  %541 = vst [vmem:[%s2014_s10 + $0x168] sm:$0xff] %v540_v45 }
  0x35   : > { %543 = vst [vmem:[%s2014_s10 + $0x170] sm:$0xff] %v542_v46  ;;  %545 = vst [vmem:[%s2014_s10 + $0x178] sm:$0xff] %v544_v47  ;;  %v546_v48 = vld [vmem:[%s2009_s23 + $0x300] sm:$0xff]  ;;  %v548_v49 = vld [vmem:[%s2009_s23 + $0x310] sm:$0xff] }
  0x36   : > { %v550_v50 = vld [vmem:[%s2009_s23 + $0x320] sm:$0xff]  ;;  %547 = vst [vmem:[%s2014_s10 + $0x180] sm:$0xff] %v546_v48  ;;  %549 = vst [vmem:[%s2014_s10 + $0x188] sm:$0xff] %v548_v49  ;;  %v552_v51 = vld [vmem:[%s2009_s23 + $0x330] sm:$0xff] }
  0x37   : > { %551 = vst [vmem:[%s2014_s10 + $0x190] sm:$0xff] %v550_v50  ;;  %v554_v52 = vld [vmem:[%s2009_s23 + $0x340] sm:$0xff]  ;;  %v556_v53 = vld [vmem:[%s2009_s23 + $0x350] sm:$0xff]  ;;  %553 = vst [vmem:[%s2014_s10 + $0x198] sm:$0xff] %v552_v51 }
  0x38   : > { %555 = vst [vmem:[%s2014_s10 + $0x1a0] sm:$0xff] %v554_v52  ;;  %557 = vst [vmem:[%s2014_s10 + $0x1a8] sm:$0xff] %v556_v53  ;;  %v558_v54 = vld [vmem:[%s2009_s23 + $0x360] sm:$0xff]  ;;  %v560_v55 = vld [vmem:[%s2009_s23 + $0x370] sm:$0xff] }
  0x39   : > { %v562_v56 = vld [vmem:[%s2009_s23 + $0x380] sm:$0xff]  ;;  %559 = vst [vmem:[%s2014_s10 + $0x1b0] sm:$0xff] %v558_v54  ;;  %561 = vst [vmem:[%s2014_s10 + $0x1b8] sm:$0xff] %v560_v55  ;;  %v564_v57 = vld [vmem:[%s2009_s23 + $0x390] sm:$0xff] }
  0x3a   : > { %563 = vst [vmem:[%s2014_s10 + $0x1c0] sm:$0xff] %v562_v56  ;;  %v566_v58 = vld [vmem:[%s2009_s23 + $0x3a0] sm:$0xff]  ;;  %v568_v59 = vld [vmem:[%s2009_s23 + $0x3b0] sm:$0xff]  ;;  %565 = vst [vmem:[%s2014_s10 + $0x1c8] sm:$0xff] %v564_v57 }
  0x3b   : > { %567 = vst [vmem:[%s2014_s10 + $0x1d0] sm:$0xff] %v566_v58  ;;  %569 = vst [vmem:[%s2014_s10 + $0x1d8] sm:$0xff] %v568_v59  ;;  %v570_v60 = vld [vmem:[%s2009_s23 + $0x3c0] sm:$0xff]  ;;  %v572_v61 = vld [vmem:[%s2009_s23 + $0x3d0] sm:$0xff] }
  0x3c   : > { %v574_v62 = vld [vmem:[%s2009_s23 + $0x3e0] sm:$0xff]  ;;  %571 = vst [vmem:[%s2014_s10 + $0x1e0] sm:$0xff] %v570_v60  ;;  %573 = vst [vmem:[%s2014_s10 + $0x1e8] sm:$0xff] %v572_v61  ;;  %v576_v63 = vld [vmem:[%s2009_s23 + $0x3f0] sm:$0xff] }
  0x3d   : > { %575 = vst [vmem:[%s2014_s10 + $0x1f0] sm:$0xff] %v574_v62  ;;  %577 = vst [vmem:[%s2014_s10 + $0x1f8] sm:$0xff] %v576_v63 }
  0x3e PF: > { %p1615_p7 = scmp.ge.s32.totalorder %s1906_s30, 1  ;;  %p606_p8 = scmp.lt.s32.totalorder %s1906_s30, 17 }
  0x40   : > { %p607_p9 = pnand %p1615_p7, %p606_p8 }
  0x41   : > { %s613_s11 = sand.u32 (!%p607_p9), 1, %s1882_s24   ;;  %s1617_s12 = sshll.u32 (!%p607_p9), %s1890_s26, 2 }
  0x42   : > { %610 = sbr.rel (%p607_p9) target bundleno = 370 (0x172), region = 74  ;;  %s1616_s13 = sshll.u32 (!%p607_p9), %s613_s11, 9 }
  0x43   : > { %p690_p10 = scmp.lt.s32.totalorder (!%p607_p9), %s1617_s12, 31  ;;  %s1619_s15 = sshll.u32 (!%p607_p9), %s1894_s27, 1 }
  0x44   : > { %p700_p11 = scmp.lt.s32.totalorder (!%p607_p9), %s1619_s15, 3  ;;  %s2319_s0 = sld [smem:[#allocation5_spill]] (!%p607_p9) }
  0x45   : > { %s2185_s10 = scalar_lea.vmem (!%p607_p9), [#allocation3], %s1616_s13  ;;  %p1628_p12 = scmp.ne.s32.totalorder (!%p607_p9), %s1890_s26, 0 }
  0x47   : > { %s2336_s12 = smov (!%p690_p10, %s1617_s12), 31  ;;  %s2338_s15 = smov (!%p700_p11, %s1619_s15), 3 }
  0x48   : > { %s1618_s16 = sshll.u32 %s2336_s12, 2  ;;  %s702_s1 = scalar_lea.vmem %s2308_s2, %s2338_s15 }
  0x49   : > { %s1623_s17 = sshll.u32 %s2338_s15, 2  ;;  %748 = sbr.rel (%p1628_p12) target bundleno = 80 (0x50), region = 82 }
  0x4a   : > { %s2156_s22 = scalar_lea.vmem %s2319_s0, %s1618_s16  ;;  %s2172_s20 = scalar_lea.vmem %s2311_s5, %s1623_s17 }
  0x4b   : > { %s1625_s16 = sshll.u32 %s2338_s15, 3 }
  0x4c   : > { %s2178_s24 = scalar_lea.vmem %s2312_s6, %s1625_s16  ;;  %s2183_s9 = scalar_lea.vmem %s2313_s7, %s1625_s16 }
  0x4e   : > { %v1908_v0 = vmov 0.0  }
  0x4f   : > { %749 = vst [vmem:[#allocation2] sm:$0xff] %v1908_v0  ;;  %750 = vst [vmem:[#allocation2 + $0x8] sm:$0xff] %v1908_v0 }
  0x50 PF: > { %v1756_v1 = vld [vmem:[%s2185_s10 + $0x74] ss:$8 sps:$4 sm:$0xff]   ;;  %v1760_v3 = vld [vmem:[%s2185_s10 + $0x70] ss:$8 sps:$4 sm:$0xff]   ;;  %v1762_v5 = vld [vmem:[%s2185_s10 + $0x64] ss:$8 sps:$4 sm:$0xff]   ;;  %v759_v38 = vlaneseq  ;;  %s2320_s19 = scalar_lea.vmem %s2309_s3, %s2336_s12  ;;  %s2321_s17 = scalar_lea.vmem %s2310_s4, %s2336_s12 }
  0x51   : > { %v1758_v2 = vld [vmem:[%s2185_s10 + $0x174] ss:$8 sps:$4 sm:$0xff]   ;;  %1211 = vmatprep.subr.bf16.mxu0 %v1756_v1  ;;  %v1761_v4 = vld [vmem:[%s2185_s10 + $0x170] ss:$8 sps:$4 sm:$0xff]   ;;  %v1764_v6 = vld [vmem:[%s2185_s10 + $0x164] ss:$8 sps:$4 sm:$0xff]  }
  0x52   : > { %1252 = vmatprep.subr.bf16.mxu1 %v1758_v2  ;;  %1212 = vmatpush1.bf16.msra.mxu0 %v1760_v3  ;;  %v1766_v7 = vld [vmem:[%s2185_s10 + $0x60] ss:$8 sps:$4 sm:$0xff]   ;;  %v1768_v9 = vld [vmem:[%s2185_s10 + $0x54] ss:$8 sps:$4 sm:$0xff]   ;;  %v1772_v11 = vld [vmem:[%s2185_s10 + $0x50] ss:$8 sps:$4 sm:$0xff]  }
  0x53   : > { %1253 = vmatpush1.bf16.msra.mxu1 %v1761_v4  ;;  %1213 = vmatprep.subr.bf16.mxu0 %v1762_v5  ;;  %v1767_v8 = vld [vmem:[%s2185_s10 + $0x160] ss:$8 sps:$4 sm:$0xff]   ;;  %v1770_v10 = vld [vmem:[%s2185_s10 + $0x154] ss:$8 sps:$4 sm:$0xff]   ;;  %v1773_v12 = vld [vmem:[%s2185_s10 + $0x150] ss:$8 sps:$4 sm:$0xff]  }
  0x54   : > { %1254 = vmatprep.subr.bf16.mxu1 %v1764_v6  ;;  %v1774_v13 = vld [vmem:[%s2185_s10 + $0x44] ss:$8 sps:$4 sm:$0xff]   ;;  %v1778_v15 = vld [vmem:[%s2185_s10 + $0x40] ss:$8 sps:$4 sm:$0xff]   ;;  %v1780_v17 = vld [vmem:[%s2185_s10 + $0x34] ss:$8 sps:$4 sm:$0xff]  }
  0x55   : > { %v1776_v14 = vld [vmem:[%s2185_s10 + $0x144] ss:$8 sps:$4 sm:$0xff]   ;;  %v1779_v16 = vld [vmem:[%s2185_s10 + $0x140] ss:$8 sps:$4 sm:$0xff]   ;;  %v1782_v18 = vld [vmem:[%s2185_s10 + $0x134] ss:$8 sps:$4 sm:$0xff]  }
  0x56   : > { %1214 = vmatpush1.bf16.msra.mxu0 %v1766_v7  ;;  %v1784_v19 = vld [vmem:[%s2185_s10 + $0x30] ss:$8 sps:$4 sm:$0xff]   ;;  %v1786_v21 = vld [vmem:[%s2185_s10 + $0x24] ss:$8 sps:$4 sm:$0xff]   ;;  %v1790_v23 = vld [vmem:[%s2185_s10 + $0x20] ss:$8 sps:$4 sm:$0xff]  }
  0x57   : > { %1255 = vmatpush1.bf16.msra.mxu1 %v1767_v8  ;;  %1215 = vmatprep.subr.bf16.mxu0 %v1768_v9  ;;  %v1785_v20 = vld [vmem:[%s2185_s10 + $0x130] ss:$8 sps:$4 sm:$0xff]   ;;  %v1788_v22 = vld [vmem:[%s2185_s10 + $0x124] ss:$8 sps:$4 sm:$0xff]   ;;  %v1791_v24 = vld [vmem:[%s2185_s10 + $0x120] ss:$8 sps:$4 sm:$0xff]  }
  0x58   : > { %1256 = vmatprep.subr.bf16.mxu1 %v1770_v10  ;;  %v1792_v25 = vld [vmem:[%s2185_s10 + $0x14] ss:$8 sps:$4 sm:$0xff]   ;;  %v1796_v27 = vld [vmem:[%s2185_s10 + $0x10] ss:$8 sps:$4 sm:$0xff]   ;;  %v1798_v29 = vld [vmem:[%s2185_s10 + $0x4] ss:$8 sps:$4 sm:$0xff]  }
  0x59   : > { %v1794_v26 = vld [vmem:[%s2185_s10 + $0x114] ss:$8 sps:$4 sm:$0xff]   ;;  %v1797_v28 = vld [vmem:[%s2185_s10 + $0x110] ss:$8 sps:$4 sm:$0xff]   ;;  %v1800_v30 = vld [vmem:[%s2185_s10 + $0x104] ss:$8 sps:$4 sm:$0xff]  }
  0x5a   : > { %1216 = vmatpush1.bf16.msra.mxu0 %v1772_v11  ;;  %v1802_v31 = vld [vmem:[%s2185_s10] ss:$8 sps:$4 sm:$0xff]   ;;  %v1804_v33 = vld [vmem:[%s2185_s10 + $0xf4] ss:$8 sps:$4 sm:$0xff]   ;;  %v1808_v35 = vld [vmem:[%s2185_s10 + $0xf0] ss:$8 sps:$4 sm:$0xff]  }
  0x5b   : > { %1257 = vmatpush1.bf16.msra.mxu1 %v1773_v12  ;;  %1217 = vmatprep.subr.bf16.mxu0 %v1774_v13  ;;  %v1803_v32 = vld [vmem:[%s2185_s10 + $0x100] ss:$8 sps:$4 sm:$0xff]   ;;  %v1806_v34 = vld [vmem:[%s2185_s10 + $0x1f4] ss:$8 sps:$4 sm:$0xff]   ;;  %v1809_v36 = vld [vmem:[%s2185_s10 + $0x1f0] ss:$8 sps:$4 sm:$0xff]  }
  0x5c   : > { %1258 = vmatprep.subr.bf16.mxu1 %v1776_v14  ;;  %v1810_v37 = vld [vmem:[%s2185_s10 + $0xe4] ss:$8 sps:$4 sm:$0xff]   ;;  %v1814_v40 = vld [vmem:[%s2185_s10 + $0xe0] ss:$8 sps:$4 sm:$0xff]   ;;  %v1816_v42 = vld [vmem:[%s2185_s10 + $0xd4] ss:$8 sps:$4 sm:$0xff]  }
  0x5d   : > { %v1812_v39 = vld [vmem:[%s2185_s10 + $0x1e4] ss:$8 sps:$4 sm:$0xff]   ;;  %v1815_v41 = vld [vmem:[%s2185_s10 + $0x1e0] ss:$8 sps:$4 sm:$0xff]   ;;  %v760_v43 = vshrl.u32 %v759_v38, 7  ;;  %v751_v52 = vld [vmem:[%s2156_s22] sm:$0xff] }
  0x5e   : > { %1218 = vmatpush1.bf16.msra.mxu0 %v1778_v15  ;;  %v1818_v44 = vld [vmem:[%s2185_s10 + $0x1d4] ss:$8 sps:$4 sm:$0xff]   ;;  %v1820_v45 = vld [vmem:[%s2185_s10 + $0xd0] ss:$8 sps:$4 sm:$0xff]   ;;  %v1822_v47 = vld [vmem:[%s2185_s10 + $0xc4] ss:$8 sps:$4 sm:$0xff]   ;;  %v753_v54 = vunpack.c.l.bf16 %v751_v52  ;;  %v754_v55 = vunpack.c.h.bf16 %v751_v52 }
  0x5f   : > { %1259 = vmatpush1.bf16.msra.mxu1 %v1779_v16  ;;  %1219 = vmatprep.subr.bf16.mxu0 %v1780_v17  ;;  %v1821_v46 = vld [vmem:[%s2185_s10 + $0x1d0] ss:$8 sps:$4 sm:$0xff]   ;;  %v2233_v48 = vsub.s32 1, %v760_v43  ;;  %v1824_v49 = vld [vmem:[%s2185_s10 + $0x1c4] ss:$8 sps:$4 sm:$0xff]   ;;  %v773_v50 = vsub.s32 3, %v760_v43 }
  0x60   : > { %1260 = vmatprep.subr.bf16.mxu1 %v1782_v18  ;;  %v2236_v51 = vsub.s32 0, %v760_v43  ;;  %v769_v53 = vsub.s32 2, %v760_v43  ;;  %v757_v56 = vld [vmem:[%s2320_s19] sm:$0xf]  ;;  %v752_v58 = vld [vmem:[%s2156_s22 + $0x8] sm:$0xff]  ;;  %p1693_p13 = scmp.ne.s32.totalorder %s1890_s26, 7 }
  0x61   : > { %v783_v57 = vld [vmem:[%s2321_s17] sm:$0xf]  ;;  %v1826_v59 = vld [vmem:[%s2185_s10 + $0xc0] ss:$8 sps:$4 sm:$0xff]   ;;  %v766_v61 = vrot.slane %v757_v56, %v2233_v48  ;;  %v755_v63 = vunpack.c.l.bf16 %v752_v58  ;;  %v756_v0 = vunpack.c.h.bf16 %v752_v58  ;;  %v1828_v1 = vld [vmem:[%s2185_s10 + $0xb4] ss:$8 sps:$4 sm:$0xff]   ;;  %v774_v3 = vrot.slane %v757_v56, %v773_v50 }
  0x62   : > { %1220 = vmatpush1.bf16.msra.mxu0 %v1784_v19  ;;  %v1827_v60 = vld [vmem:[%s2185_s10 + $0x1c0] ss:$8 sps:$4 sm:$0xff]   ;;  %v792_v62 = vrot.slane %v783_v57, %v2233_v48  ;;  %v1830_v2 = vld [vmem:[%s2185_s10 + $0x1b4] ss:$8 sps:$4 sm:$0xff]   ;;  %v800_v4 = vrot.slane %v783_v57, %v773_v50  ;;  %v762_v5 = vrot.slane %v757_v56, %v2236_v51  ;;  %v770_v7 = vrot.slane %v757_v56, %v769_v53  ;;  %v1832_v11 = vld [vmem:[%s2185_s10 + $0xb0] ss:$8 sps:$4 sm:$0xff]  }
  0x63   : > { %1261 = vmatpush1.bf16.msra.mxu1 %v1785_v20  ;;  %1221 = vmatprep.subr.bf16.mxu0 %v1786_v21  ;;  %v780_v6 = vmul.f32 %v766_v61, %v754_v55  ;;  %v782_v8 = vmul.f32 %v774_v3, %v756_v0  ;;  %v788_v9 = vrot.slane %v783_v57, %v2236_v51  ;;  %v1833_v12 = vld [vmem:[%s2185_s10 + $0x1b0] ss:$8 sps:$4 sm:$0xff]   ;;  %v1834_v16 = vld [vmem:[%s2185_s10 + $0xa4] ss:$8 sps:$4 sm:$0xff]   ;;  %v1838_v21 = vld [vmem:[%s2185_s10 + $0xa0] ss:$8 sps:$4 sm:$0xff]  }
  0x64   : > { %1262 = vmatprep.subr.bf16.mxu1 %v1788_v22  ;;  %v796_v10 = vrot.slane %v783_v57, %v769_v53  ;;  %v779_v14 = vmul.f32 %v762_v5, %v753_v54  ;;  %v781_v15 = vmul.f32 %v770_v7, %v755_v63  ;;  %v1836_v17 = vld [vmem:[%s2185_s10 + $0x1a4] ss:$8 sps:$4 sm:$0xff]   ;;  %v1839_v22 = vld [vmem:[%s2185_s10 + $0x1a0] ss:$8 sps:$4 sm:$0xff]  }
  0x65   : > { %v806_v13 = vadd.f32 %v792_v62, %v780_v6  ;;  %v808_v18 = vadd.f32 %v800_v4, %v782_v8  ;;  %v1851_v38 = vld [vmem:[%s2185_s10 + $0x180] ss:$8 sps:$4 sm:$0xff]  }
  0x66   : > { %1222 = vmatpush1.bf16.msra.mxu0 %v1790_v23 }
  0x67   : > { %1263 = vmatpush1.bf16.msra.mxu1 %v1791_v24  ;;  %1223 = vmatprep.subr.bf16.mxu0 %v1792_v25  ;;  %vm810_vm0 = vcmp.gt.f32.partialorder %v806_v13, 0.0  ;;  %v814_v19 = vmul.f32 0.01, %v806_v13  ;;  %vm812_vm1 = vcmp.gt.f32.partialorder %v808_v18, 0.0  ;;  %v816_v20 = vmul.f32 0.01, %v808_v18 }
  0x68   : > { %1264 = vmatprep.subr.bf16.mxu1 %v1794_v26  ;;  %v805_v24 = vadd.f32 %v788_v9, %v779_v14  ;;  %v807_v25 = vadd.f32 %v796_v10, %v781_v15  ;;  %v1840_v26 = vld [vmem:[%s2185_s10 + $0x94] ss:$8 sps:$4 sm:$0xff]  }
  0x69   : > { %v818_v23 = vsel %vm810_vm0, %v806_v13, %v814_v19 }
  0x6a   : > { %1224 = vmatpush1.bf16.msra.mxu0 %v1796_v27  ;;  %v1842_v27 = vld [vmem:[%s2185_s10 + $0x194] ss:$8 sps:$4 sm:$0xff]   ;;  %vm809_vm2 = vcmp.gt.f32.partialorder %v805_v24, 0.0  ;;  %vm811_vm3 = vcmp.gt.f32.partialorder %v807_v25, 0.0 }
  0x6b   : > { %1265 = vmatpush1.bf16.msra.mxu1 %v1797_v28  ;;  %1225 = vmatprep.subr.bf16.mxu0 %v1798_v29  ;;  %v824_v28 = vpack.c.bf16 %v818_v23, %v818_v23  ;;  %v820_v29 = vsel %vm812_vm1, %v808_v18, %v816_v20 }
  0x6c   : > { %1266 = vmatprep.subr.bf16.mxu1 %v1800_v30  ;;  %v826_v30 = vpack.c.bf16 %v820_v29, %v820_v29 }
  0x6d   : > { %1243 = vmatprep.mubr.bf16.mxu0 %v824_v28 }
  0x6e   : > { %1226 = vmatpush1.bf16.msra.mxu0 %v1802_v31  ;;  %v1844_v31 = vld [vmem:[%s2185_s10 + $0x90] ss:$8 sps:$4 sm:$0xff]   ;;  %1284 = vmatprep.mubr.bf16.mxu1 %v826_v30 }
  0x6f   : > { %1267 = vmatpush1.bf16.msra.mxu1 %v1803_v32  ;;  %1227 = vmatprep.subr.bf16.mxu0 %v1804_v33  ;;  %v1845_v32 = vld [vmem:[%s2185_s10 + $0x190] ss:$8 sps:$4 sm:$0xff]   ;;  %v813_v33 = vmul.f32 0.01, %v805_v24 }
  0x70   : > { %1268 = vmatprep.subr.bf16.mxu1 %v1806_v34  ;;  %v815_v34 = vmul.f32 0.01, %v807_v25 }
  0x72   : > { %1228 = vmatpush2.bf16.msra.mxu0 %v1808_v35  ;;  %v1846_v35 = vld [vmem:[%s2185_s10 + $0x84] ss:$8 sps:$4 sm:$0xff]  }
  0x73   : > { %1269 = vmatpush2.bf16.msra.mxu1 %v1809_v36  ;;  %1229 = vmatprep.subr.bf16.mxu0 %v1810_v37  ;;  %v1848_v36 = vld [vmem:[%s2185_s10 + $0x184] ss:$8 sps:$4 sm:$0xff]   ;;  %v1850_v37 = vld [vmem:[%s2185_s10 + $0x80] ss:$8 sps:$4 sm:$0xff]  }
  0x74   : > { %1270 = vmatprep.subr.bf16.mxu1 %v1812_v39  ;;  %v817_v39 = vsel %vm809_vm2, %v805_v24, %v813_v33 }
  0x76   : > { %1230 = vmatpush2.bf16.msra.mxu0 %v1814_v40  ;;  %v819_v40 = vsel %vm811_vm3, %v807_v25, %v815_v34 }
  0x77   : > { %1271 = vmatpush2.bf16.msra.mxu1 %v1815_v41  ;;  %1231 = vmatprep.subr.bf16.mxu0 %v1816_v42  ;;  %v823_v41 = vpack.c.bf16 %v817_v39, %v817_v39  ;;  %v825_v42 = vpack.c.bf16 %v819_v40, %v819_v40 }
  0x78   : > { %1272 = vmatprep.subr.bf16.mxu1 %v1818_v44  ;;  %v821_v44 = vld [vmem:[#allocation2] sm:$0xff] }
  0x7a   : > { %1232 = vmatpush2.bf16.msra.mxu0 %v1820_v45 }
  0x7b   : > { %1273 = vmatpush2.bf16.msra.mxu1 %v1821_v46  ;;  %1233 = vmatprep.subr.bf16.mxu0 %v1822_v47 }
  0x7c   : > { %1274 = vmatprep.subr.bf16.mxu1 %v1824_v49  ;;  %v822_v49 = vld [vmem:[#allocation2 + $0x8] sm:$0xff] }
  0x7e   : > { %1234 = vmatpush2.bf16.msra.mxu0 %v1826_v59 }
  0x7f   : > { %1275 = vmatpush2.bf16.msra.mxu1 %v1827_v60  ;;  %1235 = vmatprep.subr.bf16.mxu0 %v1828_v1 }
  0x80   : > { %1276 = vmatprep.subr.bf16.mxu1 %v1830_v2 }
  0x82   : > { %1236 = vmatpush2.bf16.msra.mxu0 %v1832_v11 }
  0x83   : > { %1277 = vmatpush2.bf16.msra.mxu1 %v1833_v12  ;;  %1237 = vmatprep.subr.bf16.mxu0 %v1834_v16 }
  0x84   : > { %1278 = vmatprep.subr.bf16.mxu1 %v1836_v17 }
  0x86   : > { %1238 = vmatpush2.bf16.msra.mxu0 %v1838_v21 }
  0x87   : > { %1279 = vmatpush2.bf16.msra.mxu1 %v1839_v22  ;;  %1239 = vmatprep.subr.bf16.mxu0 %v1840_v26 }
  0x88   : > { %1280 = vmatprep.subr.bf16.mxu1 %v1842_v27 }
  0x8a   : > { %1240 = vmatpush2.bf16.msra.mxu0 %v1844_v31 }
  0x8b   : > { %1281 = vmatpush2.bf16.msra.mxu1 %v1845_v32  ;;  %1241 = vmatprep.subr.bf16.mxu0 %v1846_v35 }
  0x8c   : > { %1282 = vmatprep.subr.bf16.mxu1 %v1848_v36 }
  0x8e   : > { %1242 = vmatpush2.bf16.msra.mxu0 %v1850_v37 }
  0x8f   : > { %1283 = vmatpush2.bf16.msra.mxu1 %v1851_v38 }
  0x91   : > { %1244 = vmatmul.mubr.bf16.vlgmr.msra.gmra.mxu0 %v823_v41 }
  0x92   : > { %1285 = vmatmul.mubr.bf16.vlgmr.msra.gmra.mxu1 %v825_v42 }
 0x151   : > { %v1245_v43 = vpop.f32.mrf.mxu0 }
 0x152   : > { %v1286_v45 = vpop.f32.mrf.mxu1 }
 0x153   : > { %v1287_v46 = vadd.f32 %v1286_v45, %v1245_v43  ;;  %v1247_v47 = vpop.f32.mrf.mxu0 }
 0x154   : > { %v1288_v50 = vpop.f32.mrf.mxu1 }
 0x155   : > { %v1293_v52 = vadd.f32 %v1287_v46, %v821_v44  ;;  %v1289_v53 = vadd.f32 %v1288_v50, %v1247_v47  ;;  %v1249_v54 = vpop.f32.mrf.mxu0  ;;  %1300 = sbr.rel (%p1693_p13) target bundleno = 370 (0x172), region = 86 }
 0x156   : > { %v1290_v55 = vpop.f32.mrf.mxu1 }
 0x157   : > { %1295 = vst [vmem:[#allocation2] sm:$0xff] %v1293_v52  ;;  %v1294_v56 = vadd.f32 %v1289_v53, %v822_v49  ;;  %v1250_v57 = vpop.f32.mrf.mxu0 }
 0x158   : > { %v1291_v58 = vpop.f32.mrf.mxu1 }
 0x159   : > { %1296 = vst [vmem:[#allocation2 + $0x8] sm:$0xff] %v1294_v56 }
 0x15a   : > { %v1303_v60 = vld [vmem:[%s702_s1] sm:$0x3] }
 0x15b   : > { %v1308_v62 = vrot.slane %v1303_v60, %v2236_v51  ;;  %v1312_v63 = vrot.slane %v1303_v60, %v2233_v48 }
 0x15e   : > { %v1301_v59 = vld [vmem:[#allocation2] sm:$0xff] }
 0x15f   : > { %v1315_v0 = vadd.f32 %v1308_v62, %v1301_v59 }
 0x160   : > { %v1302_v61 = vld [vmem:[#allocation2 + $0x8] sm:$0xff] }
 0x161   : > { %v1316_v1 = vadd.f32 %v1312_v63, %v1302_v61  ;;  %v1335_v2 = vrot.slane %v1315_v0, 4  ;;  %v1347_v3 = vmul.f32 %v1315_v0, %v1315_v0 }
 0x163   : > { %v1698_v4 = vpack.c.bf16 %v1316_v1, %v1315_v0  ;;  %v1341_v5 = vrot.slane %v1316_v1, 4  ;;  %v1348_v6 = vmul.f32 %v1316_v1, %v1316_v1  ;;  %v1336_v7 = vadd.f32 %v1335_v2, %v1315_v0 }
 0x164   : > { %v1349_v8 = vrot.slane %v1347_v3, 4 }
 0x165   : > { %1325 = vst [vmem:[%s2172_s20] sm:$0xff] %v1698_v4  ;;  %v1342_v9 = vadd.f32 %v1341_v5, %v1316_v1  ;;  %v1355_v10 = vrot.slane %v1348_v6, 4  ;;  %v1337_v11 = vrot.slane %v1336_v7, 2 }
 0x166   : > { %v1350_v12 = vadd.f32 %v1349_v8, %v1347_v3 }
 0x167   : > { %v1343_v13 = vrot.slane %v1342_v9, 2  ;;  %v1356_v51 = vadd.f32 %v1355_v10, %v1348_v6  ;;  %v1338_v14 = vadd.f32 %v1337_v11, %v1336_v7 }
 0x168   : > { %v1351_v48 = vrot.slane %v1350_v12, 2 }
 0x169   : > { %v1344_v15 = vadd.f32 %v1343_v13, %v1342_v9  ;;  %v1357_v16 = vrot.slane %v1356_v51, 2  ;;  %v1339_v17 = vrot.slane %v1338_v14, 1 }
 0x16a   : > { %v1352_v18 = vadd.f32 %v1351_v48, %v1350_v12 }
 0x16b   : > { %v1345_v19 = vrot.slane %v1344_v15, 1  ;;  %v1358_v20 = vadd.f32 %v1357_v16, %v1356_v51  ;;  %v1340_v21 = vadd.f32 %v1339_v17, %v1338_v14 }
 0x16c   : > { %v1353_v22 = vrot.slane %v1352_v18, 1 }
 0x16d   : > { %v1346_v23 = vadd.f32 %v1345_v19, %v1344_v15  ;;  %v1359_v24 = vrot.slane %v1358_v20, 1  ;;  %1361 = vst [vmem:[%s2178_s24] sm:$0xff] %v1340_v21 }
 0x16e   : > { %v1354_v25 = vadd.f32 %v1353_v22, %v1352_v18 }
 0x16f   : > { %1362 = vst [vmem:[%s2178_s24 + $0x8] sm:$0xff] %v1346_v23  ;;  %v1360_v26 = vadd.f32 %v1359_v24, %v1358_v20 }
 0x170   : > { %1363 = vst [vmem:[%s2183_s9] sm:$0xff] %v1354_v25 }
 0x171   : > { %1364 = vst [vmem:[%s2183_s9 + $0x8] sm:$0xff] %v1360_v26 }
 0x172 PF: > { %s18_s30 = sadd.s32 1, %s1906_s30   ;;  %s2322_s1 = sld [smem:[#allocation4_spill]] }
 0x173   : > { %p15_p0 = scmp.ge.s32.totalorder %s18_s30, 18   ;;  %s2323_s24 = smov %s1886_s25 }
 0x174   : > { %s2324_s25 = smov %s2000_s14  ;;  %s2325_s26 = smov %s1898_s28 }
 0x175   : > { %s2326_s27 = smov %s1902_s29  ;;  %s2327_s28 = smov %s2330_s8 }
 0x176   :  { %17 = sbr.rel (!%p15_p0) target bundleno = 7 (0x7), region = 157 }
 0x178   : > { %s2328_s29 = smov %s2322_s1 }

// kernel: autoencoder_forward.27
= control target key start
LH: loop header
LB: loop body
LE: loop exit
PB: predicated region body
PF: predicated region fallthrough
CT: control target
= control target key end

     0   :  { %s1319_s24 = smov 0   ;;  %s1321_s25 = smov 0   ;;  %s1436_s0 = inlined_call_operand.vmem [shape: bf16[8,2048], index: 0, kind: input, shape index: {}]   ;;  %s1437_s1 = inlined_call_operand.vmem [shape: bf16[2048,128], index: 1, kind: input, shape index: {}]   ;;  %s1438_s2 = inlined_call_operand.vmem [shape: f32[1,128], index: 2, kind: input, shape index: {}]   ;;  %s1439_s3 = inlined_call_operand.vmem [shape: f32[1,2048], index: 3, kind: input, shape index: {}]   ;;  %s1440_s4 = inlined_call_operand.vmem [shape: f32[1,2048], index: 4, kind: input, shape index: {}]   ;;  %s1441_s5 = inlined_call_operand.vmem [shape: bf16[8,128], index: 5, kind: output, shape index: {0}]   ;;  %s1442_s6 = inlined_call_operand.vmem [shape: f32[8,128], index: 6, kind: output, shape index: {1}]   ;;  %s1443_s7 = inlined_call_operand.vmem [shape: f32[8,128], index: 7, kind: output, shape index: {2}]  }
   0x1   :  { %s1323_s26 = smov 0  }
   0x2 LB: > { %s30_s27 = sadd.s32 1, %s1271_s25  ;;  %p1103_p0 = scmp.ge.s32.totalorder %s1275_s26, 1  ;;  %s1275_s26 = sphi %s1323_s26, %s18_s26   ;;  %s1271_s25 = sphi %s1321_s25, %s1445_s25   ;;  %s1267_s24 = sphi %s1319_s24, %s1444_s24  }
   0x3   : > { %p31_p1 = scmp.ge.s32.totalorder %s30_s27, 4  ;;  %p318_p2 = scmp.lt.s32.totalorder %s1275_s26, 5 }
   0x5   : > { %s1447_s27 = smov (%p31_p1, %s30_s27), 0  ;;  %p319_p3 = pnand %p1103_p0, %p318_p2 }
   0x6   : > { %s1104_s28 = sshll.u32 (!%p319_p3), %s1267_s24, 2  ;;  %s1106_s29 = sshll.u32 (!%p319_p3), %s1267_s24, 6 }
   0x7   : > { %322 = sbr.rel (%p319_p3) target bundleno = 286 (0x11e), region = 40  ;;  %p392_p4 = scmp.lt.s32.totalorder (!%p319_p3), %s1104_s28, 15 }
   0x8   : > { %p400_p5 = scmp.lt.s32.totalorder (!%p319_p3), %s1106_s29, 255  ;;  %p1110_p6 = scmp.ne.s32.totalorder (!%p319_p3), %s1267_s24, 0 }
   0xc   : > { %s1449_s28 = smov (!%p392_p4, %s1104_s28), 15  ;;  %s1451_s29 = smov (!%p400_p5, %s1106_s29), 255 }
   0xd   : > { %s1105_s30 = sshll.u32 %s1449_s28, 2  ;;  %s414_s10 = scalar_lea.vmem %s1439_s3, %s1449_s28 }
   0xe   : > { %s1351_s13 = scalar_lea.vmem %s1436_s0, %s1105_s30  ;;  %s1107_s14 = sshll.u32 %s1451_s29, 2 }
   0xf   : > { %s1356_s17 = scalar_lea.vmem %s1437_s1, %s1107_s14  ;;  %s419_s20 = scalar_lea.vmem %s1440_s4, %s1449_s28 }
  0x10   : > { %447 = sbr.rel (%p1110_p6) target bundleno = 23 (0x17), region = 44 }
  0x15   : > { %v1277_v0 = vmov 0.0  }
  0x16   : > { %448 = vst [vmem:[#allocation2] sm:$0xff] %v1277_v0 }
  0x17 PF: > { %v1221_v1 = vld [vmem:[%s1356_s17 + $0x78] sm:$0xff]   ;;  %v1225_v5 = vld [vmem:[%s1356_s17 + $0x70] sm:$0xff]   ;;  %v1229_v9 = vld [vmem:[%s1356_s17 + $0x68] sm:$0xff]   ;;  %v457_v22 = vlaneseq  ;;  %p1143_p7 = scmp.ne.s32.totalorder %s1267_s24, 3 }
  0x18   : > { %v1222_v2 = vld [vmem:[%s1356_s17 + $0xf8] sm:$0xff]   ;;  %1151 = vmatprep.subr.bf16.mxu0 %v1221_v1  ;;  %v1226_v6 = vld [vmem:[%s1356_s17 + $0xf0] sm:$0xff]   ;;  %v1230_v10 = vld [vmem:[%s1356_s17 + $0xe8] sm:$0xff]  }
  0x19   : > { %v1223_v3 = vld [vmem:[%s1356_s17 + $0x38] sm:$0xff]   ;;  %1173 = vmatprep.subr.bf16.mxu1 %v1222_v2  ;;  %v1227_v7 = vld [vmem:[%s1356_s17 + $0x30] sm:$0xff]   ;;  %v1231_v11 = vld [vmem:[%s1356_s17 + $0x28] sm:$0xff]   ;;  %v1388_v27 = vshrl.u32 %v457_v22, 7 }
  0x1a   : > { %v1224_v4 = vld [vmem:[%s1356_s17 + $0xb8] sm:$0xff]   ;;  %1152 = vmatpush3.bf16.msra.mxu0 %v1223_v3  ;;  %v1228_v8 = vld [vmem:[%s1356_s17 + $0xb0] sm:$0xff]   ;;  %v1232_v12 = vld [vmem:[%s1356_s17 + $0xa8] sm:$0xff]  }
  0x1b   : > { %1174 = vmatpush3.bf16.msra.mxu1 %v1224_v4  ;;  %1153 = vmatprep.subr.bf16.mxu0 %v1225_v5  ;;  %v1233_v13 = vld [vmem:[%s1356_s17 + $0x60] sm:$0xff]   ;;  %v1237_v17 = vld [vmem:[%s1356_s17 + $0x58] sm:$0xff]   ;;  %v1241_v21 = vld [vmem:[%s1356_s17 + $0x50] sm:$0xff]   ;;  %v463_v32 = vsub.s32 1, %v1388_v27  ;;  %v471_v34 = vsub.s32 3, %v1388_v27  ;;  %v459_v36 = vsub.s32 0, %v1388_v27 }
  0x1c   : > { %1175 = vmatprep.subr.bf16.mxu1 %v1226_v6  ;;  %v1234_v14 = vld [vmem:[%s1356_s17 + $0xe0] sm:$0xff]   ;;  %v1238_v18 = vld [vmem:[%s1356_s17 + $0xd8] sm:$0xff]   ;;  %v1242_v23 = vld [vmem:[%s1356_s17 + $0xd0] sm:$0xff]   ;;  %v467_v38 = vsub.s32 2, %v1388_v27 }
  0x1d   : > { %v1235_v15 = vld [vmem:[%s1356_s17 + $0x20] sm:$0xff]   ;;  %v1239_v19 = vld [vmem:[%s1356_s17 + $0x18] sm:$0xff]   ;;  %v1243_v24 = vld [vmem:[%s1356_s17 + $0x10] sm:$0xff]  }
  0x1e   : > { %1154 = vmatpush3.bf16.msra.mxu0 %v1227_v7  ;;  %v1236_v16 = vld [vmem:[%s1356_s17 + $0xa0] sm:$0xff]   ;;  %v1240_v20 = vld [vmem:[%s1356_s17 + $0x98] sm:$0xff]   ;;  %v1244_v25 = vld [vmem:[%s1356_s17 + $0x90] sm:$0xff]  }
  0x1f   : > { %1176 = vmatpush3.bf16.msra.mxu1 %v1228_v8  ;;  %1155 = vmatprep.subr.bf16.mxu0 %v1229_v9  ;;  %v1245_v26 = vld [vmem:[%s1356_s17 + $0x48] sm:$0xff]   ;;  %v1249_v31 = vld [vmem:[%s1356_s17 + $0x40] sm:$0xff]  }
  0x20   : > { %1177 = vmatprep.subr.bf16.mxu1 %v1230_v10  ;;  %v1246_v28 = vld [vmem:[%s1356_s17 + $0xc8] sm:$0xff]   ;;  %v1250_v33 = vld [vmem:[%s1356_s17 + $0xc0] sm:$0xff]  }
  0x21   : > { %v1247_v29 = vld [vmem:[%s1356_s17 + $0x8] sm:$0xff]   ;;  %v1251_v35 = vld [vmem:[%s1356_s17] sm:$0xff]  }
  0x22   : > { %1156 = vmatpush3.bf16.msra.mxu0 %v1231_v11  ;;  %v1248_v30 = vld [vmem:[%s1356_s17 + $0x88] sm:$0xff]   ;;  %v1252_v37 = vld [vmem:[%s1356_s17 + $0x80] sm:$0xff]  }
  0x23   : > { %1178 = vmatpush3.bf16.msra.mxu1 %v1232_v12  ;;  %1157 = vmatprep.subr.bf16.mxu0 %v1233_v13  ;;  %v449_v39 = vld [vmem:[%s1351_s13] sm:$0xff]  ;;  %v450_v46 = vld [vmem:[%s1351_s13 + $0x8] sm:$0xff] }
  0x24   : > { %1179 = vmatprep.subr.bf16.mxu1 %v1234_v14  ;;  %v455_v40 = vld [vmem:[%s414_s10] sm:$0xf]  ;;  %v451_v42 = vunpack.c.l.bf16 %v449_v39  ;;  %v452_v43 = vunpack.c.h.bf16 %v449_v39  ;;  %v453_v47 = vunpack.c.l.bf16 %v450_v46  ;;  %v454_v48 = vunpack.c.h.bf16 %v450_v46 }
  0x25   : > { %v481_v41 = vld [vmem:[%s419_s20] sm:$0xf]  ;;  %v464_v44 = vrot.slane %v455_v40, %v463_v32  ;;  %v472_v49 = vrot.slane %v455_v40, %v471_v34  ;;  %v460_v52 = vrot.slane %v455_v40, %v459_v36  ;;  %v468_v54 = vrot.slane %v455_v40, %v467_v38 }
  0x26   : > { %1158 = vmatpush3.bf16.msra.mxu0 %v1235_v15  ;;  %v490_v45 = vrot.slane %v481_v41, %v463_v32  ;;  %v498_v50 = vrot.slane %v481_v41, %v471_v34  ;;  %v486_v53 = vrot.slane %v481_v41, %v459_v36  ;;  %v494_v56 = vrot.slane %v481_v41, %v467_v38 }
  0x27   : > { %1180 = vmatpush3.bf16.msra.mxu1 %v1236_v16  ;;  %1159 = vmatprep.subr.bf16.mxu0 %v1237_v17  ;;  %v478_v51 = vmul.f32 %v464_v44, %v452_v43  ;;  %v480_v55 = vmul.f32 %v472_v49, %v454_v48  ;;  %v477_v58 = vmul.f32 %v460_v52, %v451_v42 }
  0x28   : > { %1181 = vmatprep.subr.bf16.mxu1 %v1238_v18  ;;  %v479_v59 = vmul.f32 %v468_v54, %v453_v47  ;;  %v519_v18 = vld [vmem:[#allocation2] sm:$0xff] }
  0x29   : > { %v504_v57 = vadd.f32 %v490_v45, %v478_v51  ;;  %v506_v60 = vadd.f32 %v498_v50, %v480_v55  ;;  %v503_v62 = vadd.f32 %v486_v53, %v477_v58 }
  0x2a   : > { %1160 = vmatpush3.bf16.msra.mxu0 %v1239_v19  ;;  %v505_v63 = vadd.f32 %v494_v56, %v479_v59 }
  0x2b   : > { %1182 = vmatpush3.bf16.msra.mxu1 %v1240_v20  ;;  %1161 = vmatprep.subr.bf16.mxu0 %v1241_v21  ;;  %vm508_vm0 = vcmp.gt.f32.partialorder %v504_v57, 0.0  ;;  %v512_v61 = vmul.f32 0.01, %v504_v57  ;;  %vm510_vm1 = vcmp.gt.f32.partialorder %v506_v60, 0.0  ;;  %v514_v0 = vmul.f32 0.01, %v506_v60 }
  0x2c   : > { %1183 = vmatprep.subr.bf16.mxu1 %v1242_v23  ;;  %vm507_vm2 = vcmp.gt.f32.partialorder %v503_v62, 0.0  ;;  %v511_v2 = vmul.f32 0.01, %v503_v62  ;;  %vm509_vm3 = vcmp.gt.f32.partialorder %v505_v63, 0.0  ;;  %v513_v5 = vmul.f32 0.01, %v505_v63 }
  0x2d   : > { %v516_v1 = vsel %vm508_vm0, %v504_v57, %v512_v61  ;;  %v518_v4 = vsel %vm510_vm1, %v506_v60, %v514_v0 }
  0x2e   : > { %1162 = vmatpush3.bf16.msra.mxu0 %v1243_v24  ;;  %v521_v3 = vpack.c.bf16 %v516_v1, %v516_v1  ;;  %v523_v6 = vpack.c.bf16 %v518_v4, %v518_v4  ;;  %v515_v7 = vsel %vm507_vm2, %v503_v62, %v511_v2  ;;  %v517_v9 = vsel %vm509_vm3, %v505_v63, %v513_v5 }
  0x2f   : > { %1184 = vmatpush3.bf16.msra.mxu1 %v1244_v25  ;;  %1163 = vmatprep.subr.bf16.mxu0 %v1245_v26  ;;  %v520_v8 = vpack.c.bf16 %v515_v7, %v515_v7  ;;  %v522_v10 = vpack.c.bf16 %v517_v9, %v517_v9 }
  0x30   : > { %1185 = vmatprep.subr.bf16.mxu1 %v1246_v28  ;;  %812 = vmatprep.mubr.bf16.mxu0 %v521_v3 }
  0x31   : > { %852 = vmatprep.mubr.bf16.mxu1 %v523_v6 }
  0x32   : > { %1164 = vmatpush3.bf16.msra.mxu0 %v1247_v29 }
  0x33   : > { %1186 = vmatpush3.bf16.msra.mxu1 %v1248_v30  ;;  %1165 = vmatprep.subr.bf16.mxu0 %v1249_v31 }
  0x34   : > { %1187 = vmatprep.subr.bf16.mxu1 %v1250_v33 }
  0x36   : > { %1166 = vmatpush3.bf16.msra.mxu0 %v1251_v35 }
  0x37   : > { %1188 = vmatpush3.bf16.msra.mxu1 %v1252_v37 }
  0x39   : > { %813 = vmatmul.mubr.bf16.vlgmr.msra.gmra.mxu0 %v520_v8 }
  0x3a   : > { %853 = vmatmul.mubr.bf16.vlgmr.msra.gmra.mxu1 %v522_v10 }
  0xf9   : > { %v1167_v11 = vpop.f32.mrf.mxu0 }
  0xfa   : > { %v1189_v12 = vpop.f32.mrf.mxu1 }
  0xfb   : > { %v1168_v13 = vpop.f32.mrf.mxu0 }
  0xfc   : > { %v1169_v14 = vadd.f32 %v1168_v13, %v1167_v11  ;;  %v1190_v15 = vpop.f32.mrf.mxu1 }
  0xfd   : > { %v1191_v16 = vadd.f32 %v1190_v15, %v1189_v12  ;;  %v1170_v17 = vpop.f32.mrf.mxu0 }
  0xfe   : > { %v1192_v19 = vpop.f32.mrf.mxu1 }
  0xff   : > { %v855_v20 = vadd.f32 %v1191_v16, %v1169_v14  ;;  %v1171_v21 = vpop.f32.mrf.mxu0  ;;  %865 = sbr.rel (%p1143_p7) target bundleno = 286 (0x11e), region = 48 }
 0x100   : > { %v1193_v22 = vpop.f32.mrf.mxu1 }
 0x101   : > { %v860_v23 = vadd.f32 %v855_v20, %v519_v18 }
 0x103   : > { %861 = vst [vmem:[#allocation2] sm:$0xff] %v860_v23 }
 0x104   : > { %v1144_v25 = vld [vmem:[%s1438_s2] ss:$0 sm:$0xff]  ;;  %vm881_vm4 = vcmp.lt.s32.totalorder %v1388_v27, 2  ;;  %v1278_v28 = vmov 0.0  }
 0x105   : > { %v1145_v29 = vsel %vm881_vm4, 1.0, %v1278_v28 }
 0x10a   : > { %v866_v24 = vld [vmem:[#allocation2] sm:$0xff] }
 0x10b   : > { %v874_v26 = vadd.f32 %v1144_v25, %v866_v24 }
 0x10d   : > { %v875_v30 = vpack.c.bf16 %v874_v26, %v874_v26  ;;  %v884_v31 = vmul.f32 %v1145_v29, %v874_v26 }
 0x10f   : > { %876 = vst [vmem:[%s1441_s5] sm:$0xf] %v875_v30  ;;  %v885_v32 = vrot.slane %v884_v31, 4  ;;  %v891_v33 = vmul.f32 %v884_v31, %v884_v31 }
 0x111   : > { %v886_v34 = vadd.f32 %v885_v32, %v884_v31  ;;  %v892_v35 = vrot.slane %v891_v33, 4 }
 0x113   : > { %v887_v36 = vrot.slane %v886_v34, 2  ;;  %v893_v37 = vadd.f32 %v892_v35, %v891_v33 }
 0x115   : > { %v888_v38 = vadd.f32 %v887_v36, %v886_v34  ;;  %v894_v39 = vrot.slane %v893_v37, 2 }
 0x117   : > { %v889_v40 = vrot.slane %v888_v38, 1  ;;  %v895_v41 = vadd.f32 %v894_v39, %v893_v37 }
 0x119   : > { %v890_v27 = vadd.f32 %v889_v40, %v888_v38  ;;  %v896_v42 = vrot.slane %v895_v41, 1 }
 0x11b   : > { %898 = vst [vmem:[%s1442_s6] sm:$0xff] %v890_v27  ;;  %v897_v43 = vadd.f32 %v896_v42, %v895_v41 }
 0x11d   : > { %899 = vst [vmem:[%s1443_s7] sm:$0xff] %v897_v43 }
 0x11e PF: > { %s18_s26 = sadd.s32 1, %s1275_s26   ;;  %s1444_s24 = smov %s1271_s25 }
 0x11f   : > { %p15_p8 = scmp.ge.s32.totalorder %s18_s26, 6   ;;  %s1445_s25 = smov %s1447_s27 }
 0x121   :  { %17 = sbr.rel (!%p15_p8) target bundleno = 2 (0x2), region = 114 }

// kernel: autoencoder_forward.28
= control target key start
LH: loop header
LB: loop body
LE: loop exit
PB: predicated region body
PF: predicated region fallthrough
CT: control target
= control target key end

     0   :  { %s1206_s24 = smov 0   ;;  %s1208_s25 = smov 0   ;;  %s1330_s0 = inlined_call_operand.vmem [shape: bf16[8,128], index: 0, kind: input, shape index: {}]   ;;  %s1331_s1 = inlined_call_operand.vmem [shape: bf16[128,2048], index: 1, kind: input, shape index: {}]   ;;  %s1332_s2 = inlined_call_operand.vmem [shape: f32[1,2048], index: 2, kind: input, shape index: {}]   ;;  %s1333_s3 = inlined_call_operand.vmem [shape: f32[1,128], index: 3, kind: input, shape index: {}]   ;;  %s1334_s4 = inlined_call_operand.vmem [shape: f32[1,128], index: 4, kind: input, shape index: {}]   ;;  %s1335_s5 = inlined_call_operand.vmem [shape: bf16[8,2048], index: 5, kind: output, shape index: {0}]   ;;  %s1336_s6 = inlined_call_operand.vmem [shape: f32[8,2048], index: 6, kind: output, shape index: {1}]   ;;  %s1337_s7 = inlined_call_operand.vmem [shape: f32[8,2048], index: 7, kind: output, shape index: {2}]  }
   0x1   :  { %s1210_s26 = smov 0   ;;  %s1212_s27 = smov 0  }
   0x2   :  { %s1214_s28 = smov 0  }
   0x3 LB: > { %s33_s29 = sadd.s32 1, %s1158_s27  ;;  %p81_p1 = scmp.ne.s32.totalorder %s1150_s25, %s1146_s24  ;;  %s1162_s28 = sphi %s1214_s28, %s18_s28   ;;  %s1158_s27 = sphi %s1212_s27, %s1341_s27   ;;  %s1154_s26 = sphi %s1210_s26, %s1340_s26   ;;  %s1150_s25 = sphi %s1208_s25, %s1339_s25   ;;  %s1146_s24 = sphi %s1206_s24, %s1338_s24  }
   0x4   : > { %p35_p0 = scmp.ge.s32.totalorder %s33_s29, 8  ;;  %p82_p2 = scmp.eq.s32.totalorder %s1162_s28, 0 }
   0x5   : > { %s74_s8 = sadd.s32 1, %s1150_s25  ;;  %p1021_p5 = scmp.ge.s32.totalorder %s1162_s28, 8 }
   0x6   : > { %s1343_s29 = smov (%p35_p0, %s33_s29), 0  ;;  %p83_p3 = por %p82_p2, %p81_p1 }
   0x7   : > { %s70_s30 = ssub.s32 %s1158_s27, %s1343_s29  ;;  %291 = sbr.rel (%p1021_p5) target bundleno = 32 (0x20), region = 28 }
   0x8   : > { %p72_p4 = scmp.eq.s32.totalorder %s70_s30, 0 }
   0xa   : > { %s1241_s9 = scalar_select %p72_p4, %s1150_s25, %s74_s8  }
   0xc   : > { %294 = sbr.rel (!%p83_p3) target bundleno = 32 (0x20), region = 32  ;;  %s296_s10 = sand.u32 (%p83_p3), 1, %s1150_s25  }
   0xd   : > { %s1056_s11 = sshll.u32 (%p83_p3), %s1158_s27, 3  ;;  %s1022_s12 = sshll.u32 (%p83_p3), %s296_s10, 7 }
   0xe   : > { %s1249_s15 = scalar_lea.vmem (%p83_p3), %s1331_s1, %s1056_s11  ;;  %s298_s16 = scalar_lea.vmem (%p83_p3), [#allocation3], %s1022_s12 }
   0xf   : > { %v363_v0 = vld [vmem:[%s1249_s15] sm:$0xff] (%p83_p3) }
  0x10   : > { %v365_v1 = vld [vmem:[%s1249_s15 + $0x40] sm:$0xff] (%p83_p3)  ;;  %364 = vst [vmem:[%s298_s16] sm:$0xff] (%p83_p3), %v363_v0 }
  0x11   : > { %v367_v2 = vld [vmem:[%s1249_s15 + $0x80] sm:$0xff]  ;;  %366 = vst [vmem:[%s298_s16 + $0x8] sm:$0xff] %v365_v1 }
  0x12   : > { %368 = vst [vmem:[%s298_s16 + $0x10] sm:$0xff] %v367_v2  ;;  %v369_v3 = vld [vmem:[%s1249_s15 + $0xc0] sm:$0xff] }
  0x13   : > { %v371_v4 = vld [vmem:[%s1249_s15 + $0x100] sm:$0xff]  ;;  %370 = vst [vmem:[%s298_s16 + $0x18] sm:$0xff] %v369_v3 }
  0x14   : > { %v373_v5 = vld [vmem:[%s1249_s15 + $0x140] sm:$0xff]  ;;  %372 = vst [vmem:[%s298_s16 + $0x20] sm:$0xff] %v371_v4 }
  0x15   : > { %374 = vst [vmem:[%s298_s16 + $0x28] sm:$0xff] %v373_v5  ;;  %v375_v6 = vld [vmem:[%s1249_s15 + $0x180] sm:$0xff] }
  0x16   : > { %v377_v7 = vld [vmem:[%s1249_s15 + $0x1c0] sm:$0xff]  ;;  %376 = vst [vmem:[%s298_s16 + $0x30] sm:$0xff] %v375_v6 }
  0x17   : > { %v379_v8 = vld [vmem:[%s1249_s15 + $0x200] sm:$0xff]  ;;  %378 = vst [vmem:[%s298_s16 + $0x38] sm:$0xff] %v377_v7 }
  0x18   : > { %380 = vst [vmem:[%s298_s16 + $0x40] sm:$0xff] %v379_v8  ;;  %v381_v9 = vld [vmem:[%s1249_s15 + $0x240] sm:$0xff] }
  0x19   : > { %v383_v10 = vld [vmem:[%s1249_s15 + $0x280] sm:$0xff]  ;;  %382 = vst [vmem:[%s298_s16 + $0x48] sm:$0xff] %v381_v9 }
  0x1a   : > { %v385_v11 = vld [vmem:[%s1249_s15 + $0x2c0] sm:$0xff]  ;;  %384 = vst [vmem:[%s298_s16 + $0x50] sm:$0xff] %v383_v10 }
  0x1b   : > { %386 = vst [vmem:[%s298_s16 + $0x58] sm:$0xff] %v385_v11  ;;  %v387_v12 = vld [vmem:[%s1249_s15 + $0x300] sm:$0xff] }
  0x1c   : > { %v389_v13 = vld [vmem:[%s1249_s15 + $0x340] sm:$0xff]  ;;  %388 = vst [vmem:[%s298_s16 + $0x60] sm:$0xff] %v387_v12 }
  0x1d   : > { %v391_v14 = vld [vmem:[%s1249_s15 + $0x380] sm:$0xff]  ;;  %390 = vst [vmem:[%s298_s16 + $0x68] sm:$0xff] %v389_v13 }
  0x1e   : > { %392 = vst [vmem:[%s298_s16 + $0x70] sm:$0xff] %v391_v14  ;;  %v393_v15 = vld [vmem:[%s1249_s15 + $0x3c0] sm:$0xff] }
  0x1f   : > { %394 = vst [vmem:[%s298_s16 + $0x78] sm:$0xff] %v393_v15 }
  0x20 PF: > { %p1025_p6 = scmp.ge.s32.totalorder %s1162_s28, 1  ;;  %p407_p7 = scmp.lt.s32.totalorder %s1162_s28, 9 }
  0x22   : > { %p408_p8 = pnand %p1025_p6, %p407_p7 }
  0x23   : > { %s414_s17 = sand.u32 (!%p408_p8), 1, %s1146_s24   ;;  %s1027_s8 = sshll.u32 (!%p408_p8), %s1154_s26, 1 }
  0x24   : > { %411 = sbr.rel (%p408_p8) target bundleno = 288 (0x120), region = 74  ;;  %s1026_s18 = sshll.u32 (!%p408_p8), %s414_s17, 7 }
  0x25   : > { %s1270_s19 = scalar_lea.vmem (!%p408_p8), [#allocation3], %s1026_s18  ;;  %p494_p9 = scmp.lt.s32.totalorder (!%p408_p8), %s1027_s8, 15 }
  0x29   : > { %v1164_v16 = vmov 0   ;;  %v1100_v17 = vld [vmem:[%s1270_s19 + $0x74] ss:$8 sps:$4 sm:$0xff]   ;;  %v1102_v18 = vld [vmem:[%s1270_s19 + $0x70] ss:$8 sps:$4 sm:$0xff]   ;;  %v711_v40 = vlaneseq  ;;  %s1345_s8 = smov (!%p494_p9, %s1027_s8), 15 }
  0x2a   : > { %691 = vmatprep.mubr.bf16.mxu0 %v1164_v16  ;;  %659 = vmatprep.subr.bf16.mxu0 %v1100_v17  ;;  %v1103_v19 = vld [vmem:[%s1270_s19 + $0x64] ss:$8 sps:$4 sm:$0xff]   ;;  %v1105_v20 = vld [vmem:[%s1270_s19 + $0x60] ss:$8 sps:$4 sm:$0xff]   ;;  %v1106_v21 = vld [vmem:[%s1270_s19 + $0x54] ss:$8 sps:$4 sm:$0xff]   ;;  %s496_s12 = scalar_lea.vmem %s1332_s2, %s1345_s8 }
  0x2b   : > { %660 = vmatpush1.bf16.msra.mxu0 %v1102_v18  ;;  %v1108_v22 = vld [vmem:[%s1270_s19 + $0x50] ss:$8 sps:$4 sm:$0xff]   ;;  %v1109_v23 = vld [vmem:[%s1270_s19 + $0x44] ss:$8 sps:$4 sm:$0xff]   ;;  %v1111_v24 = vld [vmem:[%s1270_s19 + $0x40] ss:$8 sps:$4 sm:$0xff]  }
  0x2c   : > { %661 = vmatprep.subr.bf16.mxu0 %v1103_v19  ;;  %v1112_v25 = vld [vmem:[%s1270_s19 + $0x34] ss:$8 sps:$4 sm:$0xff]   ;;  %v1114_v26 = vld [vmem:[%s1270_s19 + $0x30] ss:$8 sps:$4 sm:$0xff]   ;;  %v542_v27 = vld [vmem:[%s1330_s0] sm:$0xf] }
  0x2d   : > { %v1115_v28 = vld [vmem:[%s1270_s19 + $0x24] ss:$8 sps:$4 sm:$0xff]   ;;  %v543_v29 = vunpack.c.l.bf16 %v542_v27  ;;  %v1117_v30 = vld [vmem:[%s1270_s19 + $0x20] ss:$8 sps:$4 sm:$0xff]   ;;  %v1118_v32 = vld [vmem:[%s1270_s19 + $0x14] ss:$8 sps:$4 sm:$0xff]  }
  0x2e   : > { %v1034_v31 = vld [vmem:[%s1333_s3] ss:$0 sm:$0xff]  ;;  %v1120_v34 = vld [vmem:[%s1270_s19 + $0x10] ss:$8 sps:$4 sm:$0xff]   ;;  %v1121_v36 = vld [vmem:[%s1270_s19 + $0x4] ss:$8 sps:$4 sm:$0xff]  }
  0x2f   : > { %662 = vmatpush1.bf16.msra.mxu0 %v1105_v20  ;;  %v551_v33 = vmul.f32 %v1034_v31, %v543_v29  ;;  %v1035_v35 = vld [vmem:[%s1334_s4] ss:$0 sm:$0xff]  ;;  %v712_v41 = vshrl.u32 %v711_v40, 7  ;;  %v1165_v48 = vmov 0.0   ;;  %s1029_s26 = sshll.u32 %s1345_s8, 2  ;;  %s1031_s16 = sshll.u32 %s1345_s8, 3 }
  0x30   : > { %663 = vmatprep.subr.bf16.mxu0 %v1106_v21  ;;  %v1123_v38 = vld [vmem:[%s1270_s19] ss:$8 sps:$4 sm:$0xff]   ;;  %s512_s15 = scalar_lea.vmem %s1335_s5, %s1029_s26  ;;  %s522_s19 = scalar_lea.vmem %s1336_s6, %s1031_s16 }
  0x31   : > { %v559_v37 = vadd.f32 %v1035_v35, %v551_v33  ;;  %v713_v42 = vsub.s32 0, %v712_v41  ;;  %v709_v43 = vld [vmem:[%s496_s12] sm:$0x3]  ;;  %v717_v44 = vsub.s32 1, %v712_v41  ;;  %vm736_vm0 = vcmp.lt.s32.totalorder %v712_v41, 2  ;;  %s532_s22 = scalar_lea.vmem %s1337_s7, %s1031_s16 }
  0x32   : > { %v1053_v49 = vsel %vm736_vm0, 1.0, %v1165_v48 }
  0x33   : > { %664 = vmatpush1.bf16.msra.mxu0 %v1108_v22  ;;  %v562_v39 = vpack.c.bf16 %v559_v37, %v559_v37  ;;  %v714_v45 = vrot.slane %v709_v43, %v713_v42  ;;  %v718_v46 = vrot.slane %v709_v43, %v717_v44 }
  0x34   : > { %665 = vmatprep.subr.bf16.mxu0 %v1109_v23 }
  0x37   : > { %666 = vmatpush1.bf16.msra.mxu0 %v1111_v24 }
  0x38   : > { %667 = vmatprep.subr.bf16.mxu0 %v1112_v25 }
  0x3b   : > { %668 = vmatpush1.bf16.msra.mxu0 %v1114_v26 }
  0x3c   : > { %669 = vmatprep.subr.bf16.mxu0 %v1115_v28 }
  0x3f   : > { %670 = vmatpush1.bf16.msra.mxu0 %v1117_v30 }
  0x40   : > { %671 = vmatprep.subr.bf16.mxu0 %v1118_v32 }
  0x43   : > { %672 = vmatpush1.bf16.msra.mxu0 %v1120_v34 }
  0x44   : > { %673 = vmatprep.subr.bf16.mxu0 %v1121_v36 }
  0x47   : > { %674 = vmatpush1.bf16.msra.mxu0 %v1123_v38 }
  0x4a   : > { %692 = vmatmul.mubr.bf16.vlgmr.msra.gmra.mxu0 %v562_v39 }
 0x10a   : > { %v693_v47 = vpop.f32.mrf.mxu0 }
 0x10b   : > { %v721_v50 = vadd.f32 %v714_v45, %v693_v47 }
 0x10c   : > { %v695_v51 = vpop.f32.mrf.mxu0 }
 0x10d   : > { %v739_v52 = vmul.f32 %v1053_v49, %v721_v50  ;;  %v722_v53 = vadd.f32 %v718_v46, %v695_v51 }
 0x10e   : > { %v697_v54 = vpop.f32.mrf.mxu0 }
 0x10f   : > { %v741_v55 = vrot.slane %v739_v52, 4  ;;  %v753_v56 = vmul.f32 %v739_v52, %v739_v52  ;;  %v1057_v57 = vpack.c.bf16 %v722_v53, %v721_v50  ;;  %v740_v58 = vmul.f32 %v1053_v49, %v722_v53 }
 0x110   : > { %v698_v59 = vpop.f32.mrf.mxu0 }
 0x111   : > { %v742_v60 = vadd.f32 %v741_v55, %v739_v52  ;;  %v755_v61 = vrot.slane %v753_v56, 4  ;;  %731 = vst [vmem:[%s512_s15] sm:$0xff] %v1057_v57  ;;  %v747_v62 = vrot.slane %v740_v58, 4  ;;  %v754_v63 = vmul.f32 %v740_v58, %v740_v58 }
 0x113   : > { %v743_v0 = vrot.slane %v742_v60, 2  ;;  %v756_v1 = vadd.f32 %v755_v61, %v753_v56  ;;  %v748_v2 = vadd.f32 %v747_v62, %v740_v58  ;;  %v761_v3 = vrot.slane %v754_v63, 4 }
 0x115   : > { %v744_v4 = vadd.f32 %v743_v0, %v742_v60  ;;  %v757_v5 = vrot.slane %v756_v1, 2  ;;  %v749_v6 = vrot.slane %v748_v2, 2  ;;  %v762_v7 = vadd.f32 %v761_v3, %v754_v63 }
 0x117   : > { %v745_v8 = vrot.slane %v744_v4, 1  ;;  %v758_v9 = vadd.f32 %v757_v5, %v756_v1  ;;  %v750_v10 = vadd.f32 %v749_v6, %v748_v2  ;;  %v763_v11 = vrot.slane %v762_v7, 2 }
 0x119   : > { %v746_v12 = vadd.f32 %v745_v8, %v744_v4  ;;  %v759_v13 = vrot.slane %v758_v9, 1  ;;  %v751_v14 = vrot.slane %v750_v10, 1  ;;  %v764_v15 = vadd.f32 %v763_v11, %v762_v7 }
 0x11b   : > { %v760_v16 = vadd.f32 %v759_v13, %v758_v9  ;;  %767 = vst [vmem:[%s522_s19] sm:$0xff] %v746_v12  ;;  %v752_v17 = vadd.f32 %v751_v14, %v750_v10  ;;  %v765_v18 = vrot.slane %v764_v15, 1 }
 0x11d   : > { %769 = vst [vmem:[%s532_s22] sm:$0xff] %v760_v16  ;;  %v766_v19 = vadd.f32 %v765_v18, %v764_v15  ;;  %768 = vst [vmem:[%s522_s19 + $0x8] sm:$0xff] %v752_v17 }
 0x11f   : > { %770 = vst [vmem:[%s532_s22 + $0x8] sm:$0xff] %v766_v19 }
 0x120 PF: > { %s18_s28 = sadd.s32 1, %s1162_s28   ;;  %s1338_s24 = smov %s1150_s25 }
 0x121   : > { %p15_p10 = scmp.ge.s32.totalorder %s18_s28, 10   ;;  %s1339_s25 = smov %s1241_s9 }
 0x122   : > { %s1340_s26 = smov %s1158_s27  ;;  %s1341_s27 = smov %s1343_s29 }
 0x123   :  { %17 = sbr.rel (!%p15_p10) target bundleno = 3 (0x3), region = 157 }

// kernel: autoencoder_forward.29
= control target key start
LH: loop header
LB: loop body
LE: loop exit
PB: predicated region body
PF: predicated region fallthrough
CT: control target
= control target key end

     0   :  { %v42_v0 = vlaneseq  ;;  %s550_s0 = inlined_call_operand.vmem [shape: bf16[8,2048], index: 0, kind: input, shape index: {}]   ;;  %s551_s1 = inlined_call_operand.vmem [shape: f32[1,2048], index: 1, kind: input, shape index: {}]   ;;  %s552_s2 = inlined_call_operand.vmem [shape: f32[1,2048], index: 2, kind: input, shape index: {}]   ;;  %s553_s3 = inlined_call_operand.vmem [shape: bf16[8,2048], index: 3, kind: output, shape index: {}]  }
   0x1   :  { %v14_v1 = vld [vmem:[%s550_s0] sm:$0xff]  ;;  %v15_v5 = vld [vmem:[%s550_s0 + $0x8] sm:$0xff]  ;;  %v16_v6 = vld [vmem:[%s550_s0 + $0x10] sm:$0xff] }
   0x2   :  { %v22_v2 = vunpack.c.l.bf16 %v14_v1  ;;  %v23_v3 = vunpack.c.h.bf16 %v14_v1  ;;  %v43_v4 = vshrl.u32 %v42_v0, 7  ;;  %v410_v7 = vld [vmem:[%s550_s0 + $0x18] sm:$0xff]  ;;  %v415_v8 = vld [vmem:[%s551_s1] sm:$0xff]  ;;  %v24_v10 = vunpack.c.l.bf16 %v15_v5  ;;  %v472_v61 = vld [vmem:[%s551_s1 + $0x8] sm:$0xff] }
   0x3   :  { %v420_v9 = vld [vmem:[%s552_s2] sm:$0xff]  ;;  %v25_v11 = vunpack.c.h.bf16 %v15_v5  ;;  %v26_v12 = vunpack.c.l.bf16 %v16_v6  ;;  %v27_v13 = vunpack.c.h.bf16 %v16_v6  ;;  %v28_v20 = vunpack.c.l.bf16 %v410_v7 }
   0x4   :  { %v422_v14 = vsub.s32 0, %v43_v4  ;;  %v424_v15 = vsub.s32 1, %v43_v4  ;;  %v426_v16 = vsub.s32 2, %v43_v4  ;;  %v428_v17 = vsub.s32 3, %v43_v4  ;;  %v18_v58 = vld [vmem:[%s550_s0 + $0x20] sm:$0xff] }
   0x5   :  { %v430_v18 = vsub.s32 4, %v43_v4  ;;  %v432_v19 = vsub.s32 5, %v43_v4  ;;  %v29_v21 = vunpack.c.h.bf16 %v410_v7  ;;  %v460_v44 = vsub.s32 6, %v43_v4 }
   0x6   :  { %v45_v22 = vrot.slane %v415_v8, %v422_v14  ;;  %v49_v23 = vrot.slane %v415_v8, %v424_v15  ;;  %v145_v24 = vrot.slane %v420_v9, %v422_v14  ;;  %v149_v25 = vrot.slane %v420_v9, %v424_v15 }
   0x7   :  { %v53_v26 = vrot.slane %v415_v8, %v426_v16  ;;  %v57_v27 = vrot.slane %v415_v8, %v428_v17  ;;  %v153_v28 = vrot.slane %v420_v9, %v426_v16  ;;  %v157_v29 = vrot.slane %v420_v9, %v428_v17 }
   0x8   :  { %v122_v30 = vmul.f32 %v45_v22, %v22_v2  ;;  %v123_v31 = vmul.f32 %v49_v23, %v23_v3  ;;  %v61_v32 = vrot.slane %v415_v8, %v430_v18  ;;  %v65_v33 = vrot.slane %v415_v8, %v432_v19  ;;  %v484_v2 = vld [vmem:[%s552_s2 + $0x8] sm:$0xff] }
   0x9   :  { %v124_v34 = vmul.f32 %v53_v26, %v24_v10  ;;  %v125_v35 = vmul.f32 %v57_v27, %v25_v11  ;;  %v161_v36 = vrot.slane %v420_v9, %v430_v18  ;;  %v165_v37 = vrot.slane %v420_v9, %v432_v19 }
   0xa   :  { %v222_v38 = vadd.f32 %v145_v24, %v122_v30  ;;  %v223_v39 = vadd.f32 %v149_v25, %v123_v31  ;;  %v126_v40 = vmul.f32 %v61_v32, %v26_v12  ;;  %v127_v41 = vmul.f32 %v65_v33, %v27_v13  ;;  %v19_v12 = vld [vmem:[%s550_s0 + $0x28] sm:$0xff] }
   0xb   :  { %v224_v42 = vadd.f32 %v153_v28, %v124_v34  ;;  %v225_v43 = vadd.f32 %v157_v29, %v125_v35  ;;  %v462_v45 = vsub.s32 7, %v43_v4  ;;  %v69_v57 = vrot.slane %v415_v8, %v460_v44  ;;  %v20_v34 = vld [vmem:[%s550_s0 + $0x30] sm:$0xff] }
   0xc   :  { %vm238_vm0 = vcmp.gt.f32.partialorder %v222_v38, 0.0  ;;  %vm239_vm1 = vcmp.gt.f32.partialorder %v223_v39, 0.0  ;;  %v254_v46 = vmul.f32 0.01, %v222_v38  ;;  %v255_v47 = vmul.f32 0.01, %v223_v39 }
   0xd   :  { %vm240_vm2 = vcmp.gt.f32.partialorder %v224_v42, 0.0  ;;  %vm241_vm3 = vcmp.gt.f32.partialorder %v225_v43, 0.0  ;;  %v256_v48 = vmul.f32 0.01, %v224_v42  ;;  %v257_v49 = vmul.f32 0.01, %v225_v43 }
   0xe   :  { %v270_v50 = vsel %vm238_vm0, %v222_v38, %v254_v46  ;;  %v271_v51 = vsel %vm239_vm1, %v223_v39, %v255_v47  ;;  %v226_v52 = vadd.f32 %v161_v36, %v126_v40  ;;  %v227_v53 = vadd.f32 %v165_v37, %v127_v41 }
   0xf   :  { %v370_v54 = vpack.c.bf16 %v271_v51, %v270_v50  ;;  %v272_v55 = vsel %vm240_vm2, %v224_v42, %v256_v48  ;;  %v273_v56 = vsel %vm241_vm3, %v225_v43, %v257_v49  ;;  %v73_v63 = vrot.slane %v415_v8, %v462_v45  ;;  %v21_v49 = vld [vmem:[%s550_s0 + $0x38] sm:$0xff] }
  0x10   :  { %v371_v59 = vpack.c.bf16 %v273_v56, %v272_v55  ;;  %vm242_vm4 = vcmp.gt.f32.partialorder %v226_v52, 0.0  ;;  %vm243_vm5 = vcmp.gt.f32.partialorder %v227_v53, 0.0  ;;  %v258_v60 = vmul.f32 0.01, %v226_v52 }
  0x11   :  { %350 = vst [vmem:[%s553_s3] sm:$0xff] %v370_v54  ;;  %v259_v62 = vmul.f32 0.01, %v227_v53  ;;  %v128_v0 = vmul.f32 %v69_v57, %v28_v20  ;;  %v169_v1 = vrot.slane %v420_v9, %v460_v44  ;;  %v173_v4 = vrot.slane %v420_v9, %v462_v45 }
  0x12   :  { %351 = vst [vmem:[%s553_s3 + $0x8] sm:$0xff] %v371_v59  ;;  %v274_v3 = vsel %vm242_vm4, %v226_v52, %v258_v60  ;;  %v30_v5 = vunpack.c.l.bf16 %v18_v58  ;;  %v31_v6 = vunpack.c.h.bf16 %v18_v58  ;;  %v129_v8 = vmul.f32 %v73_v63, %v29_v21 }
  0x13   :  { %v275_v7 = vsel %vm243_vm5, %v227_v53, %v259_v62  ;;  %v228_v10 = vadd.f32 %v169_v1, %v128_v0  ;;  %v77_v11 = vrot.slane %v472_v61, %v422_v14  ;;  %v81_v20 = vrot.slane %v472_v61, %v424_v15 }
  0x14   :  { %v372_v13 = vpack.c.bf16 %v275_v7, %v274_v3  ;;  %v177_v22 = vrot.slane %v484_v2, %v422_v14  ;;  %v181_v9 = vrot.slane %v484_v2, %v424_v15  ;;  %v229_v23 = vadd.f32 %v173_v4, %v129_v8 }
  0x15   :  { %vm244_vm6 = vcmp.gt.f32.partialorder %v228_v10, 0.0  ;;  %v260_v21 = vmul.f32 0.01, %v228_v10  ;;  %v130_v24 = vmul.f32 %v77_v11, %v30_v5  ;;  %v131_v25 = vmul.f32 %v81_v20, %v31_v6 }
  0x16   :  { %352 = vst [vmem:[%s553_s3 + $0x10] sm:$0xff] %v372_v13  ;;  %v32_v26 = vunpack.c.l.bf16 %v19_v12  ;;  %v33_v27 = vunpack.c.h.bf16 %v19_v12  ;;  %v85_v28 = vrot.slane %v472_v61, %v426_v16  ;;  %vm245_vm7 = vcmp.gt.f32.partialorder %v229_v23, 0.0 }
  0x17   :  { %v261_v29 = vmul.f32 0.01, %v229_v23  ;;  %v276_v14 = vsel %vm244_vm6, %v228_v10, %v260_v21  ;;  %v230_v30 = vadd.f32 %v177_v22, %v130_v24  ;;  %v231_v31 = vadd.f32 %v181_v9, %v131_v25 }
  0x18   :  { %v89_v15 = vrot.slane %v472_v61, %v428_v17  ;;  %v132_v32 = vmul.f32 %v85_v28, %v32_v26  ;;  %v185_v33 = vrot.slane %v484_v2, %v426_v16  ;;  %v189_v37 = vrot.slane %v484_v2, %v428_v17 }
  0x19   :  { %v277_v35 = vsel %vm245_vm7, %v229_v23, %v261_v29  ;;  %vm246_vm8 = vcmp.gt.f32.partialorder %v230_v30, 0.0  ;;  %v262_v36 = vmul.f32 0.01, %v230_v30  ;;  %vm247_vm9 = vcmp.gt.f32.partialorder %v231_v31, 0.0 }
  0x1a   :  { %v373_v38 = vpack.c.bf16 %v277_v35, %v276_v14  ;;  %v263_v39 = vmul.f32 0.01, %v231_v31  ;;  %v133_v40 = vmul.f32 %v89_v15, %v33_v27  ;;  %v232_v42 = vadd.f32 %v185_v33, %v132_v32 }
  0x1b   :  { %v278_v41 = vsel %vm246_vm8, %v230_v30, %v262_v36  ;;  %v34_v43 = vunpack.c.l.bf16 %v20_v34  ;;  %v35_v46 = vunpack.c.h.bf16 %v20_v34  ;;  %v93_v48 = vrot.slane %v472_v61, %v430_v18 }
  0x1c   :  { %353 = vst [vmem:[%s553_s3 + $0x18] sm:$0xff] %v373_v38  ;;  %v279_v16 = vsel %vm247_vm9, %v231_v31, %v263_v39  ;;  %v233_v47 = vadd.f32 %v189_v37, %v133_v40  ;;  %v97_v17 = vrot.slane %v472_v61, %v432_v19  ;;  %vm248_vm10 = vcmp.gt.f32.partialorder %v232_v42, 0.0 }
  0x1d   :  { %v374_v50 = vpack.c.bf16 %v279_v16, %v278_v41  ;;  %v264_v51 = vmul.f32 0.01, %v232_v42  ;;  %v193_v52 = vrot.slane %v484_v2, %v430_v18  ;;  %v134_v54 = vmul.f32 %v93_v48, %v34_v43 }
  0x1e   :  { %vm249_vm11 = vcmp.gt.f32.partialorder %v233_v47, 0.0  ;;  %v265_v53 = vmul.f32 0.01, %v233_v47  ;;  %v135_v55 = vmul.f32 %v97_v17, %v35_v46  ;;  %v197_v57 = vrot.slane %v484_v2, %v432_v19 }
  0x1f   :  { %354 = vst [vmem:[%s553_s3 + $0x20] sm:$0xff] %v374_v50  ;;  %v280_v56 = vsel %vm248_vm10, %v232_v42, %v264_v51  ;;  %v36_v58 = vunpack.c.l.bf16 %v21_v49  ;;  %v37_v59 = vunpack.c.h.bf16 %v21_v49  ;;  %v234_v62 = vadd.f32 %v193_v52, %v134_v54 }
  0x20   :  { %v281_v60 = vsel %vm249_vm11, %v233_v47, %v265_v53  ;;  %v101_v63 = vrot.slane %v472_v61, %v460_v44  ;;  %v105_v18 = vrot.slane %v472_v61, %v462_v45  ;;  %v235_v1 = vadd.f32 %v197_v57, %v135_v55 }
  0x21   :  { %v375_v0 = vpack.c.bf16 %v281_v60, %v280_v56  ;;  %v201_v3 = vrot.slane %v484_v2, %v460_v44  ;;  %v205_v4 = vrot.slane %v484_v2, %v462_v45  ;;  %vm250_vm12 = vcmp.gt.f32.partialorder %v234_v62, 0.0 }
  0x22   :  { %v266_v19 = vmul.f32 0.01, %v234_v62  ;;  %v136_v5 = vmul.f32 %v101_v63, %v36_v58  ;;  %v137_v6 = vmul.f32 %v105_v18, %v37_v59  ;;  %vm251_vm13 = vcmp.gt.f32.partialorder %v235_v1, 0.0 }
  0x23   :  { %355 = vst [vmem:[%s553_s3 + $0x28] sm:$0xff] %v375_v0  ;;  %v267_v7 = vmul.f32 0.01, %v235_v1 }
  0x24   :  { %v282_v8 = vsel %vm250_vm12, %v234_v62, %v266_v19  ;;  %v236_v61 = vadd.f32 %v201_v3, %v136_v5  ;;  %v237_v10 = vadd.f32 %v205_v4, %v137_v6 }
  0x25   :  { %v283_v11 = vsel %vm251_vm13, %v235_v1, %v267_v7 }
  0x26   :  { %v376_v12 = vpack.c.bf16 %v283_v11, %v282_v8  ;;  %vm252_vm14 = vcmp.gt.f32.partialorder %v236_v61, 0.0  ;;  %vm253_vm15 = vcmp.gt.f32.partialorder %v237_v10, 0.0  ;;  %v268_v44 = vmul.f32 0.01, %v236_v61 }
  0x27   :  { %v269_v13 = vmul.f32 0.01, %v237_v10 }
  0x28   :  { %356 = vst [vmem:[%s553_s3 + $0x30] sm:$0xff] %v376_v12  ;;  %v284_v45 = vsel %vm252_vm14, %v236_v61, %v268_v44 }
  0x29   :  { %v285_v2 = vsel %vm253_vm15, %v237_v10, %v269_v13 }
  0x2a   :  { %v377_v20 = vpack.c.bf16 %v285_v2, %v284_v45 }
  0x2c   :  { %357 = vst [vmem:[%s553_s3 + $0x38] sm:$0xff] %v377_v20 }

// kernel: autoencoder_forward.30
= control target key start
LH: loop header
LB: loop body
LE: loop exit
PB: predicated region body
PF: predicated region fallthrough
CT: control target
= control target key end

     0   :  { %s1583_s24 = smov 0   ;;  %s1585_s25 = smov 0   ;;  %s1747_s0 = inlined_call_operand.vmem [shape: bf16[8,2048], index: 0, kind: input, shape index: {}]   ;;  %s1748_s1 = inlined_call_operand.vmem [shape: bf16[2048,256], index: 1, kind: input, shape index: {}]   ;;  %s1749_s2 = inlined_call_operand.vmem [shape: f32[1,256], index: 2, kind: input, shape index: {}]   ;;  %s1750_s3 = inlined_call_operand.vmem [shape: f32[1,2048], index: 3, kind: input, shape index: {}]   ;;  %s1751_s4 = inlined_call_operand.vmem [shape: f32[1,2048], index: 4, kind: input, shape index: {}]   ;;  %s1752_s5 = inlined_call_operand.vmem [shape: bf16[8,256], index: 5, kind: output, shape index: {0}]   ;;  %s1753_s6 = inlined_call_operand.vmem [shape: f32[8,256], index: 6, kind: output, shape index: {1}]   ;;  %s1754_s7 = inlined_call_operand.vmem [shape: f32[8,256], index: 7, kind: output, shape index: {2}]  }
   0x1   :  { %s1587_s26 = smov 0  }
   0x2 LB: > { %s30_s27 = sadd.s32 1, %s1536_s25  ;;  %p1312_p0 = scmp.ge.s32.totalorder %s1540_s26, 1  ;;  %s1540_s26 = sphi %s1587_s26, %s18_s26   ;;  %s1536_s25 = sphi %s1585_s25, %s1756_s25   ;;  %s1532_s24 = sphi %s1583_s24, %s1755_s24  }
   0x3   : > { %p31_p1 = scmp.ge.s32.totalorder %s30_s27, 4  ;;  %p323_p2 = scmp.lt.s32.totalorder %s1540_s26, 5 }
   0x5   : > { %s1758_s27 = smov (%p31_p1, %s30_s27), 0  ;;  %p324_p3 = pnand %p1312_p0, %p323_p2 }
   0x6   : > { %s1313_s28 = sshll.u32 (!%p324_p3), %s1532_s24, 2  ;;  %s1315_s29 = sshll.u32 (!%p324_p3), %s1532_s24, 6 }
   0x7   : > { %327 = sbr.rel (%p324_p3) target bundleno = 313 (0x139), region = 40  ;;  %p406_p4 = scmp.lt.s32.totalorder (!%p324_p3), %s1313_s28, 15 }
   0x8   : > { %p415_p5 = scmp.lt.s32.totalorder (!%p324_p3), %s1315_s29, 255  ;;  %p1320_p6 = scmp.ne.s32.totalorder (!%p324_p3), %s1532_s24, 0 }
   0xc   : > { %s1760_s28 = smov (!%p406_p4, %s1313_s28), 15  ;;  %s1762_s29 = smov (!%p415_p5, %s1315_s29), 255 }
   0xd   : > { %s1314_s30 = sshll.u32 %s1760_s28, 2  ;;  %s433_s10 = scalar_lea.vmem %s1750_s3, %s1760_s28 }
   0xe   : > { %s1615_s13 = scalar_lea.vmem %s1747_s0, %s1314_s30  ;;  %s1395_s14 = sshll.u32 %s1762_s29, 3 }
   0xf   : > { %s1620_s17 = scalar_lea.vmem %s1748_s1, %s1395_s14  ;;  %s438_s20 = scalar_lea.vmem %s1751_s4, %s1760_s28 }
  0x10   : > { %474 = sbr.rel (%p1320_p6) target bundleno = 23 (0x17), region = 44 }
  0x15   : > { %v1542_v0 = vmov 0.0  }
  0x16   : > { %475 = vst [vmem:[#allocation2] sm:$0xff] %v1542_v0  ;;  %476 = vst [vmem:[#allocation2 + $0x8] sm:$0xff] %v1542_v0 }
  0x17 PF: > { %v1422_v1 = vld [vmem:[%s1620_s17 + $0x74] ss:$8 sps:$4 sm:$0xff]   ;;  %v1426_v3 = vld [vmem:[%s1620_s17 + $0x70] ss:$8 sps:$4 sm:$0xff]   ;;  %v1428_v5 = vld [vmem:[%s1620_s17 + $0x64] ss:$8 sps:$4 sm:$0xff]   ;;  %v485_v38 = vlaneseq }
  0x18   : > { %v1424_v2 = vld [vmem:[%s1620_s17 + $0x174] ss:$8 sps:$4 sm:$0xff]   ;;  %925 = vmatprep.subr.bf16.mxu0 %v1422_v1  ;;  %v1427_v4 = vld [vmem:[%s1620_s17 + $0x170] ss:$8 sps:$4 sm:$0xff]   ;;  %v1430_v6 = vld [vmem:[%s1620_s17 + $0x164] ss:$8 sps:$4 sm:$0xff]  }
  0x19   : > { %966 = vmatprep.subr.bf16.mxu1 %v1424_v2  ;;  %926 = vmatpush1.bf16.msra.mxu0 %v1426_v3  ;;  %v1432_v7 = vld [vmem:[%s1620_s17 + $0x60] ss:$8 sps:$4 sm:$0xff]   ;;  %v1434_v9 = vld [vmem:[%s1620_s17 + $0x54] ss:$8 sps:$4 sm:$0xff]   ;;  %v1438_v11 = vld [vmem:[%s1620_s17 + $0x50] ss:$8 sps:$4 sm:$0xff]  }
  0x1a   : > { %967 = vmatpush1.bf16.msra.mxu1 %v1427_v4  ;;  %927 = vmatprep.subr.bf16.mxu0 %v1428_v5  ;;  %v1433_v8 = vld [vmem:[%s1620_s17 + $0x160] ss:$8 sps:$4 sm:$0xff]   ;;  %v1436_v10 = vld [vmem:[%s1620_s17 + $0x154] ss:$8 sps:$4 sm:$0xff]   ;;  %v1439_v12 = vld [vmem:[%s1620_s17 + $0x150] ss:$8 sps:$4 sm:$0xff]  }
  0x1b   : > { %968 = vmatprep.subr.bf16.mxu1 %v1430_v6  ;;  %v1440_v13 = vld [vmem:[%s1620_s17 + $0x44] ss:$8 sps:$4 sm:$0xff]   ;;  %v1444_v15 = vld [vmem:[%s1620_s17 + $0x40] ss:$8 sps:$4 sm:$0xff]   ;;  %v1446_v17 = vld [vmem:[%s1620_s17 + $0x34] ss:$8 sps:$4 sm:$0xff]  }
  0x1c   : > { %v1442_v14 = vld [vmem:[%s1620_s17 + $0x144] ss:$8 sps:$4 sm:$0xff]   ;;  %v1445_v16 = vld [vmem:[%s1620_s17 + $0x140] ss:$8 sps:$4 sm:$0xff]   ;;  %v1448_v18 = vld [vmem:[%s1620_s17 + $0x134] ss:$8 sps:$4 sm:$0xff]  }
  0x1d   : > { %928 = vmatpush1.bf16.msra.mxu0 %v1432_v7  ;;  %v1450_v19 = vld [vmem:[%s1620_s17 + $0x30] ss:$8 sps:$4 sm:$0xff]   ;;  %v1452_v21 = vld [vmem:[%s1620_s17 + $0x24] ss:$8 sps:$4 sm:$0xff]   ;;  %v1456_v23 = vld [vmem:[%s1620_s17 + $0x20] ss:$8 sps:$4 sm:$0xff]  }
  0x1e   : > { %969 = vmatpush1.bf16.msra.mxu1 %v1433_v8  ;;  %929 = vmatprep.subr.bf16.mxu0 %v1434_v9  ;;  %v1451_v20 = vld [vmem:[%s1620_s17 + $0x130] ss:$8 sps:$4 sm:$0xff]   ;;  %v1454_v22 = vld [vmem:[%s1620_s17 + $0x124] ss:$8 sps:$4 sm:$0xff]   ;;  %v1457_v24 = vld [vmem:[%s1620_s17 + $0x120] ss:$8 sps:$4 sm:$0xff]  }
  0x1f   : > { %970 = vmatprep.subr.bf16.mxu1 %v1436_v10  ;;  %v1458_v25 = vld [vmem:[%s1620_s17 + $0x14] ss:$8 sps:$4 sm:$0xff]   ;;  %v1462_v27 = vld [vmem:[%s1620_s17 + $0x10] ss:$8 sps:$4 sm:$0xff]   ;;  %v1464_v29 = vld [vmem:[%s1620_s17 + $0x4] ss:$8 sps:$4 sm:$0xff]  }
  0x20   : > { %v1460_v26 = vld [vmem:[%s1620_s17 + $0x114] ss:$8 sps:$4 sm:$0xff]   ;;  %v1463_v28 = vld [vmem:[%s1620_s17 + $0x110] ss:$8 sps:$4 sm:$0xff]   ;;  %v1466_v30 = vld [vmem:[%s1620_s17 + $0x104] ss:$8 sps:$4 sm:$0xff]  }
  0x21   : > { %930 = vmatpush1.bf16.msra.mxu0 %v1438_v11  ;;  %v1468_v31 = vld [vmem:[%s1620_s17] ss:$8 sps:$4 sm:$0xff]   ;;  %v1470_v33 = vld [vmem:[%s1620_s17 + $0xf4] ss:$8 sps:$4 sm:$0xff]   ;;  %v1474_v35 = vld [vmem:[%s1620_s17 + $0xf0] ss:$8 sps:$4 sm:$0xff]  }
  0x22   : > { %971 = vmatpush1.bf16.msra.mxu1 %v1439_v12  ;;  %931 = vmatprep.subr.bf16.mxu0 %v1440_v13  ;;  %v1469_v32 = vld [vmem:[%s1620_s17 + $0x100] ss:$8 sps:$4 sm:$0xff]   ;;  %v1472_v34 = vld [vmem:[%s1620_s17 + $0x1f4] ss:$8 sps:$4 sm:$0xff]   ;;  %v1475_v36 = vld [vmem:[%s1620_s17 + $0x1f0] ss:$8 sps:$4 sm:$0xff]  }
  0x23   : > { %972 = vmatprep.subr.bf16.mxu1 %v1442_v14  ;;  %v1476_v37 = vld [vmem:[%s1620_s17 + $0xe4] ss:$8 sps:$4 sm:$0xff]   ;;  %v1480_v40 = vld [vmem:[%s1620_s17 + $0xe0] ss:$8 sps:$4 sm:$0xff]   ;;  %v1482_v42 = vld [vmem:[%s1620_s17 + $0xd4] ss:$8 sps:$4 sm:$0xff]  }
  0x24   : > { %v1478_v39 = vld [vmem:[%s1620_s17 + $0x1e4] ss:$8 sps:$4 sm:$0xff]   ;;  %v1481_v41 = vld [vmem:[%s1620_s17 + $0x1e0] ss:$8 sps:$4 sm:$0xff]   ;;  %v1668_v43 = vshrl.u32 %v485_v38, 7  ;;  %p1385_p7 = scmp.ne.s32.totalorder %s1532_s24, 3 }
  0x25   : > { %932 = vmatpush1.bf16.msra.mxu0 %v1444_v15  ;;  %v1484_v44 = vld [vmem:[%s1620_s17 + $0x1d4] ss:$8 sps:$4 sm:$0xff]   ;;  %v1486_v45 = vld [vmem:[%s1620_s17 + $0xd0] ss:$8 sps:$4 sm:$0xff]   ;;  %v1488_v47 = vld [vmem:[%s1620_s17 + $0xc4] ss:$8 sps:$4 sm:$0xff]  }
  0x26   : > { %973 = vmatpush1.bf16.msra.mxu1 %v1445_v16  ;;  %933 = vmatprep.subr.bf16.mxu0 %v1446_v17  ;;  %v1487_v46 = vld [vmem:[%s1620_s17 + $0x1d0] ss:$8 sps:$4 sm:$0xff]   ;;  %v1675_v48 = vsub.s32 1, %v1668_v43  ;;  %v1490_v49 = vld [vmem:[%s1620_s17 + $0x1c4] ss:$8 sps:$4 sm:$0xff]   ;;  %v499_v50 = vsub.s32 3, %v1668_v43 }
  0x27   : > { %974 = vmatprep.subr.bf16.mxu1 %v1448_v18  ;;  %v477_v51 = vld [vmem:[%s1615_s13] sm:$0xff]  ;;  %v478_v55 = vld [vmem:[%s1615_s13 + $0x8] sm:$0xff]  ;;  %v1494_v61 = vld [vmem:[%s1620_s17 + $0xb4] ss:$8 sps:$4 sm:$0xff]   ;;  %v1698_v3 = vsub.s32 0, %v1668_v43  ;;  %v495_v4 = vsub.s32 2, %v1668_v43 }
  0x28   : > { %v480_v52 = vunpack.c.h.bf16 %v477_v51  ;;  %v483_v53 = vld [vmem:[%s433_s10] sm:$0xf]  ;;  %v482_v60 = vunpack.c.h.bf16 %v478_v55  ;;  %v1496_v62 = vld [vmem:[%s1620_s17 + $0x1b4] ss:$8 sps:$4 sm:$0xff]   ;;  %v1498_v5 = vld [vmem:[%s1620_s17 + $0xb0] ss:$8 sps:$4 sm:$0xff]   ;;  %v479_v11 = vunpack.c.l.bf16 %v477_v51  ;;  %v481_v13 = vunpack.c.l.bf16 %v478_v55 }
  0x29   : > { %934 = vmatpush1.bf16.msra.mxu0 %v1450_v19  ;;  %v509_v54 = vld [vmem:[%s438_s20] sm:$0xf]  ;;  %v492_v58 = vrot.slane %v483_v53, %v1675_v48  ;;  %v500_v63 = vrot.slane %v483_v53, %v499_v50  ;;  %v1499_v6 = vld [vmem:[%s1620_s17 + $0x1b0] ss:$8 sps:$4 sm:$0xff]   ;;  %v1500_v8 = vld [vmem:[%s1620_s17 + $0xa4] ss:$8 sps:$4 sm:$0xff]   ;;  %v488_v15 = vrot.slane %v483_v53, %v1698_v3  ;;  %v496_v16 = vrot.slane %v483_v53, %v495_v4 }
  0x2a   : > { %975 = vmatpush1.bf16.msra.mxu1 %v1451_v20  ;;  %935 = vmatprep.subr.bf16.mxu0 %v1452_v21  ;;  %v1492_v56 = vld [vmem:[%s1620_s17 + $0xc0] ss:$8 sps:$4 sm:$0xff]   ;;  %v518_v59 = vrot.slane %v509_v54, %v1675_v48  ;;  %v526_v0 = vrot.slane %v509_v54, %v499_v50  ;;  %v1502_v9 = vld [vmem:[%s1620_s17 + $0x1a4] ss:$8 sps:$4 sm:$0xff]   ;;  %v1506_v19 = vld [vmem:[%s1620_s17 + $0x94] ss:$8 sps:$4 sm:$0xff]  }
  0x2b   : > { %976 = vmatprep.subr.bf16.mxu1 %v1454_v22  ;;  %v1493_v57 = vld [vmem:[%s1620_s17 + $0x1c0] ss:$8 sps:$4 sm:$0xff]   ;;  %v506_v1 = vmul.f32 %v492_v58, %v480_v52  ;;  %v508_v2 = vmul.f32 %v500_v63, %v482_v60  ;;  %v1508_v20 = vld [vmem:[%s1620_s17 + $0x194] ss:$8 sps:$4 sm:$0xff]   ;;  %v505_v21 = vmul.f32 %v488_v15, %v479_v11  ;;  %v514_v22 = vrot.slane %v509_v54, %v1698_v3 }
  0x2c   : > { %v1504_v17 = vld [vmem:[%s1620_s17 + $0xa0] ss:$8 sps:$4 sm:$0xff]  }
  0x2d   : > { %936 = vmatpush1.bf16.msra.mxu0 %v1456_v23  ;;  %v532_v7 = vadd.f32 %v518_v59, %v506_v1  ;;  %v534_v10 = vadd.f32 %v526_v0, %v508_v2  ;;  %v1505_v18 = vld [vmem:[%s1620_s17 + $0x1a0] ss:$8 sps:$4 sm:$0xff]   ;;  %v507_v23 = vmul.f32 %v496_v16, %v481_v13 }
  0x2e   : > { %977 = vmatpush1.bf16.msra.mxu1 %v1457_v24  ;;  %937 = vmatprep.subr.bf16.mxu0 %v1458_v25  ;;  %v522_v24 = vrot.slane %v509_v54, %v495_v4  ;;  %v1510_v25 = vld [vmem:[%s1620_s17 + $0x90] ss:$8 sps:$4 sm:$0xff]  }
  0x2f   : > { %978 = vmatprep.subr.bf16.mxu1 %v1460_v26  ;;  %v538_v12 = vpack.c.bf16 %v532_v7, %v532_v7  ;;  %v540_v14 = vpack.c.bf16 %v534_v10, %v534_v10  ;;  %v1511_v26 = vld [vmem:[%s1620_s17 + $0x190] ss:$8 sps:$4 sm:$0xff]  }
  0x31   : > { %938 = vmatpush1.bf16.msra.mxu0 %v1462_v27  ;;  %957 = vmatprep.mubr.bf16.mxu0 %v538_v12  ;;  %v1512_v27 = vld [vmem:[%s1620_s17 + $0x84] ss:$8 sps:$4 sm:$0xff]  }
  0x32   : > { %979 = vmatpush1.bf16.msra.mxu1 %v1463_v28  ;;  %939 = vmatprep.subr.bf16.mxu0 %v1464_v29  ;;  %v1514_v28 = vld [vmem:[%s1620_s17 + $0x184] ss:$8 sps:$4 sm:$0xff]   ;;  %v531_v29 = vadd.f32 %v514_v22, %v505_v21 }
  0x33   : > { %980 = vmatprep.subr.bf16.mxu1 %v1466_v30  ;;  %998 = vmatprep.mubr.bf16.mxu1 %v540_v14  ;;  %v533_v30 = vadd.f32 %v522_v24, %v507_v23 }
  0x35   : > { %940 = vmatpush1.bf16.msra.mxu0 %v1468_v31  ;;  %v1516_v31 = vld [vmem:[%s1620_s17 + $0x80] ss:$8 sps:$4 sm:$0xff]  }
  0x36   : > { %981 = vmatpush1.bf16.msra.mxu1 %v1469_v32  ;;  %941 = vmatprep.subr.bf16.mxu0 %v1470_v33  ;;  %v1517_v32 = vld [vmem:[%s1620_s17 + $0x180] ss:$8 sps:$4 sm:$0xff]   ;;  %v537_v33 = vpack.c.bf16 %v531_v29, %v531_v29 }
  0x37   : > { %982 = vmatprep.subr.bf16.mxu1 %v1472_v34  ;;  %v539_v34 = vpack.c.bf16 %v533_v30, %v533_v30 }
  0x39   : > { %942 = vmatpush2.bf16.msra.mxu0 %v1474_v35 }
  0x3a   : > { %983 = vmatpush2.bf16.msra.mxu1 %v1475_v36  ;;  %943 = vmatprep.subr.bf16.mxu0 %v1476_v37  ;;  %v535_v36 = vld [vmem:[#allocation2] sm:$0xff] }
  0x3b   : > { %984 = vmatprep.subr.bf16.mxu1 %v1478_v39 }
  0x3d   : > { %944 = vmatpush2.bf16.msra.mxu0 %v1480_v40  ;;  %v536_v40 = vld [vmem:[#allocation2 + $0x8] sm:$0xff] }
  0x3e   : > { %985 = vmatpush2.bf16.msra.mxu1 %v1481_v41  ;;  %945 = vmatprep.subr.bf16.mxu0 %v1482_v42 }
  0x3f   : > { %986 = vmatprep.subr.bf16.mxu1 %v1484_v44 }
  0x41   : > { %946 = vmatpush2.bf16.msra.mxu0 %v1486_v45 }
  0x42   : > { %987 = vmatpush2.bf16.msra.mxu1 %v1487_v46  ;;  %947 = vmatprep.subr.bf16.mxu0 %v1488_v47 }
  0x43   : > { %988 = vmatprep.subr.bf16.mxu1 %v1490_v49 }
  0x45   : > { %948 = vmatpush2.bf16.msra.mxu0 %v1492_v56 }
  0x46   : > { %989 = vmatpush2.bf16.msra.mxu1 %v1493_v57  ;;  %949 = vmatprep.subr.bf16.mxu0 %v1494_v61 }
  0x47   : > { %990 = vmatprep.subr.bf16.mxu1 %v1496_v62 }
  0x49   : > { %950 = vmatpush2.bf16.msra.mxu0 %v1498_v5 }
  0x4a   : > { %991 = vmatpush2.bf16.msra.mxu1 %v1499_v6  ;;  %951 = vmatprep.subr.bf16.mxu0 %v1500_v8 }
  0x4b   : > { %992 = vmatprep.subr.bf16.mxu1 %v1502_v9 }
  0x4d   : > { %952 = vmatpush2.bf16.msra.mxu0 %v1504_v17 }
  0x4e   : > { %993 = vmatpush2.bf16.msra.mxu1 %v1505_v18  ;;  %953 = vmatprep.subr.bf16.mxu0 %v1506_v19 }
  0x4f   : > { %994 = vmatprep.subr.bf16.mxu1 %v1508_v20 }
  0x51   : > { %954 = vmatpush2.bf16.msra.mxu0 %v1510_v25 }
  0x52   : > { %995 = vmatpush2.bf16.msra.mxu1 %v1511_v26  ;;  %955 = vmatprep.subr.bf16.mxu0 %v1512_v27 }
  0x53   : > { %996 = vmatprep.subr.bf16.mxu1 %v1514_v28 }
  0x55   : > { %956 = vmatpush2.bf16.msra.mxu0 %v1516_v31 }
  0x56   : > { %997 = vmatpush2.bf16.msra.mxu1 %v1517_v32 }
  0x58   : > { %958 = vmatmul.mubr.bf16.vlgmr.msra.gmra.mxu0 %v537_v33 }
  0x59   : > { %999 = vmatmul.mubr.bf16.vlgmr.msra.gmra.mxu1 %v539_v34 }
 0x118   : > { %v959_v35 = vpop.f32.mrf.mxu0 }
 0x119   : > { %v1000_v37 = vpop.f32.mrf.mxu1 }
 0x11a   : > { %v1001_v38 = vadd.f32 %v1000_v37, %v959_v35  ;;  %v961_v39 = vpop.f32.mrf.mxu0 }
 0x11b   : > { %v1002_v41 = vpop.f32.mrf.mxu1 }
 0x11c   : > { %v1007_v42 = vadd.f32 %v1001_v38, %v535_v36  ;;  %v1003_v43 = vadd.f32 %v1002_v41, %v961_v39  ;;  %v963_v44 = vpop.f32.mrf.mxu0  ;;  %1014 = sbr.rel (%p1385_p7) target bundleno = 313 (0x139), region = 48 }
 0x11d   : > { %v1004_v45 = vpop.f32.mrf.mxu1 }
 0x11e   : > { %1009 = vst [vmem:[#allocation2] sm:$0xff] %v1007_v42  ;;  %v1008_v46 = vadd.f32 %v1003_v43, %v536_v40  ;;  %v964_v47 = vpop.f32.mrf.mxu0 }
 0x11f   : > { %v1005_v49 = vpop.f32.mrf.mxu1 }
 0x120   : > { %1010 = vst [vmem:[#allocation2 + $0x8] sm:$0xff] %v1008_v46 }
 0x121   : > { %v1017_v52 = vld [vmem:[%s1749_s2] sm:$0x3] }
 0x122   : > { %v1022_v53 = vrot.slane %v1017_v52, %v1698_v3  ;;  %v1026_v54 = vrot.slane %v1017_v52, %v1675_v48 }
 0x125   : > { %v1015_v50 = vld [vmem:[#allocation2] sm:$0xff] }
 0x126   : > { %v1029_v55 = vadd.f32 %v1022_v53, %v1015_v50 }
 0x127   : > { %v1016_v51 = vld [vmem:[#allocation2 + $0x8] sm:$0xff] }
 0x128   : > { %v1030_v56 = vadd.f32 %v1026_v54, %v1016_v51  ;;  %v1049_v58 = vrot.slane %v1029_v55, 4  ;;  %v1061_v60 = vmul.f32 %v1029_v55, %v1029_v55 }
 0x12a   : > { %v1396_v57 = vpack.c.bf16 %v1030_v56, %v1029_v55  ;;  %v1055_v59 = vrot.slane %v1030_v56, 4  ;;  %v1062_v61 = vmul.f32 %v1030_v56, %v1030_v56  ;;  %v1050_v62 = vadd.f32 %v1049_v58, %v1029_v55 }
 0x12b   : > { %v1063_v0 = vrot.slane %v1061_v60, 4 }
 0x12c   : > { %1039 = vst [vmem:[%s1752_s5] sm:$0xff] %v1396_v57  ;;  %v1056_v63 = vadd.f32 %v1055_v59, %v1030_v56  ;;  %v1069_v1 = vrot.slane %v1062_v61, 4  ;;  %v1051_v2 = vrot.slane %v1050_v62, 2 }
 0x12d   : > { %v1064_v3 = vadd.f32 %v1063_v0, %v1061_v60 }
 0x12e   : > { %v1057_v4 = vrot.slane %v1056_v63, 2  ;;  %v1070_v5 = vadd.f32 %v1069_v1, %v1062_v61  ;;  %v1052_v48 = vadd.f32 %v1051_v2, %v1050_v62 }
 0x12f   : > { %v1065_v7 = vrot.slane %v1064_v3, 2 }
 0x130   : > { %v1058_v6 = vadd.f32 %v1057_v4, %v1056_v63  ;;  %v1071_v8 = vrot.slane %v1070_v5, 2  ;;  %v1053_v9 = vrot.slane %v1052_v48, 1 }
 0x131   : > { %v1066_v11 = vadd.f32 %v1065_v7, %v1064_v3 }
 0x132   : > { %v1059_v10 = vrot.slane %v1058_v6, 1  ;;  %v1072_v12 = vadd.f32 %v1071_v8, %v1070_v5  ;;  %v1054_v13 = vadd.f32 %v1053_v9, %v1052_v48 }
 0x133   : > { %v1067_v15 = vrot.slane %v1066_v11, 1 }
 0x134   : > { %v1060_v14 = vadd.f32 %v1059_v10, %v1058_v6  ;;  %v1073_v16 = vrot.slane %v1072_v12, 1  ;;  %1075 = vst [vmem:[%s1753_s6] sm:$0xff] %v1054_v13 }
 0x135   : > { %v1068_v17 = vadd.f32 %v1067_v15, %v1066_v11 }
 0x136   : > { %1076 = vst [vmem:[%s1753_s6 + $0x8] sm:$0xff] %v1060_v14  ;;  %v1074_v18 = vadd.f32 %v1073_v16, %v1072_v12 }
 0x137   : > { %1077 = vst [vmem:[%s1754_s7] sm:$0xff] %v1068_v17 }
 0x138   : > { %1078 = vst [vmem:[%s1754_s7 + $0x8] sm:$0xff] %v1074_v18 }
 0x139 PF: > { %s18_s26 = sadd.s32 1, %s1540_s26   ;;  %s1755_s24 = smov %s1536_s25 }
 0x13a   : > { %p15_p8 = scmp.ge.s32.totalorder %s18_s26, 6   ;;  %s1756_s25 = smov %s1758_s27 }
 0x13c   :  { %17 = sbr.rel (!%p15_p8) target bundleno = 2 (0x2), region = 114 }

// kernel: autoencoder_forward.34
= control target key start
LH: loop header
LB: loop body
LE: loop exit
PB: predicated region body
PF: predicated region fallthrough
CT: control target
= control target key end

     0   :  { %s1580_s24 = smov 0   ;;  %s1582_s25 = smov 0   ;;  %s1775_s0 = inlined_call_operand.vmem [shape: bf16[32,1024], index: 0, kind: input, shape index: {}]   ;;  %s1776_s1 = inlined_call_operand.vmem [shape: bf16[1024,128], index: 1, kind: input, shape index: {}]   ;;  %s1777_s2 = inlined_call_operand.vmem [shape: f32[1,128], index: 2, kind: input, shape index: {}]   ;;  %s1778_s3 = inlined_call_operand.vmem [shape: f32[1,1024], index: 3, kind: input, shape index: {}]   ;;  %s1779_s4 = inlined_call_operand.vmem [shape: f32[1,1024], index: 4, kind: input, shape index: {}]   ;;  %s1780_s5 = inlined_call_operand.vmem [shape: bf16[32,128], index: 5, kind: output, shape index: {0}]   ;;  %s1781_s6 = inlined_call_operand.vmem [shape: f32[8,128], index: 6, kind: output, shape index: {1}]   ;;  %s1782_s7 = inlined_call_operand.vmem [shape: f32[8,128], index: 7, kind: output, shape index: {2}]  }
   0x1   :  { %s1584_s26 = smov 0   ;;  %s1586_s27 = smov 0  }
   0x2   :  { %s1588_s28 = smov 0  }
   0x3 LB: > { %s30_s29 = sadd.s32 1, %s1533_s27  ;;  %p53_p1 = scmp.ne.s32.totalorder %s1525_s25, %s1521_s24  ;;  %s1537_s28 = sphi %s1588_s28, %s18_s28   ;;  %s1533_s27 = sphi %s1586_s27, %s1786_s27   ;;  %s1529_s26 = sphi %s1584_s26, %s1785_s26   ;;  %s1525_s25 = sphi %s1582_s25, %s1784_s25   ;;  %s1521_s24 = sphi %s1580_s24, %s1783_s24  }
   0x4   : > { %p31_p0 = scmp.ge.s32.totalorder %s30_s29, 2  ;;  %p54_p2 = scmp.eq.s32.totalorder %s1537_s28, 0 }
   0x5   : > { %s46_s8 = sadd.s32 1, %s1525_s25  ;;  %p1299_p5 = scmp.ge.s32.totalorder %s1537_s28, 2 }
   0x6   : > { %s1788_s29 = smov (%p31_p0, %s30_s29), 0  ;;  %p55_p3 = por %p54_p2, %p53_p1 }
   0x7   : > { %s42_s30 = ssub.s32 %s1533_s27, %s1788_s29  ;;  %275 = sbr.rel (%p1299_p5) target bundleno = 20 (0x14), region = 20 }
   0x8   : > { %p44_p4 = scmp.eq.s32.totalorder %s42_s30, 0 }
   0xa   : > { %s1615_s9 = scalar_select %p44_p4, %s1525_s25, %s46_s8  }
   0xc   : > { %278 = sbr.rel (!%p55_p3) target bundleno = 20 (0x14), region = 24  ;;  %s280_s10 = sand.u32 (%p55_p3), 1, %s1525_s25  }
   0xd   : > { %s1354_s11 = sshll.u32 (%p55_p3), %s1533_s27, 4  ;;  %s1300_s12 = sshll.u32 (%p55_p3), %s280_s10, 6 }
   0xe   : > { %s288_s15 = scalar_lea.vmem (%p55_p3), %s1775_s0, %s1354_s11  ;;  %s282_s16 = scalar_lea.vmem (%p55_p3), [#allocation3], %s1300_s12 }
   0xf   : > { %v301_v0 = vld [vmem:[%s288_s15] sm:$0xff] (%p55_p3)  ;;  %v303_v1 = vld [vmem:[%s288_s15 + $0x8] sm:$0xff] (%p55_p3) }
  0x10   : > { %v305_v2 = vld [vmem:[%s288_s15 + $0x20] sm:$0xff] (%p55_p3)  ;;  %302 = vst [vmem:[%s282_s16] sm:$0xff] (%p55_p3), %v301_v0  ;;  %304 = vst [vmem:[%s282_s16 + $0x8] sm:$0xff] (%p55_p3), %v303_v1  ;;  %v307_v3 = vld [vmem:[%s288_s15 + $0x28] sm:$0xff] (%p55_p3) }
  0x11   : > { %306 = vst [vmem:[%s282_s16 + $0x10] sm:$0xff] %v305_v2  ;;  %v309_v4 = vld [vmem:[%s288_s15 + $0x40] sm:$0xff]  ;;  %v311_v5 = vld [vmem:[%s288_s15 + $0x48] sm:$0xff]  ;;  %308 = vst [vmem:[%s282_s16 + $0x18] sm:$0xff] %v307_v3 }
  0x12   : > { %310 = vst [vmem:[%s282_s16 + $0x20] sm:$0xff] %v309_v4  ;;  %312 = vst [vmem:[%s282_s16 + $0x28] sm:$0xff] %v311_v5  ;;  %v313_v6 = vld [vmem:[%s288_s15 + $0x60] sm:$0xff]  ;;  %v315_v7 = vld [vmem:[%s288_s15 + $0x68] sm:$0xff] }
  0x13   : > { %314 = vst [vmem:[%s282_s16 + $0x30] sm:$0xff] %v313_v6  ;;  %316 = vst [vmem:[%s282_s16 + $0x38] sm:$0xff] %v315_v7 }
  0x14 PF: > { %p1303_p6 = scmp.ge.s32.totalorder %s1537_s28, 1  ;;  %p349_p7 = scmp.lt.s32.totalorder %s1537_s28, 3 }
  0x16   : > { %p350_p8 = pnand %p1303_p6, %p349_p7 }
  0x17   : > { %s356_s17 = sand.u32 (!%p350_p8), 1, %s1521_s24   ;;  %s1305_s18 = sshll.u32 (!%p350_p8), %s1529_s26, 6 }
  0x18   : > { %353 = sbr.rel (%p350_p8) target bundleno = 319 (0x13f), region = 59  ;;  %s1304_s19 = sshll.u32 (!%p350_p8), %s356_s17, 6 }
  0x19   : > { %p426_p9 = scmp.lt.s32.totalorder (!%p350_p8), %s1305_s18, 127  ;;  %s1307_s20 = sshll.u32 (!%p350_p8), %s1529_s26, 2 }
  0x1a   : > { %p438_p10 = scmp.lt.s32.totalorder (!%p350_p8), %s1307_s20, 7  ;;  %s1643_s14 = scalar_lea.vmem (!%p350_p8), [#allocation3], %s1304_s19 }
  0x1b   : > { %p1309_p11 = scmp.ne.s32.totalorder (!%p350_p8), %s1529_s26, 0 }
  0x1d   : > { %s1790_s18 = smov (!%p426_p9, %s1305_s18), 127  ;;  %s1792_s20 = smov (!%p438_p10, %s1307_s20), 7 }
  0x1e   : > { %s1306_s21 = sshll.u32 %s1790_s18, 2  ;;  %s440_s24 = scalar_lea.vmem %s1778_s3, %s1792_s20 }
  0x1f   : > { %s1631_s30 = scalar_lea.vmem %s1776_s1, %s1306_s21  ;;  %s445_s13 = scalar_lea.vmem %s1779_s4, %s1792_s20 }
  0x20   : > { %475 = sbr.rel (%p1309_p11) target bundleno = 40 (0x28), region = 67 }
  0x25   : > { %v1539_v8 = vmov 0.0  }
  0x26   : > { %476 = vst [vmem:[#allocation2 + $0x10] sm:$0xff] %v1539_v8  ;;  %477 = vst [vmem:[#allocation2] sm:$0xff] %v1539_v8 }
  0x27   : > { %478 = vst [vmem:[#allocation2 + $0x18] sm:$0xff] %v1539_v8  ;;  %479 = vst [vmem:[#allocation2 + $0x8] sm:$0xff] %v1539_v8 }
  0x28 PF: > { %v1467_v9 = vld [vmem:[%s1631_s30 + $0x78] sm:$0xff]   ;;  %v1471_v13 = vld [vmem:[%s1631_s30 + $0x70] sm:$0xff]   ;;  %v1475_v17 = vld [vmem:[%s1631_s30 + $0x68] sm:$0xff]   ;;  %v506_v32 = vlaneseq  ;;  %p1342_p12 = scmp.ne.s32.totalorder %s1529_s26, 1 }
  0x29   : > { %v1468_v10 = vld [vmem:[%s1631_s30 + $0xf8] sm:$0xff]   ;;  %1370 = vmatprep.subr.bf16.mxu0 %v1467_v9  ;;  %v1472_v14 = vld [vmem:[%s1631_s30 + $0xf0] sm:$0xff]   ;;  %v1476_v18 = vld [vmem:[%s1631_s30 + $0xe8] sm:$0xff]  }
  0x2a   : > { %v1469_v11 = vld [vmem:[%s1631_s30 + $0x38] sm:$0xff]   ;;  %1398 = vmatprep.subr.bf16.mxu1 %v1468_v10  ;;  %v1473_v15 = vld [vmem:[%s1631_s30 + $0x30] sm:$0xff]   ;;  %v1477_v19 = vld [vmem:[%s1631_s30 + $0x28] sm:$0xff]   ;;  %v507_v37 = vshrl.u32 %v506_v32, 7 }
  0x2b   : > { %v1470_v12 = vld [vmem:[%s1631_s30 + $0xb8] sm:$0xff]   ;;  %1371 = vmatpush3.bf16.msra.mxu0 %v1469_v11  ;;  %v1474_v16 = vld [vmem:[%s1631_s30 + $0xb0] sm:$0xff]   ;;  %v1478_v20 = vld [vmem:[%s1631_s30 + $0xa8] sm:$0xff]  }
  0x2c   : > { %1399 = vmatpush3.bf16.msra.mxu1 %v1470_v12  ;;  %1372 = vmatprep.subr.bf16.mxu0 %v1471_v13  ;;  %v1479_v21 = vld [vmem:[%s1631_s30 + $0x60] sm:$0xff]   ;;  %v1483_v25 = vld [vmem:[%s1631_s30 + $0x58] sm:$0xff]   ;;  %v1487_v29 = vld [vmem:[%s1631_s30 + $0x50] sm:$0xff]   ;;  %v512_v42 = vsub.s32 1, %v507_v37  ;;  %v520_v44 = vsub.s32 3, %v507_v37  ;;  %v508_v48 = vsub.s32 0, %v507_v37 }
  0x2d   : > { %1400 = vmatprep.subr.bf16.mxu1 %v1472_v14  ;;  %v1480_v22 = vld [vmem:[%s1631_s30 + $0xe0] sm:$0xff]   ;;  %v1484_v26 = vld [vmem:[%s1631_s30 + $0xd8] sm:$0xff]   ;;  %v1488_v30 = vld [vmem:[%s1631_s30 + $0xd0] sm:$0xff]   ;;  %v516_v49 = vsub.s32 2, %v507_v37 }
  0x2e   : > { %v1481_v23 = vld [vmem:[%s1631_s30 + $0x20] sm:$0xff]   ;;  %v1485_v27 = vld [vmem:[%s1631_s30 + $0x18] sm:$0xff]   ;;  %v1489_v31 = vld [vmem:[%s1631_s30 + $0x10] sm:$0xff]  }
  0x2f   : > { %1373 = vmatpush3.bf16.msra.mxu0 %v1473_v15  ;;  %v1482_v24 = vld [vmem:[%s1631_s30 + $0xa0] sm:$0xff]   ;;  %v1486_v28 = vld [vmem:[%s1631_s30 + $0x98] sm:$0xff]   ;;  %v1490_v33 = vld [vmem:[%s1631_s30 + $0x90] sm:$0xff]  }
  0x30   : > { %1401 = vmatpush3.bf16.msra.mxu1 %v1474_v16  ;;  %1374 = vmatprep.subr.bf16.mxu0 %v1475_v17  ;;  %v1491_v34 = vld [vmem:[%s1631_s30 + $0x48] sm:$0xff]   ;;  %v1495_v39 = vld [vmem:[%s1631_s30 + $0x40] sm:$0xff]   ;;  %v482_v46 = vld [vmem:[%s1643_s14 + $0x10] sm:$0xff] }
  0x31   : > { %1402 = vmatprep.subr.bf16.mxu1 %v1476_v18  ;;  %v1492_v35 = vld [vmem:[%s1631_s30 + $0xc8] sm:$0xff]   ;;  %v1496_v40 = vld [vmem:[%s1631_s30 + $0xc0] sm:$0xff]   ;;  %v492_v52 = vunpack.c.l.bf16 %v482_v46  ;;  %v493_v53 = vunpack.c.h.bf16 %v482_v46  ;;  %v483_v56 = vld [vmem:[%s1643_s14 + $0x18] sm:$0xff] }
  0x32   : > { %v1493_v36 = vld [vmem:[%s1631_s30 + $0x8] sm:$0xff]   ;;  %v1497_v41 = vld [vmem:[%s1631_s30] sm:$0xff]   ;;  %v494_v61 = vunpack.c.l.bf16 %v483_v56  ;;  %v495_v62 = vunpack.c.h.bf16 %v483_v56  ;;  %v487_v37 = vld [vmem:[%s1643_s14 + $0x38] sm:$0xff] }
  0x33   : > { %1375 = vmatpush3.bf16.msra.mxu0 %v1477_v19  ;;  %v1494_v38 = vld [vmem:[%s1631_s30 + $0x88] sm:$0xff]   ;;  %v1498_v43 = vld [vmem:[%s1631_s30 + $0x80] sm:$0xff]  }
  0x34   : > { %1403 = vmatpush3.bf16.msra.mxu1 %v1478_v20  ;;  %1376 = vmatprep.subr.bf16.mxu0 %v1479_v21  ;;  %v480_v45 = vld [vmem:[%s1643_s14] sm:$0xff]  ;;  %v481_v55 = vld [vmem:[%s1643_s14 + $0x8] sm:$0xff] }
  0x35   : > { %1404 = vmatprep.subr.bf16.mxu1 %v1480_v22  ;;  %v504_v47 = vld [vmem:[%s440_s24] sm:$0xf]  ;;  %v488_v50 = vunpack.c.l.bf16 %v480_v45  ;;  %v489_v51 = vunpack.c.h.bf16 %v480_v45  ;;  %v490_v59 = vunpack.c.l.bf16 %v481_v55  ;;  %v491_v60 = vunpack.c.h.bf16 %v481_v55 }
  0x36   : > { %v542_v54 = vld [vmem:[%s445_s13] sm:$0xf]  ;;  %v1692_v57 = vrot.slane %v504_v47, %v512_v42  ;;  %v1696_v63 = vrot.slane %v504_v47, %v520_v44  ;;  %v1702_v3 = vrot.slane %v504_v47, %v508_v48  ;;  %v1708_v7 = vrot.slane %v504_v47, %v516_v49 }
  0x37   : > { %1377 = vmatpush3.bf16.msra.mxu0 %v1481_v23  ;;  %v1694_v58 = vrot.slane %v542_v54, %v512_v42  ;;  %v1698_v0 = vrot.slane %v542_v54, %v520_v44  ;;  %v1704_v4 = vrot.slane %v542_v54, %v508_v48  ;;  %v1710_v8 = vrot.slane %v542_v54, %v516_v49 }
  0x38   : > { %1405 = vmatpush3.bf16.msra.mxu1 %v1482_v24  ;;  %1378 = vmatprep.subr.bf16.mxu0 %v1483_v25  ;;  %v527_v1 = vmul.f32 %v1692_v57, %v489_v51  ;;  %v531_v2 = vmul.f32 %v1692_v57, %v493_v53  ;;  %v529_v5 = vmul.f32 %v1696_v63, %v491_v60  ;;  %v503_v48 = vunpack.c.h.bf16 %v487_v37 }
  0x39   : > { %1406 = vmatprep.subr.bf16.mxu1 %v1484_v26  ;;  %v533_v6 = vmul.f32 %v1696_v63, %v495_v62  ;;  %v526_v11 = vmul.f32 %v1702_v3, %v488_v50  ;;  %v530_v12 = vmul.f32 %v1702_v3, %v492_v52  ;;  %v528_v15 = vmul.f32 %v1708_v7, %v490_v59 }
  0x3a   : > { %v565_v9 = vadd.f32 %v1694_v58, %v527_v1  ;;  %v569_v10 = vadd.f32 %v1694_v58, %v531_v2  ;;  %v567_v13 = vadd.f32 %v1698_v0, %v529_v5  ;;  %v532_v16 = vmul.f32 %v1708_v7, %v494_v61 }
  0x3b   : > { %1379 = vmatpush3.bf16.msra.mxu0 %v1485_v27  ;;  %v571_v14 = vadd.f32 %v1698_v0, %v533_v6  ;;  %v564_v23 = vadd.f32 %v1704_v4, %v526_v11  ;;  %v568_v24 = vadd.f32 %v1704_v4, %v530_v12  ;;  %v541_v56 = vmul.f32 %v1696_v63, %v503_v48 }
  0x3c   : > { %1407 = vmatpush3.bf16.msra.mxu1 %v1486_v28  ;;  %1380 = vmatprep.subr.bf16.mxu0 %v1487_v29  ;;  %vm581_vm0 = vcmp.gt.f32.partialorder %v565_v9, 0.0  ;;  %vm585_vm1 = vcmp.gt.f32.partialorder %v569_v10, 0.0  ;;  %v597_v17 = vmul.f32 0.01, %v565_v9  ;;  %v601_v18 = vmul.f32 0.01, %v569_v10 }
  0x3d   : > { %1408 = vmatprep.subr.bf16.mxu1 %v1488_v30  ;;  %vm583_vm2 = vcmp.gt.f32.partialorder %v567_v13, 0.0  ;;  %vm587_vm3 = vcmp.gt.f32.partialorder %v571_v14, 0.0  ;;  %v599_v19 = vmul.f32 0.01, %v567_v13  ;;  %v603_v20 = vmul.f32 0.01, %v571_v14 }
  0x3e   : > { %v613_v21 = vsel %vm581_vm0, %v565_v9, %v597_v17  ;;  %v617_v22 = vsel %vm585_vm1, %v569_v10, %v601_v18  ;;  %v566_v28 = vadd.f32 %v1710_v8, %v528_v15  ;;  %v484_v29 = vld [vmem:[%s1643_s14 + $0x20] sm:$0xff]  ;;  %v486_v30 = vld [vmem:[%s1643_s14 + $0x30] sm:$0xff]  ;;  %vm580_vm4 = vcmp.gt.f32.partialorder %v564_v23, 0.0 }
  0x3f   : > { %1381 = vmatpush3.bf16.msra.mxu0 %v1489_v31  ;;  %v633_v25 = vpack.c.bf16 %v617_v22, %v613_v21  ;;  %v615_v26 = vsel %vm583_vm2, %v567_v13, %v599_v19  ;;  %v619_v27 = vsel %vm587_vm3, %v571_v14, %v603_v20  ;;  %v485_v31 = vld [vmem:[%s1643_s14 + $0x28] sm:$0xff]  ;;  %vm584_vm5 = vcmp.gt.f32.partialorder %v568_v24, 0.0 }
  0x40   : > { %1409 = vmatpush3.bf16.msra.mxu1 %v1490_v33  ;;  %1382 = vmatprep.subr.bf16.mxu0 %v1491_v34  ;;  %v635_v32 = vpack.c.bf16 %v619_v27, %v615_v26  ;;  %v596_v33 = vmul.f32 0.01, %v564_v23  ;;  %v600_v34 = vmul.f32 0.01, %v568_v24  ;;  %vm582_vm6 = vcmp.gt.f32.partialorder %v566_v28, 0.0 }
  0x41   : > { %1410 = vmatprep.subr.bf16.mxu1 %v1492_v35  ;;  %928 = vmatprep.mubr.bf16.mxu0 %v633_v25  ;;  %v570_v35 = vadd.f32 %v1710_v8, %v532_v16  ;;  %v496_v51 = vunpack.c.l.bf16 %v484_v29  ;;  %v500_v52 = vunpack.c.l.bf16 %v486_v30  ;;  %v498_v61 = vunpack.c.l.bf16 %v485_v31 }
  0x42   : > { %977 = vmatprep.mubr.bf16.mxu1 %v635_v32  ;;  %v616_v42 = vsel %vm584_vm5, %v568_v24, %v600_v34  ;;  %v579_v2 = vadd.f32 %v1698_v0, %v541_v56  ;;  %v502_v10 = vunpack.c.l.bf16 %v487_v37 }
  0x43   : > { %1383 = vmatpush3.bf16.msra.mxu0 %v1493_v36  ;;  %v598_v36 = vmul.f32 0.01, %v566_v28  ;;  %vm586_vm7 = vcmp.gt.f32.partialorder %v570_v35, 0.0  ;;  %v534_v60 = vmul.f32 %v1702_v3, %v496_v51  ;;  %v630_v51 = vld [vmem:[#allocation2 + $0x18] sm:$0xff] }
  0x44   : > { %1411 = vmatpush3.bf16.msra.mxu1 %v1494_v38  ;;  %1384 = vmatprep.subr.bf16.mxu0 %v1495_v39  ;;  %v612_v38 = vsel %vm580_vm4, %v564_v23, %v596_v33  ;;  %v497_v39 = vunpack.c.h.bf16 %v484_v29  ;;  %vm595_vm11 = vcmp.gt.f32.partialorder %v579_v2, 0.0  ;;  %v540_v16 = vmul.f32 %v1708_v7, %v502_v10  ;;  %v628_v33 = vld [vmem:[#allocation2 + $0x10] sm:$0xff] }
  0x45   : > { %1412 = vmatprep.subr.bf16.mxu1 %v1496_v40  ;;  %v501_v40 = vunpack.c.h.bf16 %v486_v30  ;;  %v614_v44 = vsel %vm582_vm6, %v566_v28, %v598_v36  ;;  %v632_v45 = vpack.c.bf16 %v616_v42, %v612_v38 }
  0x46   : > { %v535_v46 = vmul.f32 %v1692_v57, %v497_v39  ;;  %v578_v21 = vadd.f32 %v1710_v8, %v540_v16 }
  0x47   : > { %1385 = vmatpush3.bf16.msra.mxu0 %v1497_v41  ;;  %v499_v41 = vunpack.c.h.bf16 %v485_v31  ;;  %v539_v47 = vmul.f32 %v1692_v57, %v501_v40  ;;  %v538_v57 = vmul.f32 %v1702_v3, %v500_v52  ;;  %v611_v3 = vmul.f32 0.01, %v579_v2  ;;  %v629_v40 = vld [vmem:[#allocation2] sm:$0xff] }
  0x48   : > { %1413 = vmatpush3.bf16.msra.mxu1 %v1498_v43  ;;  %v602_v43 = vmul.f32 0.01, %v570_v35  ;;  %v573_v54 = vadd.f32 %v1694_v58, %v535_v46  ;;  %vm594_vm15 = vcmp.gt.f32.partialorder %v578_v21, 0.0  ;;  %v610_v23 = vmul.f32 0.01, %v578_v21 }
  0x49   : > { %v537_v50 = vmul.f32 %v1696_v63, %v499_v41  ;;  %v577_v55 = vadd.f32 %v1694_v58, %v539_v47  ;;  %v572_v58 = vadd.f32 %v1704_v4, %v534_v60  ;;  %v576_v9 = vadd.f32 %v1704_v4, %v538_v57  ;;  %v631_v60 = vld [vmem:[#allocation2 + $0x8] sm:$0xff] }
  0x4a   : > { %v618_v49 = vsel %vm586_vm7, %v570_v35, %v602_v43  ;;  %929 = vmatmul.mubr.bf16.vlgmr.msra.gmra.mxu0 %v632_v45  ;;  %vm589_vm8 = vcmp.gt.f32.partialorder %v573_v54, 0.0  ;;  %v605_v62 = vmul.f32 0.01, %v573_v54  ;;  %v627_v15 = vsel %vm595_vm11, %v579_v2, %v611_v3 }
  0x4b   : > { %v634_v53 = vpack.c.bf16 %v618_v49, %v614_v44  ;;  %v575_v59 = vadd.f32 %v1698_v0, %v537_v50  ;;  %vm593_vm9 = vcmp.gt.f32.partialorder %v577_v55, 0.0  ;;  %v609_v1 = vmul.f32 0.01, %v577_v55 }
  0x4c   : > { %v621_v6 = vsel %vm589_vm8, %v573_v54, %v605_v62  ;;  %vm588_vm12 = vcmp.gt.f32.partialorder %v572_v58, 0.0  ;;  %vm592_vm13 = vcmp.gt.f32.partialorder %v576_v9, 0.0  ;;  %v604_v13 = vmul.f32 0.01, %v572_v58 }
  0x4d   : > { %978 = vmatmul.mubr.bf16.vlgmr.msra.gmra.mxu1 %v634_v53  ;;  %vm591_vm10 = vcmp.gt.f32.partialorder %v575_v59, 0.0  ;;  %v607_v5 = vmul.f32 0.01, %v575_v59  ;;  %v625_v63 = vsel %vm593_vm9, %v577_v55, %v609_v1  ;;  %v608_v14 = vmul.f32 0.01, %v576_v9 }
  0x4e   : > { %v637_v11 = vpack.c.bf16 %v625_v63, %v621_v6  ;;  %v536_v0 = vmul.f32 %v1708_v7, %v498_v61  ;;  %v620_v18 = vsel %vm588_vm12, %v572_v58, %v604_v13  ;;  %v626_v25 = vsel %vm594_vm15, %v578_v21, %v610_v23 }
  0x4f   : > { %v623_v12 = vsel %vm591_vm10, %v575_v59, %v607_v5  ;;  %v624_v19 = vsel %vm592_vm13, %v576_v9, %v608_v14 }
  0x50   : > { %936 = vmatprep.mubr.bf16.mxu0 %v637_v11  ;;  %v639_v17 = vpack.c.bf16 %v627_v15, %v623_v12  ;;  %v636_v20 = vpack.c.bf16 %v624_v19, %v620_v18  ;;  %v574_v4 = vadd.f32 %v1710_v8, %v536_v0 }
  0x52   : > { %985 = vmatprep.mubr.bf16.mxu1 %v639_v17  ;;  %937 = vmatmul.mubr.bf16.gmra.mxu0 %v636_v20  ;;  %vm590_vm14 = vcmp.gt.f32.partialorder %v574_v4, 0.0  ;;  %v606_v22 = vmul.f32 0.01, %v574_v4 }
  0x54   : > { %v622_v24 = vsel %vm590_vm14, %v574_v4, %v606_v22 }
  0x55   : > { %v638_v26 = vpack.c.bf16 %v626_v25, %v622_v24 }
  0x57   : > { %986 = vmatmul.mubr.bf16.gmra.mxu1 %v638_v26 }
 0x10a   : > { %v1386_v27 = vpop.f32.mrf.mxu0 }
 0x10c   : > { %v1387_v28 = vpop.f32.mrf.mxu0 }
 0x10d   : > { %v1414_v7 = vpop.f32.mrf.mxu1  ;;  %v1388_v29 = vadd.f32 %v1387_v28, %v1386_v27 }
 0x10e   : > { %v1389_v31 = vpop.f32.mrf.mxu0 }
 0x10f   : > { %v1415_v30 = vpop.f32.mrf.mxu1 }
 0x110   : > { %v1416_v32 = vadd.f32 %v1415_v30, %v1414_v7  ;;  %v1390_v8 = vpop.f32.mrf.mxu0 }
 0x111   : > { %v1417_v34 = vpop.f32.mrf.mxu1  ;;  %v1391_v36 = vadd.f32 %v1390_v8, %v1389_v31 }
 0x112   : > { %v980_v35 = vadd.f32 %v1416_v32, %v1388_v29  ;;  %v1392_v42 = vpop.f32.mrf.mxu0 }
 0x113   : > { %v1418_v37 = vpop.f32.mrf.mxu1 }
 0x114   : > { %v994_v38 = vadd.f32 %v980_v35, %v628_v33  ;;  %v1419_v39 = vadd.f32 %v1418_v37, %v1417_v34  ;;  %v1393_v44 = vpop.f32.mrf.mxu0 }
 0x115   : > { %v1394_v47 = vadd.f32 %v1393_v44, %v1392_v42 }
 0x116   : > { %998 = vst [vmem:[#allocation2 + $0x10] sm:$0xff] %v994_v38  ;;  %v983_v41 = vadd.f32 %v1419_v39, %v1391_v36  ;;  %v1395_v45 = vpop.f32.mrf.mxu0 }
 0x117   : > { %v1420_v46 = vpop.f32.mrf.mxu1 }
 0x118   : > { %v995_v43 = vadd.f32 %v983_v41, %v629_v40  ;;  %v1396_v49 = vpop.f32.mrf.mxu0 }
 0x119   : > { %v1421_v48 = vpop.f32.mrf.mxu1  ;;  %v1397_v54 = vadd.f32 %v1396_v49, %v1395_v45 }
 0x11a   : > { %999 = vst [vmem:[#allocation2] sm:$0xff] %v995_v43  ;;  %v1422_v50 = vadd.f32 %v1421_v48, %v1420_v46 }
 0x11b   : > { %v1423_v52 = vpop.f32.mrf.mxu1 }
 0x11c   : > { %v988_v53 = vadd.f32 %v1422_v50, %v1394_v47 }
 0x11d   : > { %v1424_v55 = vpop.f32.mrf.mxu1 }
 0x11e   : > { %v996_v56 = vadd.f32 %v988_v53, %v630_v51  ;;  %v1425_v59 = vadd.f32 %v1424_v55, %v1423_v52 }
 0x120   : > { %1000 = vst [vmem:[#allocation2 + $0x18] sm:$0xff] %v996_v56  ;;  %v991_v57 = vadd.f32 %v1425_v59, %v1397_v54  ;;  %1005 = sbr.rel (%p1342_p12) target bundleno = 319 (0x13f), region = 71 }
 0x122   : > { %v997_v61 = vadd.f32 %v991_v57, %v631_v60 }
 0x124   : > { %1001 = vst [vmem:[#allocation2 + $0x8] sm:$0xff] %v997_v61 }
 0x125   : > { %v1006_v62 = vld [vmem:[#allocation2 + $0x10] sm:$0xff]  ;;  %v1007_v1 = vld [vmem:[#allocation2] sm:$0xff] }
 0x126   : > { %v1343_v2 = vld [vmem:[%s1777_s2] ss:$0 sm:$0xff] }
 0x127   : > { %v1017_v5 = vadd.f32 %v1343_v2, %v1006_v62  ;;  %v1018_v58 = vadd.f32 %v1343_v2, %v1007_v1  ;;  %v1008_v6 = vld [vmem:[#allocation2 + $0x18] sm:$0xff] }
 0x128   : > { %v1019_v9 = vadd.f32 %v1343_v2, %v1008_v6 }
 0x129   : > { %v1362_v11 = vpack.c.bf16 %v1018_v58, %v1017_v5  ;;  %v1067_v3 = vadd.f32 %v1018_v58, %v1017_v5  ;;  %v1076_v12 = vmul.f32 %v1017_v5, %v1017_v5  ;;  %v1077_v13 = vmul.f32 %v1018_v58, %v1018_v58 }
 0x12a   : > { %v1078_v15 = vmul.f32 %v1019_v9, %v1019_v9 }
 0x12b   : > { %v1009_v63 = vld [vmem:[#allocation2 + $0x8] sm:$0xff]  ;;  %1363 = vst [vmem:[%s1780_s5] sm:$0xff] %v1362_v11   ;;  %v1068_v0 = vadd.f32 %v1067_v3, %v1019_v9  ;;  %v1080_v17 = vadd.f32 %v1077_v13, %v1076_v12 }
 0x12c   : > { %v1020_v10 = vadd.f32 %v1343_v2, %v1009_v63 }
 0x12d   : > { %v1081_v19 = vadd.f32 %v1080_v17, %v1078_v15 }
 0x12e   : > { %v1367_v14 = vpack.c.bf16 %v1020_v10, %v1019_v9  ;;  %v1079_v16 = vmul.f32 %v1020_v10, %v1020_v10  ;;  %v1069_v18 = vadd.f32 %v1068_v0, %v1020_v10 }
 0x130   : > { %1369 = vst [vmem:[%s1780_s5 + $0x8] sm:$0xff] %v1367_v14   ;;  %v1070_v20 = vrot.slane %v1069_v18, 4  ;;  %v1082_v4 = vadd.f32 %v1081_v19, %v1079_v16 }
 0x132   : > { %v1071_v21 = vadd.f32 %v1070_v20, %v1069_v18  ;;  %v1083_v22 = vrot.slane %v1082_v4, 4 }
 0x134   : > { %v1072_v23 = vrot.slane %v1071_v21, 2  ;;  %v1084_v24 = vadd.f32 %v1083_v22, %v1082_v4 }
 0x136   : > { %v1073_v25 = vadd.f32 %v1072_v23, %v1071_v21  ;;  %v1085_v26 = vrot.slane %v1084_v24, 2 }
 0x138   : > { %v1074_v27 = vrot.slane %v1073_v25, 1  ;;  %v1086_v7 = vadd.f32 %v1085_v26, %v1084_v24 }
 0x13a   : > { %v1075_v28 = vadd.f32 %v1074_v27, %v1073_v25  ;;  %v1087_v29 = vrot.slane %v1086_v7, 1 }
 0x13c   : > { %1089 = vst [vmem:[%s1781_s6] sm:$0xff] %v1075_v28  ;;  %v1088_v30 = vadd.f32 %v1087_v29, %v1086_v7 }
 0x13e   : > { %1090 = vst [vmem:[%s1782_s7] sm:$0xff] %v1088_v30 }
 0x13f PF: > { %s18_s28 = sadd.s32 1, %s1537_s28   ;;  %s1783_s24 = smov %s1525_s25 }
 0x140   : > { %p15_p13 = scmp.ge.s32.totalorder %s18_s28, 4   ;;  %s1784_s25 = smov %s1615_s9 }
 0x141   : > { %s1785_s26 = smov %s1533_s27  ;;  %s1786_s27 = smov %s1788_s29 }
 0x142   :  { %17 = sbr.rel (!%p15_p13) target bundleno = 3 (0x3), region = 142 }

// kernel: tile.147
= control target key start
LH: loop header
LB: loop body
LE: loop exit
PB: predicated region body
PF: predicated region fallthrough
CT: control target
= control target key end

     0   :  { %s22_s0 = inlined_call_operand.vmem [shape: f32[128], index: 0, kind: input, shape index: {}]   ;;  %s23_s1 = inlined_call_operand.vmem [shape: f32[4,128], index: 1, kind: output, shape index: {}]  }
   0x1   :  { %v4_v0 = vld [vmem:[%s22_s0] ss:$0 sm:$0xff] }
   0x2   :  { %5 = vst [vmem:[%s23_s1] sm:$0xf] %v4_v0 }

// kernel: tile.163
= control target key start
LH: loop header
LB: loop body
LE: loop exit
PB: predicated region body
PF: predicated region fallthrough
CT: control target
= control target key end

     0   :  { %s22_s0 = inlined_call_operand.vmem [shape: f32[64], index: 0, kind: input, shape index: {}]   ;;  %s23_s1 = inlined_call_operand.vmem [shape: f32[4,64], index: 1, kind: output, shape index: {}]  }
   0x1   :  { %v4_v0 = vld [vmem:[%s22_s0] ss:$0 sm:$0xff] }
   0x2   :  { %5 = vst [vmem:[%s23_s1] sm:$0xf] %v4_v0 }

// kernel: tile.168
= control target key start
LH: loop header
LB: loop body
LE: loop exit
PB: predicated region body
PF: predicated region fallthrough
CT: control target
= control target key end

     0   :  { %s7_s8 = smov 3  ;;  %vm9_vm0 = vcmask 523264   ;;  %s34_s9 = smov 64   ;;  %vm16_vm1 = vcmask 1048064   ;;  %s54_s0 = inlined_call_operand.vmem [shape: f32[4,64], index: 0, kind: input, shape index: {}]   ;;  %s55_s1 = inlined_call_operand.vmem [shape: f32[1,256], index: 1, kind: output, shape index: {}]  }
   0x1   :  { %v5_v0 = vld [vmem:[%s54_s0] sm:$0xf]  ;;  %s12_s0 = smov 3 }
   0x2   :  { %6 = vst [vmem:[#allocation1] sm:$0xf] %v5_v0 }
   0x9   :  { %v13_v1 = vld [vmem:[#allocation1 + $0x1] ss:$2 sm:%s12_s0]   ;;  %v8_v2 = vld [vmem:[#allocation1] ss:$2 sm:%s7_s8]  }
   0xa   :  { %14 = vrot.lane.b32.xlu0 %v13_v1, %s34_s9  ;;  %10 = vst.msk [vmem:[#allocation0] ss:$8 sm:$0x3] %vm9_vm0, %v8_v2  }
  0x7c   :  { %v15_v3 = vpop.permute.xlu0 %14  }
  0x7d   :  { %17 = vst.msk [vmem:[#allocation0] ss:$8 sm:$0x3] %vm16_vm1, %v15_v3  }
  0x84   :  { %v22_v4 = vld [vmem:[#allocation0] sm:$0x1]  ;;  %v27_v5 = vld [vmem:[#allocation0 + $0x8] sm:$0x1] }
  0x85   :  { %25 = vst [vmem:[%s55_s1] sm:$0x1] %v22_v4  ;;  %32 = vst [vmem:[%s55_s1 + $0x1] sm:$0x1] %v27_v5 }

// kernel: autoencoder_forward.38
= control target key start
LH: loop header
LB: loop body
LE: loop exit
PB: predicated region body
PF: predicated region fallthrough
CT: control target
= control target key end

     0   :  { %v143_v23 = vlaneseq  ;;  %s2092_s1 = inlined_call_operand.vmem [shape: bf16[512,128], index: 1, kind: input, shape index: {}]   ;;  %s2093_s0 = inlined_call_operand.vmem [shape: bf16[128,512], index: 0, kind: input, shape index: {}]   ;;  %s2094_s3 = inlined_call_operand.vmem [shape: f32[1,512], index: 3, kind: input, shape index: {}]   ;;  %s2095_s4 = inlined_call_operand.vmem [shape: f32[1,512], index: 4, kind: input, shape index: {}]   ;;  %s2096_s2 = inlined_call_operand.vmem [shape: f32[1,128], index: 2, kind: input, shape index: {}]   ;;  %s2097_s5 = inlined_call_operand.vmem [shape: bf16[128,128], index: 5, kind: output, shape index: {0}]   ;;  %s2098_s6 = inlined_call_operand.vmem [shape: f32[8,128], index: 6, kind: output, shape index: {1}]   ;;  %s2099_s7 = inlined_call_operand.vmem [shape: f32[8,128], index: 7, kind: output, shape index: {2}]  }
   0x1   :  { %v1567_v0 = vld [vmem:[%s2092_s1 + $0x78] sm:$0xff]   ;;  %v1571_v4 = vld [vmem:[%s2092_s1 + $0x70] sm:$0xff]   ;;  %v1575_v8 = vld [vmem:[%s2092_s1 + $0x68] sm:$0xff]  }
   0x2   :  { %v1568_v1 = vld [vmem:[%s2092_s1 + $0xf8] sm:$0xff]   ;;  %1439 = vmatprep.subr.bf16.mxu0 %v1567_v0  ;;  %v1572_v5 = vld [vmem:[%s2092_s1 + $0xf0] sm:$0xff]   ;;  %v1576_v9 = vld [vmem:[%s2092_s1 + $0xe8] sm:$0xff]   ;;  %v144_v28 = vshrl.u32 %v143_v23, 7 }
   0x3   :  { %v1569_v2 = vld [vmem:[%s2092_s1 + $0x38] sm:$0xff]   ;;  %1503 = vmatprep.subr.bf16.mxu1 %v1568_v1  ;;  %v1573_v6 = vld [vmem:[%s2092_s1 + $0x30] sm:$0xff]   ;;  %v1577_v10 = vld [vmem:[%s2092_s1 + $0x28] sm:$0xff]  }
   0x4   :  { %v1570_v3 = vld [vmem:[%s2092_s1 + $0xb8] sm:$0xff]   ;;  %1440 = vmatpush3.bf16.msra.mxu0 %v1569_v2  ;;  %v1574_v7 = vld [vmem:[%s2092_s1 + $0xb0] sm:$0xff]   ;;  %v1578_v11 = vld [vmem:[%s2092_s1 + $0xa8] sm:$0xff]   ;;  %v149_v33 = vsub.s32 1, %v144_v28  ;;  %v157_v35 = vsub.s32 3, %v144_v28  ;;  %v145_v39 = vsub.s32 0, %v144_v28 }
   0x5   :  { %1504 = vmatpush3.bf16.msra.mxu1 %v1570_v3  ;;  %1441 = vmatprep.subr.bf16.mxu0 %v1571_v4  ;;  %v1579_v12 = vld [vmem:[%s2092_s1 + $0x60] sm:$0xff]   ;;  %v1583_v16 = vld [vmem:[%s2092_s1 + $0x58] sm:$0xff]   ;;  %v1587_v20 = vld [vmem:[%s2092_s1 + $0x50] sm:$0xff]   ;;  %v153_v40 = vsub.s32 2, %v144_v28 }
   0x6   :  { %1505 = vmatprep.subr.bf16.mxu1 %v1572_v5  ;;  %v1580_v13 = vld [vmem:[%s2092_s1 + $0xe0] sm:$0xff]   ;;  %v1584_v17 = vld [vmem:[%s2092_s1 + $0xd8] sm:$0xff]   ;;  %v1588_v21 = vld [vmem:[%s2092_s1 + $0xd0] sm:$0xff]  }
   0x7   :  { %v1581_v14 = vld [vmem:[%s2092_s1 + $0x20] sm:$0xff]   ;;  %v1585_v18 = vld [vmem:[%s2092_s1 + $0x18] sm:$0xff]   ;;  %v1589_v22 = vld [vmem:[%s2092_s1 + $0x10] sm:$0xff]  }
   0x8   :  { %1442 = vmatpush3.bf16.msra.mxu0 %v1573_v6  ;;  %v1582_v15 = vld [vmem:[%s2092_s1 + $0xa0] sm:$0xff]   ;;  %v1586_v19 = vld [vmem:[%s2092_s1 + $0x98] sm:$0xff]   ;;  %v1590_v24 = vld [vmem:[%s2092_s1 + $0x90] sm:$0xff]  }
   0x9   :  { %1506 = vmatpush3.bf16.msra.mxu1 %v1574_v7  ;;  %1443 = vmatprep.subr.bf16.mxu0 %v1575_v8  ;;  %v1591_v25 = vld [vmem:[%s2092_s1 + $0x48] sm:$0xff]   ;;  %v1595_v30 = vld [vmem:[%s2092_s1 + $0x40] sm:$0xff]   ;;  %v47_v37 = vld [vmem:[%s2093_s0 + $0x10] sm:$0xff] }
   0xa   :  { %1507 = vmatprep.subr.bf16.mxu1 %v1576_v9  ;;  %v1592_v26 = vld [vmem:[%s2092_s1 + $0xc8] sm:$0xff]   ;;  %v1596_v31 = vld [vmem:[%s2092_s1 + $0xc0] sm:$0xff]   ;;  %v81_v43 = vunpack.c.l.bf16 %v47_v37  ;;  %v82_v44 = vunpack.c.h.bf16 %v47_v37  ;;  %v48_v47 = vld [vmem:[%s2093_s0 + $0x18] sm:$0xff] }
   0xb   :  { %v1593_v27 = vld [vmem:[%s2092_s1 + $0x8] sm:$0xff]   ;;  %v1597_v32 = vld [vmem:[%s2092_s1] sm:$0xff]   ;;  %v83_v52 = vunpack.c.l.bf16 %v48_v47  ;;  %v84_v53 = vunpack.c.h.bf16 %v48_v47  ;;  %v52_v28 = vld [vmem:[%s2093_s0 + $0x38] sm:$0xff] }
   0xc   :  { %1444 = vmatpush3.bf16.msra.mxu0 %v1577_v10  ;;  %v1594_v29 = vld [vmem:[%s2092_s1 + $0x88] sm:$0xff]   ;;  %v1598_v34 = vld [vmem:[%s2092_s1 + $0x80] sm:$0xff]  }
   0xd   :  { %1508 = vmatpush3.bf16.msra.mxu1 %v1578_v11  ;;  %1445 = vmatprep.subr.bf16.mxu0 %v1579_v12  ;;  %v45_v36 = vld [vmem:[%s2093_s0] sm:$0xff]  ;;  %v46_v46 = vld [vmem:[%s2093_s0 + $0x8] sm:$0xff] }
   0xe   :  { %1509 = vmatprep.subr.bf16.mxu1 %v1580_v13  ;;  %v141_v38 = vld [vmem:[%s2094_s3] sm:$0xf]  ;;  %v77_v41 = vunpack.c.l.bf16 %v45_v36  ;;  %v78_v42 = vunpack.c.h.bf16 %v45_v36  ;;  %v79_v50 = vunpack.c.l.bf16 %v46_v46  ;;  %v80_v51 = vunpack.c.h.bf16 %v46_v46 }
   0xf   :  { %v227_v45 = vld [vmem:[%s2095_s4] sm:$0xf]  ;;  %v1753_v48 = vrot.slane %v141_v38, %v149_v33  ;;  %v1757_v54 = vrot.slane %v141_v38, %v157_v35  ;;  %v1763_v58 = vrot.slane %v141_v38, %v145_v39  ;;  %v1769_v62 = vrot.slane %v141_v38, %v153_v40 }
  0x10   :  { %1446 = vmatpush3.bf16.msra.mxu0 %v1581_v14  ;;  %v1755_v49 = vrot.slane %v227_v45, %v149_v33  ;;  %v1759_v55 = vrot.slane %v227_v45, %v157_v35  ;;  %v1765_v59 = vrot.slane %v227_v45, %v145_v39  ;;  %v1771_v63 = vrot.slane %v227_v45, %v153_v40 }
  0x11   :  { %1510 = vmatpush3.bf16.msra.mxu1 %v1582_v15  ;;  %1447 = vmatprep.subr.bf16.mxu0 %v1583_v16  ;;  %v164_v56 = vmul.f32 %v1753_v48, %v78_v42  ;;  %v168_v57 = vmul.f32 %v1753_v48, %v82_v44  ;;  %v166_v60 = vmul.f32 %v1757_v54, %v80_v51  ;;  %v92_v39 = vunpack.c.h.bf16 %v52_v28 }
  0x12   :  { %1511 = vmatprep.subr.bf16.mxu1 %v1584_v17  ;;  %v170_v61 = vmul.f32 %v1757_v54, %v84_v53  ;;  %v163_v2 = vmul.f32 %v1763_v58, %v77_v41  ;;  %v167_v3 = vmul.f32 %v1763_v58, %v81_v43  ;;  %v165_v6 = vmul.f32 %v1769_v62, %v79_v50 }
  0x13   :  { %v250_v0 = vadd.f32 %v1755_v49, %v164_v56  ;;  %v254_v1 = vadd.f32 %v1755_v49, %v168_v57  ;;  %v252_v4 = vadd.f32 %v1759_v55, %v166_v60  ;;  %v169_v7 = vmul.f32 %v1769_v62, %v83_v52 }
  0x14   :  { %1448 = vmatpush3.bf16.msra.mxu0 %v1585_v18  ;;  %v256_v5 = vadd.f32 %v1759_v55, %v170_v61  ;;  %v249_v14 = vadd.f32 %v1765_v59, %v163_v2  ;;  %v253_v15 = vadd.f32 %v1765_v59, %v167_v3  ;;  %v178_v47 = vmul.f32 %v1757_v54, %v92_v39 }
  0x15   :  { %1512 = vmatpush3.bf16.msra.mxu1 %v1586_v19  ;;  %1449 = vmatprep.subr.bf16.mxu0 %v1587_v20  ;;  %vm314_vm0 = vcmp.gt.f32.partialorder %v250_v0, 0.0  ;;  %vm318_vm1 = vcmp.gt.f32.partialorder %v254_v1, 0.0  ;;  %v378_v8 = vmul.f32 0.01, %v250_v0  ;;  %v382_v9 = vmul.f32 0.01, %v254_v1 }
  0x16   :  { %1513 = vmatprep.subr.bf16.mxu1 %v1588_v21  ;;  %vm316_vm2 = vcmp.gt.f32.partialorder %v252_v4, 0.0  ;;  %vm320_vm3 = vcmp.gt.f32.partialorder %v256_v5, 0.0  ;;  %v380_v10 = vmul.f32 0.01, %v252_v4  ;;  %v384_v11 = vmul.f32 0.01, %v256_v5 }
  0x17   :  { %v442_v12 = vsel %vm314_vm0, %v250_v0, %v378_v8  ;;  %v446_v13 = vsel %vm318_vm1, %v254_v1, %v382_v9  ;;  %v251_v19 = vadd.f32 %v1771_v63, %v165_v6  ;;  %v49_v20 = vld [vmem:[%s2093_s0 + $0x20] sm:$0xff]  ;;  %v51_v21 = vld [vmem:[%s2093_s0 + $0x30] sm:$0xff]  ;;  %vm313_vm4 = vcmp.gt.f32.partialorder %v249_v14, 0.0 }
  0x18   :  { %1450 = vmatpush3.bf16.msra.mxu0 %v1589_v22  ;;  %v522_v16 = vpack.c.bf16 %v446_v13, %v442_v12  ;;  %v444_v17 = vsel %vm316_vm2, %v252_v4, %v380_v10  ;;  %v448_v18 = vsel %vm320_vm3, %v256_v5, %v384_v11  ;;  %v1793_v22 = vld [vmem:[%s2093_s0 + $0x28] sm:$0xff]  ;;  %vm317_vm5 = vcmp.gt.f32.partialorder %v253_v15, 0.0  ;;  %v53_v5 = vld [vmem:[%s2093_s0 + $0x40] sm:$0xff]  ;;  %v55_v9 = vld [vmem:[%s2093_s0 + $0x50] sm:$0xff] }
  0x19   :  { %1514 = vmatpush3.bf16.msra.mxu1 %v1590_v24  ;;  %1451 = vmatprep.subr.bf16.mxu0 %v1591_v25  ;;  %v524_v23 = vpack.c.bf16 %v448_v18, %v444_v17  ;;  %v377_v24 = vmul.f32 0.01, %v249_v14  ;;  %v381_v25 = vmul.f32 0.01, %v253_v15  ;;  %vm315_vm6 = vcmp.gt.f32.partialorder %v251_v19, 0.0  ;;  %v56_v17 = vld [vmem:[%s2093_s0 + $0x58] sm:$0xff] }
  0x1a   :  { %1515 = vmatprep.subr.bf16.mxu1 %v1592_v26  ;;  %841 = vmatprep.mubr.bf16.mxu0 %v522_v16  ;;  %v255_v26 = vadd.f32 %v1771_v63, %v169_v7  ;;  %v85_v42 = vunpack.c.l.bf16 %v49_v20  ;;  %v89_v43 = vunpack.c.l.bf16 %v51_v21  ;;  %v87_v53 = vunpack.c.l.bf16 %v1793_v22  ;;  %v54_v16 = vld [vmem:[%s2093_s0 + $0x48] sm:$0xff] }
  0x1b   :  { %938 = vmatprep.mubr.bf16.mxu1 %v524_v23  ;;  %v445_v33 = vsel %vm317_vm5, %v253_v15, %v381_v25  ;;  %v264_v60 = vadd.f32 %v1759_v55, %v178_v47  ;;  %v91_v4 = vunpack.c.l.bf16 %v52_v28  ;;  %v94_v15 = vunpack.c.h.bf16 %v53_v5 }
  0x1c   :  { %1452 = vmatpush3.bf16.msra.mxu0 %v1593_v27  ;;  %v379_v27 = vmul.f32 0.01, %v251_v19  ;;  %vm319_vm7 = vcmp.gt.f32.partialorder %v255_v26, 0.0  ;;  %v171_v51 = vmul.f32 %v1763_v58, %v85_v42  ;;  %v175_v52 = vmul.f32 %v1763_v58, %v89_v43 }
  0x1d   :  { %1516 = vmatpush3.bf16.msra.mxu1 %v1594_v29  ;;  %1453 = vmatprep.subr.bf16.mxu0 %v1595_v30  ;;  %v441_v29 = vsel %vm313_vm4, %v249_v14, %v377_v24  ;;  %v86_v30 = vunpack.c.h.bf16 %v49_v20  ;;  %vm328_vm11 = vcmp.gt.f32.partialorder %v264_v60, 0.0  ;;  %v392_v7 = vmul.f32 0.01, %v264_v60 }
  0x1e   :  { %1517 = vmatprep.subr.bf16.mxu1 %v1596_v31  ;;  %v90_v31 = vunpack.c.h.bf16 %v51_v21  ;;  %v443_v35 = vsel %vm315_vm6, %v251_v19, %v379_v27  ;;  %v521_v36 = vpack.c.bf16 %v445_v33, %v441_v29  ;;  %v257_v0 = vadd.f32 %v1765_v59, %v171_v51 }
  0x1f   :  { %v172_v37 = vmul.f32 %v1753_v48, %v86_v30  ;;  %v261_v3 = vadd.f32 %v1765_v59, %v175_v52  ;;  %v456_v12 = vsel %vm328_vm11, %v264_v60, %v392_v7  ;;  %v173_v13 = vmul.f32 %v1769_v62, %v87_v53 }
  0x20   :  { %1454 = vmatpush3.bf16.msra.mxu0 %v1597_v32  ;;  %v88_v32 = vunpack.c.h.bf16 %v1793_v22  ;;  %v176_v38 = vmul.f32 %v1753_v48, %v90_v31  ;;  %vm321_vm12 = vcmp.gt.f32.partialorder %v257_v0, 0.0  ;;  %v385_v10 = vmul.f32 0.01, %v257_v0 }
  0x21   :  { %1518 = vmatpush3.bf16.msra.mxu1 %v1598_v34  ;;  %v383_v34 = vmul.f32 0.01, %v255_v26  ;;  %v258_v45 = vadd.f32 %v1755_v49, %v172_v37  ;;  %vm325_vm13 = vcmp.gt.f32.partialorder %v261_v3, 0.0  ;;  %v389_v11 = vmul.f32 0.01, %v261_v3 }
  0x22   :  { %v174_v41 = vmul.f32 %v1757_v54, %v88_v32  ;;  %v262_v46 = vadd.f32 %v1755_v49, %v176_v38  ;;  %v177_v14 = vmul.f32 %v1769_v62, %v91_v4  ;;  %v449_v19 = vsel %vm321_vm12, %v257_v0, %v385_v10  ;;  %v59_v4 = vld [vmem:[%s2093_s0 + $0x70] sm:$0xff] }
  0x23   :  { %v447_v40 = vsel %vm319_vm7, %v255_v26, %v383_v34  ;;  %842 = vmatmul.mubr.bf16.vlgmr.msra.gmra.mxu0 %v521_v36  ;;  %vm322_vm8 = vcmp.gt.f32.partialorder %v258_v45, 0.0  ;;  %v386_v56 = vmul.f32 0.01, %v258_v45  ;;  %v453_v20 = vsel %vm325_vm13, %v261_v3, %v389_v11 }
  0x24   :  { %v523_v44 = vpack.c.bf16 %v447_v40, %v443_v35  ;;  %v260_v50 = vadd.f32 %v1759_v55, %v174_v41  ;;  %vm326_vm9 = vcmp.gt.f32.partialorder %v262_v46, 0.0  ;;  %v390_v57 = vmul.f32 0.01, %v262_v46 }
  0x25   :  { %v450_v1 = vsel %vm322_vm8, %v258_v45, %v386_v56  ;;  %v98_v21 = vunpack.c.h.bf16 %v55_v9  ;;  %v525_v22 = vpack.c.bf16 %v453_v20, %v449_v19  ;;  %v259_v23 = vadd.f32 %v1771_v63, %v173_v13  ;;  %v57_v56 = vld [vmem:[%s2093_s0 + $0x60] sm:$0xff]  ;;  %v60_v13 = vld [vmem:[%s2093_s0 + $0x78] sm:$0xff] }
  0x26   :  { %939 = vmatmul.mubr.bf16.vlgmr.msra.gmra.mxu1 %v523_v44  ;;  %vm324_vm10 = vcmp.gt.f32.partialorder %v260_v50, 0.0  ;;  %v388_v61 = vmul.f32 0.01, %v260_v50  ;;  %v454_v2 = vsel %vm326_vm9, %v262_v46, %v390_v57  ;;  %v263_v24 = vadd.f32 %v1771_v63, %v177_v14 }
  0x27   :  { %v526_v6 = vpack.c.bf16 %v454_v2, %v450_v1  ;;  %v180_v25 = vmul.f32 %v1753_v48, %v94_v15  ;;  %v184_v26 = vmul.f32 %v1753_v48, %v98_v21  ;;  %v96_v27 = vunpack.c.h.bf16 %v54_v16 }
  0x28   :  { %v452_v8 = vsel %vm324_vm10, %v260_v50, %v388_v61  ;;  %v100_v28 = vunpack.c.h.bf16 %v56_v17  ;;  %v93_v29 = vunpack.c.l.bf16 %v53_v5  ;;  %vm323_vm14 = vcmp.gt.f32.partialorder %v259_v23, 0.0  ;;  %v1852_v5 = vld [vmem:[%s2093_s0 + $0x68] sm:$0xff] }
  0x29   :  { %849 = vmatprep.mubr.bf16.mxu0 %v526_v6  ;;  %v528_v18 = vpack.c.bf16 %v456_v12, %v452_v8  ;;  %vm327_vm15 = vcmp.gt.f32.partialorder %v263_v24, 0.0  ;;  %v387_v30 = vmul.f32 0.01, %v259_v23  ;;  %v391_v31 = vmul.f32 0.01, %v263_v24 }
  0x2a   :  { %v266_v32 = vadd.f32 %v1755_v49, %v180_v25  ;;  %v270_v33 = vadd.f32 %v1755_v49, %v184_v26  ;;  %v182_v34 = vmul.f32 %v1757_v54, %v96_v27  ;;  %v186_v35 = vmul.f32 %v1757_v54, %v100_v28 }
  0x2b   :  { %946 = vmatprep.mubr.bf16.mxu1 %v528_v18  ;;  %850 = vmatmul.mubr.bf16.gmra.mxu0 %v525_v22  ;;  %v451_v36 = vsel %vm323_vm14, %v259_v23, %v387_v30  ;;  %v455_v37 = vsel %vm327_vm15, %v263_v24, %v391_v31  ;;  %v97_v38 = vunpack.c.l.bf16 %v55_v9  ;;  %v179_v39 = vmul.f32 %v1763_v58, %v93_v29 }
  0x2c   :  { %v527_v40 = vpack.c.bf16 %v455_v37, %v451_v36  ;;  %vm330_vm0 = vcmp.gt.f32.partialorder %v266_v32, 0.0  ;;  %vm334_vm1 = vcmp.gt.f32.partialorder %v270_v33, 0.0  ;;  %v394_v41 = vmul.f32 0.01, %v266_v32 }
  0x2d   :  { %v398_v42 = vmul.f32 0.01, %v270_v33  ;;  %v268_v43 = vadd.f32 %v1759_v55, %v182_v34  ;;  %v272_v44 = vadd.f32 %v1759_v55, %v186_v35  ;;  %v183_v45 = vmul.f32 %v1763_v58, %v97_v38 }
  0x2e   :  { %947 = vmatmul.mubr.bf16.gmra.mxu1 %v527_v40  ;;  %v458_v46 = vsel %vm330_vm0, %v266_v32, %v394_v41  ;;  %v265_v47 = vadd.f32 %v1765_v59, %v179_v39  ;;  %v95_v50 = vunpack.c.l.bf16 %v54_v16  ;;  %v99_v51 = vunpack.c.l.bf16 %v56_v17 }
  0x2f   :  { %v462_v52 = vsel %vm334_vm1, %v270_v33, %v398_v42  ;;  %vm332_vm2 = vcmp.gt.f32.partialorder %v268_v43, 0.0  ;;  %vm336_vm3 = vcmp.gt.f32.partialorder %v272_v44, 0.0  ;;  %v396_v53 = vmul.f32 0.01, %v268_v43 }
  0x30   :  { %v530_v57 = vpack.c.bf16 %v462_v52, %v458_v46  ;;  %v400_v60 = vmul.f32 0.01, %v272_v44  ;;  %v269_v61 = vadd.f32 %v1765_v59, %v183_v45  ;;  %vm329_vm4 = vcmp.gt.f32.partialorder %v265_v47, 0.0  ;;  %v61_v45 = vld [vmem:[%s2093_s0 + $0x80] sm:$0xff] }
  0x31   :  { %v460_v0 = vsel %vm332_vm2, %v268_v43, %v396_v53  ;;  %v393_v1 = vmul.f32 0.01, %v265_v47  ;;  %v181_v2 = vmul.f32 %v1769_v62, %v95_v50  ;;  %v185_v3 = vmul.f32 %v1769_v62, %v99_v51  ;;  %v63_v51 = vld [vmem:[%s2093_s0 + $0x90] sm:$0xff] }
  0x32   :  { %857 = vmatprep.mubr.bf16.mxu0 %v530_v57  ;;  %v464_v6 = vsel %vm336_vm3, %v272_v44, %v400_v60  ;;  %vm333_vm5 = vcmp.gt.f32.partialorder %v269_v61, 0.0  ;;  %v397_v7 = vmul.f32 0.01, %v269_v61  ;;  %v102_v8 = vunpack.c.h.bf16 %v57_v56 }
  0x33   :  { %v532_v9 = vpack.c.bf16 %v464_v6, %v460_v0  ;;  %v457_v10 = vsel %vm329_vm4, %v265_v47, %v393_v1  ;;  %v267_v11 = vadd.f32 %v1771_v63, %v181_v2  ;;  %v271_v12 = vadd.f32 %v1771_v63, %v185_v3  ;;  %v62_v0 = vld [vmem:[%s2093_s0 + $0x88] sm:$0xff]  ;;  %v64_v1 = vld [vmem:[%s2093_s0 + $0x98] sm:$0xff] }
  0x34   :  { %v461_v14 = vsel %vm333_vm5, %v269_v61, %v397_v7  ;;  %v106_v15 = vunpack.c.h.bf16 %v59_v4  ;;  %v188_v16 = vmul.f32 %v1753_v48, %v102_v8  ;;  %v104_v17 = vunpack.c.h.bf16 %v1852_v5 }
  0x35   :  { %954 = vmatprep.mubr.bf16.mxu1 %v532_v9  ;;  %v529_v18 = vpack.c.bf16 %v461_v14, %v457_v10  ;;  %vm331_vm6 = vcmp.gt.f32.partialorder %v267_v11, 0.0  ;;  %vm335_vm7 = vcmp.gt.f32.partialorder %v271_v12, 0.0  ;;  %v395_v19 = vmul.f32 0.01, %v267_v11 }
  0x36   :  { %v399_v20 = vmul.f32 0.01, %v271_v12  ;;  %v192_v21 = vmul.f32 %v1753_v48, %v106_v15  ;;  %v274_v22 = vadd.f32 %v1755_v49, %v188_v16  ;;  %v108_v23 = vunpack.c.h.bf16 %v60_v13 }
  0x37   :  { %858 = vmatmul.mubr.bf16.gmra.mxu0 %v529_v18  ;;  %v459_v24 = vsel %vm331_vm6, %v267_v11, %v395_v19  ;;  %v190_v25 = vmul.f32 %v1757_v54, %v104_v17  ;;  %v101_v26 = vunpack.c.l.bf16 %v57_v56  ;;  %v105_v27 = vunpack.c.l.bf16 %v59_v4 }
  0x38   :  { %v463_v28 = vsel %vm335_vm7, %v271_v12, %v399_v20  ;;  %v278_v29 = vadd.f32 %v1755_v49, %v192_v21  ;;  %vm338_vm8 = vcmp.gt.f32.partialorder %v274_v22, 0.0  ;;  %v402_v30 = vmul.f32 0.01, %v274_v22 }
  0x39   :  { %v531_v31 = vpack.c.bf16 %v463_v28, %v459_v24  ;;  %v194_v32 = vmul.f32 %v1757_v54, %v108_v23  ;;  %v276_v33 = vadd.f32 %v1759_v55, %v190_v25  ;;  %v187_v34 = vmul.f32 %v1763_v58, %v101_v26 }
  0x3a   :  { %vm342_vm9 = vcmp.gt.f32.partialorder %v278_v29, 0.0  ;;  %v406_v35 = vmul.f32 0.01, %v278_v29  ;;  %v466_v36 = vsel %vm338_vm8, %v274_v22, %v402_v30  ;;  %v191_v37 = vmul.f32 %v1763_v58, %v105_v27 }
  0x3b   :  { %955 = vmatmul.mubr.bf16.gmra.mxu1 %v531_v31  ;;  %v280_v38 = vadd.f32 %v1759_v55, %v194_v32  ;;  %vm340_vm10 = vcmp.gt.f32.partialorder %v276_v33, 0.0  ;;  %v404_v39 = vmul.f32 0.01, %v276_v33  ;;  %v273_v40 = vadd.f32 %v1765_v59, %v187_v34 }
  0x3c   :  { %v470_v41 = vsel %vm342_vm9, %v278_v29, %v406_v35  ;;  %v277_v42 = vadd.f32 %v1765_v59, %v191_v37  ;;  %v103_v43 = vunpack.c.l.bf16 %v1852_v5  ;;  %v107_v44 = vunpack.c.l.bf16 %v60_v13 }
  0x3d   :  { %v534_v46 = vpack.c.bf16 %v470_v41, %v466_v36  ;;  %vm344_vm11 = vcmp.gt.f32.partialorder %v280_v38, 0.0  ;;  %v408_v47 = vmul.f32 0.01, %v280_v38  ;;  %v468_v50 = vsel %vm340_vm10, %v276_v33, %v404_v39  ;;  %v65_v36 = vld [vmem:[%s2093_s0 + $0xa0] sm:$0xff] }
  0x3e   :  { %vm337_vm12 = vcmp.gt.f32.partialorder %v273_v40, 0.0  ;;  %vm341_vm13 = vcmp.gt.f32.partialorder %v277_v42, 0.0  ;;  %v401_v52 = vmul.f32 0.01, %v273_v40  ;;  %v405_v53 = vmul.f32 0.01, %v277_v42 }
  0x3f   :  { %865 = vmatprep.mubr.bf16.mxu0 %v534_v46  ;;  %v472_v56 = vsel %vm344_vm11, %v280_v38, %v408_v47  ;;  %v189_v57 = vmul.f32 %v1769_v62, %v103_v43  ;;  %v193_v60 = vmul.f32 %v1769_v62, %v107_v44  ;;  %v110_v61 = vunpack.c.h.bf16 %v61_v45  ;;  %v67_v44 = vld [vmem:[%s2093_s0 + $0xb0] sm:$0xff] }
  0x40   :  { %v536_v2 = vpack.c.bf16 %v472_v56, %v468_v50  ;;  %v465_v3 = vsel %vm337_vm12, %v273_v40, %v401_v52  ;;  %v469_v4 = vsel %vm341_vm13, %v277_v42, %v405_v53  ;;  %v114_v5 = vunpack.c.h.bf16 %v63_v51 }
  0x41   :  { %v533_v6 = vpack.c.bf16 %v469_v4, %v465_v3  ;;  %v275_v7 = vadd.f32 %v1771_v63, %v189_v57  ;;  %v279_v8 = vadd.f32 %v1771_v63, %v193_v60  ;;  %v196_v9 = vmul.f32 %v1753_v48, %v110_v61  ;;  %v68_v57 = vld [vmem:[%s2093_s0 + $0xb8] sm:$0xff] }
  0x42   :  { %962 = vmatprep.mubr.bf16.mxu1 %v536_v2  ;;  %v200_v10 = vmul.f32 %v1753_v48, %v114_v5  ;;  %v112_v11 = vunpack.c.h.bf16 %v62_v0  ;;  %v116_v12 = vunpack.c.h.bf16 %v64_v1  ;;  %v109_v13 = vunpack.c.l.bf16 %v61_v45  ;;  %v1912_v45 = vld [vmem:[%s2093_s0 + $0xa8] sm:$0xff] }
  0x43   :  { %866 = vmatmul.mubr.bf16.gmra.mxu0 %v533_v6  ;;  %vm339_vm14 = vcmp.gt.f32.partialorder %v275_v7, 0.0  ;;  %vm343_vm15 = vcmp.gt.f32.partialorder %v279_v8, 0.0  ;;  %v403_v14 = vmul.f32 0.01, %v275_v7  ;;  %v407_v15 = vmul.f32 0.01, %v279_v8 }
  0x44   :  { %v282_v16 = vadd.f32 %v1755_v49, %v196_v9  ;;  %v286_v17 = vadd.f32 %v1755_v49, %v200_v10  ;;  %v198_v18 = vmul.f32 %v1757_v54, %v112_v11  ;;  %v202_v19 = vmul.f32 %v1757_v54, %v116_v12 }
  0x45   :  { %v467_v20 = vsel %vm339_vm14, %v275_v7, %v403_v14  ;;  %v471_v21 = vsel %vm343_vm15, %v279_v8, %v407_v15  ;;  %v113_v22 = vunpack.c.l.bf16 %v63_v51  ;;  %v195_v23 = vmul.f32 %v1763_v58, %v109_v13 }
  0x46   :  { %v535_v24 = vpack.c.bf16 %v471_v21, %v467_v20  ;;  %vm346_vm0 = vcmp.gt.f32.partialorder %v282_v16, 0.0  ;;  %vm350_vm1 = vcmp.gt.f32.partialorder %v286_v17, 0.0  ;;  %v410_v25 = vmul.f32 0.01, %v282_v16 }
  0x47   :  { %v414_v26 = vmul.f32 0.01, %v286_v17  ;;  %v284_v27 = vadd.f32 %v1759_v55, %v198_v18  ;;  %v288_v28 = vadd.f32 %v1759_v55, %v202_v19  ;;  %v199_v29 = vmul.f32 %v1763_v58, %v113_v22 }
  0x48   :  { %963 = vmatmul.mubr.bf16.gmra.mxu1 %v535_v24  ;;  %v474_v30 = vsel %vm346_vm0, %v282_v16, %v410_v25  ;;  %v281_v31 = vadd.f32 %v1765_v59, %v195_v23  ;;  %v111_v32 = vunpack.c.l.bf16 %v62_v0  ;;  %v115_v33 = vunpack.c.l.bf16 %v64_v1 }
  0x49   :  { %v478_v34 = vsel %vm350_vm1, %v286_v17, %v414_v26  ;;  %vm348_vm2 = vcmp.gt.f32.partialorder %v284_v27, 0.0  ;;  %vm352_vm3 = vcmp.gt.f32.partialorder %v288_v28, 0.0  ;;  %v412_v35 = vmul.f32 0.01, %v284_v27 }
  0x4a   :  { %v538_v37 = vpack.c.bf16 %v478_v34, %v474_v30  ;;  %v416_v38 = vmul.f32 0.01, %v288_v28  ;;  %v285_v39 = vadd.f32 %v1765_v59, %v199_v29  ;;  %vm345_vm4 = vcmp.gt.f32.partialorder %v281_v31, 0.0  ;;  %v69_v29 = vld [vmem:[%s2093_s0 + $0xc0] sm:$0xff] }
  0x4b   :  { %v476_v40 = vsel %vm348_vm2, %v284_v27, %v412_v35  ;;  %v409_v41 = vmul.f32 0.01, %v281_v31  ;;  %v197_v42 = vmul.f32 %v1769_v62, %v111_v32  ;;  %v201_v43 = vmul.f32 %v1769_v62, %v115_v33  ;;  %v71_v33 = vld [vmem:[%s2093_s0 + $0xd0] sm:$0xff] }
  0x4c   :  { %873 = vmatprep.mubr.bf16.mxu0 %v538_v37  ;;  %v480_v46 = vsel %vm352_vm3, %v288_v28, %v416_v38  ;;  %vm349_vm5 = vcmp.gt.f32.partialorder %v285_v39, 0.0  ;;  %v413_v47 = vmul.f32 0.01, %v285_v39  ;;  %v118_v50 = vunpack.c.h.bf16 %v65_v36 }
  0x4d   :  { %v540_v51 = vpack.c.bf16 %v480_v46, %v476_v40  ;;  %v473_v52 = vsel %vm345_vm4, %v281_v31, %v409_v41  ;;  %v283_v53 = vadd.f32 %v1771_v63, %v197_v42  ;;  %v287_v56 = vadd.f32 %v1771_v63, %v201_v43  ;;  %v70_v40 = vld [vmem:[%s2093_s0 + $0xc8] sm:$0xff]  ;;  %v72_v41 = vld [vmem:[%s2093_s0 + $0xd8] sm:$0xff] }
  0x4e   :  { %v477_v60 = vsel %vm349_vm5, %v285_v39, %v413_v47  ;;  %v122_v61 = vunpack.c.h.bf16 %v67_v44  ;;  %v204_v0 = vmul.f32 %v1753_v48, %v118_v50  ;;  %v120_v1 = vunpack.c.h.bf16 %v1912_v45 }
  0x4f   :  { %970 = vmatprep.mubr.bf16.mxu1 %v540_v51  ;;  %v537_v2 = vpack.c.bf16 %v477_v60, %v473_v52  ;;  %vm347_vm6 = vcmp.gt.f32.partialorder %v283_v53, 0.0  ;;  %vm351_vm7 = vcmp.gt.f32.partialorder %v287_v56, 0.0  ;;  %v411_v3 = vmul.f32 0.01, %v283_v53 }
  0x50   :  { %v415_v4 = vmul.f32 0.01, %v287_v56  ;;  %v208_v5 = vmul.f32 %v1753_v48, %v122_v61  ;;  %v290_v6 = vadd.f32 %v1755_v49, %v204_v0  ;;  %v124_v7 = vunpack.c.h.bf16 %v68_v57 }
  0x51   :  { %874 = vmatmul.mubr.bf16.gmra.mxu0 %v537_v2  ;;  %v475_v8 = vsel %vm347_vm6, %v283_v53, %v411_v3  ;;  %v206_v9 = vmul.f32 %v1757_v54, %v120_v1  ;;  %v117_v10 = vunpack.c.l.bf16 %v65_v36  ;;  %v121_v11 = vunpack.c.l.bf16 %v67_v44 }
  0x52   :  { %v479_v12 = vsel %vm351_vm7, %v287_v56, %v415_v4  ;;  %v294_v13 = vadd.f32 %v1755_v49, %v208_v5  ;;  %vm354_vm8 = vcmp.gt.f32.partialorder %v290_v6, 0.0  ;;  %v418_v14 = vmul.f32 0.01, %v290_v6 }
  0x53   :  { %v539_v15 = vpack.c.bf16 %v479_v12, %v475_v8  ;;  %v210_v16 = vmul.f32 %v1757_v54, %v124_v7  ;;  %v292_v17 = vadd.f32 %v1759_v55, %v206_v9  ;;  %v203_v18 = vmul.f32 %v1763_v58, %v117_v10 }
  0x54   :  { %vm358_vm9 = vcmp.gt.f32.partialorder %v294_v13, 0.0  ;;  %v422_v19 = vmul.f32 0.01, %v294_v13  ;;  %v482_v20 = vsel %vm354_vm8, %v290_v6, %v418_v14  ;;  %v207_v21 = vmul.f32 %v1763_v58, %v121_v11 }
  0x55   :  { %971 = vmatmul.mubr.bf16.gmra.mxu1 %v539_v15  ;;  %v296_v22 = vadd.f32 %v1759_v55, %v210_v16  ;;  %vm356_vm10 = vcmp.gt.f32.partialorder %v292_v17, 0.0  ;;  %v420_v23 = vmul.f32 0.01, %v292_v17  ;;  %v289_v24 = vadd.f32 %v1765_v59, %v203_v18 }
  0x56   :  { %v486_v25 = vsel %vm358_vm9, %v294_v13, %v422_v19  ;;  %v293_v26 = vadd.f32 %v1765_v59, %v207_v21  ;;  %v119_v27 = vunpack.c.l.bf16 %v1912_v45  ;;  %v123_v28 = vunpack.c.l.bf16 %v68_v57 }
  0x57   :  { %v542_v30 = vpack.c.bf16 %v486_v25, %v482_v20  ;;  %vm360_vm11 = vcmp.gt.f32.partialorder %v296_v22, 0.0  ;;  %v424_v31 = vmul.f32 0.01, %v296_v22  ;;  %v484_v32 = vsel %vm356_vm10, %v292_v17, %v420_v23  ;;  %v73_v20 = vld [vmem:[%s2093_s0 + $0xe0] sm:$0xff] }
  0x58   :  { %vm353_vm12 = vcmp.gt.f32.partialorder %v289_v24, 0.0  ;;  %vm357_vm13 = vcmp.gt.f32.partialorder %v293_v26, 0.0  ;;  %v417_v34 = vmul.f32 0.01, %v289_v24  ;;  %v421_v35 = vmul.f32 0.01, %v293_v26 }
  0x59   :  { %881 = vmatprep.mubr.bf16.mxu0 %v542_v30  ;;  %v488_v36 = vsel %vm360_vm11, %v296_v22, %v424_v31  ;;  %v205_v37 = vmul.f32 %v1769_v62, %v119_v27  ;;  %v209_v38 = vmul.f32 %v1769_v62, %v123_v28  ;;  %v126_v39 = vunpack.c.h.bf16 %v69_v29  ;;  %v75_v28 = vld [vmem:[%s2093_s0 + $0xf0] sm:$0xff] }
  0x5a   :  { %v544_v42 = vpack.c.bf16 %v488_v36, %v484_v32  ;;  %v481_v43 = vsel %vm353_vm12, %v289_v24, %v417_v34  ;;  %v485_v44 = vsel %vm357_vm13, %v293_v26, %v421_v35  ;;  %v130_v45 = vunpack.c.h.bf16 %v71_v33 }
  0x5b   :  { %v541_v46 = vpack.c.bf16 %v485_v44, %v481_v43  ;;  %v291_v47 = vadd.f32 %v1771_v63, %v205_v37  ;;  %v295_v50 = vadd.f32 %v1771_v63, %v209_v38  ;;  %v212_v51 = vmul.f32 %v1753_v48, %v126_v39  ;;  %v76_v37 = vld [vmem:[%s2093_s0 + $0xf8] sm:$0xff] }
  0x5c   :  { %978 = vmatprep.mubr.bf16.mxu1 %v544_v42  ;;  %v216_v52 = vmul.f32 %v1753_v48, %v130_v45  ;;  %v128_v53 = vunpack.c.h.bf16 %v70_v40  ;;  %v132_v56 = vunpack.c.h.bf16 %v72_v41  ;;  %v125_v57 = vunpack.c.l.bf16 %v69_v29  ;;  %v74_v29 = vld [vmem:[%s2093_s0 + $0xe8] sm:$0xff] }
  0x5d   :  { %882 = vmatmul.mubr.bf16.gmra.mxu0 %v541_v46  ;;  %vm355_vm14 = vcmp.gt.f32.partialorder %v291_v47, 0.0  ;;  %vm359_vm15 = vcmp.gt.f32.partialorder %v295_v50, 0.0  ;;  %v419_v60 = vmul.f32 0.01, %v291_v47  ;;  %v423_v61 = vmul.f32 0.01, %v295_v50 }
  0x5e   :  { %v298_v0 = vadd.f32 %v1755_v49, %v212_v51  ;;  %v302_v1 = vadd.f32 %v1755_v49, %v216_v52  ;;  %v214_v2 = vmul.f32 %v1757_v54, %v128_v53  ;;  %v218_v3 = vmul.f32 %v1757_v54, %v132_v56 }
  0x5f   :  { %v483_v4 = vsel %vm355_vm14, %v291_v47, %v419_v60  ;;  %v487_v5 = vsel %vm359_vm15, %v295_v50, %v423_v61  ;;  %v129_v6 = vunpack.c.l.bf16 %v71_v33  ;;  %v211_v7 = vmul.f32 %v1763_v58, %v125_v57 }
  0x60   :  { %v543_v8 = vpack.c.bf16 %v487_v5, %v483_v4  ;;  %vm362_vm0 = vcmp.gt.f32.partialorder %v298_v0, 0.0  ;;  %vm366_vm1 = vcmp.gt.f32.partialorder %v302_v1, 0.0  ;;  %v426_v9 = vmul.f32 0.01, %v298_v0 }
  0x61   :  { %v430_v10 = vmul.f32 0.01, %v302_v1  ;;  %v300_v11 = vadd.f32 %v1759_v55, %v214_v2  ;;  %v304_v12 = vadd.f32 %v1759_v55, %v218_v3  ;;  %v215_v13 = vmul.f32 %v1763_v58, %v129_v6 }
  0x62   :  { %979 = vmatmul.mubr.bf16.gmra.mxu1 %v543_v8  ;;  %v490_v14 = vsel %vm362_vm0, %v298_v0, %v426_v9  ;;  %v297_v15 = vadd.f32 %v1765_v59, %v211_v7  ;;  %v127_v16 = vunpack.c.l.bf16 %v70_v40  ;;  %v131_v17 = vunpack.c.l.bf16 %v72_v41 }
  0x63   :  { %v494_v18 = vsel %vm366_vm1, %v302_v1, %v430_v10  ;;  %vm364_vm2 = vcmp.gt.f32.partialorder %v300_v11, 0.0  ;;  %vm368_vm3 = vcmp.gt.f32.partialorder %v304_v12, 0.0  ;;  %v428_v19 = vmul.f32 0.01, %v300_v11 }
  0x64   :  { %v546_v21 = vpack.c.bf16 %v494_v18, %v490_v14  ;;  %v432_v22 = vmul.f32 0.01, %v304_v12  ;;  %v301_v23 = vadd.f32 %v1765_v59, %v215_v13  ;;  %vm361_vm4 = vcmp.gt.f32.partialorder %v297_v15, 0.0 }
  0x65   :  { %v492_v24 = vsel %vm364_vm2, %v300_v11, %v428_v19  ;;  %v425_v25 = vmul.f32 0.01, %v297_v15  ;;  %v213_v26 = vmul.f32 %v1769_v62, %v127_v16  ;;  %v217_v27 = vmul.f32 %v1769_v62, %v131_v17 }
  0x66   :  { %889 = vmatprep.mubr.bf16.mxu0 %v546_v21  ;;  %v496_v30 = vsel %vm368_vm3, %v304_v12, %v432_v22  ;;  %vm365_vm5 = vcmp.gt.f32.partialorder %v301_v23, 0.0  ;;  %v429_v31 = vmul.f32 0.01, %v301_v23  ;;  %v134_v32 = vunpack.c.h.bf16 %v73_v20 }
  0x67   :  { %v548_v33 = vpack.c.bf16 %v496_v30, %v492_v24  ;;  %v489_v34 = vsel %vm361_vm4, %v297_v15, %v425_v25  ;;  %v299_v35 = vadd.f32 %v1771_v63, %v213_v26  ;;  %v303_v36 = vadd.f32 %v1771_v63, %v217_v27 }
  0x68   :  { %v493_v38 = vsel %vm365_vm5, %v301_v23, %v429_v31  ;;  %v138_v39 = vunpack.c.h.bf16 %v75_v28  ;;  %v220_v40 = vmul.f32 %v1753_v48, %v134_v32  ;;  %v136_v41 = vunpack.c.h.bf16 %v74_v29 }
  0x69   :  { %986 = vmatprep.mubr.bf16.mxu1 %v548_v33  ;;  %v545_v42 = vpack.c.bf16 %v493_v38, %v489_v34  ;;  %vm363_vm6 = vcmp.gt.f32.partialorder %v299_v35, 0.0  ;;  %vm367_vm7 = vcmp.gt.f32.partialorder %v303_v36, 0.0  ;;  %v427_v43 = vmul.f32 0.01, %v299_v35 }
  0x6a   :  { %v431_v44 = vmul.f32 0.01, %v303_v36  ;;  %v224_v45 = vmul.f32 %v1753_v48, %v138_v39  ;;  %v306_v46 = vadd.f32 %v1755_v49, %v220_v40  ;;  %v140_v47 = vunpack.c.h.bf16 %v76_v37 }
  0x6b   :  { %890 = vmatmul.mubr.bf16.gmra.mxu0 %v545_v42  ;;  %v491_v50 = vsel %vm363_vm6, %v299_v35, %v427_v43  ;;  %v222_v51 = vmul.f32 %v1757_v54, %v136_v41  ;;  %v133_v52 = vunpack.c.l.bf16 %v73_v20  ;;  %v137_v53 = vunpack.c.l.bf16 %v75_v28  ;;  %v1996_v35 = vld [vmem:[%s2096_s2] ss:$0 sm:$0xff] }
  0x6c   :  { %v495_v56 = vsel %vm367_vm7, %v303_v36, %v431_v44  ;;  %v310_v57 = vadd.f32 %v1755_v49, %v224_v45  ;;  %vm370_vm8 = vcmp.gt.f32.partialorder %v306_v46, 0.0  ;;  %v434_v60 = vmul.f32 0.01, %v306_v46 }
  0x6d   :  { %v547_v61 = vpack.c.bf16 %v495_v56, %v491_v50  ;;  %v226_v0 = vmul.f32 %v1757_v54, %v140_v47  ;;  %v308_v1 = vadd.f32 %v1759_v55, %v222_v51  ;;  %v219_v48 = vmul.f32 %v1763_v58, %v133_v52 }
  0x6e   :  { %vm374_vm9 = vcmp.gt.f32.partialorder %v310_v57, 0.0  ;;  %v438_v2 = vmul.f32 0.01, %v310_v57  ;;  %v498_v3 = vsel %vm370_vm8, %v306_v46, %v434_v60  ;;  %v223_v4 = vmul.f32 %v1763_v58, %v137_v53 }
  0x6f   :  { %987 = vmatmul.mubr.bf16.gmra.mxu1 %v547_v61  ;;  %v312_v5 = vadd.f32 %v1759_v55, %v226_v0  ;;  %vm372_vm10 = vcmp.gt.f32.partialorder %v308_v1, 0.0  ;;  %v436_v6 = vmul.f32 0.01, %v308_v1  ;;  %v305_v49 = vadd.f32 %v1765_v59, %v219_v48 }
  0x70   :  { %v502_v7 = vsel %vm374_vm9, %v310_v57, %v438_v2  ;;  %v309_v8 = vadd.f32 %v1765_v59, %v223_v4  ;;  %v135_v54 = vunpack.c.l.bf16 %v74_v29  ;;  %v139_v9 = vunpack.c.l.bf16 %v76_v37 }
  0x71   :  { %v550_v10 = vpack.c.bf16 %v502_v7, %v498_v3  ;;  %vm376_vm11 = vcmp.gt.f32.partialorder %v312_v5, 0.0  ;;  %v440_v11 = vmul.f32 0.01, %v312_v5  ;;  %v500_v12 = vsel %vm372_vm10, %v308_v1, %v436_v6 }
  0x72   :  { %vm369_vm12 = vcmp.gt.f32.partialorder %v305_v49, 0.0  ;;  %vm373_vm13 = vcmp.gt.f32.partialorder %v309_v8, 0.0  ;;  %v433_v13 = vmul.f32 0.01, %v305_v49  ;;  %v437_v58 = vmul.f32 0.01, %v309_v8 }
  0x73   :  { %897 = vmatprep.mubr.bf16.mxu0 %v550_v10  ;;  %v504_v14 = vsel %vm376_vm11, %v312_v5, %v440_v11  ;;  %v221_v55 = vmul.f32 %v1769_v62, %v135_v54  ;;  %v225_v15 = vmul.f32 %v1769_v62, %v139_v9 }
  0x74   :  { %v552_v16 = vpack.c.bf16 %v504_v14, %v500_v12  ;;  %v497_v17 = vsel %vm369_vm12, %v305_v49, %v433_v13  ;;  %v501_v18 = vsel %vm373_vm13, %v309_v8, %v437_v58 }
  0x75   :  { %v549_v59 = vpack.c.bf16 %v501_v18, %v497_v17  ;;  %v307_v19 = vadd.f32 %v1771_v63, %v221_v55  ;;  %v311_v20 = vadd.f32 %v1771_v63, %v225_v15 }
  0x76   :  { %994 = vmatprep.mubr.bf16.mxu1 %v552_v16 }
  0x77   :  { %898 = vmatmul.mubr.bf16.gmra.mxu0 %v549_v59  ;;  %vm371_vm14 = vcmp.gt.f32.partialorder %v307_v19, 0.0  ;;  %vm375_vm15 = vcmp.gt.f32.partialorder %v311_v20, 0.0  ;;  %v435_v21 = vmul.f32 0.01, %v307_v19  ;;  %v439_v22 = vmul.f32 0.01, %v311_v20 }
  0x79   :  { %v499_v23 = vsel %vm371_vm14, %v307_v19, %v435_v21  ;;  %v503_v24 = vsel %vm375_vm15, %v311_v20, %v439_v22 }
  0x7a   :  { %v551_v25 = vpack.c.bf16 %v503_v24, %v499_v23 }
  0x7c   :  { %995 = vmatmul.mubr.bf16.gmra.mxu1 %v551_v25 }
  0xe3   :  { %v1455_v26 = vpop.f32.mrf.mxu0 }
  0xe5   :  { %v1456_v27 = vpop.f32.mrf.mxu0 }
  0xe6   :  { %v1519_v62 = vpop.f32.mrf.mxu1  ;;  %v1457_v28 = vadd.f32 %v1456_v27, %v1455_v26 }
  0xe7   :  { %v1458_v30 = vpop.f32.mrf.mxu0 }
  0xe8   :  { %v1520_v29 = vpop.f32.mrf.mxu1 }
  0xe9   :  { %v1521_v31 = vadd.f32 %v1520_v29, %v1519_v62  ;;  %v1459_v33 = vpop.f32.mrf.mxu0 }
  0xea   :  { %v1522_v32 = vpop.f32.mrf.mxu1  ;;  %v1460_v34 = vadd.f32 %v1459_v33, %v1458_v30 }
  0xeb   :  { %v941_v63 = vadd.f32 %v1521_v31, %v1457_v28  ;;  %v1461_v40 = vpop.f32.mrf.mxu0 }
  0xec   :  { %v1523_v36 = vpop.f32.mrf.mxu1 }
  0xed   :  { %v1524_v37 = vadd.f32 %v1523_v36, %v1522_v32  ;;  %v1061_v38 = vadd.f32 %v1996_v35, %v941_v63  ;;  %v1462_v42 = vpop.f32.mrf.mxu0 }
  0xee   :  { %v1525_v50 = vpop.f32.mrf.mxu1  ;;  %v1463_v56 = vadd.f32 %v1462_v42, %v1461_v40 }
  0xef   :  { %v944_v39 = vadd.f32 %v1524_v37, %v1460_v34  ;;  %v1276_v43 = vmul.f32 %v1061_v38, %v1061_v38  ;;  %v1464_v47 = vpop.f32.mrf.mxu0 }
  0xf0   :  { %v1526_v52 = vpop.f32.mrf.mxu1 }
  0xf1   :  { %v1062_v41 = vadd.f32 %v1996_v35, %v944_v39  ;;  %v1465_v53 = vpop.f32.mrf.mxu0  ;;  %v1527_v57 = vadd.f32 %v1526_v52, %v1525_v50 }
  0xf2   :  { %v1528_v60 = vpop.f32.mrf.mxu1  ;;  %v1466_v61 = vadd.f32 %v1465_v53, %v1464_v47 }
  0xf3   :  { %v1395_v44 = vpack.c.bf16 %v1062_v41, %v1061_v38  ;;  %v2000_v45 = vadd.f32 %v1062_v41, %v1061_v38  ;;  %v1277_v46 = vmul.f32 %v1062_v41, %v1062_v41  ;;  %v949_v1 = vadd.f32 %v1527_v57, %v1463_v56 }
  0xf4   :  { %v1529_v0 = vpop.f32.mrf.mxu1 }
  0xf5   :  { %1396 = vst [vmem:[%s2097_s5] sm:$0xff] %v1395_v44   ;;  %v2005_v51 = vadd.f32 %v1277_v46, %v1276_v43  ;;  %v1530_v48 = vadd.f32 %v1529_v0, %v1528_v60  ;;  %v2008_v4 = vadd.f32 %v1996_v35, %v949_v1 }
  0xf7   :  { %v952_v2 = vadd.f32 %v1530_v48, %v1466_v61  ;;  %v1467_v3 = vpop.f32.mrf.mxu0 }
  0xf9   :  { %v2011_v5 = vadd.f32 %v1996_v35, %v952_v2  ;;  %v1468_v6 = vpop.f32.mrf.mxu0 }
  0xfa   :  { %v1469_v10 = vadd.f32 %v1468_v6, %v1467_v3 }
  0xfb   :  { %v1400_v49 = vpack.c.bf16 %v2011_v5, %v2008_v4  ;;  %v1531_v7 = vpop.f32.mrf.mxu1  ;;  %v1470_v8 = vpop.f32.mrf.mxu0 }
  0xfd   :  { %1432 = vst [vmem:[%s2097_s5 + $0x8] sm:$0xff] %v1400_v49   ;;  %v1532_v54 = vpop.f32.mrf.mxu1  ;;  %v1471_v9 = vpop.f32.mrf.mxu0 }
  0xfe   :  { %v1533_v11 = vadd.f32 %v1532_v54, %v1531_v7  ;;  %v1472_v13 = vadd.f32 %v1471_v9, %v1470_v8 }
  0xff   :  { %v1534_v12 = vpop.f32.mrf.mxu1 }
 0x100   :  { %v957_v14 = vadd.f32 %v1533_v11, %v1469_v10  ;;  %v1278_v11 = vmul.f32 %v2008_v4, %v2008_v4 }
 0x101   :  { %v1535_v58 = vpop.f32.mrf.mxu1 }
 0x102   :  { %v1536_v55 = vadd.f32 %v1535_v58, %v1534_v12  ;;  %v2019_v18 = vadd.f32 %v1996_v35, %v957_v14  ;;  %v1279_v14 = vmul.f32 %v2011_v5, %v2011_v5 }
 0x103   :  { %v1473_v15 = vpop.f32.mrf.mxu0 }
 0x104   :  { %v960_v16 = vadd.f32 %v1536_v55, %v1472_v13  ;;  %v1256_v55 = vadd.f32 %v2000_v45, %v2008_v4 }
 0x105   :  { %v1474_v17 = vpop.f32.mrf.mxu0 }
 0x106   :  { %v2022_v59 = vadd.f32 %v1996_v35, %v960_v16  ;;  %v1475_v24 = vadd.f32 %v1474_v17, %v1473_v15 }
 0x107   :  { %v1476_v19 = vpop.f32.mrf.mxu0 }
 0x108   :  { %v1405_v20 = vpack.c.bf16 %v2022_v59, %v2019_v18  ;;  %v1537_v21 = vpop.f32.mrf.mxu1  ;;  %v1281_v45 = vmul.f32 %v2022_v59, %v2022_v59 }
 0x109   :  { %v1477_v23 = vpop.f32.mrf.mxu0 }
 0x10a   :  { %1433 = vst [vmem:[%s2097_s5 + $0x10] sm:$0xff] %v1405_v20   ;;  %v1538_v22 = vpop.f32.mrf.mxu1  ;;  %v1478_v62 = vadd.f32 %v1477_v23, %v1476_v19  ;;  %v1293_v19 = vadd.f32 %v2005_v51, %v1278_v11  ;;  %v1280_v20 = vmul.f32 %v2019_v18, %v2019_v18 }
 0x10b   :  { %v1539_v25 = vadd.f32 %v1538_v22, %v1537_v21  ;;  %v1257_v21 = vadd.f32 %v1256_v55, %v2011_v5 }
 0x10c   :  { %v1540_v26 = vpop.f32.mrf.mxu1 }
 0x10d   :  { %v965_v28 = vadd.f32 %v1539_v25, %v1475_v24  ;;  %v1294_v24 = vadd.f32 %v1293_v19, %v1279_v14 }
 0x10e   :  { %v1541_v27 = vpop.f32.mrf.mxu1 }
 0x10f   :  { %v1542_v29 = vadd.f32 %v1541_v27, %v1540_v26  ;;  %v2030_v32 = vadd.f32 %v1996_v35, %v965_v28  ;;  %v1258_v26 = vadd.f32 %v1257_v21, %v2019_v18 }
 0x111   :  { %v968_v30 = vadd.f32 %v1542_v29, %v1478_v62  ;;  %v1479_v31 = vpop.f32.mrf.mxu0  ;;  %v1295_v62 = vadd.f32 %v1294_v24, %v1280_v20  ;;  %v1282_v27 = vmul.f32 %v2030_v32, %v2030_v32  ;;  %v1259_v28 = vadd.f32 %v1258_v26, %v2022_v59 }
 0x113   :  { %v2033_v33 = vadd.f32 %v1996_v35, %v968_v30  ;;  %v1480_v63 = vpop.f32.mrf.mxu0  ;;  %v1296_v30 = vadd.f32 %v1295_v62, %v1281_v45 }
 0x114   :  { %v1481_v40 = vadd.f32 %v1480_v63, %v1479_v31 }
 0x115   :  { %v1410_v34 = vpack.c.bf16 %v2033_v33, %v2030_v32  ;;  %v1543_v36 = vpop.f32.mrf.mxu1  ;;  %v1482_v37 = vpop.f32.mrf.mxu0  ;;  %v1283_v31 = vmul.f32 %v2033_v33, %v2033_v33 }
 0x117   :  { %1434 = vst [vmem:[%s2097_s5 + $0x18] sm:$0xff] %v1410_v34   ;;  %v1544_v38 = vpop.f32.mrf.mxu1  ;;  %v1483_v39 = vpop.f32.mrf.mxu0 }
 0x118   :  { %v1545_v41 = vadd.f32 %v1544_v38, %v1543_v36  ;;  %v1484_v43 = vadd.f32 %v1483_v39, %v1482_v37  ;;  %v1260_v36 = vadd.f32 %v1259_v28, %v2030_v32  ;;  %v1297_v38 = vadd.f32 %v1296_v30, %v1282_v27 }
 0x119   :  { %v1546_v42 = vpop.f32.mrf.mxu1 }
 0x11a   :  { %v973_v46 = vadd.f32 %v1545_v41, %v1481_v40  ;;  %v1261_v40 = vadd.f32 %v1260_v36, %v2033_v33 }
 0x11b   :  { %v1547_v44 = vpop.f32.mrf.mxu1 }
 0x11c   :  { %v1548_v47 = vadd.f32 %v1547_v44, %v1546_v42  ;;  %v1069_v56 = vadd.f32 %v1996_v35, %v973_v46  ;;  %v1298_v42 = vadd.f32 %v1297_v38, %v1283_v31 }
 0x11d   :  { %v1485_v50 = vpop.f32.mrf.mxu0 }
 0x11e   :  { %v976_v52 = vadd.f32 %v1548_v47, %v1484_v43  ;;  %v1284_v18 = vmul.f32 %v1069_v56, %v1069_v56  ;;  %v1262_v46 = vadd.f32 %v1261_v40, %v1069_v56 }
 0x11f   :  { %v1486_v53 = vpop.f32.mrf.mxu0 }
 0x120   :  { %v2042_v57 = vadd.f32 %v1996_v35, %v976_v52  ;;  %v1487_v2 = vadd.f32 %v1486_v53, %v1485_v50  ;;  %v1299_v50 = vadd.f32 %v1298_v42, %v1284_v18 }
 0x121   :  { %v1488_v60 = vpop.f32.mrf.mxu0 }
 0x122   :  { %v1415_v61 = vpack.c.bf16 %v2042_v57, %v1069_v56  ;;  %v1549_v0 = vpop.f32.mrf.mxu1  ;;  %v1285_v59 = vmul.f32 %v2042_v57, %v2042_v57 }
 0x123   :  { %v1489_v48 = vpop.f32.mrf.mxu0 }
 0x124   :  { %1435 = vst [vmem:[%s2097_s5 + $0x20] sm:$0xff] %v1415_v61   ;;  %v1550_v1 = vpop.f32.mrf.mxu1  ;;  %v1490_v49 = vadd.f32 %v1489_v48, %v1488_v60  ;;  %v1263_v60 = vadd.f32 %v1262_v46, %v2042_v57 }
 0x125   :  { %v1551_v3 = vadd.f32 %v1550_v1, %v1549_v0  ;;  %v1300_v0 = vadd.f32 %v1299_v50, %v1285_v59 }
 0x126   :  { %v1552_v6 = vpop.f32.mrf.mxu1 }
 0x127   :  { %v981_v8 = vadd.f32 %v1551_v3, %v1487_v2 }
 0x128   :  { %v1553_v7 = vpop.f32.mrf.mxu1 }
 0x129   :  { %v1554_v54 = vadd.f32 %v1553_v7, %v1552_v6  ;;  %v1071_v12 = vadd.f32 %v1996_v35, %v981_v8 }
 0x12b   :  { %v984_v9 = vadd.f32 %v1554_v54, %v1490_v49  ;;  %v1491_v10 = vpop.f32.mrf.mxu0  ;;  %v1286_v52 = vmul.f32 %v1071_v12, %v1071_v12  ;;  %v1264_v2 = vadd.f32 %v1263_v60, %v1071_v12 }
 0x12d   :  { %v1072_v13 = vadd.f32 %v1996_v35, %v984_v9  ;;  %v1492_v58 = vpop.f32.mrf.mxu0  ;;  %v1301_v6 = vadd.f32 %v1300_v0, %v1286_v52 }
 0x12e   :  { %v1493_v4 = vadd.f32 %v1492_v58, %v1491_v10 }
 0x12f   :  { %v1420_v15 = vpack.c.bf16 %v1072_v13, %v1071_v12  ;;  %v1555_v16 = vpop.f32.mrf.mxu1  ;;  %v1494_v17 = vpop.f32.mrf.mxu0  ;;  %v1287_v33 = vmul.f32 %v1072_v13, %v1072_v13  ;;  %v1265_v49 = vadd.f32 %v1264_v2, %v1072_v13 }
 0x131   :  { %1436 = vst [vmem:[%s2097_s5 + $0x28] sm:$0xff] %v1420_v15   ;;  %v1556_v22 = vpop.f32.mrf.mxu1  ;;  %v1495_v23 = vpop.f32.mrf.mxu0  ;;  %v1302_v9 = vadd.f32 %v1301_v6, %v1287_v33 }
 0x132   :  { %v1557_v25 = vadd.f32 %v1556_v22, %v1555_v16  ;;  %v1496_v5 = vadd.f32 %v1495_v23, %v1494_v17 }
 0x133   :  { %v1558_v51 = vpop.f32.mrf.mxu1 }
 0x134   :  { %v989_v63 = vadd.f32 %v1557_v25, %v1493_v4 }
 0x135   :  { %v1559_v29 = vpop.f32.mrf.mxu1 }
 0x136   :  { %v1560_v34 = vadd.f32 %v1559_v29, %v1558_v51  ;;  %v1073_v43 = vadd.f32 %v1996_v35, %v989_v63 }
 0x137   :  { %v1497_v37 = vpop.f32.mrf.mxu0 }
 0x138   :  { %v992_v39 = vadd.f32 %v1560_v34, %v1496_v5  ;;  %v1288_v7 = vmul.f32 %v1073_v43, %v1073_v43  ;;  %v1266_v57 = vadd.f32 %v1265_v49, %v1073_v43 }
 0x139   :  { %v1498_v41 = vpop.f32.mrf.mxu0 }
 0x13a   :  { %v1074_v44 = vadd.f32 %v1996_v35, %v992_v39  ;;  %v1499_v61 = vadd.f32 %v1498_v41, %v1497_v37  ;;  %v1303_v55 = vadd.f32 %v1302_v9, %v1288_v7 }
 0x13b   :  { %v1500_v47 = vpop.f32.mrf.mxu0 }
 0x13c   :  { %v1425_v32 = vpack.c.bf16 %v1074_v44, %v1073_v43  ;;  %v1561_v53 = vpop.f32.mrf.mxu1  ;;  %v1289_v11 = vmul.f32 %v1074_v44, %v1074_v44  ;;  %v1267_v15 = vadd.f32 %v1266_v57, %v1074_v44 }
 0x13d   :  { %v1501_v48 = vpop.f32.mrf.mxu0 }
 0x13e   :  { %1437 = vst [vmem:[%s2097_s5 + $0x30] sm:$0xff] %v1425_v32   ;;  %v1562_v1 = vpop.f32.mrf.mxu1  ;;  %v1502_v54 = vadd.f32 %v1501_v48, %v1500_v47  ;;  %v1304_v19 = vadd.f32 %v1303_v55, %v1289_v11 }
 0x13f   :  { %v1563_v3 = vadd.f32 %v1562_v1, %v1561_v53 }
 0x140   :  { %v1564_v56 = vpop.f32.mrf.mxu1 }
 0x141   :  { %v997_v8 = vadd.f32 %v1563_v3, %v1499_v61 }
 0x142   :  { %v1565_v10 = vpop.f32.mrf.mxu1 }
 0x143   :  { %v1075_v58 = vadd.f32 %v1996_v35, %v997_v8  ;;  %v1566_v14 = vadd.f32 %v1565_v10, %v1564_v56 }
 0x145   :  { %v1290_v16 = vmul.f32 %v1075_v58, %v1075_v58  ;;  %v1000_v17 = vadd.f32 %v1566_v14, %v1502_v54  ;;  %v1268_v12 = vadd.f32 %v1267_v15, %v1075_v58 }
 0x147   :  { %v1076_v20 = vadd.f32 %v1996_v35, %v1000_v17  ;;  %v1305_v21 = vadd.f32 %v1304_v19, %v1290_v16 }
 0x149   :  { %v1430_v13 = vpack.c.bf16 %v1076_v20, %v1075_v58  ;;  %v1269_v22 = vadd.f32 %v1268_v12, %v1076_v20  ;;  %v1291_v23 = vmul.f32 %v1076_v20, %v1076_v20 }
 0x14b   :  { %1438 = vst [vmem:[%s2097_s5 + $0x38] sm:$0xff] %v1430_v13   ;;  %v1270_v24 = vrot.slane %v1269_v22, 4  ;;  %v1306_v45 = vadd.f32 %v1305_v21, %v1291_v23 }
 0x14d   :  { %v1271_v4 = vadd.f32 %v1270_v24, %v1269_v22  ;;  %v1307_v25 = vrot.slane %v1306_v45, 4 }
 0x14f   :  { %v1272_v26 = vrot.slane %v1271_v4, 2  ;;  %v1308_v51 = vadd.f32 %v1307_v25, %v1306_v45 }
 0x151   :  { %v1273_v62 = vadd.f32 %v1272_v26, %v1271_v4  ;;  %v1309_v27 = vrot.slane %v1308_v51, 2 }
 0x153   :  { %v1274_v5 = vrot.slane %v1273_v62, 1  ;;  %v1310_v28 = vadd.f32 %v1309_v27, %v1308_v51 }
 0x155   :  { %v1275_v29 = vadd.f32 %v1274_v5, %v1273_v62  ;;  %v1311_v35 = vrot.slane %v1310_v28, 1 }
 0x157   :  { %v1312_v30 = vadd.f32 %v1311_v35, %v1310_v28  ;;  %1313 = vst [vmem:[%s2098_s6] sm:$0xff] %v1275_v29 }
 0x159   :  { %1314 = vst [vmem:[%s2099_s7] sm:$0xff] %v1312_v30 }

// kernel: autoencoder_forward.42
= control target key start
LH: loop header
LB: loop body
LE: loop exit
PB: predicated region body
PF: predicated region fallthrough
CT: control target
= control target key end

     0   :  { %s1849_s18 = smov 0   ;;  %s1851_s19 = smov 0   ;;  %s2198_s0 = inlined_call_operand.vmem [shape: bf16[512,256], index: 0, kind: input, shape index: {}]   ;;  %s2199_s1 = inlined_call_operand.vmem [shape: bf16[256,128], index: 1, kind: input, shape index: {}]   ;;  %s2200_s2 = inlined_call_operand.vmem [shape: f32[1,128], index: 2, kind: input, shape index: {}]   ;;  %s2201_s3 = inlined_call_operand.vmem [shape: f32[1,256], index: 3, kind: input, shape index: {}]   ;;  %s2202_s4 = inlined_call_operand.vmem [shape: f32[1,256], index: 4, kind: input, shape index: {}]   ;;  %s2203_s5 = inlined_call_operand.vmem [shape: f32[512,128], index: 5, kind: output, shape index: {}]  }
   0x1   :  { %s1853_s20 = smov 0  }
   0x2 LB: > { %s34_s21 = sadd.s32 1, %s1813_s19  ;;  %p1537_p0 = scmp.ge.s32.totalorder %s1817_s20, 1  ;;  %s1817_s20 = sphi %s1853_s20, %s15_s20   ;;  %s1813_s19 = sphi %s1851_s19, %s2205_s19   ;;  %s1809_s18 = sphi %s1849_s18, %s2204_s18  }
   0x3   : > { %p36_p1 = scmp.ge.s32.totalorder %s34_s21, 2  ;;  %p261_p2 = scmp.lt.s32.totalorder %s1817_s20, 3 }
   0x5   : > { %s2207_s21 = smov (%p36_p1, %s34_s21), 0  ;;  %p262_p3 = pnand %p1537_p0, %p261_p2 }
   0x6   : > { %s1538_s24 = sshll.u32 (!%p262_p3), %s1809_s18, 5 }
   0x7   : > { %265 = sbr.rel (%p262_p3) target bundleno = 345 (0x159), region = 40  ;;  %p318_p4 = scmp.lt.s32.totalorder (!%p262_p3), %s1538_s24, 63 }
   0xc   : > { %v1715_v0 = vld [vmem:[%s2199_s1 + $0x78] sm:$0xff]   ;;  %v1717_v2 = vld [vmem:[%s2199_s1 + $0x70] sm:$0xff]   ;;  %v1719_v4 = vld [vmem:[%s2199_s1 + $0x68] sm:$0xff]   ;;  %v494_v5 = vlaneseq  ;;  %s2209_s24 = smov (!%p318_p4, %s1538_s24), 63 }
   0xd   : > { %v1716_v1 = vld [vmem:[%s2199_s1 + $0x38] sm:$0xff]   ;;  %1563 = vmatprep.subr.bf16.mxu0 %v1715_v0  ;;  %1675 = vmatprep.subr.bf16.mxu1 %v1715_v0  ;;  %v1718_v3 = vld [vmem:[%s2199_s1 + $0x30] sm:$0xff]   ;;  %v1720_v6 = vld [vmem:[%s2199_s1 + $0x28] sm:$0xff]   ;;  %s1562_s12 = sshll.u32 %s2209_s24, 3 }
   0xe   : > { %1564 = vmatpush3.bf16.msra.mxu0 %v1716_v1  ;;  %1683 = vmatpush3.bf16.msra.mxu1 %v1716_v1  ;;  %v1721_v7 = vld [vmem:[%s2199_s1 + $0x60] sm:$0xff]   ;;  %v495_v8 = vshrl.u32 %v494_v5, 7  ;;  %v1723_v10 = vld [vmem:[%s2199_s1 + $0x58] sm:$0xff]   ;;  %s1902_s22 = scalar_lea.vmem %s2198_s0, %s1562_s12  ;;  %v1725_v14 = vld [vmem:[%s2199_s1 + $0x50] sm:$0xff]   ;;  %s2128_s26 = scalar_lea.vmem %s2203_s5, %s1562_s12 }
   0xf   : > { %1565 = vmatprep.subr.bf16.mxu0 %v1717_v2  ;;  %1676 = vmatprep.subr.bf16.mxu1 %v1717_v2  ;;  %v1722_v9 = vld [vmem:[%s2199_s1 + $0x20] sm:$0xff]   ;;  %v1724_v12 = vld [vmem:[%s2199_s1 + $0x18] sm:$0xff]   ;;  %v397_v16 = vld [vmem:[%s1902_s22 + $0x8] sm:$0xff] }
  0x10   : > { %v496_v11 = vsub.s32 0, %v495_v8  ;;  %v500_v13 = vsub.s32 1, %v495_v8  ;;  %v396_v15 = vld [vmem:[%s1902_s22] sm:$0xff]  ;;  %v430_v20 = vunpack.c.l.bf16 %v397_v16  ;;  %v431_v21 = vunpack.c.h.bf16 %v397_v16  ;;  %v413_v24 = vld [vmem:[%s1902_s22 + $0x88] sm:$0xff]  ;;  %v1929_v29 = vld [vmem:[%s1902_s22 + $0x10] sm:$0xff] }
  0x11   : > { %v492_v17 = vld [vmem:[%s2201_s3] sm:$0x3]  ;;  %v428_v18 = vunpack.c.l.bf16 %v396_v15  ;;  %v429_v19 = vunpack.c.h.bf16 %v396_v15  ;;  %v1726_v30 = vld [vmem:[%s2199_s1 + $0x10] sm:$0xff]   ;;  %v462_v33 = vunpack.c.l.bf16 %v413_v24  ;;  %v463_v34 = vunpack.c.h.bf16 %v413_v24  ;;  %v1727_v35 = vld [vmem:[%s2199_s1 + $0x48] sm:$0xff]  }
  0x12   : > { %1566 = vmatpush3.bf16.msra.mxu0 %v1718_v3  ;;  %1684 = vmatpush3.bf16.msra.mxu1 %v1718_v3  ;;  %v568_v22 = vld [vmem:[%s2202_s4] sm:$0x3]  ;;  %v1920_v25 = vrot.slane %v492_v17, %v496_v11  ;;  %v1922_v26 = vrot.slane %v492_v17, %v500_v13  ;;  %v1941_v39 = vld [vmem:[%s1902_s22 + $0x18] sm:$0xff]  ;;  %v433_v40 = vunpack.c.h.bf16 %v1929_v29  ;;  %v1728_v49 = vld [vmem:[%s2199_s1 + $0x8] sm:$0xff]  }
  0x13   : > { %1567 = vmatprep.subr.bf16.mxu0 %v1719_v4  ;;  %1677 = vmatprep.subr.bf16.mxu1 %v1719_v4  ;;  %v412_v23 = vld [vmem:[%s1902_s22 + $0x80] sm:$0xff]  ;;  %v1924_v27 = vrot.slane %v568_v22, %v496_v11  ;;  %v1926_v28 = vrot.slane %v568_v22, %v500_v13  ;;  %v435_v54 = vunpack.c.h.bf16 %v1941_v39  ;;  %v1963_v61 = vld [vmem:[%s1902_s22 + $0x90] sm:$0xff] }
  0x14   : > { %v460_v31 = vunpack.c.l.bf16 %v412_v23  ;;  %v461_v32 = vunpack.c.h.bf16 %v412_v23  ;;  %v505_v36 = vmul.f32 %v1922_v26, %v429_v19  ;;  %v507_v37 = vmul.f32 %v1922_v26, %v431_v21  ;;  %v1729_v50 = vld [vmem:[%s2199_s1 + $0x40] sm:$0xff]  }
  0x15   : > { %v504_v38 = vmul.f32 %v1920_v25, %v428_v18  ;;  %v539_v42 = vmul.f32 %v1922_v26, %v463_v34  ;;  %v506_v43 = vmul.f32 %v1920_v25, %v430_v20  ;;  %v538_v48 = vmul.f32 %v1920_v25, %v462_v33  ;;  %v1730_v62 = vld [vmem:[%s2199_s1] sm:$0xff]  }
  0x16   : > { %1568 = vmatpush3.bf16.msra.mxu0 %v1720_v6  ;;  %1685 = vmatpush3.bf16.msra.mxu1 %v1720_v6  ;;  %v537_v41 = vmul.f32 %v1922_v26, %v461_v32  ;;  %v536_v44 = vmul.f32 %v1920_v25, %v460_v31  ;;  %v581_v45 = vadd.f32 %v1926_v28, %v505_v36  ;;  %v465_v11 = vunpack.c.h.bf16 %v1963_v61 }
  0x17   : > { %1569 = vmatprep.subr.bf16.mxu0 %v1721_v7  ;;  %1678 = vmatprep.subr.bf16.mxu1 %v1721_v7  ;;  %v583_v46 = vadd.f32 %v1926_v28, %v507_v37  ;;  %v580_v47 = vadd.f32 %v1924_v27, %v504_v38  ;;  %v615_v52 = vadd.f32 %v1926_v28, %v539_v42  ;;  %v432_v21 = vunpack.c.l.bf16 %v1929_v29 }
  0x18   : > { %v613_v51 = vadd.f32 %v1926_v28, %v537_v41  ;;  %v582_v53 = vadd.f32 %v1924_v27, %v506_v43  ;;  %vm645_vm0 = vcmp.gt.f32.partialorder %v581_v45, 0.0  ;;  %v709_v55 = vmul.f32 0.01, %v581_v45 }
  0x19   : > { %vm647_vm1 = vcmp.gt.f32.partialorder %v583_v46, 0.0  ;;  %v711_v56 = vmul.f32 0.01, %v583_v46  ;;  %vm679_vm3 = vcmp.gt.f32.partialorder %v615_v52, 0.0  ;;  %v743_v58 = vmul.f32 0.01, %v615_v52 }
  0x1a   : > { %1570 = vmatpush3.bf16.msra.mxu0 %v1722_v9  ;;  %1686 = vmatpush3.bf16.msra.mxu1 %v1722_v9  ;;  %vm677_vm2 = vcmp.gt.f32.partialorder %v613_v51, 0.0  ;;  %v741_v57 = vmul.f32 0.01, %v613_v51  ;;  %v773_v59 = vsel %vm645_vm0, %v581_v45, %v709_v55  ;;  %vm644_vm4 = vcmp.gt.f32.partialorder %v580_v47, 0.0  ;;  %v416_v55 = vld [vmem:[%s1902_s22 + $0xa0] sm:$0xff] }
  0x1b   : > { %1571 = vmatprep.subr.bf16.mxu0 %v1723_v10  ;;  %1679 = vmatprep.subr.bf16.mxu1 %v1723_v10  ;;  %v775_v60 = vsel %vm647_vm1, %v583_v46, %v711_v56  ;;  %vm646_vm5 = vcmp.gt.f32.partialorder %v582_v53, 0.0  ;;  %v807_v1 = vsel %vm679_vm3, %v615_v52, %v743_v58  ;;  %v708_v2 = vmul.f32 0.01, %v580_v47  ;;  %v415_v10 = vld [vmem:[%s1902_s22 + $0x98] sm:$0xff]  ;;  %v417_v56 = vld [vmem:[%s1902_s22 + $0xa8] sm:$0xff] }
  0x1c   : > { %v869_v63 = vpack.c.bf16 %v775_v60, %v773_v59  ;;  %v805_v0 = vsel %vm677_vm2, %v613_v51, %v741_v57  ;;  %v710_v4 = vmul.f32 0.01, %v582_v53  ;;  %v612_v5 = vadd.f32 %v1924_v27, %v536_v44  ;;  %v400_v44 = vld [vmem:[%s1902_s22 + $0x20] sm:$0xff] }
  0x1d   : > { %v885_v3 = vpack.c.bf16 %v807_v1, %v805_v0  ;;  %v614_v6 = vadd.f32 %v1924_v27, %v538_v48  ;;  %v772_v7 = vsel %vm644_vm4, %v580_v47, %v708_v2  ;;  %v509_v8 = vmul.f32 %v1922_v26, %v433_v40 }
  0x1e   : > { %1572 = vmatpush3.bf16.msra.mxu0 %v1724_v12  ;;  %1687 = vmatpush3.bf16.msra.mxu1 %v1724_v12  ;;  %v511_v9 = vmul.f32 %v1922_v26, %v435_v54  ;;  %v774_v12 = vsel %vm646_vm5, %v582_v53, %v710_v4  ;;  %vm676_vm6 = vcmp.gt.f32.partialorder %v612_v5, 0.0  ;;  %v740_v13 = vmul.f32 0.01, %v612_v5 }
  0x1f   : > { %1573 = vmatprep.subr.bf16.mxu0 %v1725_v14  ;;  %1680 = vmatprep.subr.bf16.mxu1 %v1725_v14  ;;  %vm678_vm7 = vcmp.gt.f32.partialorder %v614_v6, 0.0  ;;  %v868_v14 = vpack.c.bf16 %v774_v12, %v772_v7  ;;  %v742_v15 = vmul.f32 0.01, %v614_v6  ;;  %v585_v16 = vadd.f32 %v1926_v28, %v509_v8 }
  0x20   : > { %1060 = vmatprep.mubr.bf16.mxu0 %v869_v63  ;;  %1124 = vmatprep.mubr.bf16.mxu1 %v885_v3  ;;  %v587_v17 = vadd.f32 %v1926_v28, %v511_v9  ;;  %v804_v18 = vsel %vm676_vm6, %v612_v5, %v740_v13  ;;  %v467_v19 = vunpack.c.h.bf16 %v415_v10  ;;  %v541_v20 = vmul.f32 %v1922_v26, %v465_v11 }
  0x21   : > { %v806_v22 = vsel %vm678_vm7, %v614_v6, %v742_v15  ;;  %vm649_vm8 = vcmp.gt.f32.partialorder %v585_v16, 0.0  ;;  %v713_v23 = vmul.f32 0.01, %v585_v16  ;;  %v434_v34 = vunpack.c.l.bf16 %v1941_v39  ;;  %v401_v39 = vld [vmem:[%s1902_s22 + $0x28] sm:$0xff] }
  0x22   : > { %1574 = vmatpush3.bf16.msra.mxu0 %v1726_v30  ;;  %1688 = vmatpush3.bf16.msra.mxu1 %v1726_v30  ;;  %vm651_vm9 = vcmp.gt.f32.partialorder %v587_v17, 0.0  ;;  %v884_v24 = vpack.c.bf16 %v806_v22, %v804_v18  ;;  %v715_v30 = vmul.f32 0.01, %v587_v17  ;;  %v543_v31 = vmul.f32 %v1922_v26, %v467_v19 }
  0x23   : > { %1575 = vmatprep.subr.bf16.mxu0 %v1727_v35  ;;  %1681 = vmatprep.subr.bf16.mxu1 %v1727_v35  ;;  %v617_v32 = vadd.f32 %v1926_v28, %v541_v20  ;;  %v777_v33 = vsel %vm649_vm8, %v585_v16, %v713_v23  ;;  %v508_v35 = vmul.f32 %v1920_v25, %v432_v21  ;;  %v464_v29 = vunpack.c.l.bf16 %v1963_v61 }
  0x24   : > { %v779_v36 = vsel %vm651_vm9, %v587_v17, %v715_v30  ;;  %v619_v37 = vadd.f32 %v1926_v28, %v543_v31  ;;  %v510_v41 = vmul.f32 %v1920_v25, %v434_v34  ;;  %v466_v43 = vunpack.c.l.bf16 %v415_v10 }
  0x25   : > { %vm681_vm10 = vcmp.gt.f32.partialorder %v617_v32, 0.0  ;;  %v745_v38 = vmul.f32 0.01, %v617_v32  ;;  %v871_v40 = vpack.c.bf16 %v779_v36, %v777_v33  ;;  %v584_v42 = vadd.f32 %v1924_v27, %v508_v35 }
  0x26   : > { %1576 = vmatpush3.bf16.msra.mxu0 %v1728_v49  ;;  %1689 = vmatpush3.bf16.msra.mxu1 %v1728_v49  ;;  %vm683_vm11 = vcmp.gt.f32.partialorder %v619_v37, 0.0  ;;  %v747_v45 = vmul.f32 0.01, %v619_v37  ;;  %v540_v47 = vmul.f32 %v1920_v25, %v464_v29  ;;  %v586_v48 = vadd.f32 %v1924_v27, %v510_v41 }
  0x27   : > { %1577 = vmatprep.subr.bf16.mxu0 %v1729_v50  ;;  %1682 = vmatprep.subr.bf16.mxu1 %v1729_v50  ;;  %v809_v46 = vsel %vm681_vm10, %v617_v32, %v745_v38  ;;  %vm648_vm12 = vcmp.gt.f32.partialorder %v584_v42, 0.0  ;;  %v712_v49 = vmul.f32 0.01, %v584_v42  ;;  %v542_v50 = vmul.f32 %v1920_v25, %v466_v43  ;;  %v403_v38 = vld [vmem:[%s1902_s22 + $0x38] sm:$0xff]  ;;  %v418_v43 = vld [vmem:[%s1902_s22 + $0xb0] sm:$0xff] }
  0x28   : > { %v811_v51 = vsel %vm683_vm11, %v619_v37, %v747_v45  ;;  %v616_v52 = vadd.f32 %v1924_v27, %v540_v47  ;;  %v437_v53 = vunpack.c.h.bf16 %v400_v44  ;;  %v439_v54 = vunpack.c.h.bf16 %v401_v39 }
  0x29   : > { %v887_v57 = vpack.c.bf16 %v811_v51, %v809_v46  ;;  %vm650_vm13 = vcmp.gt.f32.partialorder %v586_v48, 0.0  ;;  %v714_v58 = vmul.f32 0.01, %v586_v48  ;;  %v776_v59 = vsel %vm648_vm12, %v584_v42, %v712_v49 }
  0x2a   : > { %1578 = vmatpush3.bf16.msra.mxu0 %v1730_v62  ;;  %1690 = vmatpush3.bf16.msra.mxu1 %v1730_v62  ;;  %v618_v60 = vadd.f32 %v1924_v27, %v542_v50  ;;  %vm680_vm14 = vcmp.gt.f32.partialorder %v616_v52, 0.0  ;;  %v744_v61 = vmul.f32 0.01, %v616_v52  ;;  %v513_v62 = vmul.f32 %v1922_v26, %v437_v53  ;;  %v419_v50 = vld [vmem:[%s1902_s22 + $0xb8] sm:$0xff] }
  0x2b   : > { %v778_v63 = vsel %vm650_vm13, %v586_v48, %v714_v58  ;;  %v515_v0 = vmul.f32 %v1922_v26, %v439_v54  ;;  %v469_v1 = vunpack.c.h.bf16 %v416_v55  ;;  %v471_v2 = vunpack.c.h.bf16 %v417_v56 }
  0x2c   : > { %v870_v3 = vpack.c.bf16 %v778_v63, %v776_v59  ;;  %vm682_vm15 = vcmp.gt.f32.partialorder %v618_v60, 0.0  ;;  %v746_v4 = vmul.f32 0.01, %v618_v60  ;;  %v808_v5 = vsel %vm680_vm14, %v616_v52, %v744_v61 }
  0x2d   : > { %1061 = vmatmul.mubr.bf16.vlgmr.msra.gmra.mxu0 %v868_v14  ;;  %1125 = vmatmul.mubr.bf16.vlgmr.msra.gmra.mxu1 %v884_v24  ;;  %v589_v6 = vadd.f32 %v1926_v28, %v513_v62  ;;  %v591_v7 = vadd.f32 %v1926_v28, %v515_v0  ;;  %v545_v8 = vmul.f32 %v1922_v26, %v469_v1  ;;  %v436_v11 = vunpack.c.l.bf16 %v400_v44  ;;  %v402_v24 = vld [vmem:[%s1902_s22 + $0x30] sm:$0xff] }
  0x2e   : > { %1068 = vmatprep.mubr.bf16.mxu0 %v871_v40  ;;  %1132 = vmatprep.mubr.bf16.mxu1 %v887_v57  ;;  %v547_v9 = vmul.f32 %v1922_v26, %v471_v2  ;;  %v810_v10 = vsel %vm682_vm15, %v618_v60, %v746_v4  ;;  %v438_v12 = vunpack.c.l.bf16 %v401_v39  ;;  %v468_v13 = vunpack.c.l.bf16 %v416_v55 }
  0x2f   : > { %v886_v14 = vpack.c.bf16 %v810_v10, %v808_v5  ;;  %vm653_vm0 = vcmp.gt.f32.partialorder %v589_v6, 0.0  ;;  %vm655_vm1 = vcmp.gt.f32.partialorder %v591_v7, 0.0  ;;  %v717_v15 = vmul.f32 0.01, %v589_v6 }
  0x30   : > { %v719_v16 = vmul.f32 0.01, %v591_v7  ;;  %v621_v17 = vadd.f32 %v1926_v28, %v545_v8  ;;  %v623_v18 = vadd.f32 %v1926_v28, %v547_v9  ;;  %v512_v19 = vmul.f32 %v1920_v25, %v436_v11 }
  0x31   : > { %v781_v20 = vsel %vm653_vm0, %v589_v6, %v717_v15  ;;  %v514_v21 = vmul.f32 %v1920_v25, %v438_v12  ;;  %v470_v22 = vunpack.c.l.bf16 %v417_v56  ;;  %v544_v23 = vmul.f32 %v1920_v25, %v468_v13  ;;  %v404_v15 = vld [vmem:[%s1902_s22 + $0x40] sm:$0xff] }
  0x32   : > { %v783_v30 = vsel %vm655_vm1, %v591_v7, %v719_v16  ;;  %vm685_vm2 = vcmp.gt.f32.partialorder %v621_v17, 0.0  ;;  %vm687_vm3 = vcmp.gt.f32.partialorder %v623_v18, 0.0  ;;  %v749_v31 = vmul.f32 0.01, %v621_v17  ;;  %v405_v16 = vld [vmem:[%s1902_s22 + $0x48] sm:$0xff] }
  0x33   : > { %v873_v32 = vpack.c.bf16 %v783_v30, %v781_v20  ;;  %v751_v33 = vmul.f32 0.01, %v623_v18  ;;  %v588_v34 = vadd.f32 %v1924_v27, %v512_v19  ;;  %v590_v35 = vadd.f32 %v1924_v27, %v514_v21 }
  0x34   : > { %v813_v29 = vsel %vm685_vm2, %v621_v17, %v749_v31  ;;  %v546_v36 = vmul.f32 %v1920_v25, %v470_v22  ;;  %v620_v37 = vadd.f32 %v1924_v27, %v544_v23  ;;  %v441_v40 = vunpack.c.h.bf16 %v402_v24 }
  0x35   : > { %1069 = vmatmul.mubr.bf16.gmra.mxu0 %v870_v3  ;;  %1133 = vmatmul.mubr.bf16.gmra.mxu1 %v886_v14  ;;  %v815_v41 = vsel %vm687_vm3, %v623_v18, %v751_v33  ;;  %vm652_vm4 = vcmp.gt.f32.partialorder %v588_v34, 0.0  ;;  %vm654_vm5 = vcmp.gt.f32.partialorder %v590_v35, 0.0  ;;  %v716_v42 = vmul.f32 0.01, %v588_v34  ;;  %v421_v33 = vld [vmem:[%s1902_s22 + $0xc8] sm:$0xff] }
  0x36   : > { %1076 = vmatprep.mubr.bf16.mxu0 %v873_v32  ;;  %v889_v44 = vpack.c.bf16 %v815_v41, %v813_v29  ;;  %v718_v39 = vmul.f32 0.01, %v590_v35  ;;  %v622_v45 = vadd.f32 %v1924_v27, %v546_v36  ;;  %vm684_vm6 = vcmp.gt.f32.partialorder %v620_v37, 0.0  ;;  %v420_v32 = vld [vmem:[%s1902_s22 + $0xc0] sm:$0xff] }
  0x37   : > { %v780_v46 = vsel %vm652_vm4, %v588_v34, %v716_v42  ;;  %v748_v47 = vmul.f32 0.01, %v620_v37  ;;  %v443_v48 = vunpack.c.h.bf16 %v403_v38  ;;  %v517_v49 = vmul.f32 %v1922_v26, %v441_v40 }
  0x38   : > { %1140 = vmatprep.mubr.bf16.mxu1 %v889_v44  ;;  %v782_v51 = vsel %vm654_vm5, %v590_v35, %v718_v39  ;;  %vm686_vm7 = vcmp.gt.f32.partialorder %v622_v45, 0.0  ;;  %v750_v52 = vmul.f32 0.01, %v622_v45  ;;  %v473_v53 = vunpack.c.h.bf16 %v418_v43 }
  0x39   : > { %v872_v54 = vpack.c.bf16 %v782_v51, %v780_v46  ;;  %v812_v55 = vsel %vm684_vm6, %v620_v37, %v748_v47  ;;  %v519_v56 = vmul.f32 %v1922_v26, %v443_v48  ;;  %v593_v57 = vadd.f32 %v1926_v28, %v517_v49 }
  0x3a   : > { %v814_v58 = vsel %vm686_vm7, %v622_v45, %v750_v52  ;;  %v475_v59 = vunpack.c.h.bf16 %v419_v50  ;;  %v549_v60 = vmul.f32 %v1922_v26, %v473_v53  ;;  %v440_v61 = vunpack.c.l.bf16 %v402_v24 }
  0x3b   : > { %v888_v62 = vpack.c.bf16 %v814_v58, %v812_v55  ;;  %v595_v63 = vadd.f32 %v1926_v28, %v519_v56  ;;  %vm657_vm8 = vcmp.gt.f32.partialorder %v593_v57, 0.0  ;;  %v721_v0 = vmul.f32 0.01, %v593_v57 }
  0x3c   : > { %v551_v1 = vmul.f32 %v1922_v26, %v475_v59  ;;  %v625_v2 = vadd.f32 %v1926_v28, %v549_v60  ;;  %v442_v3 = vunpack.c.l.bf16 %v403_v38  ;;  %v516_v4 = vmul.f32 %v1920_v25, %v440_v61 }
  0x3d   : > { %1077 = vmatmul.mubr.bf16.gmra.mxu0 %v872_v54  ;;  %1141 = vmatmul.mubr.bf16.gmra.mxu1 %v888_v62  ;;  %vm659_vm9 = vcmp.gt.f32.partialorder %v595_v63, 0.0  ;;  %v723_v5 = vmul.f32 0.01, %v595_v63  ;;  %v785_v6 = vsel %vm657_vm8, %v593_v57, %v721_v0  ;;  %v472_v7 = vunpack.c.l.bf16 %v418_v43  ;;  %v406_v0 = vld [vmem:[%s1902_s22 + $0x50] sm:$0xff] }
  0x3e   : > { %v627_v8 = vadd.f32 %v1926_v28, %v551_v1  ;;  %vm689_vm10 = vcmp.gt.f32.partialorder %v625_v2, 0.0  ;;  %v753_v9 = vmul.f32 0.01, %v625_v2  ;;  %v518_v10 = vmul.f32 %v1920_v25, %v442_v3 }
  0x3f   : > { %v787_v11 = vsel %vm659_vm9, %v595_v63, %v723_v5  ;;  %v592_v12 = vadd.f32 %v1924_v27, %v516_v4  ;;  %v474_v13 = vunpack.c.l.bf16 %v419_v50  ;;  %v548_v14 = vmul.f32 %v1920_v25, %v472_v7 }
  0x40   : > { %v875_v17 = vpack.c.bf16 %v787_v11, %v785_v6  ;;  %vm691_vm11 = vcmp.gt.f32.partialorder %v627_v8, 0.0  ;;  %v755_v18 = vmul.f32 0.01, %v627_v8  ;;  %v817_v19 = vsel %vm689_vm10, %v625_v2, %v753_v9 }
  0x41   : > { %v594_v20 = vadd.f32 %v1924_v27, %v518_v10  ;;  %vm656_vm12 = vcmp.gt.f32.partialorder %v592_v12, 0.0  ;;  %v720_v21 = vmul.f32 0.01, %v592_v12  ;;  %v550_v22 = vmul.f32 %v1920_v25, %v474_v13  ;;  %v407_v10 = vld [vmem:[%s1902_s22 + $0x58] sm:$0xff] }
  0x42   : > { %1084 = vmatprep.mubr.bf16.mxu0 %v875_v17  ;;  %v819_v23 = vsel %vm691_vm11, %v627_v8, %v755_v18  ;;  %v624_v24 = vadd.f32 %v1924_v27, %v548_v14  ;;  %v445_v30 = vunpack.c.h.bf16 %v404_v15  ;;  %v447_v31 = vunpack.c.h.bf16 %v405_v16  ;;  %v422_v14 = vld [vmem:[%s1902_s22 + $0xd0] sm:$0xff] }
  0x43   : > { %v891_v34 = vpack.c.bf16 %v819_v23, %v817_v19  ;;  %vm658_vm13 = vcmp.gt.f32.partialorder %v594_v20, 0.0  ;;  %v722_v35 = vmul.f32 0.01, %v594_v20  ;;  %v784_v29 = vsel %vm656_vm12, %v592_v12, %v720_v21 }
  0x44   : > { %v626_v36 = vadd.f32 %v1924_v27, %v550_v22  ;;  %vm688_vm14 = vcmp.gt.f32.partialorder %v624_v24, 0.0  ;;  %v752_v37 = vmul.f32 0.01, %v624_v24  ;;  %v521_v38 = vmul.f32 %v1922_v26, %v445_v30  ;;  %v423_v22 = vld [vmem:[%s1902_s22 + $0xd8] sm:$0xff] }
  0x45   : > { %1148 = vmatprep.mubr.bf16.mxu1 %v891_v34  ;;  %v786_v40 = vsel %vm658_vm13, %v594_v20, %v722_v35  ;;  %v523_v41 = vmul.f32 %v1922_v26, %v447_v31  ;;  %v477_v42 = vunpack.c.h.bf16 %v420_v32  ;;  %v479_v43 = vunpack.c.h.bf16 %v421_v33 }
  0x46   : > { %v874_v44 = vpack.c.bf16 %v786_v40, %v784_v29  ;;  %vm690_vm15 = vcmp.gt.f32.partialorder %v626_v36, 0.0  ;;  %v754_v39 = vmul.f32 0.01, %v626_v36  ;;  %v816_v45 = vsel %vm688_vm14, %v624_v24, %v752_v37 }
  0x47   : > { %v597_v46 = vadd.f32 %v1926_v28, %v521_v38  ;;  %v599_v47 = vadd.f32 %v1926_v28, %v523_v41  ;;  %v553_v48 = vmul.f32 %v1922_v26, %v477_v42  ;;  %v555_v49 = vmul.f32 %v1922_v26, %v479_v43 }
  0x48   : > { %1085 = vmatmul.mubr.bf16.gmra.mxu0 %v874_v44  ;;  %v818_v50 = vsel %vm690_vm15, %v626_v36, %v754_v39  ;;  %v444_v51 = vunpack.c.l.bf16 %v404_v15  ;;  %v446_v52 = vunpack.c.l.bf16 %v405_v16  ;;  %v476_v53 = vunpack.c.l.bf16 %v420_v32 }
  0x49   : > { %v890_v54 = vpack.c.bf16 %v818_v50, %v816_v45  ;;  %vm661_vm0 = vcmp.gt.f32.partialorder %v597_v46, 0.0  ;;  %vm663_vm1 = vcmp.gt.f32.partialorder %v599_v47, 0.0  ;;  %v725_v55 = vmul.f32 0.01, %v597_v46 }
  0x4a   : > { %v727_v56 = vmul.f32 0.01, %v599_v47  ;;  %v629_v57 = vadd.f32 %v1926_v28, %v553_v48  ;;  %v631_v58 = vadd.f32 %v1926_v28, %v555_v49  ;;  %v520_v59 = vmul.f32 %v1920_v25, %v444_v51 }
  0x4b   : > { %1149 = vmatmul.mubr.bf16.gmra.mxu1 %v890_v54  ;;  %v789_v60 = vsel %vm661_vm0, %v597_v46, %v725_v55  ;;  %v522_v61 = vmul.f32 %v1920_v25, %v446_v52  ;;  %v478_v62 = vunpack.c.l.bf16 %v421_v33  ;;  %v552_v63 = vmul.f32 %v1920_v25, %v476_v53  ;;  %v408_v55 = vld [vmem:[%s1902_s22 + $0x60] sm:$0xff] }
  0x4c   : > { %v791_v1 = vsel %vm663_vm1, %v599_v47, %v727_v56  ;;  %vm693_vm2 = vcmp.gt.f32.partialorder %v629_v57, 0.0  ;;  %vm695_vm3 = vcmp.gt.f32.partialorder %v631_v58, 0.0  ;;  %v757_v2 = vmul.f32 0.01, %v629_v57  ;;  %v409_v56 = vld [vmem:[%s1902_s22 + $0x68] sm:$0xff] }
  0x4d   : > { %v877_v3 = vpack.c.bf16 %v791_v1, %v789_v60  ;;  %v759_v4 = vmul.f32 0.01, %v631_v58  ;;  %v596_v5 = vadd.f32 %v1924_v27, %v520_v59  ;;  %v598_v6 = vadd.f32 %v1924_v27, %v522_v61 }
  0x4e   : > { %v821_v7 = vsel %vm693_vm2, %v629_v57, %v757_v2  ;;  %v554_v8 = vmul.f32 %v1920_v25, %v478_v62  ;;  %v628_v9 = vadd.f32 %v1924_v27, %v552_v63  ;;  %v449_v11 = vunpack.c.h.bf16 %v406_v0 }
  0x4f   : > { %1092 = vmatprep.mubr.bf16.mxu0 %v877_v3  ;;  %v823_v12 = vsel %vm695_vm3, %v631_v58, %v759_v4  ;;  %vm660_vm4 = vcmp.gt.f32.partialorder %v596_v5, 0.0  ;;  %vm662_vm5 = vcmp.gt.f32.partialorder %v598_v6, 0.0  ;;  %v724_v13 = vmul.f32 0.01, %v596_v5  ;;  %v424_v3 = vld [vmem:[%s1902_s22 + $0xe0] sm:$0xff]  ;;  %v425_v4 = vld [vmem:[%s1902_s22 + $0xe8] sm:$0xff] }
  0x50   : > { %v893_v15 = vpack.c.bf16 %v823_v12, %v821_v7  ;;  %v726_v16 = vmul.f32 0.01, %v598_v6  ;;  %v630_v17 = vadd.f32 %v1924_v27, %v554_v8  ;;  %vm692_vm6 = vcmp.gt.f32.partialorder %v628_v9, 0.0 }
  0x51   : > { %v788_v18 = vsel %vm660_vm4, %v596_v5, %v724_v13  ;;  %v756_v19 = vmul.f32 0.01, %v628_v9  ;;  %v451_v20 = vunpack.c.h.bf16 %v407_v10  ;;  %v525_v21 = vmul.f32 %v1922_v26, %v449_v11 }
  0x52   : > { %1156 = vmatprep.mubr.bf16.mxu1 %v893_v15  ;;  %v790_v23 = vsel %vm662_vm5, %v598_v6, %v726_v16  ;;  %vm694_vm7 = vcmp.gt.f32.partialorder %v630_v17, 0.0  ;;  %v758_v24 = vmul.f32 0.01, %v630_v17  ;;  %v481_v30 = vunpack.c.h.bf16 %v422_v14 }
  0x53   : > { %v876_v31 = vpack.c.bf16 %v790_v23, %v788_v18  ;;  %v820_v32 = vsel %vm692_vm6, %v628_v9, %v756_v19  ;;  %v527_v33 = vmul.f32 %v1922_v26, %v451_v20  ;;  %v601_v34 = vadd.f32 %v1926_v28, %v525_v21 }
  0x54   : > { %v822_v35 = vsel %vm694_vm7, %v630_v17, %v758_v24  ;;  %v483_v29 = vunpack.c.h.bf16 %v423_v22  ;;  %v557_v36 = vmul.f32 %v1922_v26, %v481_v30  ;;  %v448_v37 = vunpack.c.l.bf16 %v406_v0 }
  0x55   : > { %1093 = vmatmul.mubr.bf16.gmra.mxu0 %v876_v31  ;;  %v892_v38 = vpack.c.bf16 %v822_v35, %v820_v32  ;;  %v603_v40 = vadd.f32 %v1926_v28, %v527_v33  ;;  %vm665_vm8 = vcmp.gt.f32.partialorder %v601_v34, 0.0  ;;  %v729_v41 = vmul.f32 0.01, %v601_v34 }
  0x56   : > { %v559_v42 = vmul.f32 %v1922_v26, %v483_v29  ;;  %v633_v43 = vadd.f32 %v1926_v28, %v557_v36  ;;  %v450_v44 = vunpack.c.l.bf16 %v407_v10  ;;  %v524_v39 = vmul.f32 %v1920_v25, %v448_v37 }
  0x57   : > { %1157 = vmatmul.mubr.bf16.gmra.mxu1 %v892_v38  ;;  %vm667_vm9 = vcmp.gt.f32.partialorder %v603_v40, 0.0  ;;  %v731_v45 = vmul.f32 0.01, %v603_v40  ;;  %v793_v46 = vsel %vm665_vm8, %v601_v34, %v729_v41  ;;  %v480_v47 = vunpack.c.l.bf16 %v422_v14  ;;  %v410_v41 = vld [vmem:[%s1902_s22 + $0x70] sm:$0xff] }
  0x58   : > { %v635_v48 = vadd.f32 %v1926_v28, %v559_v42  ;;  %vm697_vm10 = vcmp.gt.f32.partialorder %v633_v43, 0.0  ;;  %v761_v49 = vmul.f32 0.01, %v633_v43  ;;  %v526_v50 = vmul.f32 %v1920_v25, %v450_v44 }
  0x59   : > { %v795_v51 = vsel %vm667_vm9, %v603_v40, %v731_v45  ;;  %v600_v52 = vadd.f32 %v1924_v27, %v524_v39  ;;  %v482_v53 = vunpack.c.l.bf16 %v423_v22  ;;  %v556_v54 = vmul.f32 %v1920_v25, %v480_v47 }
  0x5a   : > { %v879_v57 = vpack.c.bf16 %v795_v51, %v793_v46  ;;  %vm699_vm11 = vcmp.gt.f32.partialorder %v635_v48, 0.0  ;;  %v763_v58 = vmul.f32 0.01, %v635_v48  ;;  %v825_v59 = vsel %vm697_vm10, %v633_v43, %v761_v49 }
  0x5b   : > { %v602_v60 = vadd.f32 %v1924_v27, %v526_v50  ;;  %vm664_vm12 = vcmp.gt.f32.partialorder %v600_v52, 0.0  ;;  %v728_v61 = vmul.f32 0.01, %v600_v52  ;;  %v558_v62 = vmul.f32 %v1920_v25, %v482_v53  ;;  %v411_v50 = vld [vmem:[%s1902_s22 + $0x78] sm:$0xff] }
  0x5c   : > { %1100 = vmatprep.mubr.bf16.mxu0 %v879_v57  ;;  %v827_v63 = vsel %vm699_vm11, %v635_v48, %v763_v58  ;;  %v632_v0 = vadd.f32 %v1924_v27, %v556_v54  ;;  %v453_v1 = vunpack.c.h.bf16 %v408_v55  ;;  %v455_v2 = vunpack.c.h.bf16 %v409_v56  ;;  %v426_v54 = vld [vmem:[%s1902_s22 + $0xf0] sm:$0xff] }
  0x5d   : > { %v895_v5 = vpack.c.bf16 %v827_v63, %v825_v59  ;;  %vm666_vm13 = vcmp.gt.f32.partialorder %v602_v60, 0.0  ;;  %v730_v6 = vmul.f32 0.01, %v602_v60  ;;  %v792_v7 = vsel %vm664_vm12, %v600_v52, %v728_v61 }
  0x5e   : > { %v634_v8 = vadd.f32 %v1924_v27, %v558_v62  ;;  %vm696_vm14 = vcmp.gt.f32.partialorder %v632_v0, 0.0  ;;  %v760_v9 = vmul.f32 0.01, %v632_v0  ;;  %v529_v10 = vmul.f32 %v1922_v26, %v453_v1  ;;  %v427_v62 = vld [vmem:[%s1902_s22 + $0xf8] sm:$0xff] }
  0x5f   : > { %1164 = vmatprep.mubr.bf16.mxu1 %v895_v5  ;;  %v794_v11 = vsel %vm666_vm13, %v602_v60, %v730_v6  ;;  %v531_v12 = vmul.f32 %v1922_v26, %v455_v2  ;;  %v485_v13 = vunpack.c.h.bf16 %v424_v3  ;;  %v487_v14 = vunpack.c.h.bf16 %v425_v4 }
  0x60   : > { %v878_v15 = vpack.c.bf16 %v794_v11, %v792_v7  ;;  %vm698_vm15 = vcmp.gt.f32.partialorder %v634_v8, 0.0  ;;  %v762_v16 = vmul.f32 0.01, %v634_v8  ;;  %v824_v17 = vsel %vm696_vm14, %v632_v0, %v760_v9 }
  0x61   : > { %v605_v18 = vadd.f32 %v1926_v28, %v529_v10  ;;  %v607_v19 = vadd.f32 %v1926_v28, %v531_v12  ;;  %v561_v20 = vmul.f32 %v1922_v26, %v485_v13  ;;  %v563_v21 = vmul.f32 %v1922_v26, %v487_v14 }
  0x62   : > { %1101 = vmatmul.mubr.bf16.gmra.mxu0 %v878_v15  ;;  %v826_v22 = vsel %vm698_vm15, %v634_v8, %v762_v16  ;;  %v452_v23 = vunpack.c.l.bf16 %v408_v55  ;;  %v454_v24 = vunpack.c.l.bf16 %v409_v56  ;;  %v484_v30 = vunpack.c.l.bf16 %v424_v3 }
  0x63   : > { %v894_v31 = vpack.c.bf16 %v826_v22, %v824_v17  ;;  %vm669_vm0 = vcmp.gt.f32.partialorder %v605_v18, 0.0  ;;  %vm671_vm1 = vcmp.gt.f32.partialorder %v607_v19, 0.0  ;;  %v733_v32 = vmul.f32 0.01, %v605_v18 }
  0x64   : > { %v735_v33 = vmul.f32 0.01, %v607_v19  ;;  %v637_v34 = vadd.f32 %v1926_v28, %v561_v20  ;;  %v639_v35 = vadd.f32 %v1926_v28, %v563_v21  ;;  %v528_v29 = vmul.f32 %v1920_v25, %v452_v23 }
  0x65   : > { %1165 = vmatmul.mubr.bf16.gmra.mxu1 %v894_v31  ;;  %v797_v36 = vsel %vm669_vm0, %v605_v18, %v733_v32  ;;  %v530_v37 = vmul.f32 %v1920_v25, %v454_v24  ;;  %v486_v38 = vunpack.c.l.bf16 %v425_v4  ;;  %v560_v40 = vmul.f32 %v1920_v25, %v484_v30 }
  0x66   : > { %v799_v42 = vsel %vm671_vm1, %v607_v19, %v735_v33  ;;  %vm701_vm2 = vcmp.gt.f32.partialorder %v637_v34, 0.0  ;;  %vm703_vm3 = vcmp.gt.f32.partialorder %v639_v35, 0.0  ;;  %v765_v43 = vmul.f32 0.01, %v637_v34 }
  0x67   : > { %v881_v44 = vpack.c.bf16 %v799_v42, %v797_v36  ;;  %v767_v39 = vmul.f32 0.01, %v639_v35  ;;  %v604_v45 = vadd.f32 %v1924_v27, %v528_v29  ;;  %v606_v46 = vadd.f32 %v1924_v27, %v530_v37 }
  0x68   : > { %v829_v47 = vsel %vm701_vm2, %v637_v34, %v765_v43  ;;  %v562_v48 = vmul.f32 %v1920_v25, %v486_v38  ;;  %v636_v49 = vadd.f32 %v1924_v27, %v560_v40  ;;  %v457_v51 = vunpack.c.h.bf16 %v410_v41 }
  0x69   : > { %1108 = vmatprep.mubr.bf16.mxu0 %v881_v44  ;;  %v831_v52 = vsel %vm703_vm3, %v639_v35, %v767_v39  ;;  %vm668_vm4 = vcmp.gt.f32.partialorder %v604_v45, 0.0  ;;  %vm670_vm5 = vcmp.gt.f32.partialorder %v606_v46, 0.0  ;;  %v732_v53 = vmul.f32 0.01, %v604_v45 }
  0x6a   : > { %v897_v55 = vpack.c.bf16 %v831_v52, %v829_v47  ;;  %v734_v56 = vmul.f32 0.01, %v606_v46  ;;  %v638_v57 = vadd.f32 %v1924_v27, %v562_v48  ;;  %vm700_vm6 = vcmp.gt.f32.partialorder %v636_v49, 0.0 }
  0x6b   : > { %v796_v58 = vsel %vm668_vm4, %v604_v45, %v732_v53  ;;  %v764_v59 = vmul.f32 0.01, %v636_v49  ;;  %v459_v60 = vunpack.c.h.bf16 %v411_v50  ;;  %v533_v61 = vmul.f32 %v1922_v26, %v457_v51 }
  0x6c   : > { %1172 = vmatprep.mubr.bf16.mxu1 %v897_v55  ;;  %v798_v63 = vsel %vm670_vm5, %v606_v46, %v734_v56  ;;  %vm702_vm7 = vcmp.gt.f32.partialorder %v638_v57, 0.0  ;;  %v766_v0 = vmul.f32 0.01, %v638_v57  ;;  %v489_v1 = vunpack.c.h.bf16 %v426_v54 }
  0x6d   : > { %v880_v2 = vpack.c.bf16 %v798_v63, %v796_v58  ;;  %v828_v3 = vsel %vm700_vm6, %v636_v49, %v764_v59  ;;  %v535_v4 = vmul.f32 %v1922_v26, %v459_v60  ;;  %v609_v5 = vadd.f32 %v1926_v28, %v533_v61 }
  0x6e   : > { %v830_v6 = vsel %vm702_vm7, %v638_v57, %v766_v0  ;;  %v491_v7 = vunpack.c.h.bf16 %v427_v62  ;;  %v565_v8 = vmul.f32 %v1922_v26, %v489_v1  ;;  %v456_v9 = vunpack.c.l.bf16 %v410_v41 }
  0x6f   : > { %1109 = vmatmul.mubr.bf16.gmra.mxu0 %v880_v2  ;;  %v896_v10 = vpack.c.bf16 %v830_v6, %v828_v3  ;;  %v611_v11 = vadd.f32 %v1926_v28, %v535_v4  ;;  %vm673_vm8 = vcmp.gt.f32.partialorder %v609_v5, 0.0  ;;  %v737_v12 = vmul.f32 0.01, %v609_v5 }
  0x70   : > { %v567_v13 = vmul.f32 %v1922_v26, %v491_v7  ;;  %v641_v14 = vadd.f32 %v1926_v28, %v565_v8  ;;  %v458_v15 = vunpack.c.l.bf16 %v411_v50  ;;  %v532_v16 = vmul.f32 %v1920_v25, %v456_v9  ;;  %v2116_v50 = vld [vmem:[%s2200_s2] ss:$0 sm:$0xff] }
  0x71   : > { %1173 = vmatmul.mubr.bf16.gmra.mxu1 %v896_v10  ;;  %vm675_vm9 = vcmp.gt.f32.partialorder %v611_v11, 0.0  ;;  %v739_v17 = vmul.f32 0.01, %v611_v11  ;;  %v801_v18 = vsel %vm673_vm8, %v609_v5, %v737_v12  ;;  %v488_v19 = vunpack.c.l.bf16 %v426_v54 }
  0x72   : > { %v643_v20 = vadd.f32 %v1926_v28, %v567_v13  ;;  %vm705_vm10 = vcmp.gt.f32.partialorder %v641_v14, 0.0  ;;  %v769_v21 = vmul.f32 0.01, %v641_v14  ;;  %v534_v22 = vmul.f32 %v1920_v25, %v458_v15 }
  0x73   : > { %v803_v23 = vsel %vm675_vm9, %v611_v11, %v739_v17  ;;  %v608_v24 = vadd.f32 %v1924_v27, %v532_v16  ;;  %v490_v26 = vunpack.c.l.bf16 %v427_v62  ;;  %v564_v30 = vmul.f32 %v1920_v25, %v488_v19 }
  0x74   : > { %v883_v31 = vpack.c.bf16 %v803_v23, %v801_v18  ;;  %vm707_vm11 = vcmp.gt.f32.partialorder %v643_v20, 0.0  ;;  %v771_v32 = vmul.f32 0.01, %v643_v20  ;;  %v833_v33 = vsel %vm705_vm10, %v641_v14, %v769_v21 }
  0x75   : > { %v610_v34 = vadd.f32 %v1924_v27, %v534_v22  ;;  %vm672_vm12 = vcmp.gt.f32.partialorder %v608_v24, 0.0  ;;  %v736_v35 = vmul.f32 0.01, %v608_v24  ;;  %v566_v28 = vmul.f32 %v1920_v25, %v490_v26 }
  0x76   : > { %1116 = vmatprep.mubr.bf16.mxu0 %v883_v31  ;;  %v835_v29 = vsel %vm707_vm11, %v643_v20, %v771_v32  ;;  %v640_v36 = vadd.f32 %v1924_v27, %v564_v30 }
  0x77   : > { %v899_v37 = vpack.c.bf16 %v835_v29, %v833_v33  ;;  %vm674_vm13 = vcmp.gt.f32.partialorder %v610_v34, 0.0  ;;  %v738_v38 = vmul.f32 0.01, %v610_v34  ;;  %v800_v40 = vsel %vm672_vm12, %v608_v24, %v736_v35 }
  0x78   : > { %v642_v41 = vadd.f32 %v1924_v27, %v566_v28  ;;  %vm704_vm14 = vcmp.gt.f32.partialorder %v640_v36, 0.0  ;;  %v768_v42 = vmul.f32 0.01, %v640_v36 }
  0x79   : > { %1180 = vmatprep.mubr.bf16.mxu1 %v899_v37  ;;  %v802_v43 = vsel %vm674_vm13, %v610_v34, %v738_v38 }
  0x7a   : > { %v882_v44 = vpack.c.bf16 %v802_v43, %v800_v40  ;;  %vm706_vm15 = vcmp.gt.f32.partialorder %v642_v41, 0.0  ;;  %v770_v39 = vmul.f32 0.01, %v642_v41  ;;  %v832_v45 = vsel %vm704_vm14, %v640_v36, %v768_v42 }
  0x7c   : > { %1117 = vmatmul.mubr.bf16.gmra.mxu0 %v882_v44  ;;  %v834_v25 = vsel %vm706_vm15, %v642_v41, %v770_v39 }
  0x7d   : > { %v898_v46 = vpack.c.bf16 %v834_v25, %v832_v45 }
  0x7f   : > { %1181 = vmatmul.mubr.bf16.gmra.mxu1 %v898_v46 }
  0xed   : > { %v1579_v47 = vpop.f32.mrf.mxu0  ;;  %v1627_v48 = vpop.f32.mrf.mxu1 }
  0xef   : > { %v1580_v49 = vpop.f32.mrf.mxu0  ;;  %v1628_v51 = vpop.f32.mrf.mxu1 }
  0xf0   : > { %v1581_v27 = vadd.f32 %v1580_v49, %v1579_v47  ;;  %v1629_v54 = vadd.f32 %v1628_v51, %v1627_v48 }
  0xf1   : > { %v1582_v52 = vpop.f32.mrf.mxu0  ;;  %v1630_v55 = vpop.f32.mrf.mxu1 }
  0xf2   : > { %v1295_v53 = vadd.f32 %v1581_v27, %v2116_v50  ;;  %v1311_v57 = vadd.f32 %v1629_v54, %v2116_v50 }
  0xf3   : > { %v1583_v56 = vpop.f32.mrf.mxu0  ;;  %v1631_v59 = vpop.f32.mrf.mxu1 }
  0xf4   : > { %1731 = vtanh.f32 %v1295_v53  ;;  %v1584_v58 = vadd.f32 %v1583_v56, %v1582_v52  ;;  %v1632_v61 = vadd.f32 %v1631_v59, %v1630_v55 }
  0xf5   : > { %1733 = vtanh.f32 %v1311_v57  ;;  %v1585_v63 = vpop.f32.mrf.mxu0  ;;  %v1633_v1 = vpop.f32.mrf.mxu1 }
  0xf6   : > { %v1296_v60 = vadd.f32 %v1584_v58, %v2116_v50  ;;  %v1312_v62 = vadd.f32 %v1632_v61, %v2116_v50 }
  0xf7   : > { %v1586_v0 = vpop.f32.mrf.mxu0  ;;  %v1634_v5 = vpop.f32.mrf.mxu1 }
  0xf8   : > { %1735 = vtanh.f32 %v1296_v60  ;;  %v1587_v2 = vadd.f32 %v1586_v0, %v1585_v63  ;;  %v1635_v6 = vadd.f32 %v1634_v5, %v1633_v1 }
  0xf9   : > { %1737 = vtanh.f32 %v1312_v62  ;;  %v1588_v3 = vpop.f32.mrf.mxu0  ;;  %v1636_v8 = vpop.f32.mrf.mxu1 }
  0xfa   : > { %v1297_v4 = vadd.f32 %v1587_v2, %v2116_v50  ;;  %v1313_v11 = vadd.f32 %v1635_v6, %v2116_v50 }
  0xfb   : > { %v1589_v7 = vpop.f32.mrf.mxu0  ;;  %v1637_v13 = vpop.f32.mrf.mxu1 }
  0xfc   : > { %1739 = vtanh.f32 %v1297_v4  ;;  %v1590_v9 = vadd.f32 %v1589_v7, %v1588_v3  ;;  %v1638_v15 = vadd.f32 %v1637_v13, %v1636_v8 }
  0xfd   : > { %1741 = vtanh.f32 %v1313_v11  ;;  %v1591_v18 = vpop.f32.mrf.mxu0  ;;  %v1639_v20 = vpop.f32.mrf.mxu1 }
  0xfe   : > { %v1298_v12 = vadd.f32 %v1590_v9, %v2116_v50  ;;  %v1314_v17 = vadd.f32 %v1638_v15, %v2116_v50 }
  0xff   : > { %v1592_v21 = vpop.f32.mrf.mxu0  ;;  %v1640_v23 = vpop.f32.mrf.mxu1 }
 0x100   : > { %1743 = vtanh.f32 %v1298_v12  ;;  %v1593_v22 = vadd.f32 %v1592_v21, %v1591_v18  ;;  %v1641_v30 = vadd.f32 %v1640_v23, %v1639_v20 }
 0x101   : > { %v1732_v10 = vpop.eup %1731  ;;  %1745 = vtanh.f32 %v1314_v17  ;;  %v1594_v24 = vpop.f32.mrf.mxu0 }
 0x102   : > { %1359 = vst [vmem:[%s2128_s26] sm:$0xff] %v1732_v10  ;;  %v1734_v14 = vpop.eup %1733  ;;  %v1299_v26 = vadd.f32 %v1593_v22, %v2116_v50  ;;  %v1642_v31 = vpop.f32.mrf.mxu1  ;;  %v1315_v34 = vadd.f32 %v1641_v30, %v2116_v50 }
 0x103   : > { %1375 = vst [vmem:[%s2128_s26 + $0x80] sm:$0xff] %v1734_v14  ;;  %v1595_v32 = vpop.f32.mrf.mxu0 }
 0x104   : > { %1747 = vtanh.f32 %v1299_v26  ;;  %v1596_v35 = vadd.f32 %v1595_v32, %v1594_v24  ;;  %v1643_v28 = vpop.f32.mrf.mxu1 }
 0x105   : > { %v1736_v16 = vpop.eup %1735  ;;  %1749 = vtanh.f32 %v1315_v34  ;;  %v1644_v36 = vadd.f32 %v1643_v28, %v1642_v31 }
 0x106   : > { %1360 = vst [vmem:[%s2128_s26 + $0x8] sm:$0xff] %v1736_v16  ;;  %v1738_v19 = vpop.eup %1737  ;;  %v1300_v29 = vadd.f32 %v1596_v35, %v2116_v50 }
 0x107   : > { %1376 = vst [vmem:[%s2128_s26 + $0x88] sm:$0xff] %v1738_v19  ;;  %v1316_v40 = vadd.f32 %v1644_v36, %v2116_v50 }
 0x108   : > { %1751 = vtanh.f32 %v1300_v29  ;;  %v1597_v41 = vpop.f32.mrf.mxu0 }
 0x109   : > { %v1740_v33 = vpop.eup %1739  ;;  %1753 = vtanh.f32 %v1316_v40 }
 0x10a   : > { %1361 = vst [vmem:[%s2128_s26 + $0x10] sm:$0xff] %v1740_v33  ;;  %v1742_v37 = vpop.eup %1741  ;;  %v1598_v43 = vpop.f32.mrf.mxu0 }
 0x10b   : > { %1377 = vst [vmem:[%s2128_s26 + $0x90] sm:$0xff] %v1742_v37  ;;  %v1645_v44 = vpop.f32.mrf.mxu1  ;;  %v1599_v39 = vadd.f32 %v1598_v43, %v1597_v41 }
 0x10c   : > { %v1600_v45 = vpop.f32.mrf.mxu0 }
 0x10d   : > { %v1744_v38 = vpop.eup %1743  ;;  %v1301_v25 = vadd.f32 %v1599_v39, %v2116_v50  ;;  %v1646_v46 = vpop.f32.mrf.mxu1 }
 0x10e   : > { %1362 = vst [vmem:[%s2128_s26 + $0x18] sm:$0xff] %v1744_v38  ;;  %v1746_v42 = vpop.eup %1745  ;;  %v1647_v47 = vadd.f32 %v1646_v46, %v1645_v44  ;;  %v1601_v48 = vpop.f32.mrf.mxu0 }
 0x10f   : > { %1378 = vst [vmem:[%s2128_s26 + $0x98] sm:$0xff] %v1746_v42  ;;  %1755 = vtanh.f32 %v1301_v25  ;;  %v1648_v27 = vpop.f32.mrf.mxu1  ;;  %v1602_v51 = vadd.f32 %v1601_v48, %v1600_v45 }
 0x110   : > { %v1317_v52 = vadd.f32 %v1647_v47, %v2116_v50 }
 0x111   : > { %v1748_v49 = vpop.eup %1747  ;;  %v1302_v54 = vadd.f32 %v1602_v51, %v2116_v50  ;;  %v1649_v55 = vpop.f32.mrf.mxu1 }
 0x112   : > { %1363 = vst [vmem:[%s2128_s26 + $0x20] sm:$0xff] %v1748_v49  ;;  %v1750_v53 = vpop.eup %1749  ;;  %1757 = vtanh.f32 %v1317_v52  ;;  %v1650_v56 = vadd.f32 %v1649_v55, %v1648_v27 }
 0x113   : > { %1379 = vst [vmem:[%s2128_s26 + $0xa0] sm:$0xff] %v1750_v53  ;;  %1759 = vtanh.f32 %v1302_v54 }
 0x114   : > { %v1318_v58 = vadd.f32 %v1650_v56, %v2116_v50 }
 0x115   : > { %v1752_v57 = vpop.eup %1751  ;;  %v1603_v60 = vpop.f32.mrf.mxu0 }
 0x116   : > { %1364 = vst [vmem:[%s2128_s26 + $0x28] sm:$0xff] %v1752_v57  ;;  %v1754_v59 = vpop.eup %1753  ;;  %1761 = vtanh.f32 %v1318_v58 }
 0x117   : > { %1380 = vst [vmem:[%s2128_s26 + $0xa8] sm:$0xff] %v1754_v59  ;;  %v1651_v61 = vpop.f32.mrf.mxu1  ;;  %v1604_v62 = vpop.f32.mrf.mxu0 }
 0x118   : > { %v1605_v63 = vadd.f32 %v1604_v62, %v1603_v60 }
 0x119   : > { %v1652_v0 = vpop.f32.mrf.mxu1  ;;  %v1606_v1 = vpop.f32.mrf.mxu0 }
 0x11a   : > { %v1303_v2 = vadd.f32 %v1605_v63, %v2116_v50  ;;  %v1653_v3 = vadd.f32 %v1652_v0, %v1651_v61 }
 0x11b   : > { %v1654_v4 = vpop.f32.mrf.mxu1  ;;  %v1607_v5 = vpop.f32.mrf.mxu0 }
 0x11c   : > { %v1756_v6 = vpop.eup %1755  ;;  %1763 = vtanh.f32 %v1303_v2  ;;  %v1319_v7 = vadd.f32 %v1653_v3, %v2116_v50  ;;  %v1608_v8 = vadd.f32 %v1607_v5, %v1606_v1 }
 0x11d   : > { %1365 = vst [vmem:[%s2128_s26 + $0x30] sm:$0xff] %v1756_v6  ;;  %v1655_v9 = vpop.f32.mrf.mxu1 }
 0x11e   : > { %1765 = vtanh.f32 %v1319_v7  ;;  %v1304_v10 = vadd.f32 %v1608_v8, %v2116_v50  ;;  %v1656_v11 = vadd.f32 %v1655_v9, %v1654_v4 }
 0x11f   : > { %v1758_v12 = vpop.eup %1757 }
 0x120   : > { %v1760_v13 = vpop.eup %1759  ;;  %1381 = vst [vmem:[%s2128_s26 + $0xb0] sm:$0xff] %v1758_v12  ;;  %1767 = vtanh.f32 %v1304_v10  ;;  %v1320_v14 = vadd.f32 %v1656_v11, %v2116_v50 }
 0x121   : > { %1366 = vst [vmem:[%s2128_s26 + $0x38] sm:$0xff] %v1760_v13 }
 0x122   : > { %1769 = vtanh.f32 %v1320_v14  ;;  %v1609_v15 = vpop.f32.mrf.mxu0 }
 0x123   : > { %v1762_v16 = vpop.eup %1761 }
 0x124   : > { %1382 = vst [vmem:[%s2128_s26 + $0xb8] sm:$0xff] %v1762_v16  ;;  %v1610_v17 = vpop.f32.mrf.mxu0 }
 0x125   : > { %v1657_v18 = vpop.f32.mrf.mxu1  ;;  %v1611_v19 = vadd.f32 %v1610_v17, %v1609_v15 }
 0x126   : > { %v1612_v20 = vpop.f32.mrf.mxu0 }
 0x127   : > { %v1305_v21 = vadd.f32 %v1611_v19, %v2116_v50  ;;  %v1658_v22 = vpop.f32.mrf.mxu1 }
 0x128   : > { %v1659_v23 = vadd.f32 %v1658_v22, %v1657_v18  ;;  %v1613_v24 = vpop.f32.mrf.mxu0 }
 0x129   : > { %v1764_v26 = vpop.eup %1763  ;;  %1771 = vtanh.f32 %v1305_v21  ;;  %v1660_v30 = vpop.f32.mrf.mxu1  ;;  %v1614_v31 = vadd.f32 %v1613_v24, %v1612_v20 }
 0x12a   : > { %1367 = vst [vmem:[%s2128_s26 + $0x40] sm:$0xff] %v1764_v26  ;;  %v1321_v32 = vadd.f32 %v1659_v23, %v2116_v50 }
 0x12b   : > { %v1766_v33 = vpop.eup %1765  ;;  %v1306_v34 = vadd.f32 %v1614_v31, %v2116_v50  ;;  %v1661_v35 = vpop.f32.mrf.mxu1 }
 0x12c   : > { %1383 = vst [vmem:[%s2128_s26 + $0xc0] sm:$0xff] %v1766_v33  ;;  %1773 = vtanh.f32 %v1321_v32  ;;  %v1662_v28 = vadd.f32 %v1661_v35, %v1660_v30 }
 0x12d   : > { %v1768_v29 = vpop.eup %1767  ;;  %1775 = vtanh.f32 %v1306_v34 }
 0x12e   : > { %1368 = vst [vmem:[%s2128_s26 + $0x48] sm:$0xff] %v1768_v29  ;;  %v1322_v36 = vadd.f32 %v1662_v28, %v2116_v50 }
 0x12f   : > { %v1770_v37 = vpop.eup %1769  ;;  %v1615_v38 = vpop.f32.mrf.mxu0 }
 0x130   : > { %1384 = vst [vmem:[%s2128_s26 + $0xc8] sm:$0xff] %v1770_v37  ;;  %1777 = vtanh.f32 %v1322_v36 }
 0x131   : > { %v1663_v40 = vpop.f32.mrf.mxu1  ;;  %v1616_v41 = vpop.f32.mrf.mxu0 }
 0x132   : > { %v1617_v42 = vadd.f32 %v1616_v41, %v1615_v38 }
 0x133   : > { %v1664_v43 = vpop.f32.mrf.mxu1  ;;  %v1618_v44 = vpop.f32.mrf.mxu0 }
 0x134   : > { %v1307_v39 = vadd.f32 %v1617_v42, %v2116_v50  ;;  %v1665_v45 = vadd.f32 %v1664_v43, %v1663_v40 }
 0x135   : > { %v1666_v25 = vpop.f32.mrf.mxu1  ;;  %v1619_v46 = vpop.f32.mrf.mxu0 }
 0x136   : > { %v1772_v47 = vpop.eup %1771  ;;  %1779 = vtanh.f32 %v1307_v39  ;;  %v1323_v48 = vadd.f32 %v1665_v45, %v2116_v50  ;;  %v1620_v49 = vadd.f32 %v1619_v46, %v1618_v44 }
 0x137   : > { %1369 = vst [vmem:[%s2128_s26 + $0x50] sm:$0xff] %v1772_v47  ;;  %v1667_v27 = vpop.f32.mrf.mxu1 }
 0x138   : > { %1781 = vtanh.f32 %v1323_v48  ;;  %v1308_v51 = vadd.f32 %v1620_v49, %v2116_v50  ;;  %v1668_v52 = vadd.f32 %v1667_v27, %v1666_v25 }
 0x139   : > { %v1774_v53 = vpop.eup %1773 }
 0x13a   : > { %v1776_v54 = vpop.eup %1775  ;;  %1385 = vst [vmem:[%s2128_s26 + $0xd0] sm:$0xff] %v1774_v53  ;;  %1783 = vtanh.f32 %v1308_v51  ;;  %v1324_v55 = vadd.f32 %v1668_v52, %v2116_v50 }
 0x13b   : > { %1370 = vst [vmem:[%s2128_s26 + $0x58] sm:$0xff] %v1776_v54 }
 0x13c   : > { %1785 = vtanh.f32 %v1324_v55  ;;  %v1621_v56 = vpop.f32.mrf.mxu0 }
 0x13d   : > { %v1778_v57 = vpop.eup %1777 }
 0x13e   : > { %1386 = vst [vmem:[%s2128_s26 + $0xd8] sm:$0xff] %v1778_v57  ;;  %v1622_v58 = vpop.f32.mrf.mxu0 }
 0x13f   : > { %v1669_v59 = vpop.f32.mrf.mxu1  ;;  %v1623_v60 = vadd.f32 %v1622_v58, %v1621_v56 }
 0x140   : > { %v1624_v61 = vpop.f32.mrf.mxu0 }
 0x141   : > { %v1309_v62 = vadd.f32 %v1623_v60, %v2116_v50  ;;  %v1670_v63 = vpop.f32.mrf.mxu1 }
 0x142   : > { %v1671_v0 = vadd.f32 %v1670_v63, %v1669_v59  ;;  %v1625_v1 = vpop.f32.mrf.mxu0 }
 0x143   : > { %v1780_v2 = vpop.eup %1779  ;;  %1787 = vtanh.f32 %v1309_v62  ;;  %v1672_v3 = vpop.f32.mrf.mxu1  ;;  %v1626_v4 = vadd.f32 %v1625_v1, %v1624_v61 }
 0x144   : > { %1371 = vst [vmem:[%s2128_s26 + $0x60] sm:$0xff] %v1780_v2  ;;  %v1325_v5 = vadd.f32 %v1671_v0, %v2116_v50 }
 0x145   : > { %v1782_v6 = vpop.eup %1781  ;;  %v1310_v7 = vadd.f32 %v1626_v4, %v2116_v50  ;;  %v1673_v8 = vpop.f32.mrf.mxu1 }
 0x146   : > { %1387 = vst [vmem:[%s2128_s26 + $0xe0] sm:$0xff] %v1782_v6  ;;  %1789 = vtanh.f32 %v1325_v5  ;;  %v1674_v9 = vadd.f32 %v1673_v8, %v1672_v3 }
 0x147   : > { %v1784_v10 = vpop.eup %1783  ;;  %1791 = vtanh.f32 %v1310_v7 }
 0x148   : > { %1372 = vst [vmem:[%s2128_s26 + $0x68] sm:$0xff] %v1784_v10  ;;  %v1326_v11 = vadd.f32 %v1674_v9, %v2116_v50 }
 0x149   : > { %v1786_v12 = vpop.eup %1785 }
 0x14a   : > { %1388 = vst [vmem:[%s2128_s26 + $0xe8] sm:$0xff] %v1786_v12  ;;  %1793 = vtanh.f32 %v1326_v11 }
 0x150   : > { %v1788_v13 = vpop.eup %1787 }
 0x151   : > { %1373 = vst [vmem:[%s2128_s26 + $0x70] sm:$0xff] %v1788_v13 }
 0x153   : > { %v1790_v14 = vpop.eup %1789 }
 0x154   : > { %v1792_v15 = vpop.eup %1791  ;;  %1389 = vst [vmem:[%s2128_s26 + $0xf0] sm:$0xff] %v1790_v14 }
 0x155   : > { %1374 = vst [vmem:[%s2128_s26 + $0x78] sm:$0xff] %v1792_v15 }
 0x157   : > { %v1794_v16 = vpop.eup %1793 }
 0x158   : > { %1390 = vst [vmem:[%s2128_s26 + $0xf8] sm:$0xff] %v1794_v16 }
 0x159 PF: > { %s15_s20 = sadd.s32 1, %s1817_s20   ;;  %s2204_s18 = smov %s1813_s19 }
 0x15a   : > { %p12_p5 = scmp.ge.s32.totalorder %s15_s20, 4   ;;  %s2205_s19 = smov %s2207_s21 }
 0x15c   :  { %14 = sbr.rel (!%p12_p5) target bundleno = 2 (0x2), region = 90 }

</bundles_post_ra>
